<compile_context>
chip_gen: v7x
topology: tpu7x:2x2x1
jax: 0.10.0
libtpu: 0.0.40
codegen_flags: <defaults>
</compile_context>

<pallas_src>
import jax
import jax.numpy as jnp
from jax.experimental import pallas as pl
from jax.experimental.pallas import tpu as pltpu

B = 2                    # batch
C = 512                  # in_dim of Self_Attn (fixed by fc: 512 * 2)
H = W = 7                # spatial size entering AvgPool2d(7, stride=1)
N = H * W                # 49 tokens
CQK = C // 8             # 64 query/key channels
CQK_PAD = 128            # q / k padded to a full 128-lane tile
QKVP = 2 * CQK_PAD + C   # 768 fused projection width ([q|0|k|0|v])
NBLK = QKVP // 128       # 6 weight blocks of (C, 128)
OUT_FEATURES = 125
OUT_PAD = 128            # logits padded to a full 128-lane tile
FEAT = 2 * C             # 1024


def resnet_attn_head_kernel(x_ref, bq_ref, bk_ref, bv_ref, gamma_ref, bfc_ref,
                            wqkv_hbm, wfc_hbm,
                            logits_ref, feat_ref,
                            wblk, wfc_buf, sem):
    # Queue all weight DMAs up front: the six qkv blocks first (block 0 gates the
    # first matmul, the rest stream behind it), the fc weight last (only needed
    # at the very end, so its transfer hides behind the attention compute).
    qkv_cps = [pltpu.make_async_copy(wqkv_hbm.at[j], wblk.at[j], sem.at[j])
               for j in range(NBLK)]
    for cp in qkv_cps:
        cp.start()
    wfc_cp = pltpu.make_async_copy(wfc_hbm, wfc_buf, sem.at[NBLK])
    wfc_cp.start()

    x = x_ref[...]                                               # (B, N, C) f32
    xb = x.astype(jnp.bfloat16)

    # Fused q/k/v 1x1 convs, one 128-column weight block at a time (bf16 MXU,
    # f32 accumulate); each block's matmul starts as soon as its DMA lands.
    cols = []
    for j in range(NBLK):
        qkv_cps[j].wait()
        cols.append(jnp.einsum('bnc,co->bno', xb, wblk[j],
                               preferred_element_type=jnp.float32))
    q = (cols[0] + bq_ref[...]).astype(jnp.bfloat16)             # (B, N, 128), pad = 0
    k = (cols[1] + bk_ref[...]).astype(jnp.bfloat16)             # (B, N, 128), pad = 0
    v = jnp.concatenate(cols[2:], axis=-1) + bv_ref[...]         # (B, N, C)  f32

    # energy[b,i,j] = <q[b,i,:], k[b,j,:]>  (zero-padded lanes contribute nothing)
    energy = jnp.einsum('bnq,bmq->bnm', q, k,
                        preferred_element_type=jnp.float32)      # (B, N, N)
    m = jnp.max(energy, axis=-1, keepdims=True)
    e = jnp.exp(energy - m)
    # softmax(-1): multiply by an EUP reciprocal instead of a VPU divide.
    attn = e * pl.reciprocal(jnp.sum(e, axis=-1, keepdims=True), approx=True)

    # attn_out is only ever token-averaged downstream, so collapse attn @ V to a
    # pooled matvec with a_bar = mean_i attn[b,i,:]; the residual's pooled
    # contribution is exactly global_feature.
    a_bar = jnp.mean(attn, axis=1, keepdims=True).astype(jnp.bfloat16)     # (B, 1, N)
    pooled_av = jnp.einsum('bom,bmc->boc', a_bar, v.astype(jnp.bfloat16),
                           preferred_element_type=jnp.float32)[:, 0, :]    # (B, C)

    # AvgPool2d(7, stride=1) on a 7x7 map == mean over the N=49 tokens.
    global_feature = jnp.mean(x, axis=1)                          # (B, C) f32
    attn_feature = gamma_ref[0] * pooled_av + global_feature      # (B, C)
    feat = jnp.concatenate([global_feature, attn_feature], axis=1)  # (B, 2C)
    feat_ref[...] = feat

    # fc: weight pre-transposed + zero-padded to 128 lanes host-side -> lane-dense
    # bf16 matmul with an unmasked 128-wide store.
    wfc_cp.wait()
    logits_ref[...] = jnp.dot(feat.astype(jnp.bfloat16), wfc_buf[...],
                              preferred_element_type=jnp.float32) + bfc_ref[...]


def prepare_params(p):
    """Fuse / pad / transpose the PyTorch-layout params into kernel layout."""
    wq_pad = jnp.zeros((CQK_PAD, C), jnp.float32).at[:CQK].set(p['wq'])
    wk_pad = jnp.zeros((CQK_PAD, C), jnp.float32).at[:CQK].set(p['wk'])
    w_all = jnp.concatenate([wq_pad, wk_pad, p['wv']], axis=0)        # (768, C)
    wqkv = w_all.T.reshape(C, NBLK, 128).transpose(1, 0, 2)           # (NBLK, C, 128)
    bq = jnp.zeros((1, CQK_PAD), jnp.float32).at[:, :CQK].set(p['bq'])
    bk = jnp.zeros((1, CQK_PAD), jnp.float32).at[:, :CQK].set(p['bk'])
    wfc_t = jnp.zeros((FEAT, OUT_PAD), jnp.float32).at[:, :OUT_FEATURES].set(p['wfc'].T)
    bfc = jnp.zeros((1, OUT_PAD), jnp.float32).at[:, :OUT_FEATURES].set(p['bfc'])
    return {
        'wqkv': wqkv.astype(jnp.bfloat16),   # bf16 halves the dominant weight DMA
        'bq': bq, 'bk': bk, 'bv': p['bv'],   # biases stay f32
        'gamma': p['gamma'],
        'wfc': wfc_t.astype(jnp.bfloat16),
        'bfc': bfc,
    }


@jax.jit
def resnet34_attn_head(x_nchw, kp):
    # NCHW -> (B, N, C) channel-last so C sits on the 128-lane axis; the relayout
    # is allowed to fuse into the pallas_call's first operand (no separate HBM
    # round-trip), and the whole head compiles into one executable.
    x = jnp.transpose(x_nchw, (0, 2, 3, 1)).reshape(B, N, C)
    vmem = pl.BlockSpec(memory_space=pltpu.MemorySpace.VMEM)
    smem = pl.BlockSpec(memory_space=pltpu.MemorySpace.SMEM)
    hbm = pl.BlockSpec(memory_space=pl.ANY)
    logits_pad, feat = pl.pallas_call(
        resnet_attn_head_kernel,
        out_shape=(jax.ShapeDtypeStruct((B, OUT_PAD), jnp.float32),
                   jax.ShapeDtypeStruct((B, FEAT), jnp.float32)),
        in_specs=[vmem, vmem, vmem, vmem, smem, vmem, hbm, hbm],
        out_specs=(vmem, vmem),
        scratch_shapes=[pltpu.VMEM((NBLK, C, 128), jnp.bfloat16),
                        pltpu.VMEM((FEAT, OUT_PAD), jnp.bfloat16),
                        pltpu.SemaphoreType.DMA((NBLK + 1,))],
        compiler_params=pltpu.CompilerParams(
            allow_input_fusion=[True] + [False] * 7),
    )(x, kp['bq'], kp['bk'], kp['bv'], kp['gamma'], kp['bfc'],
      kp['wqkv'], kp['wfc'])
    return logits_pad[:, :OUT_FEATURES], feat


def make_params(key):
    ks = jax.random.split(key, 8)
    s = 0.02
    return {
        'wq':  s * jax.random.normal(ks[0], (CQK, C), jnp.float32),
        'bq':  s * jax.random.normal(ks[1], (1, CQK), jnp.float32),
        'wk':  s * jax.random.normal(ks[2], (CQK, C), jnp.float32),
        'bk':  s * jax.random.normal(ks[3], (1, CQK), jnp.float32),
        'wv':  s * jax.random.normal(ks[4], (C, C), jnp.float32),
        'bv':  s * jax.random.normal(ks[5], (1, C), jnp.float32),
        # nn.Parameter(t.zeros(1)) in __init__; use a nonzero value here so the
        # attention branch actually contributes in the test.
        'gamma': jnp.array([0.5], jnp.float32),
        'wfc': s * jax.random.normal(ks[6], (OUT_FEATURES, FEAT), jnp.float32),
        'bfc': s * jax.random.normal(ks[7], (1, OUT_FEATURES), jnp.float32),
    }


def reference(x_nchw, p):
    # Plain-JAX f32 reference of the same PyTorch semantics (full attn_out path).
    x = jnp.transpose(x_nchw, (0, 2, 3, 1)).reshape(B, N, C)
    q = jnp.einsum('bnc,qc->bnq', x, p['wq']) + p['bq']
    k = jnp.einsum('bnc,kc->bnk', x, p['wk']) + p['bk']
    v = jnp.einsum('bnc,vc->bnv', x, p['wv']) + p['bv']
    attn = jax.nn.softmax(jnp.einsum('bnq,bmq->bnm', q, k), axis=-1)
    out = p['gamma'][0] * jnp.einsum('bnm,bmc->bnc', attn, v) + x
    feat = jnp.concatenate([jnp.mean(x, axis=1), jnp.mean(out, axis=1)], axis=1)
    logits = feat @ p['wfc'].T + p['bfc']
    return logits, feat


if __name__ == "__main__":
    key = jax.random.PRNGKey(0)
    kx, kp = jax.random.split(key)
    # Backbone output feature map (B, 512, 7, 7), NCHW as in PyTorch.
    x = jax.random.normal(kx, (B, C, H, W), jnp.float32)
    params = make_params(kp)
    kparams = prepare_params(params)

    logits, feat = jax.block_until_ready(resnet34_attn_head(x, kparams))
    ref_logits, ref_feat = reference(x, params)

    assert logits.shape == (B, OUT_FEATURES) and feat.shape == (B, FEAT)
    # Tolerances account for bf16 MXU operands (f32 accumulation) and the
    # approx softmax reciprocal; observed error is ~1e-3, bound is 2e-2.
    assert jnp.allclose(logits, ref_logits, rtol=2e-2, atol=2e-2)
    assert jnp.allclose(feat, ref_feat, rtol=2e-2, atol=2e-2)
    print("KERNEL_OK")
</pallas_src>

<mosaic_0001>
module attributes {stable_mosaic.version = 11 : i64} {
  func.func @resnet_attn_head_kernel(%arg0: memref<2x49x512xf32, #tpu.memory_space<vmem>>, %arg1: memref<1x128xf32, #tpu.memory_space<vmem>>, %arg2: memref<1x128xf32, #tpu.memory_space<vmem>>, %arg3: memref<1x512xf32, #tpu.memory_space<vmem>>, %arg4: memref<1xf32, #tpu.memory_space<smem>>, %arg5: memref<1x128xf32, #tpu.memory_space<vmem>>, %arg6: memref<6x512x128xbf16, #tpu.memory_space<any>>, %arg7: memref<1024x128xbf16, #tpu.memory_space<any>>, %arg8: memref<2x128xf32, #tpu.memory_space<vmem>>, %arg9: memref<2x1024xf32, #tpu.memory_space<vmem>>, %arg10: memref<6x512x128xbf16, #tpu.memory_space<vmem>>, %arg11: memref<1024x128xbf16, #tpu.memory_space<vmem>>, %arg12: memref<7x!tpu.dma_semaphore, #tpu.memory_space<semaphore_mem>>) attributes {dimension_semantics = [], scalar_prefetch = 0 : i64, scratch_operands = 3 : i64, tpu.core_type = #tpu.core_type<tc>} {
    %c0_i32 = arith.constant 0 : i32
    %c0_i32_0 = arith.constant 0 : i32
    %c0_i32_1 = arith.constant 0 : i32
    %c0_i32_2 = arith.constant 0 : i32
    %c0_i32_3 = arith.constant 0 : i32
    %0 = tpu.memref_slice %arg6[%c0_i32, %c0_i32_2, %c0_i32_3] : memref<6x512x128xbf16, #tpu.memory_space<any>> -> memref<1x512x128xbf16, #tpu.memory_space<any>>
    %1 = tpu.memref_squeeze %0 : memref<1x512x128xbf16, #tpu.memory_space<any>> -> memref<512x128xbf16, #tpu.memory_space<any>>
    %c0_i32_4 = arith.constant 0 : i32
    %c0_i32_5 = arith.constant 0 : i32
    %2 = tpu.memref_slice %arg10[%c0_i32_0, %c0_i32_4, %c0_i32_5] : memref<6x512x128xbf16, #tpu.memory_space<vmem>> -> memref<1x512x128xbf16, #tpu.memory_space<vmem>>
    %3 = tpu.memref_squeeze %2 : memref<1x512x128xbf16, #tpu.memory_space<vmem>> -> memref<512x128xbf16, #tpu.memory_space<vmem>>
    %4 = tpu.memref_slice %arg12[%c0_i32_1] : memref<7x!tpu.dma_semaphore, #tpu.memory_space<semaphore_mem>> -> memref<1x!tpu.dma_semaphore, #tpu.memory_space<semaphore_mem>>
    %5 = tpu.memref_squeeze %4 : memref<1x!tpu.dma_semaphore, #tpu.memory_space<semaphore_mem>> -> memref<!tpu.dma_semaphore, #tpu.memory_space<semaphore_mem>>
    tpu.enqueue_dma source(%1 : memref<512x128xbf16, #tpu.memory_space<any>>) target(%3 : memref<512x128xbf16, #tpu.memory_space<vmem>>) target_semaphore(%5 : memref<!tpu.dma_semaphore, #tpu.memory_space<semaphore_mem>>)
    %c1_i32 = arith.constant 1 : i32
    %c1_i32_6 = arith.constant 1 : i32
    %c1_i32_7 = arith.constant 1 : i32
    %c0_i32_8 = arith.constant 0 : i32
    %c0_i32_9 = arith.constant 0 : i32
    %6 = tpu.memref_slice %arg6[%c1_i32, %c0_i32_8, %c0_i32_9] : memref<6x512x128xbf16, #tpu.memory_space<any>> -> memref<1x512x128xbf16, #tpu.memory_space<any>>
    %7 = tpu.memref_squeeze %6 : memref<1x512x128xbf16, #tpu.memory_space<any>> -> memref<512x128xbf16, #tpu.memory_space<any>>
    %c0_i32_10 = arith.constant 0 : i32
    %c0_i32_11 = arith.constant 0 : i32
    %8 = tpu.memref_slice %arg10[%c1_i32_6, %c0_i32_10, %c0_i32_11] : memref<6x512x128xbf16, #tpu.memory_space<vmem>> -> memref<1x512x128xbf16, #tpu.memory_space<vmem>>
    %9 = tpu.memref_squeeze %8 : memref<1x512x128xbf16, #tpu.memory_space<vmem>> -> memref<512x128xbf16, #tpu.memory_space<vmem>>
    %10 = tpu.memref_slice %arg12[%c1_i32_7] : memref<7x!tpu.dma_semaphore, #tpu.memory_space<semaphore_mem>> -> memref<1x!tpu.dma_semaphore, #tpu.memory_space<semaphore_mem>>
    %11 = tpu.memref_squeeze %10 : memref<1x!tpu.dma_semaphore, #tpu.memory_space<semaphore_mem>> -> memref<!tpu.dma_semaphore, #tpu.memory_space<semaphore_mem>>
    tpu.enqueue_dma source(%7 : memref<512x128xbf16, #tpu.memory_space<any>>) target(%9 : memref<512x128xbf16, #tpu.memory_space<vmem>>) target_semaphore(%11 : memref<!tpu.dma_semaphore, #tpu.memory_space<semaphore_mem>>)
    %c2_i32 = arith.constant 2 : i32
    %c2_i32_12 = arith.constant 2 : i32
    %c2_i32_13 = arith.constant 2 : i32
    %c0_i32_14 = arith.constant 0 : i32
    %c0_i32_15 = arith.constant 0 : i32
    %12 = tpu.memref_slice %arg6[%c2_i32, %c0_i32_14, %c0_i32_15] : memref<6x512x128xbf16, #tpu.memory_space<any>> -> memref<1x512x128xbf16, #tpu.memory_space<any>>
    %13 = tpu.memref_squeeze %12 : memref<1x512x128xbf16, #tpu.memory_space<any>> -> memref<512x128xbf16, #tpu.memory_space<any>>
    %c0_i32_16 = arith.constant 0 : i32
    %c0_i32_17 = arith.constant 0 : i32
    %14 = tpu.memref_slice %arg10[%c2_i32_12, %c0_i32_16, %c0_i32_17] : memref<6x512x128xbf16, #tpu.memory_space<vmem>> -> memref<1x512x128xbf16, #tpu.memory_space<vmem>>
    %15 = tpu.memref_squeeze %14 : memref<1x512x128xbf16, #tpu.memory_space<vmem>> -> memref<512x128xbf16, #tpu.memory_space<vmem>>
    %16 = tpu.memref_slice %arg12[%c2_i32_13] : memref<7x!tpu.dma_semaphore, #tpu.memory_space<semaphore_mem>> -> memref<1x!tpu.dma_semaphore, #tpu.memory_space<semaphore_mem>>
    %17 = tpu.memref_squeeze %16 : memref<1x!tpu.dma_semaphore, #tpu.memory_space<semaphore_mem>> -> memref<!tpu.dma_semaphore, #tpu.memory_space<semaphore_mem>>
    tpu.enqueue_dma source(%13 : memref<512x128xbf16, #tpu.memory_space<any>>) target(%15 : memref<512x128xbf16, #tpu.memory_space<vmem>>) target_semaphore(%17 : memref<!tpu.dma_semaphore, #tpu.memory_space<semaphore_mem>>)
    %c3_i32 = arith.constant 3 : i32
    %c3_i32_18 = arith.constant 3 : i32
    %c3_i32_19 = arith.constant 3 : i32
    %c0_i32_20 = arith.constant 0 : i32
    %c0_i32_21 = arith.constant 0 : i32
    %18 = tpu.memref_slice %arg6[%c3_i32, %c0_i32_20, %c0_i32_21] : memref<6x512x128xbf16, #tpu.memory_space<any>> -> memref<1x512x128xbf16, #tpu.memory_space<any>>
    %19 = tpu.memref_squeeze %18 : memref<1x512x128xbf16, #tpu.memory_space<any>> -> memref<512x128xbf16, #tpu.memory_space<any>>
    %c0_i32_22 = arith.constant 0 : i32
    %c0_i32_23 = arith.constant 0 : i32
    %20 = tpu.memref_slice %arg10[%c3_i32_18, %c0_i32_22, %c0_i32_23] : memref<6x512x128xbf16, #tpu.memory_space<vmem>> -> memref<1x512x128xbf16, #tpu.memory_space<vmem>>
    %21 = tpu.memref_squeeze %20 : memref<1x512x128xbf16, #tpu.memory_space<vmem>> -> memref<512x128xbf16, #tpu.memory_space<vmem>>
    %22 = tpu.memref_slice %arg12[%c3_i32_19] : memref<7x!tpu.dma_semaphore, #tpu.memory_space<semaphore_mem>> -> memref<1x!tpu.dma_semaphore, #tpu.memory_space<semaphore_mem>>
    %23 = tpu.memref_squeeze %22 : memref<1x!tpu.dma_semaphore, #tpu.memory_space<semaphore_mem>> -> memref<!tpu.dma_semaphore, #tpu.memory_space<semaphore_mem>>
    tpu.enqueue_dma source(%19 : memref<512x128xbf16, #tpu.memory_space<any>>) target(%21 : memref<512x128xbf16, #tpu.memory_space<vmem>>) target_semaphore(%23 : memref<!tpu.dma_semaphore, #tpu.memory_space<semaphore_mem>>)
    %c4_i32 = arith.constant 4 : i32
    %c4_i32_24 = arith.constant 4 : i32
    %c4_i32_25 = arith.constant 4 : i32
    %c0_i32_26 = arith.constant 0 : i32
    %c0_i32_27 = arith.constant 0 : i32
    %24 = tpu.memref_slice %arg6[%c4_i32, %c0_i32_26, %c0_i32_27] : memref<6x512x128xbf16, #tpu.memory_space<any>> -> memref<1x512x128xbf16, #tpu.memory_space<any>>
    %25 = tpu.memref_squeeze %24 : memref<1x512x128xbf16, #tpu.memory_space<any>> -> memref<512x128xbf16, #tpu.memory_space<any>>
    %c0_i32_28 = arith.constant 0 : i32
    %c0_i32_29 = arith.constant 0 : i32
    %26 = tpu.memref_slice %arg10[%c4_i32_24, %c0_i32_28, %c0_i32_29] : memref<6x512x128xbf16, #tpu.memory_space<vmem>> -> memref<1x512x128xbf16, #tpu.memory_space<vmem>>
    %27 = tpu.memref_squeeze %26 : memref<1x512x128xbf16, #tpu.memory_space<vmem>> -> memref<512x128xbf16, #tpu.memory_space<vmem>>
    %28 = tpu.memref_slice %arg12[%c4_i32_25] : memref<7x!tpu.dma_semaphore, #tpu.memory_space<semaphore_mem>> -> memref<1x!tpu.dma_semaphore, #tpu.memory_space<semaphore_mem>>
    %29 = tpu.memref_squeeze %28 : memref<1x!tpu.dma_semaphore, #tpu.memory_space<semaphore_mem>> -> memref<!tpu.dma_semaphore, #tpu.memory_space<semaphore_mem>>
    tpu.enqueue_dma source(%25 : memref<512x128xbf16, #tpu.memory_space<any>>) target(%27 : memref<512x128xbf16, #tpu.memory_space<vmem>>) target_semaphore(%29 : memref<!tpu.dma_semaphore, #tpu.memory_space<semaphore_mem>>)
    %c5_i32 = arith.constant 5 : i32
    %c5_i32_30 = arith.constant 5 : i32
    %c5_i32_31 = arith.constant 5 : i32
    %c0_i32_32 = arith.constant 0 : i32
    %c0_i32_33 = arith.constant 0 : i32
    %30 = tpu.memref_slice %arg6[%c5_i32, %c0_i32_32, %c0_i32_33] : memref<6x512x128xbf16, #tpu.memory_space<any>> -> memref<1x512x128xbf16, #tpu.memory_space<any>>
    %31 = tpu.memref_squeeze %30 : memref<1x512x128xbf16, #tpu.memory_space<any>> -> memref<512x128xbf16, #tpu.memory_space<any>>
    %c0_i32_34 = arith.constant 0 : i32
    %c0_i32_35 = arith.constant 0 : i32
    %32 = tpu.memref_slice %arg10[%c5_i32_30, %c0_i32_34, %c0_i32_35] : memref<6x512x128xbf16, #tpu.memory_space<vmem>> -> memref<1x512x128xbf16, #tpu.memory_space<vmem>>
    %33 = tpu.memref_squeeze %32 : memref<1x512x128xbf16, #tpu.memory_space<vmem>> -> memref<512x128xbf16, #tpu.memory_space<vmem>>
    %34 = tpu.memref_slice %arg12[%c5_i32_31] : memref<7x!tpu.dma_semaphore, #tpu.memory_space<semaphore_mem>> -> memref<1x!tpu.dma_semaphore, #tpu.memory_space<semaphore_mem>>
    %35 = tpu.memref_squeeze %34 : memref<1x!tpu.dma_semaphore, #tpu.memory_space<semaphore_mem>> -> memref<!tpu.dma_semaphore, #tpu.memory_space<semaphore_mem>>
    tpu.enqueue_dma source(%31 : memref<512x128xbf16, #tpu.memory_space<any>>) target(%33 : memref<512x128xbf16, #tpu.memory_space<vmem>>) target_semaphore(%35 : memref<!tpu.dma_semaphore, #tpu.memory_space<semaphore_mem>>)
    %c6_i32 = arith.constant 6 : i32
    %36 = tpu.memref_slice %arg12[%c6_i32] : memref<7x!tpu.dma_semaphore, #tpu.memory_space<semaphore_mem>> -> memref<1x!tpu.dma_semaphore, #tpu.memory_space<semaphore_mem>>
    %37 = tpu.memref_squeeze %36 : memref<1x!tpu.dma_semaphore, #tpu.memory_space<semaphore_mem>> -> memref<!tpu.dma_semaphore, #tpu.memory_space<semaphore_mem>>
    tpu.enqueue_dma source(%arg7 : memref<1024x128xbf16, #tpu.memory_space<any>>) target(%arg11 : memref<1024x128xbf16, #tpu.memory_space<vmem>>) target_semaphore(%37 : memref<!tpu.dma_semaphore, #tpu.memory_space<semaphore_mem>>)
    %c0 = arith.constant 0 : index
    %c0_36 = arith.constant 0 : index
    %c0_37 = arith.constant 0 : index
    %38 = vector.load %arg0[%c0, %c0_36, %c0_37] : memref<2x49x512xf32, #tpu.memory_space<vmem>>, vector<2x49x512xf32>
    %39 = arith.truncf %38 : vector<2x49x512xf32> to vector<2x49x512xbf16>
    %c0_i32_38 = arith.constant 0 : i32
    %c0_i32_39 = arith.constant 0 : i32
    %c0_i32_40 = arith.constant 0 : i32
    %c0_i32_41 = arith.constant 0 : i32
    %c0_i32_42 = arith.constant 0 : i32
    %40 = tpu.memref_slice %arg6[%c0_i32_38, %c0_i32_41, %c0_i32_42] : memref<6x512x128xbf16, #tpu.memory_space<any>> -> memref<1x512x128xbf16, #tpu.memory_space<any>>
    %41 = tpu.memref_squeeze %40 : memref<1x512x128xbf16, #tpu.memory_space<any>> -> memref<512x128xbf16, #tpu.memory_space<any>>
    %c0_i32_43 = arith.constant 0 : i32
    %c0_i32_44 = arith.constant 0 : i32
    %42 = tpu.memref_slice %arg10[%c0_i32_39, %c0_i32_43, %c0_i32_44] : memref<6x512x128xbf16, #tpu.memory_space<vmem>> -> memref<1x512x128xbf16, #tpu.memory_space<vmem>>
    %43 = tpu.memref_squeeze %42 : memref<1x512x128xbf16, #tpu.memory_space<vmem>> -> memref<512x128xbf16, #tpu.memory_space<vmem>>
    %44 = tpu.memref_slice %arg12[%c0_i32_40] : memref<7x!tpu.dma_semaphore, #tpu.memory_space<semaphore_mem>> -> memref<1x!tpu.dma_semaphore, #tpu.memory_space<semaphore_mem>>
    %45 = tpu.memref_squeeze %44 : memref<1x!tpu.dma_semaphore, #tpu.memory_space<semaphore_mem>> -> memref<!tpu.dma_semaphore, #tpu.memory_space<semaphore_mem>>
    tpu.wait_dma2 semaphore(%45 : memref<!tpu.dma_semaphore, #tpu.memory_space<semaphore_mem>>) src(%41 : memref<512x128xbf16, #tpu.memory_space<any>>) dst(%43 : memref<512x128xbf16, #tpu.memory_space<vmem>>)
    %c0_45 = arith.constant 0 : index
    %c0_46 = arith.constant 0 : index
    %c0_47 = arith.constant 0 : index
    %46 = vector.load %arg10[%c0_45, %c0_46, %c0_47] : memref<6x512x128xbf16, #tpu.memory_space<vmem>>, vector<1x512x128xbf16>
    %47 = vector.shape_cast %46 : vector<1x512x128xbf16> to vector<512x128xbf16>
    "tpu.trace_start"() <{level = 10 : i32, message = "bnc,co->bno"}> : () -> ()
    %cst = arith.constant dense<0.000000e+00> : vector<2x49x128xf32>
    %48 = tpu.matmul %39, %47, %cst {dimension_numbers = #tpu.dot_dimension_numbers<[2], [0], [0, 1], [1], [0, 0, 0, 1, 1, 1], [], []>} : vector<2x49x512xbf16>, vector<512x128xbf16>, vector<2x49x128xf32> -> vector<2x49x128xf32>
    %c1_i32_48 = arith.constant 1 : i32
    %c1_i32_49 = arith.constant 1 : i32
    %c1_i32_50 = arith.constant 1 : i32
    "tpu.trace_stop"() : () -> ()
    %c0_i32_51 = arith.constant 0 : i32
    %c0_i32_52 = arith.constant 0 : i32
    %49 = tpu.memref_slice %arg6[%c1_i32_48, %c0_i32_51, %c0_i32_52] : memref<6x512x128xbf16, #tpu.memory_space<any>> -> memref<1x512x128xbf16, #tpu.memory_space<any>>
    %50 = tpu.memref_squeeze %49 : memref<1x512x128xbf16, #tpu.memory_space<any>> -> memref<512x128xbf16, #tpu.memory_space<any>>
    %c0_i32_53 = arith.constant 0 : i32
    %c0_i32_54 = arith.constant 0 : i32
    %51 = tpu.memref_slice %arg10[%c1_i32_49, %c0_i32_53, %c0_i32_54] : memref<6x512x128xbf16, #tpu.memory_space<vmem>> -> memref<1x512x128xbf16, #tpu.memory_space<vmem>>
    %52 = tpu.memref_squeeze %51 : memref<1x512x128xbf16, #tpu.memory_space<vmem>> -> memref<512x128xbf16, #tpu.memory_space<vmem>>
    %53 = tpu.memref_slice %arg12[%c1_i32_50] : memref<7x!tpu.dma_semaphore, #tpu.memory_space<semaphore_mem>> -> memref<1x!tpu.dma_semaphore, #tpu.memory_space<semaphore_mem>>
    %54 = tpu.memref_squeeze %53 : memref<1x!tpu.dma_semaphore, #tpu.memory_space<semaphore_mem>> -> memref<!tpu.dma_semaphore, #tpu.memory_space<semaphore_mem>>
    tpu.wait_dma2 semaphore(%54 : memref<!tpu.dma_semaphore, #tpu.memory_space<semaphore_mem>>) src(%50 : memref<512x128xbf16, #tpu.memory_space<any>>) dst(%52 : memref<512x128xbf16, #tpu.memory_space<vmem>>)
    %c1 = arith.constant 1 : index
    %c0_55 = arith.constant 0 : index
    %c0_56 = arith.constant 0 : index
    %55 = vector.load %arg10[%c1, %c0_55, %c0_56] : memref<6x512x128xbf16, #tpu.memory_space<vmem>>, vector<1x512x128xbf16>
    %56 = vector.shape_cast %55 : vector<1x512x128xbf16> to vector<512x128xbf16>
    "tpu.trace_start"() <{level = 10 : i32, message = "bnc,co->bno"}> : () -> ()
    %cst_57 = arith.constant dense<0.000000e+00> : vector<2x49x128xf32>
    %57 = tpu.matmul %39, %56, %cst_57 {dimension_numbers = #tpu.dot_dimension_numbers<[2], [0], [0, 1], [1], [0, 0, 0, 1, 1, 1], [], []>} : vector<2x49x512xbf16>, vector<512x128xbf16>, vector<2x49x128xf32> -> vector<2x49x128xf32>
    %c2_i32_58 = arith.constant 2 : i32
    %c2_i32_59 = arith.constant 2 : i32
    %c2_i32_60 = arith.constant 2 : i32
    "tpu.trace_stop"() : () -> ()
    %c0_i32_61 = arith.constant 0 : i32
    %c0_i32_62 = arith.constant 0 : i32
    %58 = tpu.memref_slice %arg6[%c2_i32_58, %c0_i32_61, %c0_i32_62] : memref<6x512x128xbf16, #tpu.memory_space<any>> -> memref<1x512x128xbf16, #tpu.memory_space<any>>
    %59 = tpu.memref_squeeze %58 : memref<1x512x128xbf16, #tpu.memory_space<any>> -> memref<512x128xbf16, #tpu.memory_space<any>>
    %c0_i32_63 = arith.constant 0 : i32
    %c0_i32_64 = arith.constant 0 : i32
    %60 = tpu.memref_slice %arg10[%c2_i32_59, %c0_i32_63, %c0_i32_64] : memref<6x512x128xbf16, #tpu.memory_space<vmem>> -> memref<1x512x128xbf16, #tpu.memory_space<vmem>>
    %61 = tpu.memref_squeeze %60 : memref<1x512x128xbf16, #tpu.memory_space<vmem>> -> memref<512x128xbf16, #tpu.memory_space<vmem>>
    %62 = tpu.memref_slice %arg12[%c2_i32_60] : memref<7x!tpu.dma_semaphore, #tpu.memory_space<semaphore_mem>> -> memref<1x!tpu.dma_semaphore, #tpu.memory_space<semaphore_mem>>
    %63 = tpu.memref_squeeze %62 : memref<1x!tpu.dma_semaphore, #tpu.memory_space<semaphore_mem>> -> memref<!tpu.dma_semaphore, #tpu.memory_space<semaphore_mem>>
    tpu.wait_dma2 semaphore(%63 : memref<!tpu.dma_semaphore, #tpu.memory_space<semaphore_mem>>) src(%59 : memref<512x128xbf16, #tpu.memory_space<any>>) dst(%61 : memref<512x128xbf16, #tpu.memory_space<vmem>>)
    %c2 = arith.constant 2 : index
    %c0_65 = arith.constant 0 : index
    %c0_66 = arith.constant 0 : index
    %64 = vector.load %arg10[%c2, %c0_65, %c0_66] : memref<6x512x128xbf16, #tpu.memory_space<vmem>>, vector<1x512x128xbf16>
    %65 = vector.shape_cast %64 : vector<1x512x128xbf16> to vector<512x128xbf16>
    "tpu.trace_start"() <{level = 10 : i32, message = "bnc,co->bno"}> : () -> ()
    %cst_67 = arith.constant dense<0.000000e+00> : vector<2x49x128xf32>
    %66 = tpu.matmul %39, %65, %cst_67 {dimension_numbers = #tpu.dot_dimension_numbers<[2], [0], [0, 1], [1], [0, 0, 0, 1, 1, 1], [], []>} : vector<2x49x512xbf16>, vector<512x128xbf16>, vector<2x49x128xf32> -> vector<2x49x128xf32>
    %c3_i32_68 = arith.constant 3 : i32
    %c3_i32_69 = arith.constant 3 : i32
    %c3_i32_70 = arith.constant 3 : i32
    "tpu.trace_stop"() : () -> ()
    %c0_i32_71 = arith.constant 0 : i32
    %c0_i32_72 = arith.constant 0 : i32
    %67 = tpu.memref_slice %arg6[%c3_i32_68, %c0_i32_71, %c0_i32_72] : memref<6x512x128xbf16, #tpu.memory_space<any>> -> memref<1x512x128xbf16, #tpu.memory_space<any>>
    %68 = tpu.memref_squeeze %67 : memref<1x512x128xbf16, #tpu.memory_space<any>> -> memref<512x128xbf16, #tpu.memory_space<any>>
    %c0_i32_73 = arith.constant 0 : i32
    %c0_i32_74 = arith.constant 0 : i32
    %69 = tpu.memref_slice %arg10[%c3_i32_69, %c0_i32_73, %c0_i32_74] : memref<6x512x128xbf16, #tpu.memory_space<vmem>> -> memref<1x512x128xbf16, #tpu.memory_space<vmem>>
    %70 = tpu.memref_squeeze %69 : memref<1x512x128xbf16, #tpu.memory_space<vmem>> -> memref<512x128xbf16, #tpu.memory_space<vmem>>
    %71 = tpu.memref_slice %arg12[%c3_i32_70] : memref<7x!tpu.dma_semaphore, #tpu.memory_space<semaphore_mem>> -> memref<1x!tpu.dma_semaphore, #tpu.memory_space<semaphore_mem>>
    %72 = tpu.memref_squeeze %71 : memref<1x!tpu.dma_semaphore, #tpu.memory_space<semaphore_mem>> -> memref<!tpu.dma_semaphore, #tpu.memory_space<semaphore_mem>>
    tpu.wait_dma2 semaphore(%72 : memref<!tpu.dma_semaphore, #tpu.memory_space<semaphore_mem>>) src(%68 : memref<512x128xbf16, #tpu.memory_space<any>>) dst(%70 : memref<512x128xbf16, #tpu.memory_space<vmem>>)
    %c3 = arith.constant 3 : index
    %c0_75 = arith.constant 0 : index
    %c0_76 = arith.constant 0 : index
    %73 = vector.load %arg10[%c3, %c0_75, %c0_76] : memref<6x512x128xbf16, #tpu.memory_space<vmem>>, vector<1x512x128xbf16>
    %74 = vector.shape_cast %73 : vector<1x512x128xbf16> to vector<512x128xbf16>
    "tpu.trace_start"() <{level = 10 : i32, message = "bnc,co->bno"}> : () -> ()
    %cst_77 = arith.constant dense<0.000000e+00> : vector<2x49x128xf32>
    %75 = tpu.matmul %39, %74, %cst_77 {dimension_numbers = #tpu.dot_dimension_numbers<[2], [0], [0, 1], [1], [0, 0, 0, 1, 1, 1], [], []>} : vector<2x49x512xbf16>, vector<512x128xbf16>, vector<2x49x128xf32> -> vector<2x49x128xf32>
    %c4_i32_78 = arith.constant 4 : i32
    %c4_i32_79 = arith.constant 4 : i32
    %c4_i32_80 = arith.constant 4 : i32
    "tpu.trace_stop"() : () -> ()
    %c0_i32_81 = arith.constant 0 : i32
    %c0_i32_82 = arith.constant 0 : i32
    %76 = tpu.memref_slice %arg6[%c4_i32_78, %c0_i32_81, %c0_i32_82] : memref<6x512x128xbf16, #tpu.memory_space<any>> -> memref<1x512x128xbf16, #tpu.memory_space<any>>
    %77 = tpu.memref_squeeze %76 : memref<1x512x128xbf16, #tpu.memory_space<any>> -> memref<512x128xbf16, #tpu.memory_space<any>>
    %c0_i32_83 = arith.constant 0 : i32
    %c0_i32_84 = arith.constant 0 : i32
    %78 = tpu.memref_slice %arg10[%c4_i32_79, %c0_i32_83, %c0_i32_84] : memref<6x512x128xbf16, #tpu.memory_space<vmem>> -> memref<1x512x128xbf16, #tpu.memory_space<vmem>>
    %79 = tpu.memref_squeeze %78 : memref<1x512x128xbf16, #tpu.memory_space<vmem>> -> memref<512x128xbf16, #tpu.memory_space<vmem>>
    %80 = tpu.memref_slice %arg12[%c4_i32_80] : memref<7x!tpu.dma_semaphore, #tpu.memory_space<semaphore_mem>> -> memref<1x!tpu.dma_semaphore, #tpu.memory_space<semaphore_mem>>
    %81 = tpu.memref_squeeze %80 : memref<1x!tpu.dma_semaphore, #tpu.memory_space<semaphore_mem>> -> memref<!tpu.dma_semaphore, #tpu.memory_space<semaphore_mem>>
    tpu.wait_dma2 semaphore(%81 : memref<!tpu.dma_semaphore, #tpu.memory_space<semaphore_mem>>) src(%77 : memref<512x128xbf16, #tpu.memory_space<any>>) dst(%79 : memref<512x128xbf16, #tpu.memory_space<vmem>>)
    %c4 = arith.constant 4 : index
    %c0_85 = arith.constant 0 : index
    %c0_86 = arith.constant 0 : index
    %82 = vector.load %arg10[%c4, %c0_85, %c0_86] : memref<6x512x128xbf16, #tpu.memory_space<vmem>>, vector<1x512x128xbf16>
    %83 = vector.shape_cast %82 : vector<1x512x128xbf16> to vector<512x128xbf16>
    "tpu.trace_start"() <{level = 10 : i32, message = "bnc,co->bno"}> : () -> ()
    %cst_87 = arith.constant dense<0.000000e+00> : vector<2x49x128xf32>
    %84 = tpu.matmul %39, %83, %cst_87 {dimension_numbers = #tpu.dot_dimension_numbers<[2], [0], [0, 1], [1], [0, 0, 0, 1, 1, 1], [], []>} : vector<2x49x512xbf16>, vector<512x128xbf16>, vector<2x49x128xf32> -> vector<2x49x128xf32>
    %c5_i32_88 = arith.constant 5 : i32
    %c5_i32_89 = arith.constant 5 : i32
    %c5_i32_90 = arith.constant 5 : i32
    "tpu.trace_stop"() : () -> ()
    %c0_i32_91 = arith.constant 0 : i32
    %c0_i32_92 = arith.constant 0 : i32
    %85 = tpu.memref_slice %arg6[%c5_i32_88, %c0_i32_91, %c0_i32_92] : memref<6x512x128xbf16, #tpu.memory_space<any>> -> memref<1x512x128xbf16, #tpu.memory_space<any>>
    %86 = tpu.memref_squeeze %85 : memref<1x512x128xbf16, #tpu.memory_space<any>> -> memref<512x128xbf16, #tpu.memory_space<any>>
    %c0_i32_93 = arith.constant 0 : i32
    %c0_i32_94 = arith.constant 0 : i32
    %87 = tpu.memref_slice %arg10[%c5_i32_89, %c0_i32_93, %c0_i32_94] : memref<6x512x128xbf16, #tpu.memory_space<vmem>> -> memref<1x512x128xbf16, #tpu.memory_space<vmem>>
    %88 = tpu.memref_squeeze %87 : memref<1x512x128xbf16, #tpu.memory_space<vmem>> -> memref<512x128xbf16, #tpu.memory_space<vmem>>
    %89 = tpu.memref_slice %arg12[%c5_i32_90] : memref<7x!tpu.dma_semaphore, #tpu.memory_space<semaphore_mem>> -> memref<1x!tpu.dma_semaphore, #tpu.memory_space<semaphore_mem>>
    %90 = tpu.memref_squeeze %89 : memref<1x!tpu.dma_semaphore, #tpu.memory_space<semaphore_mem>> -> memref<!tpu.dma_semaphore, #tpu.memory_space<semaphore_mem>>
    tpu.wait_dma2 semaphore(%90 : memref<!tpu.dma_semaphore, #tpu.memory_space<semaphore_mem>>) src(%86 : memref<512x128xbf16, #tpu.memory_space<any>>) dst(%88 : memref<512x128xbf16, #tpu.memory_space<vmem>>)
    %c5 = arith.constant 5 : index
    %c0_95 = arith.constant 0 : index
    %c0_96 = arith.constant 0 : index
    %91 = vector.load %arg10[%c5, %c0_95, %c0_96] : memref<6x512x128xbf16, #tpu.memory_space<vmem>>, vector<1x512x128xbf16>
    %92 = vector.shape_cast %91 : vector<1x512x128xbf16> to vector<512x128xbf16>
    "tpu.trace_start"() <{level = 10 : i32, message = "bnc,co->bno"}> : () -> ()
    %cst_97 = arith.constant dense<0.000000e+00> : vector<2x49x128xf32>
    %93 = tpu.matmul %39, %92, %cst_97 {dimension_numbers = #tpu.dot_dimension_numbers<[2], [0], [0, 1], [1], [0, 0, 0, 1, 1, 1], [], []>} : vector<2x49x512xbf16>, vector<512x128xbf16>, vector<2x49x128xf32> -> vector<2x49x128xf32>
    "tpu.trace_stop"() : () -> ()
    %c0_98 = arith.constant 0 : index
    %c0_99 = arith.constant 0 : index
    %94 = vector.load %arg1[%c0_98, %c0_99] : memref<1x128xf32, #tpu.memory_space<vmem>>, vector<1x128xf32>
    %95 = vector.shape_cast %94 : vector<1x128xf32> to vector<1x1x128xf32>
    %96 = vector.broadcast %95 : vector<1x1x128xf32> to vector<2x49x128xf32>
    %97 = arith.addf %48, %96 : vector<2x49x128xf32>
    %98 = arith.truncf %97 : vector<2x49x128xf32> to vector<2x49x128xbf16>
    %c0_100 = arith.constant 0 : index
    %c0_101 = arith.constant 0 : index
    %99 = vector.load %arg2[%c0_100, %c0_101] : memref<1x128xf32, #tpu.memory_space<vmem>>, vector<1x128xf32>
    %100 = vector.shape_cast %99 : vector<1x128xf32> to vector<1x1x128xf32>
    %101 = vector.broadcast %100 : vector<1x1x128xf32> to vector<2x49x128xf32>
    %102 = arith.addf %57, %101 : vector<2x49x128xf32>
    %103 = arith.truncf %102 : vector<2x49x128xf32> to vector<2x49x128xbf16>
    %104 = tpu.concatenate %66, %75, %84, %93 in 2 : vector<2x49x128xf32>, vector<2x49x128xf32>, vector<2x49x128xf32>, vector<2x49x128xf32> -> vector<2x49x512xf32>
    %c0_102 = arith.constant 0 : index
    %c0_103 = arith.constant 0 : index
    %105 = vector.load %arg3[%c0_102, %c0_103] : memref<1x512xf32, #tpu.memory_space<vmem>>, vector<1x512xf32>
    %106 = vector.shape_cast %105 : vector<1x512xf32> to vector<1x1x512xf32>
    %107 = vector.broadcast %106 : vector<1x1x512xf32> to vector<2x49x512xf32>
    %108 = arith.addf %104, %107 : vector<2x49x512xf32>
    "tpu.trace_start"() <{level = 10 : i32, message = "bnq,bmq->bnm"}> : () -> ()
    %cst_104 = arith.constant dense<0.000000e+00> : vector<2x49x49xf32>
    %109 = tpu.matmul %98, %103, %cst_104 {dimension_numbers = #tpu.dot_dimension_numbers<[2], [2], [1], [1], [0, 0, 0, 1, 1, 1], [0], [0]>} : vector<2x49x128xbf16>, vector<2x49x128xbf16>, vector<2x49x49xf32> -> vector<2x49x49xf32>
    "tpu.trace_stop"() : () -> ()
    %cst_105 = arith.constant dense<0xFF800000> : vector<2x49xf32>
    %110 = vector.multi_reduction <maximumf>, %109, %cst_105 [2] : vector<2x49x49xf32> to vector<2x49xf32>
    %111 = vector.shape_cast %110 : vector<2x49xf32> to vector<2x49x1xf32>
    %112 = vector.broadcast %111 : vector<2x49x1xf32> to vector<2x49x49xf32>
    %113 = arith.subf %109, %112 : vector<2x49x49xf32>
    %114 = math.exp %113 : vector<2x49x49xf32>
    %cst_106 = arith.constant dense<0.000000e+00> : vector<2x49xf32>
    %115 = vector.multi_reduction <add>, %114, %cst_106 [2] : vector<2x49x49xf32> to vector<2x49xf32>
    %116 = vector.shape_cast %115 : vector<2x49xf32> to vector<2x49x1xf32>
    %117 = tpu.reciprocal %116 {approx = true} : vector<2x49x1xf32> -> vector<2x49x1xf32>
    %118 = vector.broadcast %117 : vector<2x49x1xf32> to vector<2x49x49xf32>
    %119 = arith.mulf %114, %118 : vector<2x49x49xf32>
    %cst_107 = arith.constant dense<0.000000e+00> : vector<2x49xf32>
    %120 = vector.multi_reduction <add>, %119, %cst_107 [1] : vector<2x49x49xf32> to vector<2x49xf32>
    %121 = vector.shape_cast %120 : vector<2x49xf32> to vector<2x1x49xf32>
    %cst_108 = arith.constant 4.900000e+01 : f32
    %122 = vector.broadcast %cst_108 : f32 to vector<2x1x49xf32>
    %123 = arith.divf %121, %122 : vector<2x1x49xf32>
    %124 = arith.truncf %123 : vector<2x1x49xf32> to vector<2x1x49xbf16>
    %125 = arith.truncf %108 : vector<2x49x512xf32> to vector<2x49x512xbf16>
    "tpu.trace_start"() <{level = 10 : i32, message = "bom,bmc->boc"}> : () -> ()
    %cst_109 = arith.constant dense<0.000000e+00> : vector<2x1x512xf32>
    %126 = tpu.matmul %124, %125, %cst_109 {dimension_numbers = #tpu.dot_dimension_numbers<[2], [1], [1], [2], [0, 0, 0, 1, 1, 2], [0], [0]>} : vector<2x1x49xbf16>, vector<2x49x512xbf16>, vector<2x1x512xf32> -> vector<2x1x512xf32>
    "tpu.trace_stop"() : () -> ()
    %127 = vector.shape_cast %126 : vector<2x1x512xf32> to vector<2x512xf32>
    %cst_110 = arith.constant dense<0.000000e+00> : vector<2x512xf32>
    %128 = vector.multi_reduction <add>, %38, %cst_110 [1] : vector<2x49x512xf32> to vector<2x512xf32>
    %cst_111 = arith.constant 4.900000e+01 : f32
    %129 = vector.broadcast %cst_111 : f32 to vector<2x512xf32>
    %130 = arith.divf %128, %129 : vector<2x512xf32>
    %c0_112 = arith.constant 0 : index
    %131 = memref.load %arg4[%c0_112] : memref<1xf32, #tpu.memory_space<smem>>
    %132 = vector.broadcast %131 : f32 to vector<2x512xf32>
    %133 = arith.mulf %132, %127 : vector<2x512xf32>
    %134 = arith.addf %133, %130 : vector<2x512xf32>
    %135 = tpu.concatenate %130, %134 in 1 : vector<2x512xf32>, vector<2x512xf32> -> vector<2x1024xf32>
    %c0_113 = arith.constant 0 : index
    %c0_114 = arith.constant 0 : index
    %136 = vector.load %arg9[%c0_113, %c0_114] : memref<2x1024xf32, #tpu.memory_space<vmem>>, vector<2x1024xf32>
    tpu.vector_store %arg9[%c0_113, %c0_114], %135 {strides = array<i32>} : memref<2x1024xf32, #tpu.memory_space<vmem>>, vector<2x1024xf32>,
    %c6_i32_115 = arith.constant 6 : i32
    %137 = tpu.memref_slice %arg12[%c6_i32_115] : memref<7x!tpu.dma_semaphore, #tpu.memory_space<semaphore_mem>> -> memref<1x!tpu.dma_semaphore, #tpu.memory_space<semaphore_mem>>
    %138 = tpu.memref_squeeze %137 : memref<1x!tpu.dma_semaphore, #tpu.memory_space<semaphore_mem>> -> memref<!tpu.dma_semaphore, #tpu.memory_space<semaphore_mem>>
    tpu.wait_dma2 semaphore(%138 : memref<!tpu.dma_semaphore, #tpu.memory_space<semaphore_mem>>) src(%arg7 : memref<1024x128xbf16, #tpu.memory_space<any>>) dst(%arg11 : memref<1024x128xbf16, #tpu.memory_space<vmem>>)
    %139 = arith.truncf %135 : vector<2x1024xf32> to vector<2x1024xbf16>
    %c0_116 = arith.constant 0 : index
    %c0_117 = arith.constant 0 : index
    %140 = vector.load %arg11[%c0_116, %c0_117] : memref<1024x128xbf16, #tpu.memory_space<vmem>>, vector<1024x128xbf16>
    %cst_118 = arith.constant dense<0.000000e+00> : vector<2x128xf32>
    %141 = tpu.matmul %139, %140, %cst_118 {dimension_numbers = #tpu.dot_dimension_numbers<[1], [0], [0], [1], [0, 0, 1, 1], [], []>} : vector<2x1024xbf16>, vector<1024x128xbf16>, vector<2x128xf32> -> vector<2x128xf32>
    %c0_119 = arith.constant 0 : index
    %c0_120 = arith.constant 0 : index
    %142 = vector.load %arg5[%c0_119, %c0_120] : memref<1x128xf32, #tpu.memory_space<vmem>>, vector<1x128xf32>
    %143 = vector.broadcast %142 : vector<1x128xf32> to vector<2x128xf32>
    %144 = arith.addf %141, %143 : vector<2x128xf32>
    %c0_121 = arith.constant 0 : index
    %c0_122 = arith.constant 0 : index
    %145 = vector.load %arg8[%c0_121, %c0_122] : memref<2x128xf32, #tpu.memory_space<vmem>>, vector<2x128xf32>
    tpu.vector_store %arg8[%c0_121, %c0_122], %144 {strides = array<i32>} : memref<2x128xf32, #tpu.memory_space<vmem>>, vector<2x128xf32>,
    return
  }
}

</mosaic_0001>

<bundles_post_ra>
// kernel: resnet34_attn_head.1
= control target key start
LH: loop header
LB: loop body
LE: loop exit
PB: predicated region body
PF: predicated region fallthrough
CT: control target
= control target key end

     0   :  { %16 = vsyncpa [#allocation7], 0  ;;  %s17873_s0 = inlined_call_operand.vmem [shape: f32[2,49,512], index: 0, kind: input, shape index: {}]   ;;  %s17874_s1 = inlined_call_operand.vmem [shape: f32[1,128], index: 1, kind: input, shape index: {}]   ;;  %s17875_s2 = inlined_call_operand.vmem [shape: f32[1,128], index: 2, kind: input, shape index: {}]   ;;  %s17876_s3 = inlined_call_operand.vmem [shape: f32[1,512], index: 3, kind: input, shape index: {}]   ;;  %s17877_s4 = inlined_call_operand.<no memory space> [shape: f32[1], index: 4, kind: input, shape index: {}]   ;;  %s17878_s5 = inlined_call_operand.vmem [shape: f32[1,128], index: 5, kind: input, shape index: {}]   ;;  %s17879_s6 = inlined_call_operand.hbm [shape: bf16[6,512,128], index: 6, kind: input, shape index: {}]   ;;  %s17880_s7 = inlined_call_operand.vmem [shape: bf16[1024,128], index: 7, kind: input, shape index: {}]   ;;  %s17881_s8 = inlined_call_operand.hbm [shape: f32[2,128], index: 8, kind: output, shape index: {0}]   ;;  %s17882_s9 = inlined_call_operand.hbm [shape: f32[2,1024], index: 9, kind: output, shape index: {1}]  }
   0x1   :  { %17 = vsyncpa [#allocation9], 0  ;;  %s13110_s11 = scalar_lea.hbm %s17879_s6, 4096  ;;  %v13115_v0 = vld [vmem:[%s17880_s7] sm:$0xff]  ;;  %v13120_v1 = vld [vmem:[%s17880_s7 + $0x8] sm:$0xff]  ;;  %s13046_s16 = smov [#allocation2]  }
   0x2   :  { %18201 = vst [vmem:[#allocation34_spill] sm:$0xff] %v13115_v0  ;;  %18202 = vst [vmem:[#allocation35_spill] sm:$0xff] %v13120_v1  ;;  %s38_s17 = sshll.u32 %s13046_s16, 4  ;;  %v13125_v2 = vld [vmem:[%s17880_s7 + $0x10] sm:$0xff]  ;;  %v13130_v3 = vld [vmem:[%s17880_s7 + $0x18] sm:$0xff]  ;;  %s13047_s24 = smov [#allocation2 + $0x100]   ;;  %s13137_s17 = int_to_ptr.vmem [resolvable:$true] %s38_s17 }
   0x3   :  { %18203 = vst [vmem:[#allocation36_spill] sm:$0xff] %v13125_v2  ;;  %18204 = vst [vmem:[#allocation37_spill] sm:$0xff] %v13130_v3  ;;  %v13135_v4 = vld [vmem:[%s17880_s7 + $0x20] sm:$0xff]  ;;  %s52_s25 = sshll.u32 %s13047_s24, 4  ;;  %v13142_v5 = vld [vmem:[%s17880_s7 + $0x28] sm:$0xff]  ;;  %p12838_p0 = scmp.ne.s32.totalorder %s17879_s6, %s13110_s11  ;;  %s53_s25 = int_to_ptr.vmem [resolvable:$true] %s52_s25 }
   0x4   :  { %18205 = vst [vmem:[#allocation38_spill] sm:$0xff] %v13135_v4  ;;  %18206 = vst [vmem:[#allocation39_spill] sm:$0xff] %v13142_v5  ;;  %v13147_v6 = vld [vmem:[%s17880_s7 + $0x30] sm:$0xff]  ;;  %v13152_v7 = vld [vmem:[%s17880_s7 + $0x38] sm:$0xff]  ;;  %s13161_s16 = scalar_lea.hbm %s17879_s6, 24576  ;;  %p12841_p2 = scmp.lt.u32.totalorder %s13110_s11, %s17879_s6 }
   0x5   :  { %18207 = vst [vmem:[#allocation40_spill] sm:$0xff] %v13147_v6  ;;  %18208 = vst [vmem:[#allocation41_spill] sm:$0xff] %v13152_v7  ;;  %p12840_p1 = scmp.lt.u32.totalorder %s13161_s16, %s13110_s11 }
   0x7   :  { %p12842_p3 = por %p12841_p2, %p12840_p1 }
   0x9   :  { %p12843_p4 = pnand %p12842_p3, %p12838_p0 }
   0xb   :  { %12846 = shalt.err (!%p12843_p4)  }
   0xc   :  { %s12847_s22 = scalar_lea.vmem %s13137_s17, 4096  ;;  %s13177_s23 = scalar_lea.vmem %s13137_s17, 24576 }
   0xd   :  { %p12848_p5 = scmp.ne.s32.totalorder %s13137_s17, %s12847_s22  ;;  %p12852_p6 = scmp.lt.s32.totalorder %s13137_s17, %s13137_s17 }
   0xe   :  { %p12853_p7 = scmp.lt.s32.totalorder %s13177_s23, %s12847_s22 }
  0x10   :  { %p12854_p8 = por %p12853_p7, %p12852_p6 }
  0x12   :  { %p12855_p9 = pnand %p12854_p8, %p12848_p5 }
  0x14   :  { %12858 = shalt.err (!%p12855_p9)  }
  0x15   :  { %41 = dma.hbm_to_vmem [thread:$0]  %s17879_s6, 4096, %s13137_s17, [#allocation4]  ;;  %v13189_v8 = vld [vmem:[%s17880_s7 + $0x40] sm:$0xff]  ;;  %v13194_v9 = vld [vmem:[%s17880_s7 + $0x48] sm:$0xff]  ;;  %v13199_v10 = vld [vmem:[%s17880_s7 + $0x50] sm:$0xff] }
  0x16   :  { %18209 = vst [vmem:[#allocation42_spill] sm:$0xff] %v13189_v8  ;;  %18210 = vst [vmem:[#allocation43_spill] sm:$0xff] %v13194_v9  ;;  %s13204_s15 = scalar_lea.hbm %s17879_s6, 8192  ;;  %v13209_v11 = vld [vmem:[%s17880_s7 + $0x58] sm:$0xff]  ;;  %v13214_v12 = vld [vmem:[%s17880_s7 + $0x60] sm:$0xff] }
  0x17   :  { %18211 = vst [vmem:[#allocation44_spill] sm:$0xff] %v13199_v10  ;;  %18212 = vst [vmem:[#allocation45_spill] sm:$0xff] %v13209_v11  ;;  %v13219_v13 = vld [vmem:[%s17880_s7 + $0x68] sm:$0xff]  ;;  %p12860_p10 = scmp.ne.s32.totalorder %s13110_s11, %s13204_s15  ;;  %p12863_p11 = scmp.lt.u32.totalorder %s13161_s16, %s13204_s15 }
  0x18   :  { %18213 = vst [vmem:[#allocation46_spill] sm:$0xff] %v13214_v12  ;;  %18214 = vst [vmem:[#allocation47_spill] sm:$0xff] %v13219_v13  ;;  %p12865_p13 = scmp.lt.u32.totalorder %s13204_s15, %s13110_s11 }
  0x19   :  { %p12864_p12 = por %p12863_p11, %p12841_p2 }
  0x1b   :  { %p12866_p0 = por %p12865_p13, %p12864_p12 }
  0x1d   :  { %p12867_p1 = pnand %p12866_p0, %p12860_p10 }
  0x1f   :  { %12870 = shalt.err (!%p12867_p1)  }
  0x20   :  { %s12871_s28 = scalar_lea.vmem %s53_s25, 4096  ;;  %p12876_p4 = scmp.lt.s32.totalorder %s53_s25, %s13137_s17 }
  0x21   :  { %p12872_p3 = scmp.ne.s32.totalorder %s53_s25, %s12871_s28  ;;  %p12877_p5 = scmp.lt.s32.totalorder %s13177_s23, %s12871_s28 }
  0x23   :  { %p12878_p6 = por %p12877_p5, %p12876_p4 }
  0x25   :  { %p12879_p7 = pnand %p12878_p6, %p12872_p3 }
  0x27   :  { %12882 = shalt.err (!%p12879_p7)  }
  0x28   :  { %55 = dma.hbm_to_vmem [thread:$0]  %s13110_s11, 4096, %s53_s25, [#allocation4 + $0x1]  ;;  %v13238_v14 = vld [vmem:[%s17880_s7 + $0x70] sm:$0xff]  ;;  %v13243_v15 = vld [vmem:[%s17880_s7 + $0x78] sm:$0xff]  ;;  %v13248_v16 = vld [vmem:[%s17880_s7 + $0x80] sm:$0xff] }
  0x29   :  { %18215 = vst [vmem:[#allocation48_spill] sm:$0xff] %v13238_v14  ;;  %18216 = vst [vmem:[#allocation49_spill] sm:$0xff] %v13243_v15  ;;  %s13253_s11 = scalar_lea.hbm %s17879_s6, 12288  ;;  %v13258_v17 = vld [vmem:[%s17880_s7 + $0x88] sm:$0xff]  ;;  %v13263_v18 = vld [vmem:[%s17880_s7 + $0x90] sm:$0xff]  ;;  %s13048_s27 = smov [#allocation2 + $0x200]  }
  0x2a   :  { %18217 = vst [vmem:[#allocation50_spill] sm:$0xff] %v13248_v16  ;;  %18218 = vst [vmem:[#allocation51_spill] sm:$0xff] %v13258_v17  ;;  %v13268_v19 = vld [vmem:[%s17880_s7 + $0x98] sm:$0xff]  ;;  %s66_s28 = sshll.u32 %s13048_s27, 4  ;;  %v13273_v20 = vld [vmem:[%s17880_s7 + $0xa0] sm:$0xff]  ;;  %s13049_s18 = smov [#allocation2 + $0x300]   ;;  %s67_s28 = int_to_ptr.vmem [resolvable:$true] %s66_s28 }
  0x2b   :  { %18219 = vst [vmem:[#allocation52_spill] sm:$0xff] %v13263_v18  ;;  %18220 = vst [vmem:[#allocation53_spill] sm:$0xff] %v13268_v19  ;;  %v13278_v21 = vld [vmem:[%s17880_s7 + $0xa8] sm:$0xff]  ;;  %v13283_v22 = vld [vmem:[%s17880_s7 + $0xb0] sm:$0xff]  ;;  %s80_s19 = sshll.u32 %s13049_s18, 4  ;;  %p12885_p2 = scmp.ne.s32.totalorder %s13204_s15, %s13253_s11  ;;  %s81_s19 = int_to_ptr.vmem [resolvable:$true] %s80_s19 }
  0x2c   :  { %18221 = vst [vmem:[#allocation54_spill] sm:$0xff] %v13273_v20  ;;  %18222 = vst [vmem:[#allocation55_spill] sm:$0xff] %v13278_v21  ;;  %v13288_v23 = vld [vmem:[%s17880_s7 + $0xb8] sm:$0xff]  ;;  %v13293_v24 = vld [vmem:[%s17880_s7 + $0xc0] sm:$0xff]  ;;  %p12887_p8 = scmp.lt.u32.totalorder %s13204_s15, %s17879_s6  ;;  %p12888_p9 = scmp.lt.u32.totalorder %s13161_s16, %s13253_s11 }
  0x2d   :  { %18223 = vst [vmem:[#allocation56_spill] sm:$0xff] %v13283_v22  ;;  %18224 = vst [vmem:[#allocation57_spill] sm:$0xff] %v13288_v23  ;;  %v13298_v25 = vld [vmem:[%s17880_s7 + $0xc8] sm:$0xff]  ;;  %p12890_p11 = scmp.lt.u32.totalorder %s13253_s11, %s13204_s15 }
  0x2e   :  { %18225 = vst [vmem:[#allocation58_spill] sm:$0xff] %v13293_v24  ;;  %18226 = vst [vmem:[#allocation59_spill] sm:$0xff] %v13298_v25  ;;  %p12889_p10 = por %p12888_p9, %p12887_p8 }
  0x30   :  { %p12891_p12 = por %p12890_p11, %p12889_p10 }
  0x32   :  { %p12892_p13 = pnand %p12891_p12, %p12885_p2 }
  0x34   :  { %12895 = shalt.err (!%p12892_p13)  }
  0x35   :  { %s12896_s30 = scalar_lea.vmem %s67_s28, 4096  ;;  %p12901_p1 = scmp.lt.s32.totalorder %s67_s28, %s13137_s17 }
  0x36   :  { %p12897_p0 = scmp.ne.s32.totalorder %s67_s28, %s12896_s30  ;;  %p12902_p3 = scmp.lt.s32.totalorder %s13177_s23, %s12896_s30 }
  0x38   :  { %p12903_p4 = por %p12902_p3, %p12901_p1 }
  0x3a   :  { %p12904_p5 = pnand %p12903_p4, %p12897_p0 }
  0x3c   :  { %12907 = shalt.err (!%p12904_p5)  }
  0x3d   :  { %69 = dma.hbm_to_vmem [thread:$0]  %s13204_s15, 4096, %s67_s28, [#allocation4 + $0x2]  ;;  %v13316_v26 = vld [vmem:[%s17880_s7 + $0xd0] sm:$0xff]  ;;  %v13321_v27 = vld [vmem:[%s17880_s7 + $0xd8] sm:$0xff]  ;;  %v13326_v28 = vld [vmem:[%s17880_s7 + $0xe0] sm:$0xff] }
  0x3e   :  { %18227 = vst [vmem:[#allocation60_spill] sm:$0xff] %v13316_v26  ;;  %18228 = vst [vmem:[#allocation61_spill] sm:$0xff] %v13321_v27  ;;  %s13331_s15 = scalar_lea.hbm %s17879_s6, 16384  ;;  %v13336_v29 = vld [vmem:[%s17880_s7 + $0xe8] sm:$0xff]  ;;  %v13341_v30 = vld [vmem:[%s17880_s7 + $0xf0] sm:$0xff]  ;;  %p12912_p7 = scmp.lt.u32.totalorder %s13253_s11, %s17879_s6 }
  0x3f   :  { %18229 = vst [vmem:[#allocation62_spill] sm:$0xff] %v13326_v28  ;;  %18230 = vst [vmem:[#allocation63_spill] sm:$0xff] %v13336_v29  ;;  %v13346_v31 = vld [vmem:[%s17880_s7 + $0xf8] sm:$0xff]  ;;  %p12910_p6 = scmp.ne.s32.totalorder %s13253_s11, %s13331_s15  ;;  %p12913_p2 = scmp.lt.u32.totalorder %s13161_s16, %s13331_s15 }
  0x40   :  { %18231 = vst [vmem:[#allocation64_spill] sm:$0xff] %v13341_v30  ;;  %18232 = vst [vmem:[#allocation65_spill] sm:$0xff] %v13346_v31  ;;  %p12915_p9 = scmp.lt.u32.totalorder %s13331_s15, %s13253_s11 }
  0x41   :  { %p12914_p8 = por %p12913_p2, %p12912_p7 }
  0x43   :  { %p12916_p10 = por %p12915_p9, %p12914_p8 }
  0x45   :  { %p12917_p11 = pnand %p12916_p10, %p12910_p6 }
  0x47   :  { %12920 = shalt.err (!%p12917_p11)  }
  0x48   :  { %s12921_s12 = scalar_lea.vmem %s81_s19, 4096  ;;  %p12926_p13 = scmp.lt.s32.totalorder %s81_s19, %s13137_s17 }
  0x49   :  { %p12922_p12 = scmp.ne.s32.totalorder %s81_s19, %s12921_s12  ;;  %p12927_p0 = scmp.lt.s32.totalorder %s13177_s23, %s12921_s12 }
  0x4b   :  { %p12928_p1 = por %p12927_p0, %p12926_p13 }
  0x4d   :  { %p12929_p3 = pnand %p12928_p1, %p12922_p12 }
  0x4f   :  { %12932 = shalt.err (!%p12929_p3)  }
  0x50   :  { %83 = dma.hbm_to_vmem [thread:$0]  %s13253_s11, 4096, %s81_s19, [#allocation4 + $0x3]  ;;  %v13364_v32 = vld [vmem:[%s17880_s7 + $0x100] sm:$0xff]  ;;  %v13369_v33 = vld [vmem:[%s17880_s7 + $0x108] sm:$0xff]  ;;  %v13374_v34 = vld [vmem:[%s17880_s7 + $0x110] sm:$0xff] }
  0x51   :  { %18233 = vst [vmem:[#allocation66_spill] sm:$0xff] %v13364_v32  ;;  %18234 = vst [vmem:[#allocation67_spill] sm:$0xff] %v13369_v33  ;;  %s13379_s11 = scalar_lea.hbm %s17879_s6, 20480  ;;  %v13384_v35 = vld [vmem:[%s17880_s7 + $0x118] sm:$0xff]  ;;  %v13389_v36 = vld [vmem:[%s17880_s7 + $0x120] sm:$0xff]  ;;  %s13050_s10 = smov [#allocation2 + $0x400]  }
  0x52   :  { %18235 = vst [vmem:[#allocation68_spill] sm:$0xff] %v13374_v34  ;;  %18236 = vst [vmem:[#allocation69_spill] sm:$0xff] %v13384_v35  ;;  %v13394_v37 = vld [vmem:[%s17880_s7 + $0x128] sm:$0xff]  ;;  %s94_s12 = sshll.u32 %s13050_s10, 4  ;;  %v13399_v38 = vld [vmem:[%s17880_s7 + $0x130] sm:$0xff]  ;;  %s13051_s28 = smov [#allocation2 + $0x500]   ;;  %s95_s12 = int_to_ptr.vmem [resolvable:$true] %s94_s12 }
  0x53   :  { %18237 = vst [vmem:[#allocation70_spill] sm:$0xff] %v13389_v36  ;;  %18238 = vst [vmem:[#allocation71_spill] sm:$0xff] %v13394_v37  ;;  %v13404_v39 = vld [vmem:[%s17880_s7 + $0x138] sm:$0xff]  ;;  %v13409_v40 = vld [vmem:[%s17880_s7 + $0x140] sm:$0xff]  ;;  %s108_s22 = sshll.u32 %s13051_s28, 4  ;;  %p12935_p4 = scmp.ne.s32.totalorder %s13331_s15, %s13379_s11  ;;  %s109_s22 = int_to_ptr.vmem [resolvable:$true] %s108_s22 }
  0x54   :  { %18239 = vst [vmem:[#allocation72_spill] sm:$0xff] %v13399_v38  ;;  %18240 = vst [vmem:[#allocation73_spill] sm:$0xff] %v13404_v39  ;;  %v13414_v41 = vld [vmem:[%s17880_s7 + $0x148] sm:$0xff]  ;;  %v13419_v42 = vld [vmem:[%s17880_s7 + $0x150] sm:$0xff]  ;;  %p12937_p5 = scmp.lt.u32.totalorder %s13331_s15, %s17879_s6  ;;  %p12938_p6 = scmp.lt.u32.totalorder %s13161_s16, %s13379_s11 }
  0x55   :  { %18241 = vst [vmem:[#allocation74_spill] sm:$0xff] %v13409_v40  ;;  %18242 = vst [vmem:[#allocation75_spill] sm:$0xff] %v13414_v41  ;;  %v13424_v43 = vld [vmem:[%s17880_s7 + $0x158] sm:$0xff]  ;;  %p12940_p2 = scmp.lt.u32.totalorder %s13379_s11, %s13331_s15 }
  0x56   :  { %18243 = vst [vmem:[#allocation76_spill] sm:$0xff] %v13419_v42  ;;  %18244 = vst [vmem:[#allocation77_spill] sm:$0xff] %v13424_v43  ;;  %p12939_p7 = por %p12938_p6, %p12937_p5 }
  0x58   :  { %p12941_p8 = por %p12940_p2, %p12939_p7 }
  0x5a   :  { %p12942_p9 = pnand %p12941_p8, %p12935_p4 }
  0x5c   :  { %12945 = shalt.err (!%p12942_p9)  }
  0x5d   :  { %s12946_s14 = scalar_lea.vmem %s95_s12, 4096  ;;  %p12951_p11 = scmp.lt.s32.totalorder %s95_s12, %s13137_s17 }
  0x5e   :  { %p12947_p10 = scmp.ne.s32.totalorder %s95_s12, %s12946_s14  ;;  %p12952_p12 = scmp.lt.s32.totalorder %s13177_s23, %s12946_s14 }
  0x60   :  { %p12953_p13 = por %p12952_p12, %p12951_p11 }
  0x62   :  { %p12954_p0 = pnand %p12953_p13, %p12947_p10 }
  0x64   :  { %12957 = shalt.err (!%p12954_p0)  }
  0x65   :  { %97 = dma.hbm_to_vmem [thread:$0]  %s13331_s15, 4096, %s95_s12, [#allocation4 + $0x4]  ;;  %v13445_v44 = vld [vmem:[%s17880_s7 + $0x160] sm:$0xff]  ;;  %v13450_v45 = vld [vmem:[%s17880_s7 + $0x168] sm:$0xff]  ;;  %v13455_v46 = vld [vmem:[%s17880_s7 + $0x170] sm:$0xff] }
  0x66   :  { %18245 = vst [vmem:[#allocation78_spill] sm:$0xff] %v13445_v44  ;;  %18246 = vst [vmem:[#allocation79_spill] sm:$0xff] %v13450_v45  ;;  %v13460_v47 = vld [vmem:[%s17880_s7 + $0x178] sm:$0xff]  ;;  %v13465_v48 = vld [vmem:[%s17880_s7 + $0x180] sm:$0xff]  ;;  %p12960_p1 = scmp.ne.s32.totalorder %s13379_s11, %s13161_s16  ;;  %p12962_p3 = scmp.lt.u32.totalorder %s13379_s11, %s17879_s6 }
  0x67   :  { %18247 = vst [vmem:[#allocation80_spill] sm:$0xff] %v13455_v46  ;;  %18248 = vst [vmem:[#allocation81_spill] sm:$0xff] %v13460_v47  ;;  %v13470_v49 = vld [vmem:[%s17880_s7 + $0x188] sm:$0xff]  ;;  %p12963_p4 = scmp.lt.u32.totalorder %s13161_s16, %s13161_s16 }
  0x68   :  { %18249 = vst [vmem:[#allocation82_spill] sm:$0xff] %v13465_v48  ;;  %18250 = vst [vmem:[#allocation83_spill] sm:$0xff] %v13470_v49 }
  0x69   :  { %p12964_p5 = por %p12963_p4, %p12962_p3 }
  0x6b   :  { %p12966_p7 = por %p12964_p5, %p12938_p6 }
  0x6d   :  { %p12967_p2 = pnand %p12966_p7, %p12960_p1 }
  0x6f   :  { %12970 = shalt.err (!%p12967_p2)  }
  0x70   :  { %s12971_s13 = scalar_lea.vmem %s109_s22, 4096  ;;  %p12976_p9 = scmp.lt.s32.totalorder %s109_s22, %s13137_s17 }
  0x71   :  { %p12972_p8 = scmp.ne.s32.totalorder %s109_s22, %s12971_s13  ;;  %p12977_p10 = scmp.lt.s32.totalorder %s13177_s23, %s12971_s13 }
  0x73   :  { %p12978_p11 = por %p12977_p10, %p12976_p9 }
  0x75   :  { %p12979_p12 = pnand %p12978_p11, %p12972_p8 }
  0x77   :  { %12982 = shalt.err (!%p12979_p12)  }
  0x78   :  { %111 = dma.hbm_to_vmem [thread:$0]  %s13379_s11, 4096, %s109_s22, [#allocation4 + $0x5]  ;;  %v13489_v50 = vld [vmem:[%s17880_s7 + $0x190] sm:$0xff]  ;;  %v13494_v51 = vld [vmem:[%s17880_s7 + $0x198] sm:$0xff]  ;;  %v13499_v52 = vld [vmem:[%s17880_s7 + $0x1a0] sm:$0xff] }
  0x79   :  { %18251 = vst [vmem:[#allocation84_spill] sm:$0xff] %v13489_v50  ;;  %18252 = vst [vmem:[#allocation85_spill] sm:$0xff] %v13494_v51  ;;  %v13504_v53 = vld [vmem:[%s17880_s7 + $0x1a8] sm:$0xff]  ;;  %v13509_v54 = vld [vmem:[%s17880_s7 + $0x1b0] sm:$0xff] }
  0x7a   :  { %18253 = vst [vmem:[#allocation86_spill] sm:$0xff] %v13499_v52  ;;  %18254 = vst [vmem:[#allocation87_spill] sm:$0xff] %v13504_v53  ;;  %v13514_v55 = vld [vmem:[%s17880_s7 + $0x1b8] sm:$0xff]  ;;  %v13519_v56 = vld [vmem:[%s17880_s7 + $0x1c0] sm:$0xff] }
  0x7b   :  { %18255 = vst [vmem:[#allocation88_spill] sm:$0xff] %v13509_v54  ;;  %18256 = vst [vmem:[#allocation89_spill] sm:$0xff] %v13514_v55  ;;  %v13524_v57 = vld [vmem:[%s17880_s7 + $0x1c8] sm:$0xff]  ;;  %v13529_v58 = vld [vmem:[%s17880_s7 + $0x1d0] sm:$0xff] }
  0x7c   :  { %18257 = vst [vmem:[#allocation90_spill] sm:$0xff] %v13519_v56  ;;  %18258 = vst [vmem:[#allocation91_spill] sm:$0xff] %v13524_v57  ;;  %v13534_v59 = vld [vmem:[%s17880_s7 + $0x1d8] sm:$0xff]  ;;  %v13539_v60 = vld [vmem:[%s17880_s7 + $0x1e0] sm:$0xff] }
  0x7d   :  { %18259 = vst [vmem:[#allocation92_spill] sm:$0xff] %v13529_v58  ;;  %18260 = vst [vmem:[#allocation93_spill] sm:$0xff] %v13534_v59  ;;  %v13544_v61 = vld [vmem:[%s17880_s7 + $0x1e8] sm:$0xff]  ;;  %v13549_v62 = vld [vmem:[%s17880_s7 + $0x1f0] sm:$0xff] }
  0x7e   :  { %18261 = vst [vmem:[#allocation94_spill] sm:$0xff] %v13539_v60  ;;  %18262 = vst [vmem:[#allocation95_spill] sm:$0xff] %v13544_v61  ;;  %v13554_v63 = vld [vmem:[%s17880_s7 + $0x1f8] sm:$0xff] }
  0x7f   :  { %18263 = vst [vmem:[#allocation96_spill] sm:$0xff] %v13549_v62  ;;  %18264 = vst [vmem:[#allocation97_spill] sm:$0xff] %v13554_v63 }
  0x80   :  { %280 = vsyncadd [#allocation4 + $0x6], 8192  ;;  %v13559_v55 = vld [vmem:[%s17873_s0] sm:$0xff]  ;;  %v13564_v39 = vld [vmem:[%s17873_s0 + $0x8] sm:$0xff] }
  0x81   :  { %18265 = vst [vmem:[#allocation98_spill] sm:$0xff] %v13559_v55  ;;  %18266 = vst [vmem:[#allocation99_spill] sm:$0xff] %v13564_v39  ;;  %v13569_v47 = vld [vmem:[%s17873_s0 + $0x10] sm:$0xff]  ;;  %v13574_v63 = vld [vmem:[%s17873_s0 + $0x18] sm:$0xff] }
  0x82   :  { %18267 = vst [vmem:[#allocation100_spill] sm:$0xff] %v13569_v47  ;;  %18268 = vst [vmem:[#allocation101_spill] sm:$0xff] %v13574_v63  ;;  %v13579_v54 = vld [vmem:[%s17873_s0 + $0x20] sm:$0xff]  ;;  %v13584_v38 = vld [vmem:[%s17873_s0 + $0x28] sm:$0xff] }
  0x83   :  { %18269 = vst [vmem:[#allocation102_spill] sm:$0xff] %v13579_v54  ;;  %18270 = vst [vmem:[#allocation103_spill] sm:$0xff] %v13584_v38  ;;  %v13589_v62 = vld [vmem:[%s17873_s0 + $0x30] sm:$0xff]  ;;  %v13594_v46 = vld [vmem:[%s17873_s0 + $0x38] sm:$0xff] }
  0x84   :  { %18271 = vst [vmem:[#allocation104_spill] sm:$0xff] %v13589_v62  ;;  %18272 = vst [vmem:[#allocation105_spill] sm:$0xff] %v13594_v46  ;;  %v13599_v53 = vld [vmem:[%s17873_s0 + $0x40] sm:$0xff]  ;;  %v13604_v37 = vld [vmem:[%s17873_s0 + $0x48] sm:$0xff] }
  0x85   :  { %18273 = vst [vmem:[#allocation106_spill] sm:$0xff] %v13599_v53  ;;  %18274 = vst [vmem:[#allocation107_spill] sm:$0xff] %v13604_v37  ;;  %v13609_v61 = vld [vmem:[%s17873_s0 + $0x50] sm:$0xff]  ;;  %v13614_v45 = vld [vmem:[%s17873_s0 + $0x58] sm:$0xff] }
  0x86   :  { %18275 = vst [vmem:[#allocation108_spill] sm:$0xff] %v13609_v61  ;;  %18276 = vst [vmem:[#allocation109_spill] sm:$0xff] %v13614_v45  ;;  %v13619_v52 = vld [vmem:[%s17873_s0 + $0x60] sm:$0xff]  ;;  %v13624_v36 = vld [vmem:[%s17873_s0 + $0x68] sm:$0xff] }
  0x87   :  { %18277 = vst [vmem:[#allocation110_spill] sm:$0xff] %v13619_v52  ;;  %18278 = vst [vmem:[#allocation111_spill] sm:$0xff] %v13624_v36  ;;  %v13629_v60 = vld [vmem:[%s17873_s0 + $0x70] sm:$0xff]  ;;  %v13634_v44 = vld [vmem:[%s17873_s0 + $0x78] sm:$0xff] }
  0x88   :  { %18279 = vst [vmem:[#allocation112_spill] sm:$0xff] %v13629_v60  ;;  %18280 = vst [vmem:[#allocation113_spill] sm:$0xff] %v13634_v44  ;;  %v13639_v51 = vld [vmem:[%s17873_s0 + $0x80] sm:$0xff]  ;;  %v13644_v35 = vld [vmem:[%s17873_s0 + $0x88] sm:$0xff] }
  0x89   :  { %18281 = vst [vmem:[#allocation114_spill] sm:$0xff] %v13639_v51  ;;  %18282 = vst [vmem:[#allocation115_spill] sm:$0xff] %v13644_v35  ;;  %v13649_v59 = vld [vmem:[%s17873_s0 + $0x90] sm:$0xff]  ;;  %v13654_v43 = vld [vmem:[%s17873_s0 + $0x98] sm:$0xff] }
  0x8a   :  { %18283 = vst [vmem:[#allocation116_spill] sm:$0xff] %v13649_v59  ;;  %18284 = vst [vmem:[#allocation117_spill] sm:$0xff] %v13654_v43  ;;  %v13659_v50 = vld [vmem:[%s17873_s0 + $0xa0] sm:$0xff]  ;;  %v13664_v34 = vld [vmem:[%s17873_s0 + $0xa8] sm:$0xff] }
  0x8b   :  { %18285 = vst [vmem:[#allocation118_spill] sm:$0xff] %v13659_v50  ;;  %18286 = vst [vmem:[#allocation119_spill] sm:$0xff] %v13664_v34  ;;  %v13669_v58 = vld [vmem:[%s17873_s0 + $0xb0] sm:$0xff]  ;;  %v13674_v42 = vld [vmem:[%s17873_s0 + $0xb8] sm:$0xff] }
  0x8c   :  { %18287 = vst [vmem:[#allocation120_spill] sm:$0xff] %v13669_v58  ;;  %18288 = vst [vmem:[#allocation121_spill] sm:$0xff] %v13674_v42  ;;  %v13679_v49 = vld [vmem:[%s17873_s0 + $0xc0] sm:$0x1]  ;;  %v13684_v33 = vld [vmem:[%s17873_s0 + $0xc8] sm:$0x1] }
  0x8d   :  { %18289 = vst [vmem:[#allocation122_spill] sm:$0xff] %v13679_v49  ;;  %18290 = vst [vmem:[#allocation123_spill] sm:$0xff] %v13684_v33  ;;  %v13689_v57 = vld [vmem:[%s17873_s0 + $0xd0] sm:$0x1]  ;;  %v13694_v41 = vld [vmem:[%s17873_s0 + $0xd8] sm:$0x1] }
  0x8e   :  { %18291 = vst [vmem:[#allocation124_spill] sm:$0xff] %v13689_v57  ;;  %18292 = vst [vmem:[#allocation125_spill] sm:$0xff] %v13694_v41  ;;  %v13699_v48 = vld [vmem:[%s17873_s0 + $0xe0] sm:$0xff]  ;;  %v13704_v32 = vld [vmem:[%s17873_s0 + $0xe8] sm:$0xff] }
  0x8f   :  { %18293 = vst [vmem:[#allocation126_spill] sm:$0xff] %v13699_v48  ;;  %18294 = vst [vmem:[#allocation127_spill] sm:$0xff] %v13704_v32  ;;  %v13709_v56 = vld [vmem:[%s17873_s0 + $0xf0] sm:$0xff]  ;;  %v13714_v40 = vld [vmem:[%s17873_s0 + $0xf8] sm:$0xff] }
  0x90   :  { %18295 = vst [vmem:[#allocation128_spill] sm:$0xff] %v13709_v56  ;;  %18296 = vst [vmem:[#allocation129_spill] sm:$0xff] %v13714_v40  ;;  %v13719_v23 = vld [vmem:[%s17873_s0 + $0x100] sm:$0xff]  ;;  %v13724_v7 = vld [vmem:[%s17873_s0 + $0x108] sm:$0xff] }
  0x91   :  { %18297 = vst [vmem:[#allocation130_spill] sm:$0xff] %v13719_v23  ;;  %18298 = vst [vmem:[#allocation131_spill] sm:$0xff] %v13724_v7  ;;  %v13729_v31 = vld [vmem:[%s17873_s0 + $0x110] sm:$0xff]  ;;  %v13734_v15 = vld [vmem:[%s17873_s0 + $0x118] sm:$0xff] }
  0x92   :  { %18299 = vst [vmem:[#allocation132_spill] sm:$0xff] %v13729_v31  ;;  %18300 = vst [vmem:[#allocation133_spill] sm:$0xff] %v13734_v15  ;;  %v13739_v22 = vld [vmem:[%s17873_s0 + $0x120] sm:$0xff]  ;;  %v13744_v6 = vld [vmem:[%s17873_s0 + $0x128] sm:$0xff] }
  0x93   :  { %18301 = vst [vmem:[#allocation134_spill] sm:$0xff] %v13739_v22  ;;  %18302 = vst [vmem:[#allocation135_spill] sm:$0xff] %v13744_v6  ;;  %v13749_v30 = vld [vmem:[%s17873_s0 + $0x130] sm:$0xff]  ;;  %v13754_v14 = vld [vmem:[%s17873_s0 + $0x138] sm:$0xff] }
  0x94   :  { %18303 = vst [vmem:[#allocation136_spill] sm:$0xff] %v13749_v30  ;;  %18304 = vst [vmem:[#allocation137_spill] sm:$0xff] %v13754_v14  ;;  %v13759_v21 = vld [vmem:[%s17873_s0 + $0x140] sm:$0xff]  ;;  %v13764_v5 = vld [vmem:[%s17873_s0 + $0x148] sm:$0xff] }
  0x95   :  { %18305 = vst [vmem:[#allocation138_spill] sm:$0xff] %v13759_v21  ;;  %18306 = vst [vmem:[#allocation139_spill] sm:$0xff] %v13764_v5  ;;  %v13769_v29 = vld [vmem:[%s17873_s0 + $0x150] sm:$0xff]  ;;  %v13774_v13 = vld [vmem:[%s17873_s0 + $0x158] sm:$0xff] }
  0x96   :  { %18307 = vst [vmem:[#allocation140_spill] sm:$0xff] %v13769_v29  ;;  %18308 = vst [vmem:[#allocation141_spill] sm:$0xff] %v13774_v13  ;;  %v13779_v20 = vld [vmem:[%s17873_s0 + $0x160] sm:$0xff]  ;;  %v13784_v4 = vld [vmem:[%s17873_s0 + $0x168] sm:$0xff] }
  0x97   :  { %18309 = vst [vmem:[#allocation142_spill] sm:$0xff] %v13779_v20  ;;  %18310 = vst [vmem:[#allocation143_spill] sm:$0xff] %v13784_v4  ;;  %v13789_v28 = vld [vmem:[%s17873_s0 + $0x170] sm:$0xff]  ;;  %v13794_v12 = vld [vmem:[%s17873_s0 + $0x178] sm:$0xff] }
  0x98   :  { %18311 = vst [vmem:[#allocation144_spill] sm:$0xff] %v13789_v28  ;;  %18312 = vst [vmem:[#allocation145_spill] sm:$0xff] %v13794_v12  ;;  %v13799_v19 = vld [vmem:[%s17873_s0 + $0x180] sm:$0xff]  ;;  %v13804_v3 = vld [vmem:[%s17873_s0 + $0x188] sm:$0xff] }
  0x99   :  { %18313 = vst [vmem:[#allocation146_spill] sm:$0xff] %v13799_v19  ;;  %18314 = vst [vmem:[#allocation147_spill] sm:$0xff] %v13804_v3  ;;  %v13809_v27 = vld [vmem:[%s17873_s0 + $0x190] sm:$0xff]  ;;  %v13814_v11 = vld [vmem:[%s17873_s0 + $0x198] sm:$0xff] }
  0x9a   :  { %18315 = vst [vmem:[#allocation148_spill] sm:$0xff] %v13809_v27  ;;  %18316 = vst [vmem:[#allocation149_spill] sm:$0xff] %v13814_v11  ;;  %v13819_v18 = vld [vmem:[%s17873_s0 + $0x1a0] sm:$0x1]  ;;  %v13824_v2 = vld [vmem:[%s17873_s0 + $0x1a8] sm:$0x1] }
  0x9b   :  { %18317 = vst [vmem:[#allocation150_spill] sm:$0xff] %v13819_v18  ;;  %18318 = vst [vmem:[#allocation151_spill] sm:$0xff] %v13824_v2  ;;  %v13829_v26 = vld [vmem:[%s17873_s0 + $0x1b0] sm:$0x1]  ;;  %v13834_v10 = vld [vmem:[%s17873_s0 + $0x1b8] sm:$0x1] }
  0x9c   :  { %18319 = vst [vmem:[#allocation152_spill] sm:$0xff] %v13829_v26  ;;  %18320 = vst [vmem:[#allocation153_spill] sm:$0xff] %v13834_v10 }
  0x9d   :  { %13028 = dma.done.wait [#allocation4], 4096 }
  0x9e   :  { %13029 = vsyncadd [#allocation4], 4294963200  ;;  %v13836_v17 = vld [vmem:[#allocation2] sm:$0xff]  ;;  %v13838_v1 = vld [vmem:[#allocation2 + $0x8] sm:$0xff] }
  0x9f   :  { %18321 = vst [vmem:[#allocation154_spill] sm:$0xff] %v13836_v17  ;;  %18322 = vst [vmem:[#allocation155_spill] sm:$0xff] %v13838_v1  ;;  %v13840_v25 = vld [vmem:[#allocation2 + $0x10] sm:$0xff]  ;;  %v13842_v9 = vld [vmem:[#allocation2 + $0x18] sm:$0xff] }
  0xa0   :  { %18323 = vst [vmem:[#allocation156_spill] sm:$0xff] %v13840_v25  ;;  %18324 = vst [vmem:[#allocation157_spill] sm:$0xff] %v13842_v9  ;;  %v13844_v16 = vld [vmem:[#allocation2 + $0x20] sm:$0xff]  ;;  %v13846_v0 = vld [vmem:[#allocation2 + $0x28] sm:$0xff] }
  0xa1   :  { %18325 = vst [vmem:[#allocation158_spill] sm:$0xff] %v13844_v16  ;;  %18326 = vst [vmem:[#allocation159_spill] sm:$0xff] %v13846_v0  ;;  %v13848_v24 = vld [vmem:[#allocation2 + $0x30] sm:$0xff]  ;;  %v13850_v8 = vld [vmem:[#allocation2 + $0x38] sm:$0xff] }
  0xa2   :  { %18327 = vst [vmem:[#allocation160_spill] sm:$0xff] %v13848_v24  ;;  %18328 = vst [vmem:[#allocation161_spill] sm:$0xff] %v13850_v8  ;;  %v13852_v26 = vld [vmem:[#allocation2 + $0x40] sm:$0xff]  ;;  %v13854_v10 = vld [vmem:[#allocation2 + $0x48] sm:$0xff] }
  0xa3   :  { %18329 = vst [vmem:[#allocation162_spill] sm:$0xff] %v13852_v26  ;;  %18330 = vst [vmem:[#allocation163_spill] sm:$0xff] %v13854_v10  ;;  %v13856_v2 = vld [vmem:[#allocation2 + $0x50] sm:$0xff]  ;;  %v13858_v17 = vld [vmem:[#allocation2 + $0x58] sm:$0xff] }
  0xa4   :  { %18331 = vst [vmem:[#allocation164_spill] sm:$0xff] %v13856_v2  ;;  %18332 = vst [vmem:[#allocation165_spill] sm:$0xff] %v13858_v17  ;;  %v13860_v1 = vld [vmem:[#allocation2 + $0x60] sm:$0xff]  ;;  %v13862_v25 = vld [vmem:[#allocation2 + $0x68] sm:$0xff] }
  0xa5   :  { %18333 = vst [vmem:[#allocation166_spill] sm:$0xff] %v13860_v1  ;;  %18334 = vst [vmem:[#allocation167_spill] sm:$0xff] %v13862_v25  ;;  %v13864_v9 = vld [vmem:[#allocation2 + $0x70] sm:$0xff]  ;;  %v13866_v16 = vld [vmem:[#allocation2 + $0x78] sm:$0xff] }
  0xa6   :  { %18335 = vst [vmem:[#allocation168_spill] sm:$0xff] %v13864_v9  ;;  %18336 = vst [vmem:[#allocation169_spill] sm:$0xff] %v13866_v16  ;;  %v13868_v0 = vld [vmem:[#allocation2 + $0x80] sm:$0xff]  ;;  %v13870_v24 = vld [vmem:[#allocation2 + $0x88] sm:$0xff] }
  0xa7   :  { %18337 = vst [vmem:[#allocation170_spill] sm:$0xff] %v13868_v0  ;;  %18338 = vst [vmem:[#allocation171_spill] sm:$0xff] %v13870_v24  ;;  %v13872_v8 = vld [vmem:[#allocation2 + $0x90] sm:$0xff]  ;;  %v13874_v26 = vld [vmem:[#allocation2 + $0x98] sm:$0xff] }
  0xa8   :  { %18339 = vst [vmem:[#allocation172_spill] sm:$0xff] %v13872_v8  ;;  %18340 = vst [vmem:[#allocation173_spill] sm:$0xff] %v13874_v26  ;;  %v13876_v10 = vld [vmem:[#allocation2 + $0xa0] sm:$0xff]  ;;  %v13878_v2 = vld [vmem:[#allocation2 + $0xa8] sm:$0xff] }
  0xa9   :  { %18341 = vst [vmem:[#allocation174_spill] sm:$0xff] %v13876_v10  ;;  %18342 = vst [vmem:[#allocation175_spill] sm:$0xff] %v13878_v2  ;;  %v13880_v17 = vld [vmem:[#allocation2 + $0xb0] sm:$0xff]  ;;  %v13882_v1 = vld [vmem:[#allocation2 + $0xb8] sm:$0xff] }
  0xaa   :  { %18343 = vst [vmem:[#allocation176_spill] sm:$0xff] %v13880_v17  ;;  %18344 = vst [vmem:[#allocation177_spill] sm:$0xff] %v13882_v1  ;;  %v13884_v25 = vld [vmem:[#allocation2 + $0xc0] sm:$0xff]  ;;  %v13886_v9 = vld [vmem:[#allocation2 + $0xc8] sm:$0xff] }
  0xab   :  { %18345 = vst [vmem:[#allocation178_spill] sm:$0xff] %v13884_v25  ;;  %18346 = vst [vmem:[#allocation179_spill] sm:$0xff] %v13886_v9  ;;  %v13888_v16 = vld [vmem:[#allocation2 + $0xd0] sm:$0xff]  ;;  %v13890_v0 = vld [vmem:[#allocation2 + $0xd8] sm:$0xff] }
  0xac   :  { %18347 = vst [vmem:[#allocation180_spill] sm:$0xff] %v13888_v16  ;;  %18348 = vst [vmem:[#allocation181_spill] sm:$0xff] %v13890_v0  ;;  %v13892_v24 = vld [vmem:[#allocation2 + $0xe0] sm:$0xff]  ;;  %v13894_v8 = vld [vmem:[#allocation2 + $0xe8] sm:$0xff] }
  0xad   :  { %18349 = vst [vmem:[#allocation182_spill] sm:$0xff] %v13892_v24  ;;  %18350 = vst [vmem:[#allocation183_spill] sm:$0xff] %v13894_v8  ;;  %v13896_v26 = vld [vmem:[#allocation2 + $0xf0] sm:$0xff]  ;;  %v13898_v10 = vld [vmem:[#allocation2 + $0xf8] sm:$0xff] }
  0xae   :  { %18351 = vst [vmem:[#allocation184_spill] sm:$0xff] %v13896_v26  ;;  %18352 = vst [vmem:[#allocation185_spill] sm:$0xff] %v13898_v10 }
  0xaf   :  { %13030 = dma.done.wait [#allocation4 + $0x1], 4096 }
  0xb0   :  { %13031 = vsyncadd [#allocation4 + $0x1], 4294963200  ;;  %v13900_v17 = vld [vmem:[#allocation2 + $0x100] sm:$0xff]  ;;  %v13902_v1 = vld [vmem:[#allocation2 + $0x108] sm:$0xff] }
  0xb1   :  { %18353 = vst [vmem:[#allocation186_spill] sm:$0xff] %v13900_v17  ;;  %18354 = vst [vmem:[#allocation187_spill] sm:$0xff] %v13902_v1  ;;  %v13904_v2 = vld [vmem:[#allocation2 + $0x110] sm:$0xff]  ;;  %v13906_v9 = vld [vmem:[#allocation2 + $0x118] sm:$0xff] }
  0xb2   :  { %18355 = vst [vmem:[#allocation188_spill] sm:$0xff] %v13904_v2  ;;  %18356 = vst [vmem:[#allocation189_spill] sm:$0xff] %v13906_v9  ;;  %v13908_v16 = vld [vmem:[#allocation2 + $0x120] sm:$0xff]  ;;  %v13910_v0 = vld [vmem:[#allocation2 + $0x128] sm:$0xff] }
  0xb3   :  { %18357 = vst [vmem:[#allocation190_spill] sm:$0xff] %v13908_v16  ;;  %18358 = vst [vmem:[#allocation191_spill] sm:$0xff] %v13910_v0  ;;  %v13912_v24 = vld [vmem:[#allocation2 + $0x130] sm:$0xff]  ;;  %v13914_v8 = vld [vmem:[#allocation2 + $0x138] sm:$0xff] }
  0xb4   :  { %18359 = vst [vmem:[#allocation192_spill] sm:$0xff] %v13912_v24  ;;  %18360 = vst [vmem:[#allocation193_spill] sm:$0xff] %v13914_v8  ;;  %v13916_v26 = vld [vmem:[#allocation2 + $0x140] sm:$0xff]  ;;  %v13918_v10 = vld [vmem:[#allocation2 + $0x148] sm:$0xff] }
  0xb5   :  { %18361 = vst [vmem:[#allocation194_spill] sm:$0xff] %v13916_v26  ;;  %18362 = vst [vmem:[#allocation195_spill] sm:$0xff] %v13918_v10  ;;  %v13920_v25 = vld [vmem:[#allocation2 + $0x150] sm:$0xff]  ;;  %v13922_v17 = vld [vmem:[#allocation2 + $0x158] sm:$0xff] }
  0xb6   :  { %18363 = vst [vmem:[#allocation196_spill] sm:$0xff] %v13920_v25  ;;  %18364 = vst [vmem:[#allocation197_spill] sm:$0xff] %v13922_v17  ;;  %v13924_v1 = vld [vmem:[#allocation2 + $0x160] sm:$0xff]  ;;  %v13926_v2 = vld [vmem:[#allocation2 + $0x168] sm:$0xff] }
  0xb7   :  { %18365 = vst [vmem:[#allocation198_spill] sm:$0xff] %v13924_v1  ;;  %18366 = vst [vmem:[#allocation199_spill] sm:$0xff] %v13926_v2  ;;  %v13928_v9 = vld [vmem:[#allocation2 + $0x170] sm:$0xff]  ;;  %v13930_v16 = vld [vmem:[#allocation2 + $0x178] sm:$0xff] }
  0xb8   :  { %18367 = vst [vmem:[#allocation200_spill] sm:$0xff] %v13928_v9  ;;  %18368 = vst [vmem:[#allocation201_spill] sm:$0xff] %v13930_v16  ;;  %v13932_v0 = vld [vmem:[#allocation2 + $0x180] sm:$0xff]  ;;  %v13934_v24 = vld [vmem:[#allocation2 + $0x188] sm:$0xff] }
  0xb9   :  { %18369 = vst [vmem:[#allocation202_spill] sm:$0xff] %v13932_v0  ;;  %18370 = vst [vmem:[#allocation203_spill] sm:$0xff] %v13934_v24  ;;  %v13936_v8 = vld [vmem:[#allocation2 + $0x190] sm:$0xff]  ;;  %v13938_v26 = vld [vmem:[#allocation2 + $0x198] sm:$0xff] }
  0xba   :  { %18371 = vst [vmem:[#allocation204_spill] sm:$0xff] %v13936_v8  ;;  %18372 = vst [vmem:[#allocation205_spill] sm:$0xff] %v13938_v26  ;;  %v13940_v10 = vld [vmem:[#allocation2 + $0x1a0] sm:$0xff]  ;;  %v13942_v25 = vld [vmem:[#allocation2 + $0x1a8] sm:$0xff] }
  0xbb   :  { %18373 = vst [vmem:[#allocation206_spill] sm:$0xff] %v13940_v10  ;;  %18374 = vst [vmem:[#allocation207_spill] sm:$0xff] %v13942_v25  ;;  %v13944_v17 = vld [vmem:[#allocation2 + $0x1b0] sm:$0xff]  ;;  %v13946_v1 = vld [vmem:[#allocation2 + $0x1b8] sm:$0xff] }
  0xbc   :  { %18375 = vst [vmem:[#allocation208_spill] sm:$0xff] %v13944_v17  ;;  %18376 = vst [vmem:[#allocation209_spill] sm:$0xff] %v13946_v1  ;;  %v13948_v2 = vld [vmem:[#allocation2 + $0x1c0] sm:$0xff]  ;;  %v13950_v9 = vld [vmem:[#allocation2 + $0x1c8] sm:$0xff] }
  0xbd   :  { %18377 = vst [vmem:[#allocation210_spill] sm:$0xff] %v13948_v2  ;;  %18378 = vst [vmem:[#allocation211_spill] sm:$0xff] %v13950_v9  ;;  %v13952_v16 = vld [vmem:[#allocation2 + $0x1d0] sm:$0xff]  ;;  %v13954_v0 = vld [vmem:[#allocation2 + $0x1d8] sm:$0xff] }
  0xbe   :  { %18379 = vst [vmem:[#allocation212_spill] sm:$0xff] %v13952_v16  ;;  %18380 = vst [vmem:[#allocation213_spill] sm:$0xff] %v13954_v0  ;;  %v13956_v24 = vld [vmem:[#allocation2 + $0x1e0] sm:$0xff]  ;;  %v13958_v8 = vld [vmem:[#allocation2 + $0x1e8] sm:$0xff] }
  0xbf   :  { %18381 = vst [vmem:[#allocation214_spill] sm:$0xff] %v13956_v24  ;;  %18382 = vst [vmem:[#allocation215_spill] sm:$0xff] %v13958_v8  ;;  %v13960_v26 = vld [vmem:[#allocation2 + $0x1f0] sm:$0xff]  ;;  %v13962_v10 = vld [vmem:[#allocation2 + $0x1f8] sm:$0xff] }
  0xc0   :  { %18383 = vst [vmem:[#allocation216_spill] sm:$0xff] %v13960_v26  ;;  %18384 = vst [vmem:[#allocation217_spill] sm:$0xff] %v13962_v10 }
  0xc1   :  { %13032 = dma.done.wait [#allocation4 + $0x2], 4096 }
  0xc2   :  { %13033 = vsyncadd [#allocation4 + $0x2], 4294963200  ;;  %v11789_v1 = vpack.c.bf16 %v13564_v39, %v13559_v55  ;;  %v11790_v17 = vpack.c.bf16 %v13584_v38, %v13579_v54  ;;  %v11791_v25 = vpack.c.bf16 %v13574_v63, %v13569_v47  ;;  %v11792_v24 = vpack.c.bf16 %v13594_v46, %v13589_v62  ;;  %v465_v46 = vld [vmem:[#allocation2 + $0x2c0] sm:$0xff]  ;;  %v451_v55 = vld [vmem:[#allocation2 + $0x250] sm:$0xff] }
  0xc3   :  { %v512_v0 = vlaneseq  ;;  %v11793_v26 = vpack.c.bf16 %v13604_v37, %v13599_v53  ;;  %v13052_v8 = vmov 1966171168   ;;  %v11794_v16 = vpack.c.bf16 %v13624_v36, %v13619_v52  ;;  %11996 = vmatprep.subr.bf16.mxu1 %v465_v46  ;;  %v442_v46 = vld [vmem:[#allocation2 + $0x208] sm:$0xff]  ;;  %v452_v9 = vld [vmem:[#allocation2 + $0x258] sm:$0xff] }
  0xc4   :  { %v510_v10 = vunpack.c.l.s4 %v13052_v8  ;;  %v11795_v39 = vpack.c.bf16 %v13614_v45, %v13609_v61  ;;  %v11796_v38 = vpack.c.bf16 %v13634_v44, %v13629_v60  ;;  %v449_v8 = vld [vmem:[#allocation2 + $0x240] sm:$0xff]  ;;  %v450_v61 = vld [vmem:[#allocation2 + $0x248] sm:$0xff] }
  0xc5   :  { %v13980_v54 = vshrl.u32 %v512_v0, 7  ;;  %v441_v60 = vld [vmem:[#allocation2 + $0x200] sm:$0xff]  ;;  %11938 = vmatprep.subr.bf16.mxu0 %v449_v8  ;;  %v466_v44 = vld [vmem:[#allocation2 + $0x2c8] sm:$0xff] }
  0xc6   :  { %v511_v37 = vunpack.c.0.s8 %v510_v10  ;;  %v457_v0 = vld [vmem:[#allocation2 + $0x280] sm:$0xff]  ;;  %11939 = vmatpush3.bf16.msra.mxu0 %v441_v60  ;;  %v458_v8 = vld [vmem:[#allocation2 + $0x288] sm:$0xff] }
  0xc7   :  { %18385 = vst [vmem:[#allocation218_spill] sm:$0xff] %v13980_v54  ;;  %11997 = vmatpush3.bf16.msra.mxu1 %v457_v0  ;;  %11940 = vmatprep.subr.bf16.mxu0 %v450_v61 }
  0xc8   :  { %v14003_v36 = vsub.s32 %v511_v37, %v13980_v54  ;;  %11998 = vmatprep.subr.bf16.mxu1 %v466_v44 }
  0xca   :  { %v515_v52 = vrot.slane %v11789_v1, %v14003_v36  ;;  %v522_v62 = vrot.slane %v11790_v17, %v14003_v36  ;;  %v529_v63 = vrot.slane %v11791_v25, %v14003_v36  ;;  %v536_v10 = vrot.slane %v11792_v24, %v14003_v36  ;;  %v467_v17 = vld [vmem:[#allocation2 + $0x2d0] sm:$0xff]  ;;  %11941 = vmatpush3.bf16.msra.mxu0 %v442_v46 }
  0xcb   :  { %v583_v37 = vrot.slane %v11793_v26, %v14003_v36  ;;  %v590_v47 = vrot.slane %v11794_v16, %v14003_v36  ;;  %v597_v1 = vrot.slane %v11795_v39, %v14003_v36  ;;  %v604_v60 = vrot.slane %v11796_v38, %v14003_v36  ;;  %11999 = vmatpush3.bf16.msra.mxu1 %v458_v8  ;;  %v459_v38 = vld [vmem:[#allocation2 + $0x290] sm:$0xff] }
  0xcc   :  { %v537_v45 = vcombine.low %v515_v52, %v529_v63  ;;  %v538_v53 = vcombine.high %v515_v52, %v529_v63  ;;  %v539_v54 = vcombine.low %v522_v62, %v536_v10  ;;  %v540_v25 = vcombine.high %v522_v62, %v536_v10  ;;  %11942 = vmatprep.subr.bf16.mxu0 %v451_v55  ;;  %v443_v62 = vld [vmem:[#allocation2 + $0x210] sm:$0xff] }
  0xcd   :  { %v605_v44 = vcombine.low %v583_v37, %v597_v1  ;;  %v606_v61 = vcombine.high %v583_v37, %v597_v1  ;;  %v607_v63 = vcombine.low %v590_v47, %v604_v60  ;;  %12000 = vmatprep.subr.bf16.mxu1 %v467_v17  ;;  %v608_v24 = vcombine.high %v590_v47, %v604_v60 }
  0xce   :  { %v547_v26 = vrot.slane %v537_v45, %v14003_v36  ;;  %v561_v16 = vrot.slane %v538_v53, %v14003_v36  ;;  %v554_v52 = vrot.slane %v539_v54, %v14003_v36  ;;  %v568_v39 = vrot.slane %v540_v25, %v14003_v36  ;;  %v468_v45 = vld [vmem:[#allocation2 + $0x2d8] sm:$0xff]  ;;  %11943 = vmatpush3.bf16.msra.mxu0 %v443_v62 }
  0xcf   :  { %v615_v37 = vrot.slane %v605_v44, %v14003_v36  ;;  %v622_v46 = vrot.slane %v607_v63, %v14003_v36  ;;  %v629_v55 = vrot.slane %v606_v61, %v14003_v36  ;;  %v636_v1 = vrot.slane %v608_v24, %v14003_v36  ;;  %12001 = vmatpush3.bf16.msra.mxu1 %v459_v38  ;;  %v453_v24 = vld [vmem:[#allocation2 + $0x260] sm:$0xff] }
  0xd0   :  { %v1108_v0 = vcombine.low %v547_v26, %v561_v16  ;;  %v11842_v10 = vcombine.high %v547_v26, %v561_v16  ;;  %v1110_v2 = vcombine.low %v554_v52, %v568_v39  ;;  %v11843_v53 = vcombine.high %v554_v52, %v568_v39  ;;  %11944 = vmatprep.subr.bf16.mxu0 %v452_v9  ;;  %v444_v26 = vld [vmem:[#allocation2 + $0x218] sm:$0xff]  ;;  %v469_v39 = vld [vmem:[#allocation2 + $0x2e0] sm:$0xff] }
  0xd1   :  { %v18386_v25 = vpack.c.bf16 %v13644_v35, %v13639_v51  ;;  %12002 = vmatprep.subr.bf16.mxu1 %v468_v45  ;;  %v460_v16 = vld [vmem:[#allocation2 + $0x298] sm:$0xff]  ;;  %v1176_v52 = vcombine.low %v615_v37, %v629_v55  ;;  %v1178_v38 = vcombine.low %v622_v46, %v636_v1 }
  0xd2   :  { %v1118_v54 = vrot.slane %v1108_v0, %v14003_v36  ;;  %v1125_v8 = vrot.slane %v11842_v10, %v14003_v36  ;;  %v1132_v47 = vrot.slane %v1110_v2, %v14003_v36  ;;  %v1139_v17 = vrot.slane %v11843_v53, %v14003_v36  ;;  %11945 = vmatpush3.bf16.msra.mxu0 %v444_v26  ;;  %v470_v26 = vld [vmem:[#allocation2 + $0x2e8] sm:$0xff] }
  0xd3   :  { %v14045_v60 = vrot.slane %v18386_v25, %v14003_v36  ;;  %v11844_v2 = vcombine.high %v615_v37, %v629_v55  ;;  %v11845_v53 = vcombine.high %v622_v46, %v636_v1  ;;  %v1186_v25 = vrot.slane %v1176_v52, %v14003_v36  ;;  %12003 = vmatpush3.bf16.msra.mxu1 %v460_v16  ;;  %v461_v37 = vld [vmem:[#allocation2 + $0x2a0] sm:$0xff] }
  0xd4   :  { %v1141_v44 = vcombine.high %v1118_v54, %v1125_v8  ;;  %v1140_v61 = vcombine.low %v1118_v54, %v1125_v8  ;;  %v1143_v63 = vcombine.high %v1132_v47, %v1139_v17  ;;  %v1142_v62 = vcombine.low %v1132_v47, %v1139_v17  ;;  %11946 = vmatprep.subr.bf16.mxu0 %v453_v24  ;;  %v445_v8 = vld [vmem:[#allocation2 + $0x220] sm:$0xff]  ;;  %v454_v17 = vld [vmem:[#allocation2 + $0x268] sm:$0xff] }
  0xd5   :  { %v1193_v54 = vrot.slane %v11844_v2, %v14003_v36  ;;  %12004 = vmatprep.subr.bf16.mxu1 %v469_v39  ;;  %v1200_v55 = vrot.slane %v1178_v38, %v14003_v36  ;;  %v1207_v47 = vrot.slane %v11845_v53, %v14003_v36  ;;  %v18387_v46 = vpack.c.bf16 %v13654_v43, %v13649_v59 }
  0xd6   :  { %v1157_v0 = vrot.slane %v1141_v44, %v14003_v36  ;;  %v1150_v10 = vrot.slane %v1140_v61, %v14003_v36  ;;  %v1171_v9 = vrot.slane %v1143_v63, %v14003_v36  ;;  %v1164_v45 = vrot.slane %v1142_v62, %v14003_v36  ;;  %11947 = vmatpush3.bf16.msra.mxu0 %v445_v8  ;;  %v455_v8 = vld [vmem:[#allocation2 + $0x270] sm:$0xff] }
  0xd7   :  { %v665_v1 = vrot.slane %v18387_v46, %v14003_v36  ;;  %v18388_v52 = vpack.c.bf16 %v13664_v34, %v13659_v50  ;;  %v1209_v39 = vcombine.high %v1186_v25, %v1193_v54  ;;  %v1211_v63 = vcombine.high %v1200_v55, %v1207_v47  ;;  %12005 = vmatpush3.bf16.msra.mxu1 %v461_v37  ;;  %v446_v46 = vld [vmem:[#allocation2 + $0x228] sm:$0xff]  ;;  %v471_v37 = vld [vmem:[#allocation2 + $0x2f0] sm:$0xff] }
  0xd8   :  { %v14059_v16 = vcombine.low %v1157_v0, %v1171_v9  ;;  %v14061_v44 = vcombine.high %v1157_v0, %v1171_v9  ;;  %v14063_v61 = vcombine.low %v1150_v10, %v1164_v45  ;;  %v1208_v62 = vcombine.low %v1186_v25, %v1193_v54  ;;  %11948 = vmatprep.subr.bf16.mxu0 %v454_v17  ;;  %v462_v34 = vld [vmem:[#allocation2 + $0x2a8] sm:$0xff] }
  0xd9   :  { %v658_v24 = vrot.slane %v18388_v52, %v14003_v36  ;;  %v1210_v2 = vcombine.low %v1200_v55, %v1207_v47  ;;  %v18389_v38 = vpack.c.bf16 %v13674_v42, %v13669_v58  ;;  %v673_v0 = vcombine.low %v14045_v60, %v665_v1  ;;  %12006 = vmatprep.subr.bf16.mxu1 %v470_v26  ;;  %v472_v42 = vld [vmem:[#allocation2 + $0x2f8] sm:$0xff] }
  0xda   :  { %v674_v9 = vcombine.high %v14045_v60, %v665_v1  ;;  %v1225_v52 = vrot.slane %v1209_v39, %v14003_v36  ;;  %v1239_v25 = vrot.slane %v1211_v63, %v14003_v36  ;;  %v14078_v54 = vrot.slane %v1208_v62, %v14003_v36  ;;  %1600 = vmatprep.mubr.bf16.mxu0 %v14059_v16 }
  0xdb   :  { %v672_v53 = vrot.slane %v18389_v38, %v14003_v36  ;;  %1688 = vmatprep.mubr.bf16.mxu1 %v14061_v44  ;;  %v1232_v55 = vrot.slane %v1210_v2, %v14003_v36  ;;  %v14083_v1 = vcombine.high %v1150_v10, %v1164_v45  ;;  %v683_v26 = vrot.slane %v673_v0, %v14003_v36  ;;  %v463_v10 = vld [vmem:[#allocation2 + $0x2b0] sm:$0xff]  ;;  %v456_v0 = vld [vmem:[#allocation2 + $0x278] sm:$0xff] }
  0xdc   :  { %v14085_v17 = vcombine.low %v1225_v52, %v1239_v25  ;;  %v697_v39 = vrot.slane %v674_v9, %v14003_v36  ;;  %11949 = vmatpush3.bf16.msra.mxu0 %v446_v46  ;;  %12007 = vmatpush3.bf16.msra.mxu1 %v462_v34  ;;  %v14089_v63 = vcombine.high %v1225_v52, %v1239_v25 }
  0xdd   :  { %v675_v60 = vcombine.low %v658_v24, %v672_v53  ;;  %v676_v47 = vcombine.high %v658_v24, %v672_v53  ;;  %v14092_v62 = vcombine.low %v14078_v54, %v1232_v55  ;;  %11950 = vmatprep.subr.bf16.mxu0 %v455_v8  ;;  %12008 = vmatprep.subr.bf16.mxu1 %v471_v37  ;;  %v447_v24 = vld [vmem:[#allocation2 + $0x230] sm:$0xff] }
  0xde   :  { %v1244_v2 = vcombine.low %v683_v26, %v697_v39  ;;  %v11846_v53 = vcombine.high %v683_v26, %v697_v39  ;;  %v18390_v34 = vpack.c.bf16 %v13684_v33, %v13679_v49  ;;  %v18391_v46 = vpack.c.bf16 %v13694_v41, %v13689_v57 }
  0xdf   :  { %v690_v38 = vrot.slane %v675_v60, %v14003_v36  ;;  %v704_v45 = vrot.slane %v676_v47, %v14003_v36  ;;  %v18392_v25 = vpack.c.bf16 %v13704_v32, %v13699_v48  ;;  %v18393_v37 = vpack.c.bf16 %v13724_v7, %v13719_v23 }
  0xe0   :  { %v717_v9 = vrot.slane %v18390_v34, %v14003_v36  ;;  %v724_v52 = vrot.slane %v18391_v46, %v14003_v36  ;;  %v1254_v39 = vrot.slane %v1244_v2, %v14003_v36  ;;  %v1261_v34 = vrot.slane %v11846_v53, %v14003_v36  ;;  %11951 = vmatpush3.bf16.msra.mxu0 %v447_v24 }
  0xe1   :  { %v743_v8 = vrot.slane %v18392_v25, %v14003_v36  ;;  %v750_v60 = vrot.slane %v18393_v37, %v14003_v36  ;;  %v1246_v47 = vcombine.low %v690_v38, %v704_v45  ;;  %v11847_v26 = vcombine.high %v690_v38, %v704_v45  ;;  %12009 = vmatpush3.bf16.msra.mxu1 %v463_v10  ;;  %v448_v38 = vld [vmem:[#allocation2 + $0x238] sm:$0xff] }
  0xe2   :  { %v725_v41 = vcombine.low %v717_v9, %v724_v52  ;;  %v18394_v46 = vpack.c.bf16 %v13714_v40, %v13709_v56  ;;  %v18395_v25 = vpack.c.bf16 %v13734_v15, %v13729_v31  ;;  %11952 = vmatprep.subr.bf16.mxu0 %v456_v0  ;;  %12010 = vmatprep.subr.bf16.mxu1 %v472_v42  ;;  %v464_v45 = vld [vmem:[#allocation2 + $0x2b8] sm:$0xff] }
  0xe3   :  { %v1268_v2 = vrot.slane %v1246_v47, %v14003_v36  ;;  %v1275_v24 = vrot.slane %v11847_v26, %v14003_v36  ;;  %v1277_v10 = vcombine.high %v1254_v39, %v1261_v34  ;;  %v1276_v53 = vcombine.low %v1254_v39, %v1261_v34 }
  0xe4   :  { %v757_v32 = vrot.slane %v18394_v46, %v14003_v36  ;;  %v764_v7 = vrot.slane %v18395_v25, %v14003_v36  ;;  %v732_v9 = vrot.slane %v725_v41, %v14003_v36  ;;  %11953 = vmatpush3.bf16.msra.mxu0 %v448_v38  ;;  %v18396_v31 = vpack.c.bf16 %v13744_v6, %v13739_v22 }
  0xe5   :  { %v1279_v46 = vcombine.high %v1268_v2, %v1275_v24  ;;  %v1293_v40 = vrot.slane %v1277_v10, %v14003_v36  ;;  %v1278_v56 = vcombine.low %v1268_v2, %v1275_v24  ;;  %12011 = vmatpush3.bf16.msra.mxu1 %v464_v45  ;;  %v1286_v42 = vrot.slane %v1276_v53, %v14003_v36 }
  0xe6   :  { %v765_v52 = vcombine.low %v743_v8, %v757_v32  ;;  %v766_v37 = vcombine.high %v743_v8, %v757_v32  ;;  %v767_v15 = vcombine.low %v750_v60, %v764_v7  ;;  %v768_v0 = vcombine.high %v750_v60, %v764_v7 }
  0xe7   :  { %v1307_v26 = vrot.slane %v1279_v46, %v14003_v36  ;;  %v1300_v39 = vrot.slane %v1278_v56, %v14003_v36  ;;  %v14133_v8 = vcombine.high %v14078_v54, %v1232_v55  ;;  %1601 = vmatmul.mubr.bf16.vlgmr.msra.gmra.mrb[0].mxu0 %v14063_v61  ;;  %v811_v57 = vrot.slane %v18396_v31, %v14003_v36 }
  0xe8   :  { %v775_v47 = vrot.slane %v765_v52, %v14003_v36  ;;  %v782_v41 = vrot.slane %v767_v15, %v14003_v36  ;;  %v789_v32 = vrot.slane %v766_v37, %v14003_v36  ;;  %v796_v34 = vrot.slane %v768_v0, %v14003_v36  ;;  %1689 = vmatmul.mubr.bf16.vlgmr.msra.gmra.mrb[0].mxu1 %v14083_v1 }
  0xe9   :  { %v14138_v7 = vcombine.low %v1293_v40, %v1307_v26  ;;  %v14140_v60 = vcombine.high %v1293_v40, %v1307_v26  ;;  %1608 = vmatprep.mubr.bf16.mxu0 %v14085_v17  ;;  %1696 = vmatprep.mubr.bf16.mxu1 %v14089_v63  ;;  %v14144_v15 = vcombine.low %v1286_v42, %v1300_v39 }
  0xea   :  { %v797_v25 = vcombine.high %v775_v47, %v775_v47  ;;  %v1011_v38 = vunpack.i.h.s16 %v775_v47  ;;  %v1013_v56 = vunpack.i.h.s16 %v789_v32  ;;  %v11817_v45 = vpack.i.b16 %v775_v47, %v732_v9 }
  0xeb   :  { %v798_v54 = vcombine.high %v782_v41, %v782_v41  ;;  %v799_v55 = vcombine.high %v789_v32, %v789_v32  ;;  %v14146_v24 = vcombine.high %v796_v34, %v796_v34  ;;  %v1019_v10 = vunpack.i.h.s16 %v782_v41 }
  0xec   :  { %v1015_v2 = vunpack.i.h.s16 %v797_v25  ;;  %v1021_v53 = vunpack.i.h.s16 %v796_v34  ;;  %v11818_v52 = vpack.i.b16 %v789_v32, %v1011_v38  ;;  %v11819_v40 = vpack.i.b16 %v797_v25, %v1013_v56 }
  0xed   :  { %v1017_v37 = vunpack.i.h.s16 %v799_v55  ;;  %v1023_v46 = vunpack.i.h.s16 %v798_v54  ;;  %v11822_v26 = vpack.i.b16 %v796_v34, %v1019_v10  ;;  %v18397_v32 = vpack.c.bf16 %v13764_v5, %v13759_v21 }
  0xee   :  { %v11820_v0 = vpack.i.b16 %v799_v55, %v1015_v2  ;;  %v11823_v9 = vpack.i.b16 %v798_v54, %v1021_v53  ;;  %v1312_v47 = vcombine.low %v11817_v45, %v11818_v52  ;;  %v14157_v33 = vcombine.high %v1286_v42, %v1300_v39 }
  0xef   :  { %v11821_v23 = vpack.i.b16 %v782_v41, %v1017_v37  ;;  %v11824_v48 = vpack.i.b16 %v14146_v24, %v1023_v46  ;;  %v818_v38 = vrot.slane %v18397_v32, %v14003_v36  ;;  %v18398_v25 = vpack.c.bf16 %v13754_v14, %v13749_v30  ;;  %1609 = vmatmul.mubr.bf16.gmra.mrb[4].mxu0 %v14092_v62 }
  0xf0   :  { %v1313_v58 = vcombine.low %v11819_v40, %v11820_v0  ;;  %v1322_v34 = vrot.slane %v1312_v47, %v14003_v36  ;;  %v18399_v31 = vpack.c.bf16 %v13774_v13, %v13769_v29  ;;  %v18400_v42 = vpack.c.bf16 %v13784_v4, %v13779_v20  ;;  %1697 = vmatmul.mubr.bf16.gmra.mrb[4].mxu1 %v14133_v8 }
  0xf1   :  { %v825_v56 = vrot.slane %v18398_v25, %v14003_v36  ;;  %v1314_v45 = vcombine.low %v11821_v23, %v11822_v26  ;;  %v1315_v54 = vcombine.low %v11823_v9, %v11824_v48  ;;  %1616 = vmatprep.mubr.bf16.mxu0 %v14138_v7  ;;  %1704 = vmatprep.mubr.bf16.mxu1 %v14140_v60  ;;  %v1025_v52 = vunpack.i.h.s16 %v14146_v24 }
  0xf2   :  { %v832_v41 = vrot.slane %v18399_v31, %v14003_v36  ;;  %v1329_v55 = vrot.slane %v1313_v58, %v14003_v36  ;;  %v14173_v39 = vrot.slane %v18400_v42, %v14003_v36  ;;  %v18401_v5 = vpack.c.bf16 %v13804_v3, %v13799_v19 }
  0xf3   :  { %v833_v2 = vcombine.low %v811_v57, %v825_v56  ;;  %v834_v10 = vcombine.high %v811_v57, %v825_v56  ;;  %v1336_v23 = vrot.slane %v1314_v45, %v14003_v36  ;;  %v1343_v48 = vrot.slane %v1315_v54, %v14003_v36 }
  0xf4   :  { %v835_v53 = vcombine.low %v818_v38, %v832_v41  ;;  %v1345_v58 = vcombine.high %v1322_v34, %v1329_v55  ;;  %v1344_v37 = vcombine.low %v1322_v34, %v1329_v55  ;;  %v836_v46 = vcombine.high %v818_v38, %v832_v41 }
  0xf5   :  { %v843_v40 = vrot.slane %v833_v2, %v14003_v36  ;;  %v1347_v26 = vcombine.high %v1336_v23, %v1343_v48  ;;  %v1346_v9 = vcombine.low %v1336_v23, %v1343_v48  ;;  %v857_v47 = vrot.slane %v834_v10, %v14003_v36 }
  0xf6   :  { %v850_v0 = vrot.slane %v835_v53, %v14003_v36  ;;  %v1361_v57 = vrot.slane %v1345_v58, %v14003_v36  ;;  %v1354_v32 = vrot.slane %v1344_v37, %v14003_v36  ;;  %v864_v25 = vrot.slane %v836_v46, %v14003_v36 }
  0xf7   :  { %v865_v56 = vcombine.high %v843_v40, %v843_v40  ;;  %v1375_v24 = vrot.slane %v1347_v26, %v14003_v36  ;;  %v1368_v38 = vrot.slane %v1346_v9, %v14003_v36  ;;  %v867_v34 = vcombine.high %v857_v47, %v857_v47  ;;  %1617 = vmatmul.mubr.bf16.gmra.mrb[8].mxu0 %v14144_v15 }
  0xf8   :  { %v866_v31 = vcombine.high %v850_v0, %v850_v0  ;;  %v1027_v41 = vunpack.i.h.s16 %v843_v40  ;;  %v14190_v45 = vcombine.high %v864_v25, %v864_v25  ;;  %v1029_v54 = vunpack.i.h.s16 %v857_v47  ;;  %1705 = vmatmul.mubr.bf16.gmra.mrb[8].mxu1 %v14157_v33 }
  0xf9   :  { %v1031_v55 = vunpack.i.h.s16 %v865_v56  ;;  %v1035_v42 = vunpack.i.h.s16 %v850_v0  ;;  %v14192_v2 = vcombine.low %v1361_v57, %v1375_v24  ;;  %v14194_v10 = vcombine.high %v1361_v57, %v1375_v24 }
  0xfa   :  { %v14196_v53 = vcombine.low %v1354_v32, %v1368_v38  ;;  %v14198_v23 = vcombine.high %v1354_v32, %v1368_v38  ;;  %v1033_v48 = vunpack.i.h.s16 %v867_v34  ;;  %v1037_v58 = vunpack.i.h.s16 %v864_v25 }
  0xfb   :  { %v1039_v37 = vunpack.i.h.s16 %v866_v31  ;;  %v11825_v46 = vpack.i.b16 %v843_v40, %v1025_v52  ;;  %1624 = vmatprep.mubr.bf16.mxu0 %v14192_v2  ;;  %1712 = vmatprep.mubr.bf16.mxu1 %v14194_v10  ;;  %v11826_v26 = vpack.i.b16 %v857_v47, %v1027_v41  ;;  %v11827_v9 = vpack.i.b16 %v865_v56, %v1029_v54 }
  0xfc   :  { %v11828_v57 = vpack.i.b16 %v867_v34, %v1031_v55  ;;  %v11829_v24 = vpack.i.b16 %v850_v0, %v1033_v48  ;;  %v11830_v13 = vpack.i.b16 %v864_v25, %v1035_v42  ;;  %v11831_v14 = vpack.i.b16 %v866_v31, %v1037_v58  ;;  %v18404_v31 = vld [vmem:[#allocation151_spill] sm:$0xff] }
  0xfd   :  { %v11832_v32 = vpack.i.b16 %v14190_v45, %v1039_v37  ;;  %v1380_v38 = vcombine.low %v11825_v46, %v11826_v26  ;;  %v886_v29 = vrot.slane %v18401_v5, %v14003_v36  ;;  %v18402_v52 = vpack.c.bf16 %v13794_v12, %v13789_v28 }
  0xfe   :  { %v1381_v4 = vcombine.low %v11827_v9, %v11828_v57  ;;  %v1382_v47 = vcombine.low %v11829_v24, %v11830_v13  ;;  %v18403_v0 = vpack.c.bf16 %v13814_v11, %v13809_v27  ;;  %v11815_v34 = vpack.c.bf16 %v18404_v31, %v13819_v18  ;;  %v18406_v27 = vld [vmem:[#allocation153_spill] sm:$0xff] }
  0xff   :  { %v893_v40 = vrot.slane %v18402_v52, %v14003_v36  ;;  %v1383_v56 = vcombine.low %v11831_v14, %v11832_v32  ;;  %v1390_v41 = vrot.slane %v1380_v38, %v14003_v36  ;;  %1625 = vmatmul.mubr.bf16.gmra.mrb[12].mxu0 %v14196_v53  ;;  %v1041_v57 = vunpack.i.h.s16 %v14190_v45 }
 0x100   :  { %v900_v25 = vrot.slane %v18403_v0, %v14003_v36  ;;  %v1397_v54 = vrot.slane %v1381_v4, %v14003_v36  ;;  %v1404_v42 = vrot.slane %v1382_v47, %v14003_v36  ;;  %1713 = vmatmul.mubr.bf16.gmra.mrb[12].mxu1 %v14198_v23  ;;  %v945_v30 = vrot.slane %v11815_v34, %v14003_v36 }
 0x101   :  { %v901_v5 = vcombine.low %v14173_v39, %v893_v40  ;;  %v902_v55 = vcombine.high %v14173_v39, %v893_v40  ;;  %v1411_v13 = vrot.slane %v1383_v56, %v14003_v36 }
 0x102   :  { %v903_v14 = vcombine.low %v886_v29, %v900_v25  ;;  %v904_v48 = vcombine.high %v886_v29, %v900_v25  ;;  %v1413_v58 = vcombine.high %v1390_v41, %v1397_v54  ;;  %v1412_v37 = vcombine.low %v1390_v41, %v1397_v54 }
 0x103   :  { %v911_v46 = vrot.slane %v901_v5, %v14003_v36  ;;  %v925_v26 = vrot.slane %v902_v55, %v14003_v36  ;;  %v1415_v4 = vcombine.high %v1404_v42, %v1411_v13  ;;  %v1414_v9 = vcombine.low %v1404_v42, %v1411_v13 }
 0x104   :  { %v918_v39 = vrot.slane %v903_v14, %v14003_v36  ;;  %v1429_v24 = vrot.slane %v1413_v58, %v14003_v36  ;;  %v1422_v29 = vrot.slane %v1412_v37, %v14003_v36  ;;  %v932_v32 = vrot.slane %v904_v48, %v14003_v36 }
 0x105   :  { %v933_v38 = vcombine.high %v911_v46, %v911_v46  ;;  %v1443_v52 = vrot.slane %v1415_v4, %v14003_v36  ;;  %v1436_v40 = vrot.slane %v1414_v9, %v14003_v36  ;;  %v935_v56 = vcombine.high %v925_v26, %v925_v26 }
 0x106   :  { %v934_v47 = vcombine.high %v918_v39, %v918_v39  ;;  %v936_v0 = vcombine.high %v932_v32, %v932_v32  ;;  %v1043_v25 = vunpack.i.h.s16 %v911_v46  ;;  %v1045_v41 = vunpack.i.h.s16 %v925_v26 }
 0x107   :  { %v1047_v54 = vunpack.i.h.s16 %v933_v38  ;;  %v14236_v5 = vcombine.low %v1429_v24, %v1443_v52  ;;  %v14238_v45 = vcombine.high %v1429_v24, %v1443_v52  ;;  %v14240_v55 = vcombine.low %v1422_v29, %v1436_v40 }
 0x108   :  { %v14242_v42 = vcombine.high %v1422_v29, %v1436_v40  ;;  %v1049_v13 = vunpack.i.h.s16 %v935_v56  ;;  %v1051_v14 = vunpack.i.h.s16 %v918_v39  ;;  %v1053_v48 = vunpack.i.h.s16 %v932_v32  ;;  %v18405_v40 = vld [vmem:[#allocation152_spill] sm:$0xff] }
 0x109   :  { %v1055_v58 = vunpack.i.h.s16 %v934_v47  ;;  %1632 = vmatprep.mubr.bf16.mxu0 %v14236_v5  ;;  %1720 = vmatprep.mubr.bf16.mxu1 %v14238_v45  ;;  %v11833_v37 = vpack.i.b16 %v911_v46, %v1041_v57  ;;  %v11834_v4 = vpack.i.b16 %v925_v26, %v1043_v25  ;;  %v11835_v9 = vpack.i.b16 %v933_v38, %v1045_v41 }
 0x10a   :  { %v11836_v11 = vpack.i.b16 %v935_v56, %v1047_v54  ;;  %v11837_v12 = vpack.i.b16 %v918_v39, %v1049_v13  ;;  %v11838_v3 = vpack.i.b16 %v932_v32, %v1051_v14  ;;  %v11839_v24 = vpack.i.b16 %v934_v47, %v1053_v48  ;;  %1633 = vmatmul.mubr.bf16.gmra.mrb[16].mxu0 %v14240_v55 }
 0x10b   :  { %1721 = vmatmul.mubr.bf16.gmra.mrb[16].mxu1 %v14242_v42  ;;  %v11840_v29 = vpack.i.b16 %v936_v0, %v1055_v58  ;;  %v1448_v52 = vcombine.low %v11833_v37, %v11834_v4  ;;  %v11816_v31 = vpack.c.bf16 %v18406_v27, %v18405_v40  ;;  %v1057_v56 = vunpack.i.h.s16 %v936_v0 }
 0x10c   :  { %v1449_v28 = vcombine.low %v11835_v9, %v11836_v11  ;;  %v1450_v6 = vcombine.low %v11837_v12, %v11838_v3 }
 0x10d   :  { %v1451_v46 = vcombine.low %v11839_v24, %v11840_v29  ;;  %v1458_v26 = vrot.slane %v1448_v52, %v14003_v36  ;;  %v952_v39 = vrot.slane %v11816_v31, %v14003_v36 }
 0x10e   :  { %v1465_v57 = vrot.slane %v1449_v28, %v14003_v36  ;;  %v1472_v32 = vrot.slane %v1450_v6, %v14003_v36 }
 0x10f   :  { %v1479_v38 = vrot.slane %v1451_v46, %v14003_v36  ;;  %v953_v47 = vcombine.low %v945_v30, %v952_v39 }
 0x110   :  { %v1481_v25 = vcombine.high %v1458_v26, %v1465_v57  ;;  %v1480_v41 = vcombine.low %v1458_v26, %v1465_v57 }
 0x111   :  { %v1483_v54 = vcombine.high %v1472_v32, %v1479_v38  ;;  %v1482_v11 = vcombine.low %v1472_v32, %v1479_v38  ;;  %v960_v3 = vrot.slane %v953_v47, %v14003_v36 }
 0x112   :  { %v1497_v12 = vrot.slane %v1481_v25, %v14003_v36  ;;  %v1490_v34 = vrot.slane %v1480_v41, %v14003_v36 }
 0x113   :  { %v1511_v31 = vrot.slane %v1483_v54, %v14003_v36  ;;  %v1504_v28 = vrot.slane %v1482_v11, %v14003_v36  ;;  %v11841_v13 = vpack.i.b16 %v960_v3, %v1057_v56 }
 0x115   :  { %v14261_v6 = vcombine.low %v1497_v12, %v1511_v31  ;;  %v14263_v14 = vcombine.high %v1497_v12, %v1511_v31  ;;  %v14265_v30 = vcombine.low %v1490_v34, %v1504_v28  ;;  %v14267_v0 = vcombine.high %v1490_v34, %v1504_v28 }
 0x116   :  { %v1522_v48 = vrot.slane %v11841_v13, %v14003_v36 }
 0x117   :  { %1640 = vmatprep.mubr.bf16.mxu0 %v14261_v6  ;;  %1728 = vmatprep.mubr.bf16.mxu1 %v14263_v14 }
 0x118   :  { %1641 = vmatmul.mubr.bf16.gmra.mrb[20].mxu0 %v14265_v30  ;;  %1729 = vmatmul.mubr.bf16.gmra.mrb[20].mxu1 %v14267_v0  ;;  %v1523_v58 = vcombine.high %v1522_v48, %v1522_v48  ;;  %v14275_v37 = vrot.slane %v1522_v48, %v14003_v36 }
 0x11a   :  { %v14278_v4 = vrot.slane %v1523_v58, %v14003_v36  ;;  %v14287_v24 = vcombine.high %v14275_v37, %v14275_v37 }
 0x11c   :  { %1648 = vmatprep.mubr.bf16.mxu0 %v14278_v4  ;;  %v14283_v9 = vcombine.high %v14278_v4, %v14278_v4 }
 0x11e   :  { %1736 = vmatprep.mubr.bf16.mxu1 %v14283_v9 }
 0x120   :  { %1649 = vmatmul.mubr.bf16.gmra.mrb[24].mxu0 %v14275_v37  ;;  %1737 = vmatmul.mubr.bf16.gmra.mrb[24].mxu1 %v14287_v24 }
 0x1ba   :  { %v11954_v29 = vpop.f32.mrb[0].mxu0 }
 0x1bb   :  { %v12012_v52 = vpop.f32.mrb[0].mxu1  ;;  %v11955_v46 = vpop.f32.mrb[1].mxu0 }
 0x1bc   :  { %v12013_v26 = vpop.f32.mrb[1].mxu1  ;;  %v11956_v39 = vadd.f32 %v11955_v46, %v11954_v29  ;;  %v11957_v32 = vpop.f32.mrb[2].mxu0 }
 0x1bd   :  { %v12014_v57 = vadd.f32 %v12013_v26, %v12012_v52  ;;  %v12015_v38 = vpop.f32.mrb[2].mxu1  ;;  %v11958_v47 = vpop.f32.mrb[3].mxu0 }
 0x1be   :  { %v12016_v56 = vpop.f32.mrb[3].mxu1  ;;  %v11959_v41 = vadd.f32 %v11958_v47, %v11957_v32 }
 0x1bf   :  { %v1691_v25 = vadd.f32 %v12014_v57, %v11956_v39  ;;  %v12017_v54 = vadd.f32 %v12016_v56, %v12015_v38 }
 0x1c1   :  { %v1757_v11 = vcombine.high %v1691_v25, %v1691_v25  ;;  %v1764_v3 = vrot.slane %v1691_v25, %v14003_v36  ;;  %v1694_v12 = vadd.f32 %v12017_v54, %v11959_v41 }
 0x1c2   :  { %v11960_v48 = vpop.f32.mrb[4].mxu0 }
 0x1c3   :  { %v1771_v34 = vrot.slane %v1757_v11, %v14003_v36  ;;  %v1772_v31 = vcombine.high %v1764_v3, %v1764_v3  ;;  %v14295_v28 = vrot.slane %v1764_v3, %v14003_v36  ;;  %v1806_v13 = vcombine.high %v1694_v12, %v1694_v12  ;;  %v12018_v58 = vpop.f32.mrb[4].mxu1  ;;  %v11961_v52 = vpop.f32.mrb[5].mxu0 }
 0x1c4   :  { %v1813_v29 = vrot.slane %v1694_v12, %v14003_v36  ;;  %v12019_v46 = vpop.f32.mrb[5].mxu1  ;;  %v11963_v38 = vpop.f32.mrb[6].mxu0  ;;  %v11962_v41 = vadd.f32 %v11961_v52, %v11960_v48 }
 0x1c5   :  { %18407 = vst [vmem:[#allocation219_spill] sm:$0xff] %v14295_v28  ;;  %v1773_v26 = vcombine.high %v1771_v34, %v1771_v34  ;;  %v14299_v39 = vrot.slane %v1771_v34, %v14003_v36  ;;  %v14302_v57 = vrot.slane %v1772_v31, %v14003_v36  ;;  %v1820_v32 = vrot.slane %v1806_v13, %v14003_v36  ;;  %v12021_v47 = vpop.f32.mrb[6].mxu1  ;;  %v11964_v11 = vpop.f32.mrb[7].mxu0 }
 0x1c6   :  { %v1821_v56 = vcombine.high %v1813_v29, %v1813_v29  ;;  %v14306_v25 = vrot.slane %v1813_v29, %v14003_v36  ;;  %v12020_v54 = vadd.f32 %v12019_v46, %v12018_v58  ;;  %v12022_v3 = vpop.f32.mrb[7].mxu1  ;;  %v11965_v31 = vadd.f32 %v11964_v11, %v11963_v38 }
 0x1c7   :  { %18408 = vst [vmem:[#allocation220_spill] sm:$0xff] %v14299_v39  ;;  %18409 = vst [vmem:[#allocation221_spill] sm:$0xff] %v14302_v57  ;;  %v14309_v12 = vrot.slane %v1773_v26, %v14003_v36  ;;  %v1822_v34 = vcombine.high %v1820_v32, %v1820_v32  ;;  %v14312_v27 = vrot.slane %v1820_v32, %v14003_v36 }
 0x1c8   :  { %18410 = vst [vmem:[#allocation222_spill] sm:$0xff] %v14306_v25  ;;  %v14315_v13 = vrot.slane %v1821_v56, %v14003_v36  ;;  %v1699_v40 = vadd.f32 %v12020_v54, %v11962_v41  ;;  %v12023_v19 = vadd.f32 %v12022_v3, %v12021_v47 }
 0x1c9   :  { %18411 = vst [vmem:[#allocation223_spill] sm:$0xff] %v14309_v12  ;;  %18412 = vst [vmem:[#allocation224_spill] sm:$0xff] %v14312_v27  ;;  %v14318_v29 = vrot.slane %v1822_v34, %v14003_v36 }
 0x1ca   :  { %18413 = vst [vmem:[#allocation225_spill] sm:$0xff] %v14315_v13  ;;  %v1855_v48 = vcombine.high %v1699_v40, %v1699_v40  ;;  %v1862_v58 = vrot.slane %v1699_v40, %v14003_v36  ;;  %v1702_v52 = vadd.f32 %v12023_v19, %v11965_v31  ;;  %v11966_v46 = vpop.f32.mrb[8].mxu0 }
 0x1cb   :  { %18414 = vst [vmem:[#allocation226_spill] sm:$0xff] %v14318_v29  ;;  %v12024_v26 = vpop.f32.mrb[8].mxu1  ;;  %v11967_v56 = vpop.f32.mrb[9].mxu0 }
 0x1cc   :  { %v1869_v18 = vrot.slane %v1855_v48, %v14003_v36  ;;  %v1870_v20 = vcombine.high %v1862_v58, %v1862_v58  ;;  %v14323_v32 = vrot.slane %v1862_v58, %v14003_v36  ;;  %v1904_v38 = vcombine.high %v1702_v52, %v1702_v52  ;;  %v12025_v11 = vpop.f32.mrb[9].mxu1  ;;  %v11969_v3 = vpop.f32.mrb[10].mxu0 }
 0x1cd   :  { %v1911_v47 = vrot.slane %v1702_v52, %v14003_v36  ;;  %v11968_v41 = vadd.f32 %v11967_v56, %v11966_v46  ;;  %v12026_v54 = vadd.f32 %v12025_v11, %v12024_v26  ;;  %v12027_v34 = vpop.f32.mrb[10].mxu1  ;;  %v11970_v48 = vpop.f32.mrb[11].mxu0 }
 0x1ce   :  { %18415 = vst [vmem:[#allocation227_spill] sm:$0xff] %v14323_v32  ;;  %v1871_v21 = vcombine.high %v1869_v18, %v1869_v18  ;;  %v14327_v19 = vrot.slane %v1869_v18, %v14003_v36  ;;  %v14330_v40 = vrot.slane %v1870_v20, %v14003_v36  ;;  %v1918_v31 = vrot.slane %v1904_v38, %v14003_v36  ;;  %v12028_v58 = vpop.f32.mrb[11].mxu1 }
 0x1cf   :  { %v1919_v22 = vcombine.high %v1911_v47, %v1911_v47  ;;  %v14334_v43 = vrot.slane %v1911_v47, %v14003_v36  ;;  %v1707_v52 = vadd.f32 %v12026_v54, %v11968_v41  ;;  %v11971_v46 = vadd.f32 %v11970_v48, %v11969_v3 }
 0x1d0   :  { %18416 = vst [vmem:[#allocation228_spill] sm:$0xff] %v14327_v19  ;;  %18417 = vst [vmem:[#allocation229_spill] sm:$0xff] %v14330_v40  ;;  %v14337_v26 = vrot.slane %v1871_v21, %v14003_v36  ;;  %v1920_v56 = vcombine.high %v1918_v31, %v1918_v31  ;;  %v14340_v18 = vrot.slane %v1918_v31, %v14003_v36 }
 0x1d1   :  { %18418 = vst [vmem:[#allocation230_spill] sm:$0xff] %v14334_v43  ;;  %v12029_v11 = vadd.f32 %v12028_v58, %v12027_v34  ;;  %v14343_v20 = vrot.slane %v1919_v22, %v14003_v36  ;;  %v1953_v38 = vcombine.high %v1707_v52, %v1707_v52  ;;  %v1960_v49 = vrot.slane %v1707_v52, %v14003_v36 }
 0x1d2   :  { %18419 = vst [vmem:[#allocation231_spill] sm:$0xff] %v14337_v26  ;;  %18420 = vst [vmem:[#allocation232_spill] sm:$0xff] %v14340_v18  ;;  %v14347_v59 = vrot.slane %v1920_v56, %v14003_v36  ;;  %v11972_v3 = vpop.f32.mrb[12].mxu0 }
 0x1d3   :  { %18421 = vst [vmem:[#allocation233_spill] sm:$0xff] %v14343_v20  ;;  %v1710_v47 = vadd.f32 %v12029_v11, %v11971_v46  ;;  %v1967_v41 = vrot.slane %v1953_v38, %v14003_v36  ;;  %v1968_v54 = vcombine.high %v1960_v49, %v1960_v49  ;;  %v14351_v21 = vrot.slane %v1960_v49, %v14003_v36  ;;  %v12030_v31 = vpop.f32.mrb[12].mxu1  ;;  %v11973_v22 = vpop.f32.mrb[13].mxu0 }
 0x1d4   :  { %18422 = vst [vmem:[#allocation234_spill] sm:$0xff] %v14347_v59  ;;  %v12031_v58 = vpop.f32.mrb[13].mxu1  ;;  %v11974_v46 = vadd.f32 %v11973_v22, %v11972_v3  ;;  %v11975_v11 = vpop.f32.mrb[14].mxu0 }
 0x1d5   :  { %18423 = vst [vmem:[#allocation235_spill] sm:$0xff] %v14351_v21  ;;  %v2002_v48 = vcombine.high %v1710_v47, %v1710_v47  ;;  %v2009_v34 = vrot.slane %v1710_v47, %v14003_v36  ;;  %v1969_v50 = vcombine.high %v1967_v41, %v1967_v41  ;;  %v14355_v52 = vrot.slane %v1967_v41, %v14003_v36  ;;  %v12033_v38 = vpop.f32.mrb[14].mxu1  ;;  %v11976_v47 = vpop.f32.mrb[15].mxu0 }
 0x1d6   :  { %v14358_v56 = vrot.slane %v1968_v54, %v14003_v36  ;;  %v12032_v21 = vadd.f32 %v12031_v58, %v12030_v31  ;;  %v12034_v18 = vpop.f32.mrb[15].mxu1  ;;  %v11977_v41 = vadd.f32 %v11976_v47, %v11975_v11 }
 0x1d7   :  { %18424 = vst [vmem:[#allocation236_spill] sm:$0xff] %v14355_v52  ;;  %v2016_v49 = vrot.slane %v2002_v48, %v14003_v36  ;;  %v2017_v35 = vcombine.high %v2009_v34, %v2009_v34  ;;  %v14362_v51 = vrot.slane %v2009_v34, %v14003_v36  ;;  %v14365_v59 = vrot.slane %v1969_v50, %v14003_v36 }
 0x1d8   :  { %18425 = vst [vmem:[#allocation237_spill] sm:$0xff] %v14358_v56  ;;  %v12035_v52 = vadd.f32 %v12034_v18, %v12033_v38  ;;  %v1715_v48 = vadd.f32 %v12032_v21, %v11974_v46 }
 0x1d9   :  { %18426 = vst [vmem:[#allocation238_spill] sm:$0xff] %v14362_v51  ;;  %18427 = vst [vmem:[#allocation239_spill] sm:$0xff] %v14365_v59  ;;  %v2018_v43 = vcombine.high %v2016_v49, %v2016_v49  ;;  %v14368_v54 = vrot.slane %v2016_v49, %v14003_v36  ;;  %v14371_v3 = vrot.slane %v2017_v35, %v14003_v36 }
 0x1da   :  { %v1718_v22 = vadd.f32 %v12035_v52, %v11977_v41  ;;  %v2051_v31 = vcombine.high %v1715_v48, %v1715_v48  ;;  %v2058_v58 = vrot.slane %v1715_v48, %v14003_v36 }
 0x1db   :  { %18428 = vst [vmem:[#allocation240_spill] sm:$0xff] %v14368_v54  ;;  %18429 = vst [vmem:[#allocation241_spill] sm:$0xff] %v14371_v3  ;;  %v14374_v34 = vrot.slane %v2018_v43, %v14003_v36 }
 0x1dc   :  { %v2100_v51 = vcombine.high %v1718_v22, %v1718_v22  ;;  %v2107_v50 = vrot.slane %v1718_v22, %v14003_v36  ;;  %v2065_v38 = vrot.slane %v2051_v31, %v14003_v36  ;;  %v2066_v49 = vcombine.high %v2058_v58, %v2058_v58 }
 0x1dd   :  { %18430 = vst [vmem:[#allocation242_spill] sm:$0xff] %v14374_v34  ;;  %v11978_v11 = vpop.f32.mrb[16].mxu0  ;;  %v14380_v47 = vrot.slane %v2058_v58, %v14003_v36 }
 0x1de   :  { %v12036_v18 = vpop.f32.mrb[16].mxu1  ;;  %v11979_v35 = vpop.f32.mrb[17].mxu0  ;;  %v2114_v52 = vrot.slane %v2100_v51, %v14003_v36  ;;  %v2115_v43 = vcombine.high %v2107_v50, %v2107_v50  ;;  %v14384_v46 = vrot.slane %v2107_v50, %v14003_v36  ;;  %v2067_v22 = vcombine.high %v2065_v38, %v2065_v38 }
 0x1df   :  { %18431 = vst [vmem:[#allocation243_spill] sm:$0xff] %v14380_v47  ;;  %v12037_v21 = vpop.f32.mrb[17].mxu1  ;;  %v11980_v41 = vadd.f32 %v11979_v35, %v11978_v11  ;;  %v11981_v48 = vpop.f32.mrb[18].mxu0  ;;  %v14387_v34 = vrot.slane %v2065_v38, %v14003_v36  ;;  %v14390_v31 = vrot.slane %v2066_v49, %v14003_v36 }
 0x1e0   :  { %18432 = vst [vmem:[#allocation244_spill] sm:$0xff] %v14384_v46  ;;  %v12039_v54 = vpop.f32.mrb[18].mxu1  ;;  %v11982_v3 = vpop.f32.mrb[19].mxu0  ;;  %v2116_v51 = vcombine.high %v2114_v52, %v2114_v52  ;;  %v14395_v56 = vrot.slane %v2114_v52, %v14003_v36  ;;  %v14398_v50 = vrot.slane %v2115_v43, %v14003_v36  ;;  %v14403_v38 = vrot.slane %v2067_v22, %v14003_v36 }
 0x1e1   :  { %18433 = vst [vmem:[#allocation245_spill] sm:$0xff] %v14387_v34  ;;  %18434 = vst [vmem:[#allocation246_spill] sm:$0xff] %v14390_v31  ;;  %v12040_v59 = vpop.f32.mrb[19].mxu1  ;;  %v12038_v58 = vadd.f32 %v12037_v21, %v12036_v18  ;;  %v11983_v11 = vadd.f32 %v11982_v3, %v11981_v48 }
 0x1e2   :  { %18435 = vst [vmem:[#allocation247_spill] sm:$0xff] %v14395_v56  ;;  %18436 = vst [vmem:[#allocation248_spill] sm:$0xff] %v14398_v50  ;;  %v14410_v47 = vrot.slane %v2116_v51, %v14003_v36  ;;  %v12041_v20 = vadd.f32 %v12040_v59, %v12039_v54 }
 0x1e3   :  { %18437 = vst [vmem:[#allocation249_spill] sm:$0xff] %v14403_v38  ;;  %v1723_v46 = vadd.f32 %v12038_v58, %v11980_v41 }
 0x1e4   :  { %18438 = vst [vmem:[#allocation250_spill] sm:$0xff] %v14410_v47  ;;  %v1726_v21 = vadd.f32 %v12041_v20, %v11983_v11 }
 0x1e5   :  { %v2149_v35 = vcombine.high %v1723_v46, %v1723_v46  ;;  %v2156_v18 = vrot.slane %v1723_v46, %v14003_v36 }
 0x1e6   :  { %v2198_v43 = vcombine.high %v1726_v21, %v1726_v21  ;;  %v2205_v3 = vrot.slane %v1726_v21, %v14003_v36 }
 0x1e7   :  { %v2163_v51 = vrot.slane %v2149_v35, %v14003_v36  ;;  %v2164_v34 = vcombine.high %v2156_v18, %v2156_v18  ;;  %v14423_v52 = vrot.slane %v2156_v18, %v14003_v36 }
 0x1e8   :  { %v2212_v58 = vrot.slane %v2198_v43, %v14003_v36  ;;  %v2213_v11 = vcombine.high %v2205_v3, %v2205_v3  ;;  %v14436_v35 = vrot.slane %v2205_v3, %v14003_v36 }
 0x1e9   :  { %18439 = vst [vmem:[#allocation251_spill] sm:$0xff] %v14423_v52  ;;  %v2165_v48 = vcombine.high %v2163_v51, %v2163_v51  ;;  %v14427_v41 = vrot.slane %v2163_v51, %v14003_v36  ;;  %v14430_v59 = vrot.slane %v2164_v34, %v14003_v36 }
 0x1ea   :  { %18442 = vst [vmem:[#allocation254_spill] sm:$0xff] %v14436_v35  ;;  %v2214_v47 = vcombine.high %v2212_v58, %v2212_v58  ;;  %v14446_v43 = vrot.slane %v2212_v58, %v14003_v36  ;;  %v14449_v3 = vrot.slane %v2213_v11, %v14003_v36 }
 0x1eb   :  { %18440 = vst [vmem:[#allocation252_spill] sm:$0xff] %v14427_v41  ;;  %18441 = vst [vmem:[#allocation253_spill] sm:$0xff] %v14430_v59  ;;  %v11984_v20 = vpop.f32.mrb[20].mxu0  ;;  %v12042_v46 = vpop.f32.mrb[20].mxu1  ;;  %v14439_v49 = vrot.slane %v2165_v48, %v14003_v36 }
 0x1ec   :  { %v11985_v18 = vpop.f32.mrb[21].mxu0  ;;  %v12043_v21 = vpop.f32.mrb[21].mxu1  ;;  %18444 = vst [vmem:[#allocation256_spill] sm:$0xff] %v14446_v43  ;;  %18445 = vst [vmem:[#allocation257_spill] sm:$0xff] %v14449_v3 }
 0x1ed   :  { %18443 = vst [vmem:[#allocation255_spill] sm:$0xff] %v14439_v49  ;;  %v11986_v54 = vadd.f32 %v11985_v18, %v11984_v20  ;;  %v11987_v22 = vpop.f32.mrb[22].mxu0  ;;  %v12045_v52 = vpop.f32.mrb[22].mxu1  ;;  %v12044_v41 = vadd.f32 %v12043_v21, %v12042_v46  ;;  %v14456_v18 = vrot.slane %v2214_v47, %v14003_v36 }
 0x1ee   :  { %v11988_v56 = vpop.f32.mrb[23].mxu0  ;;  %v12046_v50 = vpop.f32.mrb[23].mxu1 }
 0x1ef   :  { %v11989_v51 = vadd.f32 %v11988_v56, %v11987_v22  ;;  %v12047_v20 = vadd.f32 %v12046_v50, %v12045_v52  ;;  %18446 = vst [vmem:[#allocation258_spill] sm:$0xff] %v14456_v18  ;;  %v1731_v59 = vadd.f32 %v12044_v41, %v11986_v54 }
 0x1f1   :  { %v1734_v38 = vadd.f32 %v12047_v20, %v11989_v51  ;;  %v2247_v35 = vcombine.high %v1731_v59, %v1731_v59  ;;  %v2254_v34 = vrot.slane %v1731_v59, %v14003_v36 }
 0x1f3   :  { %v2296_v46 = vcombine.high %v1734_v38, %v1734_v38  ;;  %v2303_v56 = vrot.slane %v1734_v38, %v14003_v36  ;;  %v11990_v50 = vpop.f32.mrb[24].mxu0  ;;  %v12048_v47 = vpop.f32.mrb[24].mxu1  ;;  %v2261_v21 = vrot.slane %v2247_v35, %v14003_v36  ;;  %v2262_v58 = vcombine.high %v2254_v34, %v2254_v34 }
 0x1f4   :  { %v11991_v52 = vpop.f32.mrb[25].mxu0  ;;  %v12049_v22 = vpop.f32.mrb[25].mxu1  ;;  %v14468_v11 = vrot.slane %v2254_v34, %v14003_v36 }
 0x1f5   :  { %v2310_v41 = vrot.slane %v2296_v46, %v14003_v36  ;;  %v11993_v54 = vpop.f32.mrb[26].mxu0  ;;  %v12051_v51 = vpop.f32.mrb[26].mxu1  ;;  %v2311_v20 = vcombine.high %v2303_v56, %v2303_v56  ;;  %v14472_v59 = vrot.slane %v2303_v56, %v14003_v36  ;;  %v11992_v48 = vadd.f32 %v11991_v52, %v11990_v50 }
 0x1f6   :  { %18447 = vst [vmem:[#allocation259_spill] sm:$0xff] %v14468_v11  ;;  %v12050_v38 = vadd.f32 %v12049_v22, %v12048_v47  ;;  %v11994_v18 = vpop.f32.mrb[27].mxu0  ;;  %v12052_v43 = vpop.f32.mrb[27].mxu1  ;;  %v2263_v3 = vcombine.high %v2261_v21, %v2261_v21  ;;  %v14475_v49 = vrot.slane %v2261_v21, %v14003_v36  ;;  %v14478_v35 = vrot.slane %v2262_v58, %v14003_v36 }
 0x1f7   :  { %18448 = vst [vmem:[#allocation260_spill] sm:$0xff] %v14472_v59  ;;  %v2312_v46 = vcombine.high %v2310_v41, %v2310_v41  ;;  %v14483_v54 = vrot.slane %v2310_v41, %v14003_v36  ;;  %v14486_v56 = vrot.slane %v2311_v20, %v14003_v36 }
 0x1f8   :  { %18449 = vst [vmem:[#allocation261_spill] sm:$0xff] %v14475_v49  ;;  %18450 = vst [vmem:[#allocation262_spill] sm:$0xff] %v14478_v35  ;;  %v14491_v18 = vrot.slane %v2263_v3, %v14003_v36  ;;  %v1739_v47 = vadd.f32 %v12050_v38, %v11992_v48 }
 0x1f9   :  { %18451 = vst [vmem:[#allocation263_spill] sm:$0xff] %v14483_v54  ;;  %18452 = vst [vmem:[#allocation264_spill] sm:$0xff] %v14486_v56  ;;  %v14498_v52 = vrot.slane %v2312_v46, %v14003_v36 }
 0x1fa   :  { %18453 = vst [vmem:[#allocation265_spill] sm:$0xff] %v14491_v18  ;;  %v14507_v41 = vrot.slane %v1739_v47, %v14003_v36 }
 0x1fb   :  { %18454 = vst [vmem:[#allocation266_spill] sm:$0xff] %v14498_v52 }
 0x1fc   :  { %18455 = vst [vmem:[#allocation267_spill] sm:$0xff] %v14507_v41  ;;  %v2352_v48 = vcombine.high %v14507_v41, %v14507_v41 }
 0x1fe   :  { %v14516_v38 = vrot.slane %v2352_v48, %v14003_v36 }
 0x200   :  { %18456 = vst [vmem:[#allocation268_spill] sm:$0xff] %v14516_v38 }
 0x201   :  { %13034 = dma.done.wait [#allocation4 + $0x3], 4096 }
 0x202   :  { %13035 = vsyncadd [#allocation4 + $0x3], 4294963200  ;;  %2433 = vmatprep.mubr.bf16.mxu0 %v14059_v16  ;;  %2521 = vmatprep.mubr.bf16.mxu1 %v14061_v44  ;;  %v2377_v46 = vld [vmem:[#allocation2 + $0x340] sm:$0xff]  ;;  %v2378_v21 = vld [vmem:[#allocation2 + $0x348] sm:$0xff] }
 0x203   :  { %v2393_v47 = vld [vmem:[#allocation2 + $0x3c0] sm:$0xff]  ;;  %12054 = vmatprep.subr.bf16.mxu0 %v2377_v46  ;;  %v2394_v43 = vld [vmem:[#allocation2 + $0x3c8] sm:$0xff]  ;;  %v2379_v3 = vld [vmem:[#allocation2 + $0x350] sm:$0xff] }
 0x204   :  { %v2369_v22 = vld [vmem:[#allocation2 + $0x300] sm:$0xff]  ;;  %12112 = vmatprep.subr.bf16.mxu1 %v2393_v47  ;;  %v2370_v48 = vld [vmem:[#allocation2 + $0x308] sm:$0xff]  ;;  %v2395_v58 = vld [vmem:[#allocation2 + $0x3d0] sm:$0xff] }
 0x205   :  { %v2385_v51 = vld [vmem:[#allocation2 + $0x380] sm:$0xff]  ;;  %12055 = vmatpush3.bf16.msra.mxu0 %v2369_v22  ;;  %v2386_v20 = vld [vmem:[#allocation2 + $0x388] sm:$0xff]  ;;  %v2371_v50 = vld [vmem:[#allocation2 + $0x310] sm:$0xff] }
 0x206   :  { %12113 = vmatpush3.bf16.msra.mxu1 %v2385_v51  ;;  %12056 = vmatprep.subr.bf16.mxu0 %v2378_v21  ;;  %v2387_v34 = vld [vmem:[#allocation2 + $0x390] sm:$0xff]  ;;  %v2380_v38 = vld [vmem:[#allocation2 + $0x358] sm:$0xff]  ;;  %v2381_v21 = vld [vmem:[#allocation2 + $0x360] sm:$0xff] }
 0x207   :  { %12114 = vmatprep.subr.bf16.mxu1 %v2394_v43  ;;  %v2396_v46 = vld [vmem:[#allocation2 + $0x3d8] sm:$0xff]  ;;  %v2397_v43 = vld [vmem:[#allocation2 + $0x3e0] sm:$0xff] }
 0x208   :  { %v2372_v22 = vld [vmem:[#allocation2 + $0x318] sm:$0xff]  ;;  %v2373_v47 = vld [vmem:[#allocation2 + $0x320] sm:$0xff] }
 0x209   :  { %12057 = vmatpush3.bf16.msra.mxu0 %v2370_v48  ;;  %v2388_v51 = vld [vmem:[#allocation2 + $0x398] sm:$0xff]  ;;  %v2399_v48 = vld [vmem:[#allocation2 + $0x3f0] sm:$0xff] }
 0x20a   :  { %12115 = vmatpush3.bf16.msra.mxu1 %v2386_v20  ;;  %12058 = vmatprep.subr.bf16.mxu0 %v2379_v3  ;;  %v2389_v20 = vld [vmem:[#allocation2 + $0x3a0] sm:$0xff]  ;;  %v2382_v3 = vld [vmem:[#allocation2 + $0x368] sm:$0xff] }
 0x20b   :  { %12116 = vmatprep.subr.bf16.mxu1 %v2395_v58  ;;  %v2398_v58 = vld [vmem:[#allocation2 + $0x3e8] sm:$0xff] }
 0x20d   :  { %12059 = vmatpush3.bf16.msra.mxu0 %v2371_v50  ;;  %v2374_v50 = vld [vmem:[#allocation2 + $0x328] sm:$0xff] }
 0x20e   :  { %12117 = vmatpush3.bf16.msra.mxu1 %v2387_v34  ;;  %12060 = vmatprep.subr.bf16.mxu0 %v2380_v38  ;;  %v2390_v34 = vld [vmem:[#allocation2 + $0x3a8] sm:$0xff]  ;;  %v2383_v38 = vld [vmem:[#allocation2 + $0x370] sm:$0xff] }
 0x20f   :  { %12118 = vmatprep.subr.bf16.mxu1 %v2396_v46  ;;  %v2375_v46 = vld [vmem:[#allocation2 + $0x330] sm:$0xff] }
 0x211   :  { %12061 = vmatpush3.bf16.msra.mxu0 %v2372_v22  ;;  %v2391_v22 = vld [vmem:[#allocation2 + $0x3b0] sm:$0xff] }
 0x212   :  { %12119 = vmatpush3.bf16.msra.mxu1 %v2388_v51  ;;  %12062 = vmatprep.subr.bf16.mxu0 %v2381_v21  ;;  %v2384_v51 = vld [vmem:[#allocation2 + $0x378] sm:$0xff] }
 0x213   :  { %12120 = vmatprep.subr.bf16.mxu1 %v2397_v43  ;;  %v2400_v21 = vld [vmem:[#allocation2 + $0x3f8] sm:$0xff] }
 0x214   :  { %v2376_v43 = vld [vmem:[#allocation2 + $0x338] sm:$0xff] }
 0x215   :  { %12063 = vmatpush3.bf16.msra.mxu0 %v2373_v47  ;;  %v2392_v47 = vld [vmem:[#allocation2 + $0x3b8] sm:$0xff] }
 0x216   :  { %12121 = vmatpush3.bf16.msra.mxu1 %v2389_v20  ;;  %12064 = vmatprep.subr.bf16.mxu0 %v2382_v3 }
 0x217   :  { %12122 = vmatprep.subr.bf16.mxu1 %v2398_v58 }
 0x219   :  { %12065 = vmatpush3.bf16.msra.mxu0 %v2374_v50 }
 0x21a   :  { %12123 = vmatpush3.bf16.msra.mxu1 %v2390_v34  ;;  %12066 = vmatprep.subr.bf16.mxu0 %v2383_v38 }
 0x21b   :  { %12124 = vmatprep.subr.bf16.mxu1 %v2399_v48 }
 0x21d   :  { %12067 = vmatpush3.bf16.msra.mxu0 %v2375_v46 }
 0x21e   :  { %12125 = vmatpush3.bf16.msra.mxu1 %v2391_v22  ;;  %12068 = vmatprep.subr.bf16.mxu0 %v2384_v51 }
 0x21f   :  { %12126 = vmatprep.subr.bf16.mxu1 %v2400_v21 }
 0x221   :  { %12069 = vmatpush3.bf16.msra.mxu0 %v2376_v43 }
 0x222   :  { %12127 = vmatpush3.bf16.msra.mxu1 %v2392_v47 }
 0x224   :  { %2434 = vmatmul.mubr.bf16.vlgmr.msra.gmra.mrb[28].mxu0 %v14063_v61 }
 0x225   :  { %2522 = vmatmul.mubr.bf16.vlgmr.msra.gmra.mrb[28].mxu1 %v14083_v1  ;;  %2441 = vmatprep.mubr.bf16.mxu0 %v14085_v17 }
 0x226   :  { %2529 = vmatprep.mubr.bf16.mxu1 %v14089_v63 }
 0x22c   :  { %2442 = vmatmul.mubr.bf16.gmra.mrb[32].mxu0 %v14092_v62 }
 0x22d   :  { %2530 = vmatmul.mubr.bf16.gmra.mrb[32].mxu1 %v14133_v8  ;;  %2449 = vmatprep.mubr.bf16.mxu0 %v14138_v7 }
 0x22e   :  { %2537 = vmatprep.mubr.bf16.mxu1 %v14140_v60 }
 0x234   :  { %2450 = vmatmul.mubr.bf16.gmra.mrb[36].mxu0 %v14144_v15 }
 0x235   :  { %2538 = vmatmul.mubr.bf16.gmra.mrb[36].mxu1 %v14157_v33  ;;  %2457 = vmatprep.mubr.bf16.mxu0 %v14192_v2 }
 0x236   :  { %2545 = vmatprep.mubr.bf16.mxu1 %v14194_v10 }
 0x23c   :  { %2458 = vmatmul.mubr.bf16.gmra.mrb[40].mxu0 %v14196_v53 }
 0x23d   :  { %2546 = vmatmul.mubr.bf16.gmra.mrb[40].mxu1 %v14198_v23  ;;  %2465 = vmatprep.mubr.bf16.mxu0 %v14236_v5 }
 0x23e   :  { %2553 = vmatprep.mubr.bf16.mxu1 %v14238_v45 }
 0x244   :  { %2466 = vmatmul.mubr.bf16.gmra.mrb[44].mxu0 %v14240_v55 }
 0x245   :  { %2554 = vmatmul.mubr.bf16.gmra.mrb[44].mxu1 %v14242_v42  ;;  %2473 = vmatprep.mubr.bf16.mxu0 %v14261_v6 }
 0x246   :  { %2561 = vmatprep.mubr.bf16.mxu1 %v14263_v14 }
 0x24c   :  { %2474 = vmatmul.mubr.bf16.gmra.mrb[48].mxu0 %v14265_v30 }
 0x24d   :  { %2562 = vmatmul.mubr.bf16.gmra.mrb[48].mxu1 %v14267_v0  ;;  %2481 = vmatprep.mubr.bf16.mxu0 %v14278_v4 }
 0x24e   :  { %2569 = vmatprep.mubr.bf16.mxu1 %v14283_v9 }
 0x254   :  { %2482 = vmatmul.mubr.bf16.gmra.mrb[52].mxu0 %v14275_v37 }
 0x255   :  { %2570 = vmatmul.mubr.bf16.gmra.mrb[52].mxu1 %v14287_v24 }
 0x2f7   :  { %v12070_v20 = vpop.f32.mrb[28].mxu0 }
 0x2f8   :  { %v12128_v3 = vpop.f32.mrb[28].mxu1  ;;  %v12071_v58 = vpop.f32.mrb[29].mxu0 }
 0x2f9   :  { %v12129_v50 = vpop.f32.mrb[29].mxu1  ;;  %v12072_v34 = vadd.f32 %v12071_v58, %v12070_v20  ;;  %v12073_v48 = vpop.f32.mrb[30].mxu0 }
 0x2fa   :  { %v12130_v38 = vadd.f32 %v12129_v50, %v12128_v3  ;;  %v12131_v46 = vpop.f32.mrb[30].mxu1  ;;  %v12074_v22 = vpop.f32.mrb[31].mxu0 }
 0x2fb   :  { %v12132_v51 = vpop.f32.mrb[31].mxu1  ;;  %v12075_v43 = vadd.f32 %v12074_v22, %v12073_v48 }
 0x2fc   :  { %v2524_v21 = vadd.f32 %v12130_v38, %v12072_v34  ;;  %v12133_v47 = vadd.f32 %v12132_v51, %v12131_v46 }
 0x2fe   :  { %v2590_v41 = vcombine.high %v2524_v21, %v2524_v21  ;;  %v2597_v52 = vrot.slane %v2524_v21, %v14003_v36  ;;  %v2527_v54 = vadd.f32 %v12133_v47, %v12075_v43 }
 0x2ff   :  { %v12076_v20 = vpop.f32.mrb[32].mxu0 }
 0x300   :  { %v2604_v56 = vrot.slane %v2590_v41, %v14003_v36  ;;  %v2605_v59 = vcombine.high %v2597_v52, %v2597_v52  ;;  %v14549_v18 = vrot.slane %v2597_v52, %v14003_v36  ;;  %v2639_v49 = vcombine.high %v2527_v54, %v2527_v54  ;;  %v12134_v3 = vpop.f32.mrb[32].mxu1  ;;  %v12077_v50 = vpop.f32.mrb[33].mxu0 }
 0x301   :  { %v2646_v58 = vrot.slane %v2527_v54, %v14003_v36  ;;  %v12135_v35 = vpop.f32.mrb[33].mxu1  ;;  %v12079_v46 = vpop.f32.mrb[34].mxu0  ;;  %v12078_v21 = vadd.f32 %v12077_v50, %v12076_v20 }
 0x302   :  { %18457 = vst [vmem:[#allocation269_spill] sm:$0xff] %v14549_v18  ;;  %v2606_v34 = vcombine.high %v2604_v56, %v2604_v56  ;;  %v14553_v38 = vrot.slane %v2604_v56, %v14003_v36  ;;  %v14556_v48 = vrot.slane %v2605_v59, %v14003_v36  ;;  %v2653_v41 = vrot.slane %v2639_v49, %v14003_v36  ;;  %v12137_v22 = vpop.f32.mrb[34].mxu1  ;;  %v12080_v54 = vpop.f32.mrb[35].mxu0 }
 0x303   :  { %v2654_v52 = vcombine.high %v2646_v58, %v2646_v58  ;;  %v14560_v51 = vrot.slane %v2646_v58, %v14003_v36  ;;  %v12136_v43 = vadd.f32 %v12135_v35, %v12134_v3  ;;  %v12138_v47 = vpop.f32.mrb[35].mxu1  ;;  %v12081_v59 = vadd.f32 %v12080_v54, %v12079_v46 }
 0x304   :  { %18458 = vst [vmem:[#allocation270_spill] sm:$0xff] %v14553_v38  ;;  %18459 = vst [vmem:[#allocation271_spill] sm:$0xff] %v14556_v48  ;;  %v14563_v11 = vrot.slane %v2606_v34, %v14003_v36  ;;  %v2655_v56 = vcombine.high %v2653_v41, %v2653_v41  ;;  %v14566_v31 = vrot.slane %v2653_v41, %v14003_v36 }
 0x305   :  { %18460 = vst [vmem:[#allocation272_spill] sm:$0xff] %v14560_v51  ;;  %v14569_v49 = vrot.slane %v2654_v52, %v14003_v36  ;;  %v2532_v19 = vadd.f32 %v12136_v43, %v12078_v21  ;;  %v12139_v26 = vadd.f32 %v12138_v47, %v12137_v22 }
 0x306   :  { %18461 = vst [vmem:[#allocation273_spill] sm:$0xff] %v14563_v11  ;;  %18462 = vst [vmem:[#allocation274_spill] sm:$0xff] %v14566_v31  ;;  %v14572_v58 = vrot.slane %v2655_v56, %v14003_v36 }
 0x307   :  { %18463 = vst [vmem:[#allocation275_spill] sm:$0xff] %v14569_v49  ;;  %v2688_v20 = vcombine.high %v2532_v19, %v2532_v19  ;;  %v2695_v35 = vrot.slane %v2532_v19, %v14003_v36  ;;  %v2535_v3 = vadd.f32 %v12139_v26, %v12081_v59  ;;  %v12082_v50 = vpop.f32.mrb[36].mxu0 }
 0x308   :  { %18464 = vst [vmem:[#allocation276_spill] sm:$0xff] %v14572_v58  ;;  %v12140_v34 = vpop.f32.mrb[36].mxu1  ;;  %v12083_v52 = vpop.f32.mrb[37].mxu0 }
 0x309   :  { %v2702_v32 = vrot.slane %v2688_v20, %v14003_v36  ;;  %v2703_v40 = vcombine.high %v2695_v35, %v2695_v35  ;;  %v14577_v41 = vrot.slane %v2695_v35, %v14003_v36  ;;  %v2737_v46 = vcombine.high %v2535_v3, %v2535_v3  ;;  %v12141_v54 = vpop.f32.mrb[37].mxu1  ;;  %v12085_v47 = vpop.f32.mrb[38].mxu0 }
 0x30a   :  { %v2744_v22 = vrot.slane %v2535_v3, %v14003_v36  ;;  %v12084_v21 = vadd.f32 %v12083_v52, %v12082_v50  ;;  %v12142_v43 = vadd.f32 %v12141_v54, %v12140_v34  ;;  %v12143_v56 = vpop.f32.mrb[38].mxu1  ;;  %v12086_v20 = vpop.f32.mrb[39].mxu0 }
 0x30b   :  { %18465 = vst [vmem:[#allocation277_spill] sm:$0xff] %v14577_v41  ;;  %v2704_v27 = vcombine.high %v2702_v32, %v2702_v32  ;;  %v14581_v19 = vrot.slane %v2702_v32, %v14003_v36  ;;  %v14584_v26 = vrot.slane %v2703_v40, %v14003_v36  ;;  %v2751_v59 = vrot.slane %v2737_v46, %v14003_v36  ;;  %v12144_v35 = vpop.f32.mrb[39].mxu1 }
 0x30c   :  { %v2752_v41 = vcombine.high %v2744_v22, %v2744_v22  ;;  %v14588_v29 = vrot.slane %v2744_v22, %v14003_v36  ;;  %v2540_v3 = vadd.f32 %v12142_v43, %v12084_v21  ;;  %v12087_v50 = vadd.f32 %v12086_v20, %v12085_v47 }
 0x30d   :  { %18466 = vst [vmem:[#allocation278_spill] sm:$0xff] %v14581_v19  ;;  %18467 = vst [vmem:[#allocation279_spill] sm:$0xff] %v14584_v26  ;;  %v14591_v34 = vrot.slane %v2704_v27, %v14003_v36  ;;  %v2753_v52 = vcombine.high %v2751_v59, %v2751_v59  ;;  %v14594_v32 = vrot.slane %v2751_v59, %v14003_v36 }
 0x30e   :  { %18468 = vst [vmem:[#allocation280_spill] sm:$0xff] %v14588_v29  ;;  %v12145_v54 = vadd.f32 %v12144_v35, %v12143_v56  ;;  %v14597_v40 = vrot.slane %v2752_v41, %v14003_v36  ;;  %v2786_v46 = vcombine.high %v2540_v3, %v2540_v3  ;;  %v2793_v19 = vrot.slane %v2540_v3, %v14003_v36 }
 0x30f   :  { %18469 = vst [vmem:[#allocation281_spill] sm:$0xff] %v14591_v34  ;;  %18470 = vst [vmem:[#allocation282_spill] sm:$0xff] %v14594_v32  ;;  %v14601_v26 = vrot.slane %v2753_v52, %v14003_v36  ;;  %v12088_v47 = vpop.f32.mrb[40].mxu0 }
 0x310   :  { %18471 = vst [vmem:[#allocation283_spill] sm:$0xff] %v14597_v40  ;;  %v2543_v22 = vadd.f32 %v12145_v54, %v12087_v50  ;;  %v2800_v21 = vrot.slane %v2786_v46, %v14003_v36  ;;  %v2801_v43 = vcombine.high %v2793_v19, %v2793_v19  ;;  %v14605_v27 = vrot.slane %v2793_v19, %v14003_v36  ;;  %v12146_v59 = vpop.f32.mrb[40].mxu1  ;;  %v12089_v41 = vpop.f32.mrb[41].mxu0 }
 0x311   :  { %18472 = vst [vmem:[#allocation284_spill] sm:$0xff] %v14601_v26  ;;  %v12147_v35 = vpop.f32.mrb[41].mxu1  ;;  %v12090_v50 = vadd.f32 %v12089_v41, %v12088_v47  ;;  %v12091_v54 = vpop.f32.mrb[42].mxu0 }
 0x312   :  { %18473 = vst [vmem:[#allocation285_spill] sm:$0xff] %v14605_v27  ;;  %v2835_v20 = vcombine.high %v2543_v22, %v2543_v22  ;;  %v2842_v56 = vrot.slane %v2543_v22, %v14003_v36  ;;  %v2802_v32 = vcombine.high %v2800_v21, %v2800_v21  ;;  %v14609_v3 = vrot.slane %v2800_v21, %v14003_v36  ;;  %v12149_v46 = vpop.f32.mrb[42].mxu1  ;;  %v12092_v22 = vpop.f32.mrb[43].mxu0 }
 0x313   :  { %v14612_v52 = vrot.slane %v2801_v43, %v14003_v36  ;;  %v12148_v29 = vadd.f32 %v12147_v35, %v12146_v59  ;;  %v12150_v40 = vpop.f32.mrb[43].mxu1  ;;  %v12093_v21 = vadd.f32 %v12092_v22, %v12091_v54 }
 0x314   :  { %18474 = vst [vmem:[#allocation286_spill] sm:$0xff] %v14609_v3  ;;  %v2849_v19 = vrot.slane %v2835_v20, %v14003_v36  ;;  %v2850_v27 = vcombine.high %v2842_v56, %v2842_v56  ;;  %v14616_v26 = vrot.slane %v2842_v56, %v14003_v36  ;;  %v14619_v34 = vrot.slane %v2802_v32, %v14003_v36 }
 0x315   :  { %18475 = vst [vmem:[#allocation287_spill] sm:$0xff] %v14612_v52  ;;  %v12151_v3 = vadd.f32 %v12150_v40, %v12149_v46  ;;  %v2548_v20 = vadd.f32 %v12148_v29, %v12090_v50 }
 0x316   :  { %18476 = vst [vmem:[#allocation288_spill] sm:$0xff] %v14616_v26  ;;  %18477 = vst [vmem:[#allocation289_spill] sm:$0xff] %v14619_v34  ;;  %v2851_v25 = vcombine.high %v2849_v19, %v2849_v19  ;;  %v14622_v43 = vrot.slane %v2849_v19, %v14003_v36  ;;  %v14625_v47 = vrot.slane %v2850_v27, %v14003_v36 }
 0x317   :  { %v2551_v41 = vadd.f32 %v12151_v3, %v12093_v21  ;;  %v2884_v59 = vcombine.high %v2548_v20, %v2548_v20  ;;  %v2891_v35 = vrot.slane %v2548_v20, %v14003_v36  ;;  %v12094_v54 = vpop.f32.mrb[44].mxu0 }
 0x318   :  { %18478 = vst [vmem:[#allocation290_spill] sm:$0xff] %v14622_v43  ;;  %18479 = vst [vmem:[#allocation291_spill] sm:$0xff] %v14625_v47  ;;  %v14628_v56 = vrot.slane %v2851_v25, %v14003_v36  ;;  %v12152_v40 = vpop.f32.mrb[44].mxu1  ;;  %v12095_v27 = vpop.f32.mrb[45].mxu0 }
 0x319   :  { %v2933_v26 = vcombine.high %v2551_v41, %v2551_v41  ;;  %v2940_v32 = vrot.slane %v2551_v41, %v14003_v36  ;;  %v2898_v46 = vrot.slane %v2884_v59, %v14003_v36  ;;  %v2899_v19 = vcombine.high %v2891_v35, %v2891_v35  ;;  %v12153_v29 = vpop.f32.mrb[45].mxu1  ;;  %v12097_v20 = vpop.f32.mrb[46].mxu0 }
 0x31a   :  { %18480 = vst [vmem:[#allocation292_spill] sm:$0xff] %v14628_v56  ;;  %v14634_v22 = vrot.slane %v2891_v35, %v14003_v36  ;;  %v12096_v21 = vadd.f32 %v12095_v27, %v12094_v54  ;;  %v12155_v43 = vpop.f32.mrb[46].mxu1  ;;  %v12098_v47 = vpop.f32.mrb[47].mxu0  ;;  %v12154_v35 = vadd.f32 %v12153_v29, %v12152_v40 }
 0x31b   :  { %v2947_v3 = vrot.slane %v2933_v26, %v14003_v36  ;;  %v2948_v25 = vcombine.high %v2940_v32, %v2940_v32  ;;  %v14638_v50 = vrot.slane %v2940_v32, %v14003_v36  ;;  %v2900_v41 = vcombine.high %v2898_v46, %v2898_v46  ;;  %v12156_v34 = vpop.f32.mrb[47].mxu1 }
 0x31c   :  { %18481 = vst [vmem:[#allocation293_spill] sm:$0xff] %v14634_v22  ;;  %v14641_v56 = vrot.slane %v2898_v46, %v14003_v36  ;;  %v14644_v59 = vrot.slane %v2899_v19, %v14003_v36  ;;  %v12099_v54 = vadd.f32 %v12098_v47, %v12097_v20  ;;  %v12157_v13 = vadd.f32 %v12156_v34, %v12155_v43 }
 0x31d   :  { %18482 = vst [vmem:[#allocation294_spill] sm:$0xff] %v14638_v50  ;;  %v2949_v26 = vcombine.high %v2947_v3, %v2947_v3  ;;  %v14649_v52 = vrot.slane %v2947_v3, %v14003_v36  ;;  %v14652_v32 = vrot.slane %v2948_v25, %v14003_v36  ;;  %v14657_v46 = vrot.slane %v2900_v41, %v14003_v36 }
 0x31e   :  { %18483 = vst [vmem:[#allocation295_spill] sm:$0xff] %v14641_v56  ;;  %18484 = vst [vmem:[#allocation296_spill] sm:$0xff] %v14644_v59  ;;  %v2556_v50 = vadd.f32 %v12154_v35, %v12096_v21  ;;  %v2559_v56 = vadd.f32 %v12157_v13, %v12099_v54 }
 0x31f   :  { %18485 = vst [vmem:[#allocation297_spill] sm:$0xff] %v14649_v52  ;;  %18486 = vst [vmem:[#allocation298_spill] sm:$0xff] %v14652_v32  ;;  %v14664_v22 = vrot.slane %v2949_v26, %v14003_v36  ;;  %v12100_v27 = vpop.f32.mrb[48].mxu0 }
 0x320   :  { %18487 = vst [vmem:[#allocation299_spill] sm:$0xff] %v14657_v46  ;;  %v12158_v40 = vpop.f32.mrb[48].mxu1  ;;  %v2982_v29 = vcombine.high %v2556_v50, %v2556_v50  ;;  %v2989_v26 = vrot.slane %v2556_v50, %v14003_v36  ;;  %v12101_v59 = vpop.f32.mrb[49].mxu0  ;;  %v3031_v43 = vcombine.high %v2559_v56, %v2559_v56  ;;  %v3038_v19 = vrot.slane %v2559_v56, %v14003_v36 }
 0x321   :  { %18488 = vst [vmem:[#allocation300_spill] sm:$0xff] %v14664_v22  ;;  %v12159_v3 = vpop.f32.mrb[49].mxu1  ;;  %v12102_v52 = vadd.f32 %v12101_v59, %v12100_v27  ;;  %v12103_v25 = vpop.f32.mrb[50].mxu0 }
 0x322   :  { %v12160_v39 = vadd.f32 %v12159_v3, %v12158_v40  ;;  %v12161_v47 = vpop.f32.mrb[50].mxu1  ;;  %v2996_v20 = vrot.slane %v2982_v29, %v14003_v36  ;;  %v2997_v41 = vcombine.high %v2989_v26, %v2989_v26  ;;  %v14677_v34 = vrot.slane %v2989_v26, %v14003_v36  ;;  %v12104_v21 = vpop.f32.mrb[51].mxu0 }
 0x323   :  { %v12162_v35 = vpop.f32.mrb[51].mxu1  ;;  %v12105_v50 = vadd.f32 %v12104_v21, %v12103_v25  ;;  %v3045_v40 = vrot.slane %v3031_v43, %v14003_v36  ;;  %v3046_v29 = vcombine.high %v3038_v19, %v3038_v19  ;;  %v14690_v26 = vrot.slane %v3038_v19, %v14003_v36 }
 0x324   :  { %18489 = vst [vmem:[#allocation301_spill] sm:$0xff] %v14677_v34  ;;  %v2564_v22 = vadd.f32 %v12160_v39, %v12102_v52  ;;  %v12163_v13 = vadd.f32 %v12162_v35, %v12161_v47  ;;  %v2998_v54 = vcombine.high %v2996_v20, %v2996_v20  ;;  %v14681_v59 = vrot.slane %v2996_v20, %v14003_v36 }
 0x325   :  { %v14684_v27 = vrot.slane %v2997_v41, %v14003_v36  ;;  %18492 = vst [vmem:[#allocation304_spill] sm:$0xff] %v14690_v26  ;;  %v3047_v47 = vcombine.high %v3045_v40, %v3045_v40  ;;  %v14701_v20 = vrot.slane %v3045_v40, %v14003_v36  ;;  %v14704_v43 = vrot.slane %v3046_v29, %v14003_v36 }
 0x326   :  { %18490 = vst [vmem:[#allocation302_spill] sm:$0xff] %v14681_v59  ;;  %v3080_v56 = vcombine.high %v2564_v22, %v2564_v22  ;;  %v14693_v39 = vrot.slane %v2998_v54, %v14003_v36  ;;  %v3087_v41 = vrot.slane %v2564_v22, %v14003_v36  ;;  %v2567_v26 = vadd.f32 %v12163_v13, %v12105_v50 }
 0x327   :  { %18491 = vst [vmem:[#allocation303_spill] sm:$0xff] %v14684_v27  ;;  %18494 = vst [vmem:[#allocation306_spill] sm:$0xff] %v14701_v20  ;;  %v12106_v21 = vpop.f32.mrb[52].mxu0  ;;  %v14715_v59 = vrot.slane %v3047_v47, %v14003_v36 }
 0x328   :  { %18493 = vst [vmem:[#allocation305_spill] sm:$0xff] %v14693_v39  ;;  %18495 = vst [vmem:[#allocation307_spill] sm:$0xff] %v14704_v43  ;;  %v12164_v35 = vpop.f32.mrb[52].mxu1  ;;  %v3094_v52 = vrot.slane %v3080_v56, %v14003_v36  ;;  %v3095_v25 = vcombine.high %v3087_v41, %v3087_v41  ;;  %v14712_v22 = vrot.slane %v3087_v41, %v14003_v36  ;;  %v12107_v3 = vpop.f32.mrb[53].mxu0 }
 0x329   :  { %v12165_v40 = vpop.f32.mrb[53].mxu1  ;;  %18497 = vst [vmem:[#allocation309_spill] sm:$0xff] %v14715_v59  ;;  %v12109_v27 = vpop.f32.mrb[54].mxu0  ;;  %v3129_v20 = vcombine.high %v2567_v26, %v2567_v26  ;;  %v3136_v50 = vrot.slane %v2567_v26, %v14003_v36  ;;  %v12108_v13 = vadd.f32 %v12107_v3, %v12106_v21 }
 0x32a   :  { %18496 = vst [vmem:[#allocation308_spill] sm:$0xff] %v14712_v22  ;;  %v12167_v54 = vpop.f32.mrb[54].mxu1  ;;  %v3096_v39 = vcombine.high %v3094_v52, %v3094_v52  ;;  %v14722_v56 = vrot.slane %v3094_v52, %v14003_v36  ;;  %v14725_v41 = vrot.slane %v3095_v25, %v14003_v36  ;;  %v12110_v34 = vpop.f32.mrb[55].mxu0 }
 0x32b   :  { %v12168_v32 = vpop.f32.mrb[55].mxu1  ;;  %v12166_v54 = vadd.f32 %v12165_v40, %v12164_v35  ;;  %v3143_v34 = vrot.slane %v3129_v20, %v14003_v36  ;;  %v14741_v47 = vrot.slane %v3136_v50, %v14003_v36 }
 0x32c   :  { %18498 = vst [vmem:[#allocation310_spill] sm:$0xff] %v14722_v56  ;;  %18499 = vst [vmem:[#allocation311_spill] sm:$0xff] %v14725_v41  ;;  %v14733_v27 = vrot.slane %v3096_v39, %v14003_v36  ;;  %v3144_v32 = vcombine.high %v3136_v50, %v3136_v50 }
 0x32d   :  { %18501 = vst [vmem:[#allocation313_spill] sm:$0xff] %v14741_v47  ;;  %v2572_v3 = vadd.f32 %v12166_v54, %v12108_v13  ;;  %v3145_v21 = vcombine.high %v3143_v34, %v3143_v34  ;;  %v14746_v39 = vrot.slane %v3143_v34, %v14003_v36 }
 0x32e   :  { %18500 = vst [vmem:[#allocation312_spill] sm:$0xff] %v14733_v27  ;;  %v14749_v52 = vrot.slane %v3144_v32, %v14003_v36 }
 0x32f   :  { %18502 = vst [vmem:[#allocation314_spill] sm:$0xff] %v14746_v39  ;;  %v14754_v20 = vrot.slane %v2572_v3, %v14003_v36  ;;  %v14757_v40 = vrot.slane %v3145_v21, %v14003_v36 }
 0x330   :  { %18503 = vst [vmem:[#allocation315_spill] sm:$0xff] %v14749_v52 }
 0x331   :  { %18504 = vst [vmem:[#allocation316_spill] sm:$0xff] %v14754_v20  ;;  %18505 = vst [vmem:[#allocation317_spill] sm:$0xff] %v14757_v40  ;;  %v3185_v54 = vcombine.high %v14754_v20, %v14754_v20 }
 0x333   :  { %v14770_v3 = vrot.slane %v3185_v54, %v14003_v36 }
 0x335   :  { %18506 = vst [vmem:[#allocation318_spill] sm:$0xff] %v14770_v3 }
 0x336   :  { %13036 = dma.done.wait [#allocation4 + $0x4], 4096 }
 0x337   :  { %13037 = vsyncadd [#allocation4 + $0x4], 4294963200  ;;  %3266 = vmatprep.mubr.bf16.mxu0 %v14059_v16  ;;  %3354 = vmatprep.mubr.bf16.mxu1 %v14061_v44  ;;  %v3210_v21 = vld [vmem:[#allocation2 + $0x440] sm:$0xff]  ;;  %v3211_v26 = vld [vmem:[#allocation2 + $0x448] sm:$0xff] }
 0x338   :  { %v3226_v50 = vld [vmem:[#allocation2 + $0x4c0] sm:$0xff]  ;;  %12170 = vmatprep.subr.bf16.mxu0 %v3210_v21  ;;  %v3227_v34 = vld [vmem:[#allocation2 + $0x4c8] sm:$0xff]  ;;  %v3212_v25 = vld [vmem:[#allocation2 + $0x450] sm:$0xff] }
 0x339   :  { %v3202_v13 = vld [vmem:[#allocation2 + $0x400] sm:$0xff]  ;;  %12228 = vmatprep.subr.bf16.mxu1 %v3226_v50  ;;  %v3203_v54 = vld [vmem:[#allocation2 + $0x408] sm:$0xff]  ;;  %v3228_v29 = vld [vmem:[#allocation2 + $0x4d0] sm:$0xff] }
 0x33a   :  { %v3218_v35 = vld [vmem:[#allocation2 + $0x480] sm:$0xff]  ;;  %12171 = vmatpush3.bf16.msra.mxu0 %v3202_v13  ;;  %v3219_v32 = vld [vmem:[#allocation2 + $0x488] sm:$0xff]  ;;  %v3204_v19 = vld [vmem:[#allocation2 + $0x410] sm:$0xff] }
 0x33b   :  { %12229 = vmatpush3.bf16.msra.mxu1 %v3218_v35  ;;  %12172 = vmatprep.subr.bf16.mxu0 %v3211_v26  ;;  %v3220_v3 = vld [vmem:[#allocation2 + $0x490] sm:$0xff]  ;;  %v3213_v20 = vld [vmem:[#allocation2 + $0x458] sm:$0xff]  ;;  %v3214_v26 = vld [vmem:[#allocation2 + $0x460] sm:$0xff] }
 0x33c   :  { %12230 = vmatprep.subr.bf16.mxu1 %v3227_v34  ;;  %v3229_v21 = vld [vmem:[#allocation2 + $0x4d8] sm:$0xff]  ;;  %v3230_v13 = vld [vmem:[#allocation2 + $0x4e0] sm:$0xff] }
 0x33d   :  { %v3205_v50 = vld [vmem:[#allocation2 + $0x418] sm:$0xff]  ;;  %v3206_v34 = vld [vmem:[#allocation2 + $0x420] sm:$0xff] }
 0x33e   :  { %12173 = vmatpush3.bf16.msra.mxu0 %v3203_v54  ;;  %v3221_v35 = vld [vmem:[#allocation2 + $0x498] sm:$0xff]  ;;  %v3232_v54 = vld [vmem:[#allocation2 + $0x4f0] sm:$0xff] }
 0x33f   :  { %12231 = vmatpush3.bf16.msra.mxu1 %v3219_v32  ;;  %12174 = vmatprep.subr.bf16.mxu0 %v3212_v25  ;;  %v3222_v32 = vld [vmem:[#allocation2 + $0x4a0] sm:$0xff]  ;;  %v3215_v25 = vld [vmem:[#allocation2 + $0x468] sm:$0xff] }
 0x340   :  { %12232 = vmatprep.subr.bf16.mxu1 %v3228_v29  ;;  %v3231_v29 = vld [vmem:[#allocation2 + $0x4e8] sm:$0xff] }
 0x342   :  { %12175 = vmatpush3.bf16.msra.mxu0 %v3204_v19  ;;  %v3207_v19 = vld [vmem:[#allocation2 + $0x428] sm:$0xff] }
 0x343   :  { %12233 = vmatpush3.bf16.msra.mxu1 %v3220_v3  ;;  %12176 = vmatprep.subr.bf16.mxu0 %v3213_v20  ;;  %v3223_v3 = vld [vmem:[#allocation2 + $0x4a8] sm:$0xff]  ;;  %v3216_v20 = vld [vmem:[#allocation2 + $0x470] sm:$0xff] }
 0x344   :  { %12234 = vmatprep.subr.bf16.mxu1 %v3229_v21  ;;  %v3208_v21 = vld [vmem:[#allocation2 + $0x430] sm:$0xff] }
 0x346   :  { %12177 = vmatpush3.bf16.msra.mxu0 %v3205_v50  ;;  %v3224_v50 = vld [vmem:[#allocation2 + $0x4b0] sm:$0xff] }
 0x347   :  { %12235 = vmatpush3.bf16.msra.mxu1 %v3221_v35  ;;  %12178 = vmatprep.subr.bf16.mxu0 %v3214_v26  ;;  %v3217_v35 = vld [vmem:[#allocation2 + $0x478] sm:$0xff] }
 0x348   :  { %12236 = vmatprep.subr.bf16.mxu1 %v3230_v13  ;;  %v3233_v26 = vld [vmem:[#allocation2 + $0x4f8] sm:$0xff] }
 0x349   :  { %v3209_v13 = vld [vmem:[#allocation2 + $0x438] sm:$0xff] }
 0x34a   :  { %12179 = vmatpush3.bf16.msra.mxu0 %v3206_v34  ;;  %v3225_v34 = vld [vmem:[#allocation2 + $0x4b8] sm:$0xff] }
 0x34b   :  { %12237 = vmatpush3.bf16.msra.mxu1 %v3222_v32  ;;  %12180 = vmatprep.subr.bf16.mxu0 %v3215_v25 }
 0x34c   :  { %12238 = vmatprep.subr.bf16.mxu1 %v3231_v29 }
 0x34e   :  { %12181 = vmatpush3.bf16.msra.mxu0 %v3207_v19 }
 0x34f   :  { %12239 = vmatpush3.bf16.msra.mxu1 %v3223_v3  ;;  %12182 = vmatprep.subr.bf16.mxu0 %v3216_v20 }
 0x350   :  { %12240 = vmatprep.subr.bf16.mxu1 %v3232_v54 }
 0x352   :  { %12183 = vmatpush3.bf16.msra.mxu0 %v3208_v21 }
 0x353   :  { %12241 = vmatpush3.bf16.msra.mxu1 %v3224_v50  ;;  %12184 = vmatprep.subr.bf16.mxu0 %v3217_v35 }
 0x354   :  { %12242 = vmatprep.subr.bf16.mxu1 %v3233_v26 }
 0x356   :  { %12185 = vmatpush3.bf16.msra.mxu0 %v3209_v13 }
 0x357   :  { %12243 = vmatpush3.bf16.msra.mxu1 %v3225_v34 }
 0x359   :  { %3267 = vmatmul.mubr.bf16.vlgmr.msra.gmra.mrb[56].mxu0 %v14063_v61 }
 0x35a   :  { %3355 = vmatmul.mubr.bf16.vlgmr.msra.gmra.mrb[56].mxu1 %v14083_v1  ;;  %3274 = vmatprep.mubr.bf16.mxu0 %v14085_v17 }
 0x35b   :  { %3362 = vmatprep.mubr.bf16.mxu1 %v14089_v63 }
 0x361   :  { %3275 = vmatmul.mubr.bf16.gmra.mrb[60].mxu0 %v14092_v62 }
 0x362   :  { %3363 = vmatmul.mubr.bf16.gmra.mrb[60].mxu1 %v14133_v8  ;;  %3282 = vmatprep.mubr.bf16.mxu0 %v14138_v7 }
 0x363   :  { %3370 = vmatprep.mubr.bf16.mxu1 %v14140_v60 }
 0x369   :  { %3283 = vmatmul.mubr.bf16.gmra.mrb[64].mxu0 %v14144_v15 }
 0x36a   :  { %3371 = vmatmul.mubr.bf16.gmra.mrb[64].mxu1 %v14157_v33  ;;  %3290 = vmatprep.mubr.bf16.mxu0 %v14192_v2 }
 0x36b   :  { %3378 = vmatprep.mubr.bf16.mxu1 %v14194_v10 }
 0x371   :  { %3291 = vmatmul.mubr.bf16.gmra.mrb[68].mxu0 %v14196_v53 }
 0x372   :  { %3379 = vmatmul.mubr.bf16.gmra.mrb[68].mxu1 %v14198_v23  ;;  %3298 = vmatprep.mubr.bf16.mxu0 %v14236_v5 }
 0x373   :  { %3386 = vmatprep.mubr.bf16.mxu1 %v14238_v45 }
 0x379   :  { %3299 = vmatmul.mubr.bf16.gmra.mrb[72].mxu0 %v14240_v55 }
 0x37a   :  { %3387 = vmatmul.mubr.bf16.gmra.mrb[72].mxu1 %v14242_v42  ;;  %3306 = vmatprep.mubr.bf16.mxu0 %v14261_v6 }
 0x37b   :  { %3394 = vmatprep.mubr.bf16.mxu1 %v14263_v14 }
 0x381   :  { %3307 = vmatmul.mubr.bf16.gmra.mrb[76].mxu0 %v14265_v30 }
 0x382   :  { %3395 = vmatmul.mubr.bf16.gmra.mrb[76].mxu1 %v14267_v0  ;;  %3314 = vmatprep.mubr.bf16.mxu0 %v14278_v4 }
 0x383   :  { %3402 = vmatprep.mubr.bf16.mxu1 %v14283_v9 }
 0x389   :  { %3315 = vmatmul.mubr.bf16.gmra.mrb[80].mxu0 %v14275_v37 }
 0x38a   :  { %3403 = vmatmul.mubr.bf16.gmra.mrb[80].mxu1 %v14287_v24 }
 0x42c   :  { %v12186_v32 = vpop.f32.mrb[56].mxu0 }
 0x42d   :  { %v12244_v25 = vpop.f32.mrb[56].mxu1  ;;  %v12187_v29 = vpop.f32.mrb[57].mxu0 }
 0x42e   :  { %v12245_v19 = vpop.f32.mrb[57].mxu1  ;;  %v12188_v3 = vadd.f32 %v12187_v29, %v12186_v32  ;;  %v12189_v54 = vpop.f32.mrb[58].mxu0 }
 0x42f   :  { %v12246_v20 = vadd.f32 %v12245_v19, %v12244_v25  ;;  %v12247_v21 = vpop.f32.mrb[58].mxu1  ;;  %v12190_v50 = vpop.f32.mrb[59].mxu0 }
 0x430   :  { %v12248_v35 = vpop.f32.mrb[59].mxu1  ;;  %v12191_v13 = vadd.f32 %v12190_v50, %v12189_v54 }
 0x431   :  { %v3357_v26 = vadd.f32 %v12246_v20, %v12188_v3  ;;  %v12249_v34 = vadd.f32 %v12248_v35, %v12247_v21 }
 0x433   :  { %v3423_v40 = vcombine.high %v3357_v26, %v3357_v26  ;;  %v3430_v39 = vrot.slane %v3357_v26, %v14003_v36  ;;  %v3360_v52 = vadd.f32 %v12249_v34, %v12191_v13 }
 0x434   :  { %v12192_v32 = vpop.f32.mrb[60].mxu0 }
 0x435   :  { %v3437_v47 = vrot.slane %v3423_v40, %v14003_v36  ;;  %v3438_v27 = vcombine.high %v3430_v39, %v3430_v39  ;;  %v14803_v56 = vrot.slane %v3430_v39, %v14003_v36  ;;  %v3472_v41 = vcombine.high %v3360_v52, %v3360_v52  ;;  %v12250_v25 = vpop.f32.mrb[60].mxu1  ;;  %v12193_v19 = vpop.f32.mrb[61].mxu0 }
 0x436   :  { %v3479_v29 = vrot.slane %v3360_v52, %v14003_v36  ;;  %v12251_v22 = vpop.f32.mrb[61].mxu1  ;;  %v12195_v21 = vpop.f32.mrb[62].mxu0  ;;  %v12194_v26 = vadd.f32 %v12193_v19, %v12192_v32 }
 0x437   :  { %18507 = vst [vmem:[#allocation319_spill] sm:$0xff] %v14803_v56  ;;  %v3439_v3 = vcombine.high %v3437_v47, %v3437_v47  ;;  %v14807_v20 = vrot.slane %v3437_v47, %v14003_v36  ;;  %v14810_v54 = vrot.slane %v3438_v27, %v14003_v36  ;;  %v3486_v40 = vrot.slane %v3472_v41, %v14003_v36  ;;  %v12253_v50 = vpop.f32.mrb[62].mxu1  ;;  %v12196_v52 = vpop.f32.mrb[63].mxu0 }
 0x438   :  { %v3487_v39 = vcombine.high %v3479_v29, %v3479_v29  ;;  %v14814_v35 = vrot.slane %v3479_v29, %v14003_v36  ;;  %v12252_v13 = vadd.f32 %v12251_v22, %v12250_v25  ;;  %v12254_v34 = vpop.f32.mrb[63].mxu1  ;;  %v12197_v27 = vadd.f32 %v12196_v52, %v12195_v21 }
 0x439   :  { %18508 = vst [vmem:[#allocation320_spill] sm:$0xff] %v14807_v20  ;;  %18509 = vst [vmem:[#allocation321_spill] sm:$0xff] %v14810_v54  ;;  %v14817_v59 = vrot.slane %v3439_v3, %v14003_v36  ;;  %v3488_v47 = vcombine.high %v3486_v40, %v3486_v40  ;;  %v14820_v43 = vrot.slane %v3486_v40, %v14003_v36 }
 0x43a   :  { %18510 = vst [vmem:[#allocation322_spill] sm:$0xff] %v14814_v35  ;;  %v14823_v41 = vrot.slane %v3487_v39, %v14003_v36  ;;  %v3365_v46 = vadd.f32 %v12252_v13, %v12194_v26  ;;  %v12255_v12 = vadd.f32 %v12254_v34, %v12253_v50 }
 0x43b   :  { %18511 = vst [vmem:[#allocation323_spill] sm:$0xff] %v14817_v59  ;;  %18512 = vst [vmem:[#allocation324_spill] sm:$0xff] %v14820_v43  ;;  %v14826_v29 = vrot.slane %v3488_v47, %v14003_v36 }
 0x43c   :  { %18513 = vst [vmem:[#allocation325_spill] sm:$0xff] %v14823_v41  ;;  %v3521_v32 = vcombine.high %v3365_v46, %v3365_v46  ;;  %v3528_v22 = vrot.slane %v3365_v46, %v14003_v36  ;;  %v3368_v25 = vadd.f32 %v12255_v12, %v12197_v27  ;;  %v12198_v19 = vpop.f32.mrb[64].mxu0 }
 0x43d   :  { %18514 = vst [vmem:[#allocation326_spill] sm:$0xff] %v14826_v29  ;;  %v12256_v3 = vpop.f32.mrb[64].mxu1  ;;  %v12199_v39 = vpop.f32.mrb[65].mxu0 }
 0x43e   :  { %v3535_v28 = vrot.slane %v3521_v32, %v14003_v36  ;;  %v3536_v57 = vcombine.high %v3528_v22, %v3528_v22  ;;  %v14831_v40 = vrot.slane %v3528_v22, %v14003_v36  ;;  %v3570_v21 = vcombine.high %v3368_v25, %v3368_v25  ;;  %v12257_v52 = vpop.f32.mrb[65].mxu1  ;;  %v12201_v34 = vpop.f32.mrb[66].mxu0 }
 0x43f   :  { %v3577_v50 = vrot.slane %v3368_v25, %v14003_v36  ;;  %v12200_v26 = vadd.f32 %v12199_v39, %v12198_v19  ;;  %v12258_v13 = vadd.f32 %v12257_v52, %v12256_v3  ;;  %v12259_v47 = vpop.f32.mrb[66].mxu1  ;;  %v12202_v32 = vpop.f32.mrb[67].mxu0 }
 0x440   :  { %18515 = vst [vmem:[#allocation327_spill] sm:$0xff] %v14831_v40  ;;  %v3537_v31 = vcombine.high %v3535_v28, %v3535_v28  ;;  %v14835_v12 = vrot.slane %v3535_v28, %v14003_v36  ;;  %v14838_v46 = vrot.slane %v3536_v57, %v14003_v36  ;;  %v3584_v27 = vrot.slane %v3570_v21, %v14003_v36  ;;  %v12260_v22 = vpop.f32.mrb[67].mxu1 }
 0x441   :  { %v3585_v58 = vcombine.high %v3577_v50, %v3577_v50  ;;  %v14842_v51 = vrot.slane %v3577_v50, %v14003_v36  ;;  %v3373_v25 = vadd.f32 %v12258_v13, %v12200_v26  ;;  %v12203_v19 = vadd.f32 %v12202_v32, %v12201_v34 }
 0x442   :  { %18516 = vst [vmem:[#allocation328_spill] sm:$0xff] %v14835_v12  ;;  %18517 = vst [vmem:[#allocation329_spill] sm:$0xff] %v14838_v46  ;;  %v14845_v3 = vrot.slane %v3537_v31, %v14003_v36  ;;  %v3586_v39 = vcombine.high %v3584_v27, %v3584_v27  ;;  %v14848_v28 = vrot.slane %v3584_v27, %v14003_v36 }
 0x443   :  { %18518 = vst [vmem:[#allocation330_spill] sm:$0xff] %v14842_v51  ;;  %v12261_v52 = vadd.f32 %v12260_v22, %v12259_v47  ;;  %v14851_v57 = vrot.slane %v3585_v58, %v14003_v36  ;;  %v3619_v21 = vcombine.high %v3373_v25, %v3373_v25  ;;  %v3626_v49 = vrot.slane %v3373_v25, %v14003_v36 }
 0x444   :  { %18519 = vst [vmem:[#allocation331_spill] sm:$0xff] %v14845_v3  ;;  %18520 = vst [vmem:[#allocation332_spill] sm:$0xff] %v14848_v28  ;;  %v14855_v38 = vrot.slane %v3586_v39, %v14003_v36  ;;  %v12204_v34 = vpop.f32.mrb[68].mxu0 }
 0x445   :  { %18521 = vst [vmem:[#allocation333_spill] sm:$0xff] %v14851_v57  ;;  %v3376_v50 = vadd.f32 %v12261_v52, %v12203_v19  ;;  %v3633_v26 = vrot.slane %v3619_v21, %v14003_v36  ;;  %v3634_v13 = vcombine.high %v3626_v49, %v3626_v49  ;;  %v14859_v31 = vrot.slane %v3626_v49, %v14003_v36  ;;  %v12262_v27 = vpop.f32.mrb[68].mxu1  ;;  %v12205_v58 = vpop.f32.mrb[69].mxu0 }
 0x446   :  { %18522 = vst [vmem:[#allocation334_spill] sm:$0xff] %v14855_v38  ;;  %v12263_v22 = vpop.f32.mrb[69].mxu1  ;;  %v12206_v19 = vadd.f32 %v12205_v58, %v12204_v34  ;;  %v12207_v52 = vpop.f32.mrb[70].mxu0 }
 0x447   :  { %18523 = vst [vmem:[#allocation335_spill] sm:$0xff] %v14859_v31  ;;  %v3668_v32 = vcombine.high %v3376_v50, %v3376_v50  ;;  %v3675_v47 = vrot.slane %v3376_v50, %v14003_v36  ;;  %v3635_v11 = vcombine.high %v3633_v26, %v3633_v26  ;;  %v14863_v25 = vrot.slane %v3633_v26, %v14003_v36  ;;  %v12265_v21 = vpop.f32.mrb[70].mxu1  ;;  %v12208_v50 = vpop.f32.mrb[71].mxu0 }
 0x448   :  { %v14866_v39 = vrot.slane %v3634_v13, %v14003_v36  ;;  %v12264_v31 = vadd.f32 %v12263_v22, %v12262_v27  ;;  %v12266_v28 = vpop.f32.mrb[71].mxu1  ;;  %v12209_v26 = vadd.f32 %v12208_v50, %v12207_v52 }
 0x449   :  { %18524 = vst [vmem:[#allocation336_spill] sm:$0xff] %v14863_v25  ;;  %v3682_v49 = vrot.slane %v3668_v32, %v14003_v36  ;;  %v3683_v18 = vcombine.high %v3675_v47, %v3675_v47  ;;  %v14870_v48 = vrot.slane %v3675_v47, %v14003_v36  ;;  %v14873_v38 = vrot.slane %v3635_v11, %v14003_v36 }
 0x44a   :  { %18525 = vst [vmem:[#allocation337_spill] sm:$0xff] %v14866_v39  ;;  %v12267_v25 = vadd.f32 %v12266_v28, %v12265_v21  ;;  %v3381_v32 = vadd.f32 %v12264_v31, %v12206_v19 }
 0x44b   :  { %18526 = vst [vmem:[#allocation338_spill] sm:$0xff] %v14870_v48  ;;  %18527 = vst [vmem:[#allocation339_spill] sm:$0xff] %v14873_v38  ;;  %v3684_v51 = vcombine.high %v3682_v49, %v3682_v49  ;;  %v14876_v13 = vrot.slane %v3682_v49, %v14003_v36  ;;  %v14879_v34 = vrot.slane %v3683_v18, %v14003_v36 }
 0x44c   :  { %v3384_v58 = vadd.f32 %v12267_v25, %v12209_v26  ;;  %v3717_v27 = vcombine.high %v3381_v32, %v3381_v32  ;;  %v3724_v22 = vrot.slane %v3381_v32, %v14003_v36  ;;  %v12210_v52 = vpop.f32.mrb[72].mxu0 }
 0x44d   :  { %18528 = vst [vmem:[#allocation340_spill] sm:$0xff] %v14876_v13  ;;  %18529 = vst [vmem:[#allocation341_spill] sm:$0xff] %v14879_v34  ;;  %v14882_v47 = vrot.slane %v3684_v51, %v14003_v36  ;;  %v12268_v28 = vpop.f32.mrb[72].mxu1  ;;  %v12211_v18 = vpop.f32.mrb[73].mxu0 }
 0x44e   :  { %v3766_v48 = vcombine.high %v3384_v58, %v3384_v58  ;;  %v3773_v11 = vrot.slane %v3384_v58, %v14003_v36  ;;  %v3731_v21 = vrot.slane %v3717_v27, %v14003_v36  ;;  %v3732_v49 = vcombine.high %v3724_v22, %v3724_v22  ;;  %v12269_v31 = vpop.f32.mrb[73].mxu1  ;;  %v12213_v32 = vpop.f32.mrb[74].mxu0 }
 0x44f   :  { %18530 = vst [vmem:[#allocation342_spill] sm:$0xff] %v14882_v47  ;;  %v14888_v50 = vrot.slane %v3724_v22, %v14003_v36  ;;  %v12212_v26 = vadd.f32 %v12211_v18, %v12210_v52  ;;  %v12271_v13 = vpop.f32.mrb[74].mxu1  ;;  %v12214_v34 = vpop.f32.mrb[75].mxu0  ;;  %v12270_v22 = vadd.f32 %v12269_v31, %v12268_v28 }
 0x450   :  { %v3780_v25 = vrot.slane %v3766_v48, %v14003_v36  ;;  %v3781_v51 = vcombine.high %v3773_v11, %v3773_v11  ;;  %v14892_v19 = vrot.slane %v3773_v11, %v14003_v36  ;;  %v3733_v58 = vcombine.high %v3731_v21, %v3731_v21  ;;  %v12272_v38 = vpop.f32.mrb[75].mxu1 }
 0x451   :  { %18531 = vst [vmem:[#allocation343_spill] sm:$0xff] %v14888_v50  ;;  %v14895_v47 = vrot.slane %v3731_v21, %v14003_v36  ;;  %v14898_v27 = vrot.slane %v3732_v49, %v14003_v36  ;;  %v12215_v52 = vadd.f32 %v12214_v34, %v12213_v32  ;;  %v12273_v57 = vadd.f32 %v12272_v38, %v12271_v13 }
 0x452   :  { %18532 = vst [vmem:[#allocation344_spill] sm:$0xff] %v14892_v19  ;;  %v3782_v48 = vcombine.high %v3780_v25, %v3780_v25  ;;  %v14903_v39 = vrot.slane %v3780_v25, %v14003_v36  ;;  %v14906_v11 = vrot.slane %v3781_v51, %v14003_v36  ;;  %v14911_v21 = vrot.slane %v3733_v58, %v14003_v36 }
 0x453   :  { %18533 = vst [vmem:[#allocation345_spill] sm:$0xff] %v14895_v47  ;;  %18534 = vst [vmem:[#allocation346_spill] sm:$0xff] %v14898_v27  ;;  %v3389_v19 = vadd.f32 %v12270_v22, %v12212_v26  ;;  %v3392_v47 = vadd.f32 %v12273_v57, %v12215_v52 }
 0x454   :  { %18535 = vst [vmem:[#allocation347_spill] sm:$0xff] %v14903_v39  ;;  %18536 = vst [vmem:[#allocation348_spill] sm:$0xff] %v14906_v11  ;;  %v14918_v50 = vrot.slane %v3782_v48, %v14003_v36  ;;  %v12216_v18 = vpop.f32.mrb[76].mxu0 }
 0x455   :  { %18537 = vst [vmem:[#allocation349_spill] sm:$0xff] %v14911_v21  ;;  %v12274_v28 = vpop.f32.mrb[76].mxu1  ;;  %v3815_v31 = vcombine.high %v3389_v19, %v3389_v19  ;;  %v3822_v48 = vrot.slane %v3389_v19, %v14003_v36  ;;  %v12217_v27 = vpop.f32.mrb[77].mxu0  ;;  %v3864_v13 = vcombine.high %v3392_v47, %v3392_v47  ;;  %v3871_v49 = vrot.slane %v3392_v47, %v14003_v36 }
 0x456   :  { %18538 = vst [vmem:[#allocation350_spill] sm:$0xff] %v14918_v50  ;;  %v12275_v25 = vpop.f32.mrb[77].mxu1  ;;  %v12218_v39 = vadd.f32 %v12217_v27, %v12216_v18  ;;  %v12219_v51 = vpop.f32.mrb[78].mxu0 }
 0x457   :  { %v12276_v12 = vadd.f32 %v12275_v25, %v12274_v28  ;;  %v12277_v34 = vpop.f32.mrb[78].mxu1  ;;  %v3829_v32 = vrot.slane %v3815_v31, %v14003_v36  ;;  %v3830_v58 = vcombine.high %v3822_v48, %v3822_v48  ;;  %v14931_v38 = vrot.slane %v3822_v48, %v14003_v36  ;;  %v12220_v26 = vpop.f32.mrb[79].mxu0 }
 0x458   :  { %v12278_v22 = vpop.f32.mrb[79].mxu1  ;;  %v12221_v19 = vadd.f32 %v12220_v26, %v12219_v51  ;;  %v3878_v28 = vrot.slane %v3864_v13, %v14003_v36  ;;  %v3879_v31 = vcombine.high %v3871_v49, %v3871_v49  ;;  %v14944_v48 = vrot.slane %v3871_v49, %v14003_v36 }
 0x459   :  { %18539 = vst [vmem:[#allocation351_spill] sm:$0xff] %v14931_v38  ;;  %v3397_v50 = vadd.f32 %v12276_v12, %v12218_v39  ;;  %v12279_v57 = vadd.f32 %v12278_v22, %v12277_v34  ;;  %v3831_v52 = vcombine.high %v3829_v32, %v3829_v32  ;;  %v14935_v27 = vrot.slane %v3829_v32, %v14003_v36 }
 0x45a   :  { %v14938_v18 = vrot.slane %v3830_v58, %v14003_v36  ;;  %18542 = vst [vmem:[#allocation354_spill] sm:$0xff] %v14944_v48  ;;  %v3880_v34 = vcombine.high %v3878_v28, %v3878_v28  ;;  %v14955_v32 = vrot.slane %v3878_v28, %v14003_v36  ;;  %v14958_v13 = vrot.slane %v3879_v31, %v14003_v36 }
 0x45b   :  { %18540 = vst [vmem:[#allocation352_spill] sm:$0xff] %v14935_v27  ;;  %v3913_v47 = vcombine.high %v3397_v50, %v3397_v50  ;;  %v14947_v12 = vrot.slane %v3831_v52, %v14003_v36  ;;  %v3920_v58 = vrot.slane %v3397_v50, %v14003_v36  ;;  %v3400_v48 = vadd.f32 %v12279_v57, %v12221_v19 }
 0x45c   :  { %18541 = vst [vmem:[#allocation353_spill] sm:$0xff] %v14938_v18  ;;  %18544 = vst [vmem:[#allocation356_spill] sm:$0xff] %v14955_v32  ;;  %v12222_v26 = vpop.f32.mrb[80].mxu0  ;;  %v14969_v27 = vrot.slane %v3880_v34, %v14003_v36 }
 0x45d   :  { %18543 = vst [vmem:[#allocation355_spill] sm:$0xff] %v14947_v12  ;;  %18545 = vst [vmem:[#allocation357_spill] sm:$0xff] %v14958_v13  ;;  %v12280_v22 = vpop.f32.mrb[80].mxu1  ;;  %v3927_v39 = vrot.slane %v3913_v47, %v14003_v36  ;;  %v3928_v51 = vcombine.high %v3920_v58, %v3920_v58  ;;  %v14966_v50 = vrot.slane %v3920_v58, %v14003_v36  ;;  %v12223_v25 = vpop.f32.mrb[81].mxu0 }
 0x45e   :  { %v12281_v28 = vpop.f32.mrb[81].mxu1  ;;  %18547 = vst [vmem:[#allocation359_spill] sm:$0xff] %v14969_v27  ;;  %v12225_v18 = vpop.f32.mrb[82].mxu0  ;;  %v3962_v32 = vcombine.high %v3400_v48, %v3400_v48  ;;  %v3969_v19 = vrot.slane %v3400_v48, %v14003_v36  ;;  %v12224_v57 = vadd.f32 %v12223_v25, %v12222_v26 }
 0x45f   :  { %18546 = vst [vmem:[#allocation358_spill] sm:$0xff] %v14966_v50  ;;  %v12283_v52 = vpop.f32.mrb[82].mxu1  ;;  %v3929_v12 = vcombine.high %v3927_v39, %v3927_v39  ;;  %v14976_v47 = vrot.slane %v3927_v39, %v14003_v36  ;;  %v14979_v58 = vrot.slane %v3928_v51, %v14003_v36  ;;  %v12226_v38 = vpop.f32.mrb[83].mxu0 }
 0x460   :  { %v12284_v11 = vpop.f32.mrb[83].mxu1  ;;  %v12282_v52 = vadd.f32 %v12281_v28, %v12280_v22  ;;  %v3976_v38 = vrot.slane %v3962_v32, %v14003_v36  ;;  %v14995_v34 = vrot.slane %v3969_v19, %v14003_v36 }
 0x461   :  { %18548 = vst [vmem:[#allocation360_spill] sm:$0xff] %v14976_v47  ;;  %18549 = vst [vmem:[#allocation361_spill] sm:$0xff] %v14979_v58  ;;  %v14987_v18 = vrot.slane %v3929_v12, %v14003_v36  ;;  %v3977_v11 = vcombine.high %v3969_v19, %v3969_v19 }
 0x462   :  { %18551 = vst [vmem:[#allocation363_spill] sm:$0xff] %v14995_v34  ;;  %v3405_v25 = vadd.f32 %v12282_v52, %v12224_v57  ;;  %v3978_v26 = vcombine.high %v3976_v38, %v3976_v38  ;;  %v15000_v12 = vrot.slane %v3976_v38, %v14003_v36 }
 0x463   :  { %18550 = vst [vmem:[#allocation362_spill] sm:$0xff] %v14987_v18  ;;  %v15003_v39 = vrot.slane %v3977_v11, %v14003_v36 }
 0x464   :  { %18552 = vst [vmem:[#allocation364_spill] sm:$0xff] %v15000_v12  ;;  %v15008_v32 = vrot.slane %v3405_v25, %v14003_v36  ;;  %v15011_v28 = vrot.slane %v3978_v26, %v14003_v36 }
 0x465   :  { %18553 = vst [vmem:[#allocation365_spill] sm:$0xff] %v15003_v39 }
 0x466   :  { %18554 = vst [vmem:[#allocation366_spill] sm:$0xff] %v15008_v32  ;;  %18555 = vst [vmem:[#allocation367_spill] sm:$0xff] %v15011_v28  ;;  %v4018_v52 = vcombine.high %v15008_v32, %v15008_v32 }
 0x468   :  { %v15024_v25 = vrot.slane %v4018_v52, %v14003_v36 }
 0x46a   :  { %18556 = vst [vmem:[#allocation368_spill] sm:$0xff] %v15024_v25 }
 0x46b   :  { %13038 = dma.done.wait [#allocation4 + $0x5], 4096 }
 0x46c   :  { %13039 = vsyncadd [#allocation4 + $0x5], 4294963200  ;;  %4099 = vmatprep.mubr.bf16.mxu0 %v14059_v16  ;;  %4187 = vmatprep.mubr.bf16.mxu1 %v14061_v44  ;;  %v4043_v26 = vld [vmem:[#allocation2 + $0x540] sm:$0xff]  ;;  %v4044_v48 = vld [vmem:[#allocation2 + $0x548] sm:$0xff]  ;;  %vm11062_vm0 = vcmask 1040384   ;;  %vm10828_vm1 = vcmask 400384  }
 0x46d   :  { %v4059_v19 = vld [vmem:[#allocation2 + $0x5c0] sm:$0xff]  ;;  %12286 = vmatprep.subr.bf16.mxu0 %v4043_v26  ;;  %v4060_v38 = vld [vmem:[#allocation2 + $0x5c8] sm:$0xff]  ;;  %v4045_v51 = vld [vmem:[#allocation2 + $0x550] sm:$0xff]  ;;  %vm10847_vm2 = vcmask 393216   ;;  %vm11394_vm3 = vcmask 1041409  }
 0x46e   :  { %v4035_v57 = vld [vmem:[#allocation2 + $0x500] sm:$0xff]  ;;  %12344 = vmatprep.subr.bf16.mxu1 %v4059_v19  ;;  %v4036_v52 = vld [vmem:[#allocation2 + $0x508] sm:$0xff]  ;;  %v4061_v31 = vld [vmem:[#allocation2 + $0x5d0] sm:$0xff] }
 0x46f   :  { %v4051_v22 = vld [vmem:[#allocation2 + $0x580] sm:$0xff]  ;;  %12287 = vmatpush3.bf16.msra.mxu0 %v4035_v57  ;;  %v4052_v11 = vld [vmem:[#allocation2 + $0x588] sm:$0xff]  ;;  %v4037_v49 = vld [vmem:[#allocation2 + $0x510] sm:$0xff] }
 0x470   :  { %12345 = vmatpush3.bf16.msra.mxu1 %v4051_v22  ;;  %12288 = vmatprep.subr.bf16.mxu0 %v4044_v48  ;;  %v4053_v25 = vld [vmem:[#allocation2 + $0x590] sm:$0xff]  ;;  %v4046_v32 = vld [vmem:[#allocation2 + $0x558] sm:$0xff]  ;;  %v4047_v48 = vld [vmem:[#allocation2 + $0x560] sm:$0xff] }
 0x471   :  { %12346 = vmatprep.subr.bf16.mxu1 %v4060_v38  ;;  %v4062_v26 = vld [vmem:[#allocation2 + $0x5d8] sm:$0xff]  ;;  %v4063_v57 = vld [vmem:[#allocation2 + $0x5e0] sm:$0xff] }
 0x472   :  { %v4038_v19 = vld [vmem:[#allocation2 + $0x518] sm:$0xff]  ;;  %v4039_v38 = vld [vmem:[#allocation2 + $0x520] sm:$0xff] }
 0x473   :  { %12289 = vmatpush3.bf16.msra.mxu0 %v4036_v52  ;;  %v4054_v22 = vld [vmem:[#allocation2 + $0x598] sm:$0xff]  ;;  %v4065_v52 = vld [vmem:[#allocation2 + $0x5f0] sm:$0xff] }
 0x474   :  { %12347 = vmatpush3.bf16.msra.mxu1 %v4052_v11  ;;  %12290 = vmatprep.subr.bf16.mxu0 %v4045_v51  ;;  %v4055_v11 = vld [vmem:[#allocation2 + $0x5a0] sm:$0xff]  ;;  %v4048_v51 = vld [vmem:[#allocation2 + $0x568] sm:$0xff] }
 0x475   :  { %12348 = vmatprep.subr.bf16.mxu1 %v4061_v31  ;;  %v4064_v31 = vld [vmem:[#allocation2 + $0x5e8] sm:$0xff] }
 0x477   :  { %12291 = vmatpush3.bf16.msra.mxu0 %v4037_v49  ;;  %v4040_v49 = vld [vmem:[#allocation2 + $0x528] sm:$0xff] }
 0x478   :  { %12349 = vmatpush3.bf16.msra.mxu1 %v4053_v25  ;;  %12292 = vmatprep.subr.bf16.mxu0 %v4046_v32  ;;  %v4056_v25 = vld [vmem:[#allocation2 + $0x5a8] sm:$0xff]  ;;  %v4049_v32 = vld [vmem:[#allocation2 + $0x570] sm:$0xff] }
 0x479   :  { %12350 = vmatprep.subr.bf16.mxu1 %v4062_v26  ;;  %v4041_v26 = vld [vmem:[#allocation2 + $0x530] sm:$0xff] }
 0x47b   :  { %12293 = vmatpush3.bf16.msra.mxu0 %v4038_v19  ;;  %v4057_v19 = vld [vmem:[#allocation2 + $0x5b0] sm:$0xff] }
 0x47c   :  { %12351 = vmatpush3.bf16.msra.mxu1 %v4054_v22  ;;  %12294 = vmatprep.subr.bf16.mxu0 %v4047_v48  ;;  %v4050_v22 = vld [vmem:[#allocation2 + $0x578] sm:$0xff] }
 0x47d   :  { %12352 = vmatprep.subr.bf16.mxu1 %v4063_v57  ;;  %v4066_v48 = vld [vmem:[#allocation2 + $0x5f8] sm:$0xff] }
 0x47e   :  { %v4042_v57 = vld [vmem:[#allocation2 + $0x538] sm:$0xff] }
 0x47f   :  { %12295 = vmatpush3.bf16.msra.mxu0 %v4039_v38  ;;  %v4058_v38 = vld [vmem:[#allocation2 + $0x5b8] sm:$0xff] }
 0x480   :  { %12353 = vmatpush3.bf16.msra.mxu1 %v4055_v11  ;;  %12296 = vmatprep.subr.bf16.mxu0 %v4048_v51  ;;  %v18557_v11 = vld [vmem:[#allocation162_spill] sm:$0xff] }
 0x481   :  { %12354 = vmatprep.subr.bf16.mxu1 %v4064_v31  ;;  %v18558_v51 = vld [vmem:[#allocation178_spill] sm:$0xff] }
 0x482   :  { %v18559_v31 = vld [vmem:[#allocation154_spill] sm:$0xff] }
 0x483   :  { %12297 = vmatpush3.bf16.msra.mxu0 %v4040_v49  ;;  %v18560_v49 = vld [vmem:[#allocation170_spill] sm:$0xff] }
 0x484   :  { %12355 = vmatpush3.bf16.msra.mxu1 %v4056_v25  ;;  %12298 = vmatprep.subr.bf16.mxu0 %v4049_v32  ;;  %v18561_v25 = vld [vmem:[#allocation163_spill] sm:$0xff] }
 0x485   :  { %12356 = vmatprep.subr.bf16.mxu1 %v4065_v52  ;;  %v18562_v32 = vld [vmem:[#allocation179_spill] sm:$0xff] }
 0x486   :  { %v18563_v52 = vld [vmem:[#allocation155_spill] sm:$0xff] }
 0x487   :  { %12299 = vmatpush3.bf16.msra.mxu0 %v4041_v26  ;;  %v18564_v26 = vld [vmem:[#allocation171_spill] sm:$0xff] }
 0x488   :  { %12357 = vmatpush3.bf16.msra.mxu1 %v4057_v19  ;;  %12300 = vmatprep.subr.bf16.mxu0 %v4050_v22  ;;  %v18565_v19 = vld [vmem:[#allocation164_spill] sm:$0xff] }
 0x489   :  { %12358 = vmatprep.subr.bf16.mxu1 %v4066_v48  ;;  %v18566_v22 = vld [vmem:[#allocation180_spill] sm:$0xff] }
 0x48a   :  { %v18567_v48 = vld [vmem:[#allocation156_spill] sm:$0xff] }
 0x48b   :  { %12301 = vmatpush3.bf16.msra.mxu0 %v4042_v57  ;;  %v18568_v57 = vld [vmem:[#allocation172_spill] sm:$0xff] }
 0x48c   :  { %12359 = vmatpush3.bf16.msra.mxu1 %v4058_v38  ;;  %12402 = vmatprep.subr.bf16.mxu0 %v18557_v11  ;;  %v18569_v38 = vld [vmem:[#allocation165_spill] sm:$0xff] }
 0x48d   :  { %12460 = vmatprep.subr.bf16.mxu1 %v18558_v51  ;;  %v18570_v11 = vld [vmem:[#allocation181_spill] sm:$0xff] }
 0x48e   :  { %4100 = vmatmul.mubr.bf16.vlgmr.msra.gmra.mrb[84].mxu0 %v14063_v61  ;;  %v18571_v51 = vld [vmem:[#allocation157_spill] sm:$0xff] }
 0x48f   :  { %4188 = vmatmul.mubr.bf16.vlgmr.msra.gmra.mrb[84].mxu1 %v14083_v1  ;;  %4107 = vmatprep.mubr.bf16.mxu0 %v14085_v17 }
 0x490   :  { %4195 = vmatprep.mubr.bf16.mxu1 %v14089_v63  ;;  %12403 = vmatpush3.bf16.msra.mxu0 %v18559_v31  ;;  %v18572_v31 = vld [vmem:[#allocation173_spill] sm:$0xff] }
 0x491   :  { %12461 = vmatpush3.bf16.msra.mxu1 %v18560_v49  ;;  %12404 = vmatprep.subr.bf16.mxu0 %v18561_v25  ;;  %v18573_v49 = vld [vmem:[#allocation166_spill] sm:$0xff] }
 0x492   :  { %12462 = vmatprep.subr.bf16.mxu1 %v18562_v32  ;;  %v18574_v25 = vld [vmem:[#allocation182_spill] sm:$0xff] }
 0x493   :  { %v18575_v32 = vld [vmem:[#allocation158_spill] sm:$0xff] }
 0x494   :  { %12405 = vmatpush3.bf16.msra.mxu0 %v18563_v52  ;;  %v18576_v52 = vld [vmem:[#allocation174_spill] sm:$0xff] }
 0x495   :  { %12463 = vmatpush3.bf16.msra.mxu1 %v18564_v26  ;;  %12406 = vmatprep.subr.bf16.mxu0 %v18565_v19  ;;  %v18577_v26 = vld [vmem:[#allocation167_spill] sm:$0xff] }
 0x496   :  { %12464 = vmatprep.subr.bf16.mxu1 %v18566_v22  ;;  %4108 = vmatmul.mubr.bf16.gmra.mrb[88].mxu0 %v14092_v62  ;;  %v18578_v19 = vld [vmem:[#allocation183_spill] sm:$0xff] }
 0x497   :  { %4196 = vmatmul.mubr.bf16.gmra.mrb[88].mxu1 %v14133_v8  ;;  %4115 = vmatprep.mubr.bf16.mxu0 %v14138_v7  ;;  %v18579_v22 = vld [vmem:[#allocation159_spill] sm:$0xff] }
 0x498   :  { %4203 = vmatprep.mubr.bf16.mxu1 %v14140_v60  ;;  %12407 = vmatpush3.bf16.msra.mxu0 %v18567_v48  ;;  %v18580_v48 = vld [vmem:[#allocation175_spill] sm:$0xff] }
 0x499   :  { %12465 = vmatpush3.bf16.msra.mxu1 %v18568_v57  ;;  %12408 = vmatprep.subr.bf16.mxu0 %v18569_v38  ;;  %v18581_v57 = vld [vmem:[#allocation168_spill] sm:$0xff] }
 0x49a   :  { %12466 = vmatprep.subr.bf16.mxu1 %v18570_v11  ;;  %v18582_v38 = vld [vmem:[#allocation184_spill] sm:$0xff] }
 0x49b   :  { %v18583_v11 = vld [vmem:[#allocation160_spill] sm:$0xff] }
 0x49c   :  { %12409 = vmatpush3.bf16.msra.mxu0 %v18571_v51  ;;  %v18584_v51 = vld [vmem:[#allocation176_spill] sm:$0xff] }
 0x49d   :  { %12467 = vmatpush3.bf16.msra.mxu1 %v18572_v31  ;;  %12410 = vmatprep.subr.bf16.mxu0 %v18573_v49  ;;  %v18585_v31 = vld [vmem:[#allocation169_spill] sm:$0xff] }
 0x49e   :  { %12468 = vmatprep.subr.bf16.mxu1 %v18574_v25  ;;  %4116 = vmatmul.mubr.bf16.gmra.mrb[92].mxu0 %v14144_v15  ;;  %v18586_v49 = vld [vmem:[#allocation185_spill] sm:$0xff] }
 0x49f   :  { %4204 = vmatmul.mubr.bf16.gmra.mrb[92].mxu1 %v14157_v33  ;;  %4123 = vmatprep.mubr.bf16.mxu0 %v14192_v2  ;;  %v18587_v25 = vld [vmem:[#allocation161_spill] sm:$0xff] }
 0x4a0   :  { %4211 = vmatprep.mubr.bf16.mxu1 %v14194_v10  ;;  %12411 = vmatpush3.bf16.msra.mxu0 %v18575_v32  ;;  %v18588_v32 = vld [vmem:[#allocation177_spill] sm:$0xff] }
 0x4a1   :  { %12469 = vmatpush3.bf16.msra.mxu1 %v18576_v52  ;;  %12412 = vmatprep.subr.bf16.mxu0 %v18577_v26  ;;  %v18589_v52 = vld [vmem:[#allocation194_spill] sm:$0xff] }
 0x4a2   :  { %12470 = vmatprep.subr.bf16.mxu1 %v18578_v19  ;;  %v18590_v26 = vld [vmem:[#allocation210_spill] sm:$0xff] }
 0x4a3   :  { %v18591_v19 = vld [vmem:[#allocation186_spill] sm:$0xff] }
 0x4a4   :  { %12413 = vmatpush3.bf16.msra.mxu0 %v18579_v22  ;;  %v18592_v22 = vld [vmem:[#allocation202_spill] sm:$0xff] }
 0x4a5   :  { %12471 = vmatpush3.bf16.msra.mxu1 %v18580_v48  ;;  %12414 = vmatprep.subr.bf16.mxu0 %v18581_v57  ;;  %v18593_v48 = vld [vmem:[#allocation195_spill] sm:$0xff] }
 0x4a6   :  { %12472 = vmatprep.subr.bf16.mxu1 %v18582_v38  ;;  %4124 = vmatmul.mubr.bf16.gmra.mrb[96].mxu0 %v14196_v53  ;;  %v18594_v57 = vld [vmem:[#allocation211_spill] sm:$0xff] }
 0x4a7   :  { %4212 = vmatmul.mubr.bf16.gmra.mrb[96].mxu1 %v14198_v23  ;;  %4131 = vmatprep.mubr.bf16.mxu0 %v14236_v5  ;;  %v18595_v38 = vld [vmem:[#allocation187_spill] sm:$0xff] }
 0x4a8   :  { %4219 = vmatprep.mubr.bf16.mxu1 %v14238_v45  ;;  %12415 = vmatpush3.bf16.msra.mxu0 %v18583_v11  ;;  %v18596_v11 = vld [vmem:[#allocation203_spill] sm:$0xff] }
 0x4a9   :  { %12473 = vmatpush3.bf16.msra.mxu1 %v18584_v51  ;;  %12416 = vmatprep.subr.bf16.mxu0 %v18585_v31  ;;  %v18597_v51 = vld [vmem:[#allocation196_spill] sm:$0xff] }
 0x4aa   :  { %12474 = vmatprep.subr.bf16.mxu1 %v18586_v49  ;;  %v18598_v31 = vld [vmem:[#allocation212_spill] sm:$0xff] }
 0x4ab   :  { %v18599_v49 = vld [vmem:[#allocation188_spill] sm:$0xff] }
 0x4ac   :  { %12417 = vmatpush3.bf16.msra.mxu0 %v18587_v25  ;;  %v18600_v25 = vld [vmem:[#allocation204_spill] sm:$0xff] }
 0x4ad   :  { %12475 = vmatpush3.bf16.msra.mxu1 %v18588_v32  ;;  %12518 = vmatprep.subr.bf16.mxu0 %v18589_v52  ;;  %v18601_v32 = vld [vmem:[#allocation197_spill] sm:$0xff] }
 0x4ae   :  { %12576 = vmatprep.subr.bf16.mxu1 %v18590_v26  ;;  %4132 = vmatmul.mubr.bf16.gmra.mrb[100].mxu0 %v14240_v55  ;;  %v18602_v52 = vld [vmem:[#allocation213_spill] sm:$0xff] }
 0x4af   :  { %4220 = vmatmul.mubr.bf16.gmra.mrb[100].mxu1 %v14242_v42  ;;  %4139 = vmatprep.mubr.bf16.mxu0 %v14261_v6  ;;  %v18603_v26 = vld [vmem:[#allocation189_spill] sm:$0xff] }
 0x4b0   :  { %4227 = vmatprep.mubr.bf16.mxu1 %v14263_v14 }
 0x4b6   :  { %4140 = vmatmul.mubr.bf16.gmra.mrb[104].mxu0 %v14265_v30 }
 0x4b7   :  { %4228 = vmatmul.mubr.bf16.gmra.mrb[104].mxu1 %v14267_v0  ;;  %4147 = vmatprep.mubr.bf16.mxu0 %v14278_v4 }
 0x4b8   :  { %4235 = vmatprep.mubr.bf16.mxu1 %v14283_v9 }
 0x4be   :  { %4148 = vmatmul.mubr.bf16.gmra.mrb[108].mxu0 %v14275_v37 }
 0x4bf   :  { %4236 = vmatmul.mubr.bf16.gmra.mrb[108].mxu1 %v14287_v24  ;;  %5079 = vmatprep.mubr.bf16.mxu0 %v14059_v16 }
 0x4c0   :  { %5167 = vmatprep.mubr.bf16.mxu1 %v14061_v44 }
 0x4c6   :  { %5080 = vmatmul.mubr.bf16.vlgmr.msra.gmra.mrb[112].mxu0 %v14063_v61 }
 0x4c7   :  { %5168 = vmatmul.mubr.bf16.vlgmr.msra.gmra.mrb[112].mxu1 %v14083_v1  ;;  %5087 = vmatprep.mubr.bf16.mxu0 %v14085_v17 }
 0x4c8   :  { %5175 = vmatprep.mubr.bf16.mxu1 %v14089_v63  ;;  %12519 = vmatpush3.bf16.msra.mxu0 %v18591_v19  ;;  %v18604_v19 = vld [vmem:[#allocation205_spill] sm:$0xff] }
 0x4c9   :  { %12577 = vmatpush3.bf16.msra.mxu1 %v18592_v22  ;;  %12520 = vmatprep.subr.bf16.mxu0 %v18593_v48  ;;  %v18605_v22 = vld [vmem:[#allocation198_spill] sm:$0xff] }
 0x4ca   :  { %12578 = vmatprep.subr.bf16.mxu1 %v18594_v57  ;;  %v18606_v48 = vld [vmem:[#allocation214_spill] sm:$0xff] }
 0x4cb   :  { %v18607_v57 = vld [vmem:[#allocation190_spill] sm:$0xff] }
 0x4cc   :  { %12521 = vmatpush3.bf16.msra.mxu0 %v18595_v38  ;;  %v18608_v38 = vld [vmem:[#allocation206_spill] sm:$0xff] }
 0x4cd   :  { %12579 = vmatpush3.bf16.msra.mxu1 %v18596_v11  ;;  %12522 = vmatprep.subr.bf16.mxu0 %v18597_v51  ;;  %v18609_v11 = vld [vmem:[#allocation199_spill] sm:$0xff] }
 0x4ce   :  { %12580 = vmatprep.subr.bf16.mxu1 %v18598_v31  ;;  %5088 = vmatmul.mubr.bf16.gmra.mrb[116].mxu0 %v14092_v62  ;;  %v18610_v51 = vld [vmem:[#allocation215_spill] sm:$0xff] }
 0x4cf   :  { %5176 = vmatmul.mubr.bf16.gmra.mrb[116].mxu1 %v14133_v8  ;;  %5095 = vmatprep.mubr.bf16.mxu0 %v14138_v7  ;;  %v18611_v31 = vld [vmem:[#allocation191_spill] sm:$0xff] }
 0x4d0   :  { %5183 = vmatprep.mubr.bf16.mxu1 %v14140_v60  ;;  %12523 = vmatpush3.bf16.msra.mxu0 %v18599_v49  ;;  %v18612_v49 = vld [vmem:[#allocation207_spill] sm:$0xff] }
 0x4d1   :  { %12581 = vmatpush3.bf16.msra.mxu1 %v18600_v25  ;;  %12524 = vmatprep.subr.bf16.mxu0 %v18601_v32  ;;  %v18613_v25 = vld [vmem:[#allocation200_spill] sm:$0xff] }
 0x4d2   :  { %12582 = vmatprep.subr.bf16.mxu1 %v18602_v52  ;;  %v18614_v32 = vld [vmem:[#allocation216_spill] sm:$0xff] }
 0x4d3   :  { %v18615_v52 = vld [vmem:[#allocation192_spill] sm:$0xff] }
 0x4d4   :  { %12525 = vmatpush3.bf16.msra.mxu0 %v18603_v26  ;;  %v18616_v26 = vld [vmem:[#allocation208_spill] sm:$0xff] }
 0x4d5   :  { %12583 = vmatpush3.bf16.msra.mxu1 %v18604_v19  ;;  %12526 = vmatprep.subr.bf16.mxu0 %v18605_v22  ;;  %v18617_v19 = vld [vmem:[#allocation201_spill] sm:$0xff] }
 0x4d6   :  { %12584 = vmatprep.subr.bf16.mxu1 %v18606_v48  ;;  %5096 = vmatmul.mubr.bf16.gmra.mrb[120].mxu0 %v14144_v15  ;;  %v18618_v22 = vld [vmem:[#allocation217_spill] sm:$0xff] }
 0x4d7   :  { %5184 = vmatmul.mubr.bf16.gmra.mrb[120].mxu1 %v14157_v33  ;;  %5103 = vmatprep.mubr.bf16.mxu0 %v14192_v2  ;;  %v18619_v48 = vld [vmem:[#allocation193_spill] sm:$0xff] }
 0x4d8   :  { %5191 = vmatprep.mubr.bf16.mxu1 %v14194_v10  ;;  %12527 = vmatpush3.bf16.msra.mxu0 %v18607_v57  ;;  %v18620_v57 = vld [vmem:[#allocation209_spill] sm:$0xff] }
 0x4d9   :  { %12585 = vmatpush3.bf16.msra.mxu1 %v18608_v38  ;;  %12528 = vmatprep.subr.bf16.mxu0 %v18609_v11 }
 0x4da   :  { %12586 = vmatprep.subr.bf16.mxu1 %v18610_v51 }
 0x4dc   :  { %12529 = vmatpush3.bf16.msra.mxu0 %v18611_v31 }
 0x4dd   :  { %12587 = vmatpush3.bf16.msra.mxu1 %v18612_v49  ;;  %12530 = vmatprep.subr.bf16.mxu0 %v18613_v25 }
 0x4de   :  { %12588 = vmatprep.subr.bf16.mxu1 %v18614_v32  ;;  %5104 = vmatmul.mubr.bf16.gmra.mrb[124].mxu0 %v14196_v53 }
 0x4df   :  { %5192 = vmatmul.mubr.bf16.gmra.mrb[124].mxu1 %v14198_v23  ;;  %5111 = vmatprep.mubr.bf16.mxu0 %v14236_v5 }
 0x4e0   :  { %5199 = vmatprep.mubr.bf16.mxu1 %v14238_v45  ;;  %12531 = vmatpush3.bf16.msra.mxu0 %v18615_v52 }
 0x4e1   :  { %12589 = vmatpush3.bf16.msra.mxu1 %v18616_v26  ;;  %12532 = vmatprep.subr.bf16.mxu0 %v18617_v19 }
 0x4e2   :  { %12590 = vmatprep.subr.bf16.mxu1 %v18618_v22 }
 0x4e4   :  { %12533 = vmatpush3.bf16.msra.mxu0 %v18619_v48 }
 0x4e5   :  { %12591 = vmatpush3.bf16.msra.mxu1 %v18620_v57 }
 0x4e6   :  { %5112 = vmatmul.mubr.bf16.gmra.mrb[128].mxu0 %v14240_v55 }
 0x4e7   :  { %5200 = vmatmul.mubr.bf16.gmra.mrb[128].mxu1 %v14242_v42  ;;  %5119 = vmatprep.mubr.bf16.mxu0 %v14261_v6 }
 0x4e8   :  { %5207 = vmatprep.mubr.bf16.mxu1 %v14263_v14 }
 0x4ee   :  { %5120 = vmatmul.mubr.bf16.gmra.mrb[132].mxu0 %v14265_v30 }
 0x4ef   :  { %5208 = vmatmul.mubr.bf16.gmra.mrb[132].mxu1 %v14267_v0  ;;  %5127 = vmatprep.mubr.bf16.mxu0 %v14278_v4 }
 0x4f0   :  { %5215 = vmatprep.mubr.bf16.mxu1 %v14283_v9 }
 0x4f6   :  { %5128 = vmatmul.mubr.bf16.gmra.mrb[136].mxu0 %v14275_v37 }
 0x4f7   :  { %5216 = vmatmul.mubr.bf16.gmra.mrb[136].mxu1 %v14287_v24  ;;  %6697 = vmatprep.mubr.bf16.mxu0 %v14059_v16 }
 0x4f8   :  { %6785 = vmatprep.mubr.bf16.mxu1 %v14061_v44 }
 0x4fe   :  { %6698 = vmatmul.mubr.bf16.vlgmr.msra.gmra.mrb[140].mxu0 %v14063_v61 }
 0x4ff   :  { %6786 = vmatmul.mubr.bf16.vlgmr.msra.gmra.mrb[140].mxu1 %v14083_v1  ;;  %6705 = vmatprep.mubr.bf16.mxu0 %v14085_v17 }
 0x500   :  { %6793 = vmatprep.mubr.bf16.mxu1 %v14089_v63 }
 0x506   :  { %6706 = vmatmul.mubr.bf16.gmra.mrb[144].mxu0 %v14092_v62 }
 0x507   :  { %6794 = vmatmul.mubr.bf16.gmra.mrb[144].mxu1 %v14133_v8  ;;  %6713 = vmatprep.mubr.bf16.mxu0 %v14138_v7 }
 0x508   :  { %6801 = vmatprep.mubr.bf16.mxu1 %v14140_v60 }
 0x50e   :  { %6714 = vmatmul.mubr.bf16.gmra.mrb[148].mxu0 %v14144_v15 }
 0x50f   :  { %6802 = vmatmul.mubr.bf16.gmra.mrb[148].mxu1 %v14157_v33  ;;  %6721 = vmatprep.mubr.bf16.mxu0 %v14192_v2  ;;  %v11848_v33 = vld [vmem:[%s17874_s1] ss:$0 sm:$0xff] }
 0x510   :  { %6809 = vmatprep.mubr.bf16.mxu1 %v14194_v10  ;;  %v4872_v16 = vcombine.high %v11848_v33, %v11848_v33  ;;  %v4879_v44 = vrot.slane %v11848_v33, %v14003_v36 }
 0x512   :  { %v4886_v61 = vrot.slane %v4872_v16, %v14003_v36  ;;  %v4887_v1 = vcombine.high %v4879_v44, %v4879_v44  ;;  %v4895_v63 = vrot.slane %v4879_v44, %v14003_v36 }
 0x514   :  { %v4888_v17 = vcombine.high %v4886_v61, %v4886_v61  ;;  %v4902_v62 = vrot.slane %v4886_v61, %v14003_v36  ;;  %v4909_v8 = vrot.slane %v4887_v1, %v14003_v36  ;;  %v4917_v60 = vcombine.high %v4895_v63, %v4895_v63 }
 0x516   :  { %6722 = vmatmul.mubr.bf16.gmra.mrb[152].mxu0 %v14196_v53  ;;  %v4916_v7 = vrot.slane %v4888_v17, %v14003_v36  ;;  %v4918_v15 = vcombine.high %v4902_v62, %v4902_v62  ;;  %v4919_v2 = vcombine.high %v4909_v8, %v4909_v8  ;;  %v4921_v53 = vcombine.low %v4895_v63, %v4909_v8 }
 0x517   :  { %6810 = vmatmul.mubr.bf16.gmra.mrb[152].mxu1 %v14198_v23  ;;  %6729 = vmatprep.mubr.bf16.mxu0 %v14236_v5  ;;  %v11849_v23 = vcombine.high %v4895_v63, %v4909_v8 }
 0x518   :  { %6817 = vmatprep.mubr.bf16.mxu1 %v14238_v45  ;;  %v4920_v10 = vcombine.high %v4916_v7, %v4916_v7  ;;  %v4923_v5 = vcombine.low %v4902_v62, %v4916_v7  ;;  %v11850_v45 = vcombine.high %v4902_v62, %v4916_v7 }
 0x51e   :  { %6730 = vmatmul.mubr.bf16.gmra.mrb[156].mxu0 %v14240_v55  ;;  %v4970_v55 = vcombine.low %v4895_v63, %v4895_v63 }
 0x51f   :  { %6818 = vmatmul.mubr.bf16.gmra.mrb[156].mxu1 %v14242_v42  ;;  %6737 = vmatprep.mubr.bf16.mxu0 %v14261_v6  ;;  %v4971_v42 = vcombine.low %v4909_v8, %v4917_v60  ;;  %v4972_v6 = vcombine.low %v4919_v2, %v4902_v62 }
 0x520   :  { %6825 = vmatprep.mubr.bf16.mxu1 %v14263_v14  ;;  %v4973_v14 = vcombine.low %v4916_v7, %v4918_v15 }
 0x521   :  { %v4987_v38 = vrot.slane %v4971_v42, %v14003_v36  ;;  %v4994_v11 = vrot.slane %v4972_v6, %v14003_v36 }
 0x522   :  { %v5001_v51 = vrot.slane %v4973_v14, %v14003_v36 }
 0x524   :  { %v5003_v48 = vcombine.low %v4994_v11, %v5001_v51 }
 0x526   :  { %6738 = vmatmul.mubr.bf16.gmra.mrb[160].mxu0 %v14265_v30  ;;  %v5019_v30 = vcombine.low %v4920_v10, %v4895_v63  ;;  %v15201_v2 = vrot.slane %v5003_v48, %v14003_v36 }
 0x527   :  { %6826 = vmatmul.mubr.bf16.gmra.mrb[160].mxu1 %v14267_v0  ;;  %6745 = vmatprep.mubr.bf16.mxu0 %v14278_v4  ;;  %v4931_v0 = vrot.slane %v4921_v53, %v14003_v36  ;;  %v4945_v4 = vrot.slane %v4923_v5, %v14003_v36 }
 0x528   :  { %6833 = vmatprep.mubr.bf16.mxu1 %v14283_v9  ;;  %v4952_v9 = vrot.slane %v11850_v45, %v14003_v36  ;;  %v15192_v31 = vrot.slane %v5019_v30, %v14003_v36 }
 0x52a   :  { %v4954_v52 = vcombine.low %v4945_v4, %v4952_v9  ;;  %v5027_v57 = vcombine.low %v15192_v31, %v4987_v38 }
 0x52c   :  { %v4968_v60 = vrot.slane %v4954_v52, %v14003_v36  ;;  %v5034_v10 = vrot.slane %v5027_v57, %v14003_v36 }
 0x52e   :  { %6746 = vmatmul.mubr.bf16.gmra.mrb[164].mxu0 %v14275_v37  ;;  %v4938_v37 = vrot.slane %v11849_v23, %v14003_v36 }
 0x52f   :  { %6834 = vmatmul.mubr.bf16.gmra.mrb[164].mxu1 %v14287_v24  ;;  %v4980_v24 = vrot.slane %v4970_v55, %v14003_v36 }
 0x530   :  { %v4953_v49 = vcombine.low %v4931_v0, %v4938_v37 }
 0x531   :  { %v5002_v22 = vcombine.low %v4980_v24, %v4987_v38  ;;  %v15213_v38 = vcombine.low %v5034_v10, %v15201_v2 }
 0x532   :  { %v4961_v63 = vrot.slane %v4953_v49, %v14003_v36 }
 0x533   :  { %v15198_v15 = vrot.slane %v5002_v22, %v14003_v36 }
 0x534   :  { %v15206_v30 = vcombine.low %v4961_v63, %v4968_v60 }
 0x561   :  { %v12302_v25 = vpop.f32.mrb[84].mxu0 }
 0x562   :  { %v12360_v32 = vpop.f32.mrb[84].mxu1  ;;  %v12303_v26 = vpop.f32.mrb[85].mxu0 }
 0x563   :  { %v12361_v19 = vpop.f32.mrb[85].mxu1  ;;  %v12304_v33 = vadd.f32 %v12303_v26, %v12302_v25  ;;  %v12305_v44 = vpop.f32.mrb[86].mxu0 }
 0x564   :  { %v12362_v16 = vadd.f32 %v12361_v19, %v12360_v32  ;;  %v12363_v61 = vpop.f32.mrb[86].mxu1  ;;  %v12306_v1 = vpop.f32.mrb[87].mxu0 }
 0x565   :  { %v12364_v17 = vpop.f32.mrb[87].mxu1  ;;  %v12307_v8 = vadd.f32 %v12306_v1, %v12305_v44 }
 0x566   :  { %v4190_v62 = vadd.f32 %v12362_v16, %v12304_v33  ;;  %v12365_v7 = vadd.f32 %v12364_v17, %v12363_v61 }
 0x568   :  { %v4256_v53 = vcombine.high %v4190_v62, %v4190_v62  ;;  %v4263_v23 = vrot.slane %v4190_v62, %v14003_v36  ;;  %v4193_v5 = vadd.f32 %v12365_v7, %v12307_v8 }
 0x569   :  { %v12308_v6 = vpop.f32.mrb[88].mxu0 }
 0x56a   :  { %v4270_v45 = vrot.slane %v4256_v53, %v14003_v36  ;;  %v4271_v55 = vcombine.high %v4263_v23, %v4263_v23  ;;  %v4305_v42 = vcombine.high %v4193_v5, %v4193_v5  ;;  %v12366_v14 = vpop.f32.mrb[88].mxu1  ;;  %v4279_v0 = vrot.slane %v4263_v23, %v14003_v36  ;;  %v12309_v4 = vpop.f32.mrb[89].mxu0 }
 0x56b   :  { %v4312_v37 = vrot.slane %v4193_v5, %v14003_v36  ;;  %v12367_v9 = vpop.f32.mrb[89].mxu1  ;;  %v12311_v32 = vpop.f32.mrb[90].mxu0  ;;  %v12310_v22 = vadd.f32 %v12309_v4, %v12308_v6 }
 0x56c   :  { %v4272_v11 = vcombine.high %v4270_v45, %v4270_v45  ;;  %v4286_v51 = vrot.slane %v4270_v45, %v14003_v36  ;;  %v4293_v49 = vrot.slane %v4271_v55, %v14003_v36  ;;  %v4319_v25 = vrot.slane %v4305_v42, %v14003_v36  ;;  %v12369_v52 = vpop.f32.mrb[90].mxu1  ;;  %v12312_v57 = vpop.f32.mrb[91].mxu0 }
 0x56d   :  { %v4320_v26 = vcombine.high %v4312_v37, %v4312_v37  ;;  %v4328_v19 = vrot.slane %v4312_v37, %v14003_v36  ;;  %v12368_v48 = vadd.f32 %v12367_v9, %v12366_v14  ;;  %v12370_v33 = vpop.f32.mrb[91].mxu1  ;;  %v12313_v8 = vadd.f32 %v12312_v57, %v12311_v32 }
 0x56e   :  { %v4300_v16 = vrot.slane %v4272_v11, %v14003_v36  ;;  %v9992_v44 = vcombine.low %v4279_v0, %v4293_v49  ;;  %v11914_v61 = vcombine.high %v4279_v0, %v4293_v49  ;;  %v4321_v1 = vcombine.high %v4319_v25, %v4319_v25 }
 0x56f   :  { %v4335_v17 = vrot.slane %v4319_v25, %v14003_v36  ;;  %v4342_v63 = vrot.slane %v4320_v26, %v14003_v36  ;;  %v4198_v62 = vadd.f32 %v12368_v48, %v12310_v22  ;;  %v12371_v0 = vadd.f32 %v12370_v33, %v12369_v52 }
 0x570   :  { %v9994_v7 = vcombine.low %v4286_v51, %v4300_v16  ;;  %v11915_v60 = vcombine.high %v4286_v51, %v4300_v16  ;;  %v15223_v10 = vrot.slane %v9992_v44, %v14003_v36  ;;  %v15226_v53 = vrot.slane %v11914_v61, %v14003_v36 }
 0x571   :  { %v4349_v23 = vrot.slane %v4321_v1, %v14003_v36  ;;  %v10041_v5 = vcombine.low %v4328_v19, %v4342_v63  ;;  %v11916_v45 = vcombine.high %v4328_v19, %v4342_v63  ;;  %v4354_v55 = vcombine.high %v4198_v62, %v4198_v62  ;;  %v12314_v37 = vpop.f32.mrb[92].mxu0 }
 0x572   :  { %18621 = vst [vmem:[#allocation162_spill] sm:$0xff] %v15223_v10  ;;  %18622 = vst [vmem:[#allocation178_spill] sm:$0xff] %v15226_v53  ;;  %v15230_v42 = vrot.slane %v9994_v7, %v14003_v36  ;;  %v15233_v6 = vrot.slane %v11915_v60, %v14003_v36  ;;  %v4361_v14 = vrot.slane %v4198_v62, %v14003_v36  ;;  %v12372_v4 = vpop.f32.mrb[92].mxu1  ;;  %v12315_v25 = vpop.f32.mrb[93].mxu0 }
 0x573   :  { %v10043_v9 = vcombine.low %v4335_v17, %v4349_v23  ;;  %v11917_v11 = vcombine.high %v4335_v17, %v4349_v23  ;;  %v15237_v51 = vrot.slane %v10041_v5, %v14003_v36  ;;  %v15240_v49 = vrot.slane %v11916_v45, %v14003_v36  ;;  %v12373_v32 = vpop.f32.mrb[93].mxu1  ;;  %v12317_v57 = vpop.f32.mrb[94].mxu0 }
 0x574   :  { %18623 = vst [vmem:[#allocation154_spill] sm:$0xff] %v15230_v42  ;;  %18624 = vst [vmem:[#allocation170_spill] sm:$0xff] %v15233_v6  ;;  %v4368_v26 = vrot.slane %v4354_v55, %v14003_v36  ;;  %v4369_v19 = vcombine.high %v4361_v14, %v4361_v14  ;;  %v4377_v22 = vrot.slane %v4361_v14, %v14003_v36  ;;  %v12375_v52 = vpop.f32.mrb[94].mxu1  ;;  %v12318_v1 = vpop.f32.mrb[95].mxu0 }
 0x575   :  { %18625 = vst [vmem:[#allocation163_spill] sm:$0xff] %v15237_v51  ;;  %18626 = vst [vmem:[#allocation179_spill] sm:$0xff] %v15240_v49  ;;  %v4201_v48 = vadd.f32 %v12371_v0, %v12313_v8  ;;  %v15245_v33 = vrot.slane %v10043_v9, %v14003_v36  ;;  %v15248_v16 = vrot.slane %v11917_v11, %v14003_v36  ;;  %v12376_v17 = vpop.f32.mrb[95].mxu1 }
 0x576   :  { %v12316_v44 = vadd.f32 %v12315_v25, %v12314_v37  ;;  %v12374_v61 = vadd.f32 %v12373_v32, %v12372_v4  ;;  %v4370_v63 = vcombine.high %v4368_v26, %v4368_v26  ;;  %v4384_v62 = vrot.slane %v4368_v26, %v14003_v36 }
 0x577   :  { %18627 = vst [vmem:[#allocation155_spill] sm:$0xff] %v15245_v33  ;;  %18628 = vst [vmem:[#allocation171_spill] sm:$0xff] %v15248_v16  ;;  %v4391_v7 = vrot.slane %v4369_v19, %v14003_v36  ;;  %v4403_v60 = vcombine.high %v4201_v48, %v4201_v48  ;;  %v4410_v8 = vrot.slane %v4201_v48, %v14003_v36 }
 0x578   :  { %v4206_v23 = vadd.f32 %v12374_v61, %v12316_v44  ;;  %v12319_v5 = vadd.f32 %v12318_v1, %v12317_v57  ;;  %v12377_v45 = vadd.f32 %v12376_v17, %v12375_v52  ;;  %v4398_v55 = vrot.slane %v4370_v63, %v14003_v36 }
 0x579   :  { %v10090_v14 = vcombine.low %v4377_v22, %v4391_v7  ;;  %v11918_v0 = vcombine.high %v4377_v22, %v4391_v7  ;;  %v4417_v37 = vrot.slane %v4403_v60, %v14003_v36  ;;  %v4418_v4 = vcombine.high %v4410_v8, %v4410_v8  ;;  %v12320_v57 = vpop.f32.mrb[96].mxu0 }
 0x57a   :  { %v4426_v9 = vrot.slane %v4410_v8, %v14003_v36  ;;  %v4452_v11 = vcombine.high %v4206_v23, %v4206_v23  ;;  %v4459_v25 = vrot.slane %v4206_v23, %v14003_v36  ;;  %v10092_v32 = vcombine.low %v4384_v62, %v4398_v55  ;;  %v12378_v52 = vpop.f32.mrb[96].mxu1  ;;  %v12321_v17 = vpop.f32.mrb[97].mxu0 }
 0x57b   :  { %v11919_v26 = vcombine.high %v4384_v62, %v4398_v55  ;;  %v15258_v19 = vrot.slane %v10090_v14, %v14003_v36  ;;  %v15261_v48 = vrot.slane %v11918_v0, %v14003_v36  ;;  %v4419_v44 = vcombine.high %v4417_v37, %v4417_v37  ;;  %v12379_v63 = vpop.f32.mrb[97].mxu1  ;;  %v12323_v23 = vpop.f32.mrb[98].mxu0 }
 0x57c   :  { %v4433_v22 = vrot.slane %v4417_v37, %v14003_v36  ;;  %v4440_v61 = vrot.slane %v4418_v4, %v14003_v36  ;;  %v4466_v1 = vrot.slane %v4452_v11, %v14003_v36  ;;  %v15267_v7 = vrot.slane %v10092_v32, %v14003_v36  ;;  %v12381_v55 = vpop.f32.mrb[98].mxu1  ;;  %v12324_v24 = vpop.f32.mrb[99].mxu0 }
 0x57d   :  { %18629 = vst [vmem:[#allocation164_spill] sm:$0xff] %v15258_v19  ;;  %18630 = vst [vmem:[#allocation180_spill] sm:$0xff] %v15261_v48  ;;  %v15270_v62 = vrot.slane %v11919_v26, %v14003_v36  ;;  %v4467_v60 = vcombine.high %v4459_v25, %v4459_v25  ;;  %v4475_v8 = vrot.slane %v4459_v25, %v14003_v36  ;;  %v12382_v11 = vpop.f32.mrb[99].mxu1 }
 0x57e   :  { %18631 = vst [vmem:[#allocation156_spill] sm:$0xff] %v15267_v7  ;;  %v4447_v14 = vrot.slane %v4419_v44, %v14003_v36  ;;  %v10139_v0 = vcombine.low %v4426_v9, %v4440_v61  ;;  %v11920_v37 = vcombine.high %v4426_v9, %v4440_v61  ;;  %v4468_v4 = vcombine.high %v4466_v1, %v4466_v1 }
 0x57f   :  { %18632 = vst [vmem:[#allocation172_spill] sm:$0xff] %v15270_v62  ;;  %v4482_v28 = vrot.slane %v4466_v1, %v14003_v36  ;;  %v4489_v32 = vrot.slane %v4467_v60, %v14003_v36  ;;  %v4209_v12 = vadd.f32 %v12377_v45, %v12319_v5  ;;  %v12322_v39 = vadd.f32 %v12321_v17, %v12320_v57 }
 0x580   :  { %v10141_v26 = vcombine.low %v4433_v22, %v4447_v14  ;;  %v11921_v34 = vcombine.high %v4433_v22, %v4447_v14  ;;  %v15277_v18 = vrot.slane %v10139_v0, %v14003_v36  ;;  %v15280_v25 = vrot.slane %v11920_v37, %v14003_v36 }
 0x581   :  { %v4496_v44 = vrot.slane %v4468_v4, %v14003_v36  ;;  %v10188_v9 = vcombine.low %v4475_v8, %v4489_v32  ;;  %v11922_v61 = vcombine.high %v4475_v8, %v4489_v32  ;;  %v4501_v47 = vcombine.high %v4209_v12, %v4209_v12  ;;  %v12326_v14 = vpop.f32.mrb[100].mxu0 }
 0x582   :  { %18633 = vst [vmem:[#allocation165_spill] sm:$0xff] %v15277_v18  ;;  %18634 = vst [vmem:[#allocation181_spill] sm:$0xff] %v15280_v25  ;;  %v15284_v58 = vrot.slane %v10141_v26, %v14003_v36  ;;  %v15287_v1 = vrot.slane %v11921_v34, %v14003_v36  ;;  %v4508_v5 = vrot.slane %v4209_v12, %v14003_v36  ;;  %v12384_v8 = vpop.f32.mrb[100].mxu1  ;;  %v12327_v32 = vpop.f32.mrb[101].mxu0 }
 0x583   :  { %v12380_v45 = vadd.f32 %v12379_v63, %v12378_v52  ;;  %v10190_v57 = vcombine.low %v4482_v28, %v4496_v44  ;;  %v11923_v22 = vcombine.high %v4482_v28, %v4496_v44  ;;  %v15291_v17 = vrot.slane %v10188_v9, %v14003_v36  ;;  %v12385_v26 = vpop.f32.mrb[101].mxu1  ;;  %v15304_v44 = vpop.f32.mrb[102].mxu0 }
 0x584   :  { %18635 = vst [vmem:[#allocation157_spill] sm:$0xff] %v15284_v58  ;;  %18636 = vst [vmem:[#allocation173_spill] sm:$0xff] %v15287_v1  ;;  %v15294_v60 = vrot.slane %v11922_v61, %v14003_v36  ;;  %v4515_v0 = vrot.slane %v4501_v47, %v14003_v36  ;;  %v4516_v37 = vcombine.high %v4508_v5, %v4508_v5  ;;  %v15306_v9 = vpop.f32.mrb[102].mxu1 }
 0x585   :  { %18637 = vst [vmem:[#allocation166_spill] sm:$0xff] %v15291_v17  ;;  %v4524_v4 = vrot.slane %v4508_v5, %v14003_v36  ;;  %v4214_v34 = vadd.f32 %v12380_v45, %v12322_v39  ;;  %v15299_v12 = vrot.slane %v10190_v57, %v14003_v36  ;;  %v15302_v28 = vrot.slane %v11923_v22, %v14003_v36  ;;  %v12330_v45 = vpop.f32.mrb[103].mxu0  ;;  %v15310_v50 = vpop.f32.mrb[103].mxu1 }
 0x586   :  { %18638 = vst [vmem:[#allocation182_spill] sm:$0xff] %v15294_v60  ;;  %v12325_v52 = vadd.f32 %v12324_v24, %v12323_v23  ;;  %v12383_v63 = vadd.f32 %v12382_v11, %v12381_v55  ;;  %v4517_v61 = vcombine.high %v4515_v0, %v4515_v0  ;;  %v4531_v47 = vrot.slane %v4515_v0, %v14003_v36 }
 0x587   :  { %18639 = vst [vmem:[#allocation158_spill] sm:$0xff] %v15299_v12  ;;  %18640 = vst [vmem:[#allocation174_spill] sm:$0xff] %v15302_v28  ;;  %v4538_v5 = vrot.slane %v4516_v37, %v14003_v36  ;;  %v4550_v39 = vcombine.high %v4214_v34, %v4214_v34  ;;  %v4557_v57 = vrot.slane %v4214_v34, %v14003_v36 }
 0x588   :  { %v4217_v27 = vadd.f32 %v12383_v63, %v12325_v52  ;;  %v12328_v22 = vadd.f32 %v12327_v32, %v12326_v14  ;;  %v12386_v13 = vadd.f32 %v12385_v26, %v12384_v8  ;;  %v4545_v24 = vrot.slane %v4517_v61, %v14003_v36 }
 0x589   :  { %v10237_v23 = vcombine.low %v4524_v4, %v4538_v5  ;;  %v11924_v55 = vcombine.high %v4524_v4, %v4538_v5  ;;  %v4564_v11 = vrot.slane %v4550_v39, %v14003_v36  ;;  %v4565_v21 = vcombine.high %v4557_v57, %v4557_v57  ;;  %v12332_v52 = vpop.f32.mrb[104].mxu0 }
 0x58a   :  { %v15316_v0 = vrot.slane %v4557_v57, %v14003_v36  ;;  %v4599_v37 = vcombine.high %v4217_v27, %v4217_v27  ;;  %v4606_v12 = vrot.slane %v4217_v27, %v14003_v36  ;;  %v10239_v28 = vcombine.low %v4531_v47, %v4545_v24  ;;  %v12390_v63 = vpop.f32.mrb[104].mxu1  ;;  %v12333_v39 = vpop.f32.mrb[105].mxu0 }
 0x58b   :  { %v11925_v17 = vcombine.high %v4531_v47, %v4545_v24  ;;  %v15320_v34 = vrot.slane %v10237_v23, %v14003_v36  ;;  %v15323_v14 = vrot.slane %v11924_v55, %v14003_v36  ;;  %v4566_v8 = vcombine.high %v4564_v11, %v4564_v11  ;;  %v12391_v57 = vpop.f32.mrb[105].mxu1 }
 0x58c   :  { %18641 = vst [vmem:[#allocation167_spill] sm:$0xff] %v15316_v0  ;;  %v4580_v4 = vrot.slane %v4564_v11, %v14003_v36  ;;  %v4587_v32 = vrot.slane %v4565_v21, %v14003_v36  ;;  %v4595_v26 = vcombine.high %v15316_v0, %v15316_v0  ;;  %v15330_v27 = vrot.slane %v10239_v28, %v14003_v36  ;;  %v12335_v11 = vpop.f32.mrb[106].mxu0 }
 0x58d   :  { %18642 = vst [vmem:[#allocation183_spill] sm:$0xff] %v15320_v34  ;;  %18643 = vst [vmem:[#allocation159_spill] sm:$0xff] %v15323_v14  ;;  %v15333_v61 = vrot.slane %v11925_v17, %v14003_v36  ;;  %v4613_v5 = vrot.slane %v4599_v37, %v14003_v36  ;;  %v4594_v21 = vrot.slane %v4566_v8, %v14003_v36  ;;  %v15341_v34 = vpop.f32.mrb[106].mxu1  ;;  %v12336_v47 = vpop.f32.mrb[107].mxu0 }
 0x58e   :  { %18644 = vst [vmem:[#allocation175_spill] sm:$0xff] %v15330_v27  ;;  %v4596_v24 = vcombine.high %v4580_v4, %v4580_v4  ;;  %v4597_v23 = vcombine.high %v4587_v32, %v4587_v32  ;;  %v15339_v55 = vcombine.low %v4587_v32, %v4595_v26  ;;  %v4614_v28 = vcombine.high %v4606_v12, %v4606_v12  ;;  %v15345_v0 = vpop.f32.mrb[107].mxu1 }
 0x58f   :  { %18645 = vst [vmem:[#allocation168_spill] sm:$0xff] %v15333_v61  ;;  %v4615_v27 = vcombine.high %v4613_v5, %v4613_v5  ;;  %v4622_v17 = vrot.slane %v4606_v12, %v14003_v36  ;;  %v4629_v61 = vrot.slane %v4613_v5, %v14003_v36  ;;  %v4598_v37 = vcombine.high %v4594_v21, %v4594_v21 }
 0x590   :  { %18646 = vst [vmem:[#allocation184_spill] sm:$0xff] %v15339_v55  ;;  %v15347_v14 = vcombine.low %v4597_v23, %v4580_v4  ;;  %v15349_v8 = vcombine.low %v4594_v21, %v4596_v24  ;;  %v4636_v26 = vrot.slane %v4614_v28, %v14003_v36  ;;  %v4222_v4 = vadd.f32 %v12386_v13, %v12328_v22 }
 0x591   :  { %v4643_v60 = vrot.slane %v4615_v27, %v14003_v36  ;;  %v4644_v3 = vcombine.high %v4622_v17, %v4622_v17  ;;  %v4645_v40 = vcombine.high %v4629_v61, %v4629_v61  ;;  %v15359_v46 = vcombine.low %v4598_v37, %v4622_v17 }
 0x592   :  { %18647 = vst [vmem:[#allocation160_spill] sm:$0xff] %v15347_v14  ;;  %18648 = vst [vmem:[#allocation176_spill] sm:$0xff] %v15349_v8  ;;  %v4646_v21 = vcombine.high %v4636_v26, %v4636_v26  ;;  %v4648_v28 = vcombine.high %v4222_v4, %v4222_v4  ;;  %v4655_v55 = vrot.slane %v4222_v4, %v14003_v36  ;;  %v15369_v14 = vpop.f32.mrb[108].mxu0  ;;  %v15371_v5 = vpop.f32.mrb[108].mxu1 }
 0x593   :  { %18649 = vst [vmem:[#allocation169_spill] sm:$0xff] %v15359_v46  ;;  %v4647_v24 = vcombine.high %v4643_v60, %v4643_v60  ;;  %v15361_v23 = vcombine.low %v4636_v26, %v4644_v3  ;;  %v15363_v32 = vcombine.low %v4643_v60, %v4645_v40  ;;  %v12331_v12 = vadd.f32 %v12330_v45, %v15304_v44  ;;  %v15381_v60 = vpop.f32.mrb[109].mxu0  ;;  %v15383_v22 = vpop.f32.mrb[109].mxu1 }
 0x594   :  { %v15373_v17 = vcombine.low %v4646_v21, %v4629_v61  ;;  %v12389_v13 = vadd.f32 %v15310_v50, %v15306_v9  ;;  %v4662_v44 = vrot.slane %v4648_v28, %v14003_v36  ;;  %v4663_v45 = vcombine.high %v4655_v55, %v4655_v55  ;;  %v12341_v26 = vpop.f32.mrb[110].mxu0  ;;  %v12399_v4 = vpop.f32.mrb[110].mxu1 }
 0x595   :  { %18650 = vst [vmem:[#allocation185_spill] sm:$0xff] %v15361_v23  ;;  %18651 = vst [vmem:[#allocation161_spill] sm:$0xff] %v15363_v32  ;;  %v4671_v37 = vrot.slane %v4655_v55, %v14003_v36  ;;  %v12334_v61 = vadd.f32 %v12333_v39, %v12332_v52  ;;  %v12392_v40 = vadd.f32 %v12391_v57, %v12390_v63  ;;  %v12342_v32 = vpop.f32.mrb[111].mxu0  ;;  %v12400_v50 = vpop.f32.mrb[111].mxu1 }
 0x596   :  { %18652 = vst [vmem:[#allocation177_spill] sm:$0xff] %v15373_v17  ;;  %v4225_v3 = vadd.f32 %v12389_v13, %v12331_v12  ;;  %v12337_v27 = vadd.f32 %v12336_v47, %v12335_v11  ;;  %v4664_v9 = vcombine.high %v4662_v44, %v4662_v44  ;;  %v4678_v23 = vrot.slane %v4662_v44, %v14003_v36 }
 0x597   :  { %v4685_v8 = vrot.slane %v4663_v45, %v14003_v36  ;;  %v4693_v28 = vcombine.high %v4671_v37, %v4671_v37  ;;  %v15391_v46 = vcombine.low %v4647_v24, %v4671_v37  ;;  %v4230_v39 = vadd.f32 %v12392_v40, %v12334_v61 }
 0x598   :  { %v4697_v55 = vcombine.high %v4225_v3, %v4225_v3  ;;  %v4704_v52 = vrot.slane %v4225_v3, %v14003_v36  ;;  %v4692_v26 = vrot.slane %v4664_v9, %v14003_v36  ;;  %v4694_v4 = vcombine.high %v4678_v23, %v4678_v23 }
 0x599   :  { %18653 = vst [vmem:[#allocation194_spill] sm:$0xff] %v15391_v46  ;;  %v4695_v12 = vcombine.high %v4685_v8, %v4685_v8  ;;  %v15395_v63 = vcombine.low %v4685_v8, %v4693_v28  ;;  %v15407_v40 = vpop.f32.mrb[112].mxu0 }
 0x59a   :  { %v4711_v57 = vrot.slane %v4697_v55, %v14003_v36  ;;  %v4712_v11 = vcombine.high %v4704_v52, %v4704_v52  ;;  %v4720_v32 = vrot.slane %v4704_v52, %v14003_v36  ;;  %v4696_v24 = vcombine.high %v4692_v26, %v4692_v26  ;;  %v15409_v8 = vpop.f32.mrb[112].mxu1  ;;  %v15413_v9 = vpop.f32.mrb[113].mxu0 }
 0x59b   :  { %18654 = vst [vmem:[#allocation210_spill] sm:$0xff] %v15395_v63  ;;  %v15401_v13 = vcombine.low %v4695_v12, %v4678_v23  ;;  %v15403_v44 = vcombine.low %v4692_v26, %v4694_v4  ;;  %v15415_v28 = vpop.f32.mrb[113].mxu1  ;;  %v4746_v26 = vcombine.high %v4230_v39, %v4230_v39  ;;  %v15423_v4 = vpop.f32.mrb[114].mxu0  ;;  %v12395_v23 = vadd.f32 %v15345_v0, %v15341_v34 }
 0x59c   :  { %v4713_v45 = vcombine.high %v4711_v57, %v4711_v57  ;;  %v4727_v37 = vrot.slane %v4711_v57, %v14003_v36  ;;  %v4734_v61 = vrot.slane %v4712_v11, %v14003_v36  ;;  %v4742_v50 = vcombine.high %v4720_v32, %v4720_v32  ;;  %v15425_v12 = vpop.f32.mrb[114].mxu1  ;;  %v15430_v21 = vpop.f32.mrb[115].mxu0 }
 0x59d   :  { %18655 = vst [vmem:[#allocation186_spill] sm:$0xff] %v15401_v13  ;;  %18656 = vst [vmem:[#allocation202_spill] sm:$0xff] %v15403_v44  ;;  %v15421_v52 = vcombine.low %v4696_v24, %v4720_v32  ;;  %v15432_v63 = vpop.f32.mrb[115].mxu1  ;;  %v4753_v32 = vrot.slane %v4230_v39, %v14003_v36  ;;  %v4760_v24 = vrot.slane %v4746_v26, %v14003_v36 }
 0x59e   :  { %v4741_v57 = vrot.slane %v4713_v45, %v14003_v36  ;;  %v4743_v11 = vcombine.high %v4727_v37, %v4727_v37  ;;  %v4744_v3 = vcombine.high %v4734_v61, %v4734_v61  ;;  %v15428_v47 = vcombine.low %v4734_v61, %v4742_v50 }
 0x59f   :  { %18657 = vst [vmem:[#allocation195_spill] sm:$0xff] %v15421_v52  ;;  %v4761_v50 = vcombine.high %v4753_v32, %v4753_v32  ;;  %v4762_v46 = vcombine.high %v4760_v24, %v4760_v24  ;;  %v4769_v17 = vrot.slane %v4753_v32, %v14003_v36  ;;  %v4776_v55 = vrot.slane %v4760_v24, %v14003_v36 }
 0x5a0   :  { %18658 = vst [vmem:[#allocation211_spill] sm:$0xff] %v15428_v47  ;;  %v4745_v44 = vcombine.high %v4741_v57, %v4741_v57  ;;  %v15440_v45 = vcombine.low %v4744_v3, %v4727_v37  ;;  %v15442_v13 = vcombine.low %v4741_v57, %v4743_v11  ;;  %v4233_v34 = vadd.f32 %v12395_v23, %v12337_v27 }
 0x5a1   :  { %v12340_v3 = vadd.f32 %v15381_v60, %v15369_v14  ;;  %v4783_v37 = vrot.slane %v4761_v50, %v14003_v36  ;;  %v4790_v26 = vrot.slane %v4762_v46, %v14003_v36  ;;  %v4791_v57 = vcombine.high %v4769_v17, %v4769_v17  ;;  %v12424_v61 = vpop.f32.mrb[116].mxu0 }
 0x5a2   :  { %18659 = vst [vmem:[#allocation187_spill] sm:$0xff] %v15440_v45  ;;  %18660 = vst [vmem:[#allocation203_spill] sm:$0xff] %v15442_v13  ;;  %v4792_v11 = vcombine.high %v4776_v55, %v4776_v55  ;;  %v12482_v32 = vpop.f32.mrb[116].mxu1  ;;  %v15456_v47 = vcombine.low %v4745_v44, %v4769_v17  ;;  %v4795_v24 = vcombine.high %v4233_v34, %v4233_v34  ;;  %v12425_v27 = vpop.f32.mrb[117].mxu0 }
 0x5a3   :  { %v4802_v39 = vrot.slane %v4233_v34, %v14003_v36  ;;  %v12398_v0 = vadd.f32 %v15383_v22, %v15371_v5  ;;  %v12483_v23 = vpop.f32.mrb[117].mxu1  ;;  %v4793_v13 = vcombine.high %v4783_v37, %v4783_v37  ;;  %v4794_v14 = vcombine.high %v4790_v26, %v4790_v26  ;;  %v12427_v46 = vpop.f32.mrb[118].mxu0 }
 0x5a4   :  { %18661 = vst [vmem:[#allocation196_spill] sm:$0xff] %v15456_v47  ;;  %v15461_v60 = vcombine.low %v4783_v37, %v4791_v57  ;;  %v15463_v50 = vcombine.low %v4790_v26, %v4792_v11  ;;  %v12485_v45 = vpop.f32.mrb[118].mxu1  ;;  %v4809_v44 = vrot.slane %v4795_v24, %v14003_v36  ;;  %v12428_v58 = vpop.f32.mrb[119].mxu0 }
 0x5a5   :  { %v4810_v52 = vcombine.high %v4802_v39, %v4802_v39  ;;  %v4818_v34 = vrot.slane %v4802_v39, %v14003_v36  ;;  %v12486_v5 = vpop.f32.mrb[119].mxu1  ;;  %v15469_v22 = vcombine.low %v4793_v13, %v4776_v55  ;;  %v4238_v57 = vadd.f32 %v12398_v0, %v12340_v3 }
 0x5a6   :  { %18662 = vst [vmem:[#allocation212_spill] sm:$0xff] %v15461_v60  ;;  %18663 = vst [vmem:[#allocation188_spill] sm:$0xff] %v15463_v50  ;;  %v4811_v11 = vcombine.high %v4809_v44, %v4809_v44  ;;  %v4825_v1 = vrot.slane %v4809_v44, %v14003_v36  ;;  %v12420_v55 = vadd.f32 %v15413_v9, %v15407_v40 }
 0x5a7   :  { %18664 = vst [vmem:[#allocation204_spill] sm:$0xff] %v15469_v22  ;;  %v4832_v17 = vrot.slane %v4810_v52, %v14003_v36  ;;  %v4840_v24 = vcombine.high %v4818_v34, %v4818_v34  ;;  %v15479_v47 = vcombine.low %v4794_v14, %v4818_v34  ;;  %v4850_v13 = vrot.slane %v4238_v57, %v14003_v36 }
 0x5a8   :  { %v4839_v37 = vrot.slane %v4811_v11, %v14003_v36  ;;  %v4841_v26 = vcombine.high %v4825_v1, %v4825_v1  ;;  %v5082_v14 = vadd.f32 %v12420_v55, %v15206_v30  ;;  %v12423_v55 = vadd.f32 %v15430_v21, %v15423_v4 }
 0x5a9   :  { %18665 = vst [vmem:[#allocation197_spill] sm:$0xff] %v15479_v47  ;;  %v4842_v0 = vcombine.high %v4832_v17, %v4832_v17  ;;  %v15485_v3 = vcombine.low %v4832_v17, %v4840_v24  ;;  %v4851_v44 = vcombine.high %v4850_v13, %v4850_v13  ;;  %v4858_v50 = vrot.slane %v4850_v13, %v14003_v36  ;;  %v12430_v34 = vpop.f32.mrb[120].mxu0 }
 0x5aa   :  { %v15491_v39 = vpop.f32.mrb[120].mxu1  ;;  %v10547_v40 = vcombine.low %v4839_v37, %v4841_v26  ;;  %v4843_v11 = vcombine.high %v4839_v37, %v4839_v37  ;;  %v12431_v17 = vpop.f32.mrb[121].mxu0  ;;  %v12478_v13 = vadd.f32 %v15415_v28, %v15409_v8  ;;  %v12484_v4 = vadd.f32 %v12483_v23, %v12482_v32 }
 0x5ab   :  { %18666 = vst [vmem:[#allocation213_spill] sm:$0xff] %v15485_v3  ;;  %v15493_v57 = vcombine.low %v4842_v0, %v4825_v1  ;;  %v15497_v24 = vpop.f32.mrb[121].mxu1  ;;  %v4865_v52 = vrot.slane %v4851_v44, %v14003_v36  ;;  %v12481_v1 = vadd.f32 %v15432_v63, %v15425_v12  ;;  %v15506_v0 = vpop.f32.mrb[122].mxu0  ;;  %v12426_v44 = vadd.f32 %v12425_v27, %v12424_v61 }
 0x5ac   :  { %v15508_v26 = vpop.f32.mrb[122].mxu1  ;;  %v10569_v9 = vrot.slane %v10547_v40, %v14003_v36  ;;  %v10548_v3 = vcombine.low %v4843_v11, %v4858_v50  ;;  %v15513_v47 = vpop.f32.mrb[123].mxu0  ;;  %v5170_v28 = vadd.f32 %v12478_v13, %v5082_v14  ;;  %v5085_v63 = vadd.f32 %v12423_v55, %v15206_v30 }
 0x5ad   :  { %18667 = vst [vmem:[#allocation189_spill] sm:$0xff] %v15493_v57  ;;  %v15515_v8 = vpop.f32.mrb[123].mxu1  ;;  %v10600_v21 = vrot.slane %v4865_v52, %v14003_v36  ;;  %v5090_v60 = vadd.f32 %v12426_v44, %v15206_v30  ;;  %v12429_v22 = vadd.f32 %v12428_v58, %v12427_v46  ;;  %v12487_v37 = vadd.f32 %v12486_v5, %v12485_v45 }
 0x5ae   :  { %v10576_v12 = vrot.slane %v10548_v3, %v14003_v36  ;;  %v5236_v61 = vcombine.high %v5170_v28, %v5170_v28  ;;  %v5243_v27 = vrot.slane %v5170_v28, %v14003_v36  ;;  %v5173_v50 = vadd.f32 %v12481_v1, %v5085_v63 }
 0x5af   :  { %v15522_v40 = vrot.slane %v10600_v21, %v14003_v36  ;;  %v5178_v52 = vadd.f32 %v12484_v4, %v5090_v60  ;;  %v5093_v14 = vadd.f32 %v12429_v22, %v15206_v30  ;;  %v15528_v13 = vadd.f32 %v12431_v17, %v12430_v34 }
 0x5b0   :  { %v15525_v11 = vcombine.low %v10569_v9, %v10576_v12  ;;  %v5250_v32 = vrot.slane %v5236_v61, %v14003_v36  ;;  %v5251_v23 = vcombine.high %v5243_v27, %v5243_v27  ;;  %v5259_v58 = vrot.slane %v5243_v27, %v14003_v36 }
 0x5b1   :  { %18668 = vst [vmem:[#allocation205_spill] sm:$0xff] %v15522_v40  ;;  %v5285_v45 = vcombine.high %v5173_v50, %v5173_v50  ;;  %v15532_v46 = vpop.f32.mrb[124].mxu0  ;;  %v5292_v3 = vrot.slane %v5173_v50, %v14003_v36  ;;  %v5334_v55 = vcombine.high %v5178_v52, %v5178_v52  ;;  %v5341_v9 = vrot.slane %v5178_v52, %v14003_v36 }
 0x5b2   :  { %18669 = vst [vmem:[#allocation198_spill] sm:$0xff] %v15525_v11  ;;  %v15534_v5 = vpop.f32.mrb[124].mxu1  ;;  %v5181_v60 = vadd.f32 %v12487_v37, %v5093_v14  ;;  %v15538_v1 = vpop.f32.mrb[125].mxu0  ;;  %v5252_v34 = vcombine.high %v5250_v32, %v5250_v32  ;;  %v5266_v17 = vrot.slane %v5250_v32, %v14003_v36  ;;  %v5273_v44 = vrot.slane %v5251_v23, %v14003_v36 }
 0x5b3   :  { %v15540_v22 = vpop.f32.mrb[125].mxu1  ;;  %v5299_v21 = vrot.slane %v5285_v45, %v14003_v36  ;;  %v15545_v28 = vpop.f32.mrb[126].mxu0  ;;  %v5300_v4 = vcombine.high %v5292_v3, %v5292_v3  ;;  %v5308_v12 = vrot.slane %v5292_v3, %v14003_v36  ;;  %v5348_v37 = vrot.slane %v5334_v55, %v14003_v36 }
 0x5b4   :  { %v15547_v63 = vpop.f32.mrb[126].mxu1  ;;  %v5349_v61 = vcombine.high %v5341_v9, %v5341_v9  ;;  %v15551_v27 = vpop.f32.mrb[127].mxu0  ;;  %v5280_v52 = vrot.slane %v5252_v34, %v14003_v36  ;;  %v5846_v14 = vcombine.low %v5259_v58, %v5273_v44  ;;  %v11851_v32 = vcombine.high %v5259_v58, %v5273_v44 }
 0x5b5   :  { %v15553_v50 = vpop.f32.mrb[127].mxu1  ;;  %v5301_v23 = vcombine.high %v5299_v21, %v5299_v21  ;;  %v5315_v45 = vrot.slane %v5299_v21, %v14003_v36  ;;  %v5322_v40 = vrot.slane %v5300_v4, %v14003_v36  ;;  %v5350_v11 = vcombine.high %v5348_v37, %v5348_v37 }
 0x5b6   :  { %v5357_v57 = vrot.slane %v5341_v9, %v14003_v36  ;;  %v5848_v3 = vcombine.low %v5266_v17, %v5280_v52  ;;  %v11852_v18 = vcombine.high %v5266_v17, %v5280_v52  ;;  %v15560_v55 = vrot.slane %v5846_v14, %v14003_v36 }
 0x5b7   :  { %v15563_v25 = vrot.slane %v11851_v32, %v14003_v36  ;;  %v5329_v34 = vrot.slane %v5301_v23, %v14003_v36  ;;  %v5895_v7 = vcombine.low %v5308_v12, %v5322_v40  ;;  %v11853_v58 = vcombine.high %v5308_v12, %v5322_v40 }
 0x5b8   :  { %v5364_v44 = vrot.slane %v5348_v37, %v14003_v36  ;;  %v15568_v21 = vrot.slane %v5848_v3, %v14003_v36  ;;  %v15571_v4 = vrot.slane %v11852_v18, %v14003_v36  ;;  %v5371_v9 = vrot.slane %v5349_v61, %v14003_v36 }
 0x5b9   :  { %v5378_v17 = vrot.slane %v5350_v11, %v14003_v36  ;;  %v15575_v52 = vpop.f32.mrb[128].mxu0  ;;  %v5897_v32 = vcombine.low %v5315_v45, %v5329_v34  ;;  %v11854_v23 = vcombine.high %v5315_v45, %v5329_v34  ;;  %v15580_v40 = vrot.slane %v5895_v7, %v14003_v36 }
 0x5ba   :  { %v15577_v14 = vpop.f32.mrb[128].mxu1  ;;  %v15583_v12 = vrot.slane %v11853_v58, %v14003_v36  ;;  %v15585_v37 = vpop.f32.mrb[129].mxu0  ;;  %v5944_v3 = vcombine.low %v5357_v57, %v5371_v9  ;;  %v11855_v61 = vcombine.high %v5357_v57, %v5371_v9  ;;  %v5383_v34 = vcombine.high %v5181_v60, %v5181_v60 }
 0x5bb   :  { %v15587_v18 = vpop.f32.mrb[129].mxu1  ;;  %v5946_v62 = vcombine.low %v5364_v44, %v5378_v17  ;;  %v11856_v11 = vcombine.high %v5364_v44, %v5378_v17  ;;  %v15589_v19 = vpop.f32.mrb[130].mxu0  ;;  %v15594_v45 = vrot.slane %v5897_v32, %v14003_v36  ;;  %v15597_v7 = vrot.slane %v11854_v23, %v14003_v36 }
 0x5bc   :  { %v15591_v48 = vpop.f32.mrb[130].mxu1  ;;  %v5390_v58 = vrot.slane %v5181_v60, %v14003_v36  ;;  %v15600_v43 = vpop.f32.mrb[131].mxu0  ;;  %v5954_v57 = vrot.slane %v5944_v3, %v14003_v36  ;;  %v5961_v44 = vrot.slane %v11855_v61, %v14003_v36  ;;  %v5397_v32 = vrot.slane %v5383_v34, %v14003_v36 }
 0x5bd   :  { %v15602_v29 = vpop.f32.mrb[131].mxu1  ;;  %v5968_v9 = vrot.slane %v5946_v62, %v14003_v36  ;;  %v5975_v17 = vrot.slane %v11856_v11, %v14003_v36  ;;  %v5098_v60 = vadd.f32 %v15528_v13, %v15206_v30  ;;  %v12490_v59 = vadd.f32 %v15497_v24, %v15491_v39 }
 0x5be   :  { %v5398_v35 = vcombine.high %v5390_v58, %v5390_v58  ;;  %v5406_v23 = vrot.slane %v5390_v58, %v14003_v36  ;;  %v5976_v41 = vcombine.low %v5954_v57, %v5961_v44  ;;  %v12435_v3 = vadd.f32 %v15513_v47, %v15506_v0 }
 0x5bf   :  { %v5977_v20 = vcombine.low %v5968_v9, %v5975_v17  ;;  %v5399_v61 = vcombine.high %v5397_v32, %v5397_v32  ;;  %v5413_v62 = vrot.slane %v5397_v32, %v14003_v36  ;;  %v12493_v34 = vadd.f32 %v15515_v8, %v15508_v26 }
 0x5c0   :  { %v5420_v11 = vrot.slane %v5398_v35, %v14003_v36  ;;  %v15621_v58 = vrot.slane %v5976_v41, %v14003_v36  ;;  %v5186_v57 = vadd.f32 %v12490_v59, %v5098_v60  ;;  %v5101_v39 = vadd.f32 %v12435_v3, %v15206_v30 }
 0x5c1   :  { %v15624_v13 = vrot.slane %v5977_v20, %v14003_v36  ;;  %v15627_v24 = vpop.f32.mrb[132].mxu0  ;;  %v5427_v0 = vrot.slane %v5399_v61, %v14003_v36  ;;  %v12438_v26 = vadd.f32 %v15538_v1, %v15532_v46 }
 0x5c2   :  { %18670 = vst [vmem:[#allocation214_spill] sm:$0xff] %v15621_v58  ;;  %v15629_v47 = vpop.f32.mrb[132].mxu1  ;;  %v5993_v44 = vcombine.low %v5406_v23, %v5420_v11  ;;  %v11857_v35 = vcombine.high %v5406_v23, %v5420_v11  ;;  %v15634_v8 = vpop.f32.mrb[133].mxu0  ;;  %v5432_v20 = vcombine.high %v5186_v57, %v5186_v57  ;;  %v5439_v30 = vrot.slane %v5186_v57, %v14003_v36 }
 0x5c3   :  { %18671 = vst [vmem:[#allocation190_spill] sm:$0xff] %v15624_v13  ;;  %v15636_v41 = vpop.f32.mrb[133].mxu1  ;;  %v5189_v9 = vadd.f32 %v12493_v34, %v5101_v39  ;;  %v15641_v17 = vpop.f32.mrb[134].mxu0  ;;  %v5995_v60 = vcombine.low %v5413_v62, %v5427_v0  ;;  %v11858_v23 = vcombine.high %v5413_v62, %v5427_v0 }
 0x5c4   :  { %v15643_v32 = vpop.f32.mrb[134].mxu1  ;;  %v6003_v3 = vrot.slane %v5993_v44, %v14003_v36  ;;  %v6010_v46 = vrot.slane %v11857_v35, %v14003_v36  ;;  %v15647_v1 = vpop.f32.mrb[135].mxu0  ;;  %v5446_v11 = vrot.slane %v5432_v20, %v14003_v36  ;;  %v5447_v59 = vcombine.high %v5439_v30, %v5439_v30 }
 0x5c5   :  { %v15649_v61 = vpop.f32.mrb[135].mxu1  ;;  %v5455_v57 = vrot.slane %v5439_v30, %v14003_v36  ;;  %v5481_v34 = vcombine.high %v5189_v9, %v5189_v9  ;;  %v6017_v39 = vrot.slane %v5995_v60, %v14003_v36  ;;  %v6024_v56 = vrot.slane %v11858_v23, %v14003_v36 }
 0x5c6   :  { %v6025_v54 = vcombine.low %v6003_v3, %v6010_v46  ;;  %v5488_v62 = vrot.slane %v5189_v9, %v14003_v36  ;;  %v5448_v0 = vcombine.high %v5446_v11, %v5446_v11  ;;  %v5462_v44 = vrot.slane %v5446_v11, %v14003_v36 }
 0x5c7   :  { %v5469_v35 = vrot.slane %v5447_v59, %v14003_v36  ;;  %v5495_v33 = vrot.slane %v5481_v34, %v14003_v36  ;;  %v6026_v16 = vcombine.low %v6017_v39, %v6024_v56  ;;  %v18674_v11 = vcombine.low %v15198_v15, %v15201_v2 }
 0x5c8   :  { %v15660_v20 = vrot.slane %v6025_v54, %v14003_v36  ;;  %v5496_v30 = vcombine.high %v5488_v62, %v5488_v62  ;;  %v5504_v51 = vrot.slane %v5488_v62, %v14003_v36  ;;  %v5476_v60 = vrot.slane %v5448_v0, %v14003_v36 }
 0x5c9   :  { %v6042_v23 = vcombine.low %v5455_v57, %v5469_v35  ;;  %v11859_v3 = vcombine.high %v5455_v57, %v5469_v35  ;;  %v5497_v46 = vcombine.high %v5495_v33, %v5495_v33  ;;  %v15664_v9 = vpop.f32.mrb[136].mxu0  ;;  %v15669_v59 = vrot.slane %v6026_v16, %v14003_v36 }
 0x5ca   :  { %18672 = vst [vmem:[#allocation206_spill] sm:$0xff] %v15660_v20  ;;  %v15666_v49 = vpop.f32.mrb[136].mxu1  ;;  %v5511_v56 = vrot.slane %v5495_v33, %v14003_v36  ;;  %v5518_v54 = vrot.slane %v5496_v30, %v14003_v36  ;;  %v5106_v34 = vadd.f32 %v12438_v26, %v18674_v11  ;;  %v15676_v39 = vpop.f32.mrb[137].mxu0  ;;  %v6044_v57 = vcombine.low %v5462_v44, %v5476_v60 }
 0x5cb   :  { %18673 = vst [vmem:[#allocation199_spill] sm:$0xff] %v15669_v59  ;;  %v15678_v62 = vpop.f32.mrb[137].mxu1  ;;  %v11860_v0 = vcombine.high %v5462_v44, %v5476_v60  ;;  %v15681_v35 = vrot.slane %v6042_v23, %v14003_v36  ;;  %v15684_v16 = vrot.slane %v11859_v3, %v14003_v36  ;;  %v12457_v42 = vpop.f32.mrb[138].mxu0  ;;  %v5525_v15 = vrot.slane %v5497_v46, %v14003_v36 }
 0x5cc   :  { %v12515_v33 = vpop.f32.mrb[138].mxu1  ;;  %v6091_v2 = vcombine.low %v5504_v51, %v5518_v54  ;;  %v11861_v26 = vcombine.high %v5504_v51, %v5518_v54  ;;  %v12458_v11 = vpop.f32.mrb[139].mxu0  ;;  %v15690_v10 = vrot.slane %v6044_v57, %v14003_v36  ;;  %v12496_v60 = vadd.f32 %v15540_v22, %v15534_v5 }
 0x5cd   :  { %18675 = vst [vmem:[#allocation215_spill] sm:$0xff] %v15681_v35  ;;  %18676 = vst [vmem:[#allocation191_spill] sm:$0xff] %v15684_v16  ;;  %v12516_v6 = vpop.f32.mrb[139].mxu1  ;;  %v15693_v44 = vrot.slane %v11860_v0, %v14003_v36  ;;  %v12441_v42 = vadd.f32 %v15551_v27, %v15545_v28  ;;  %v6093_v23 = vcombine.low %v5511_v56, %v5525_v15 }
 0x5ce   :  { %18677 = vst [vmem:[#allocation207_spill] sm:$0xff] %v15690_v10  ;;  %v11862_v3 = vcombine.high %v5511_v56, %v5525_v15  ;;  %v15700_v46 = vrot.slane %v6091_v2, %v14003_v36  ;;  %v15703_v51 = vrot.slane %v11861_v26, %v14003_v36  ;;  %v5194_v6 = vadd.f32 %v12496_v60, %v5106_v34 }
 0x5cf   :  { %18678 = vst [vmem:[#allocation200_spill] sm:$0xff] %v15693_v44  ;;  %v5109_v54 = vadd.f32 %v12441_v42, %v15213_v38  ;;  %v12499_v57 = vadd.f32 %v15553_v50, %v15547_v63  ;;  %v5878_v5 = vcombine.low %v15560_v55, %v15563_v25  ;;  %v15711_v22 = vrot.slane %v6093_v23, %v14003_v36 }
 0x5d0   :  { %18679 = vst [vmem:[#allocation216_spill] sm:$0xff] %v15700_v46  ;;  %18680 = vst [vmem:[#allocation192_spill] sm:$0xff] %v15703_v51  ;;  %v15714_v28 = vrot.slane %v11862_v3, %v14003_v36  ;;  %v5879_v27 = vcombine.low %v15568_v21, %v15571_v4  ;;  %v5927_v56 = vcombine.low %v15580_v40, %v15583_v12 }
 0x5d1   :  { %18681 = vst [vmem:[#allocation208_spill] sm:$0xff] %v15711_v22  ;;  %v5530_v34 = vcombine.high %v5194_v6, %v5194_v6  ;;  %v5537_v0 = vrot.slane %v5194_v6, %v14003_v36  ;;  %v5197_v33 = vadd.f32 %v12499_v57, %v5109_v54  ;;  %v5886_v63 = vrot.slane %v5878_v5, %v14003_v36  ;;  %v15722_v50 = vpop.f32.mrb[140].mxu0 }
 0x5d2   :  { %18682 = vst [vmem:[#allocation201_spill] sm:$0xff] %v15714_v28  ;;  %v15724_v25 = vpop.f32.mrb[140].mxu1  ;;  %v5893_v55 = vrot.slane %v5879_v27, %v14003_v36  ;;  %v5928_v15 = vcombine.low %v15594_v45, %v15597_v7  ;;  %v5935_v21 = vrot.slane %v5927_v56, %v14003_v36  ;;  %v12444_v4 = vadd.f32 %v15585_v37, %v15575_v52  ;;  %v15732_v40 = vpop.f32.mrb[141].mxu0 }
 0x5d3   :  { %v15734_v12 = vpop.f32.mrb[141].mxu1  ;;  %v5544_v2 = vrot.slane %v5530_v34, %v14003_v36  ;;  %v5545_v26 = vcombine.high %v5537_v0, %v5537_v0  ;;  %v15738_v11 = vrot.slane %v5537_v0, %v14003_v36  ;;  %v5579_v60 = vcombine.high %v5197_v33, %v5197_v33  ;;  %v15740_v42 = vpop.f32.mrb[142].mxu0 }
 0x5d4   :  { %v15742_v23 = vpop.f32.mrb[142].mxu1  ;;  %v5586_v45 = vrot.slane %v5197_v33, %v14003_v36  ;;  %v5894_v7 = vcombine.low %v5886_v63, %v5893_v55  ;;  %v5942_v52 = vrot.slane %v5928_v15, %v14003_v36  ;;  %v5114_v37 = vadd.f32 %v12444_v4, %v15213_v38  ;;  %v15747_v3 = vpop.f32.mrb[143].mxu0 }
 0x5d5   :  { %18683 = vst [vmem:[#allocation217_spill] sm:$0xff] %v15738_v11  ;;  %v15749_v6 = vpop.f32.mrb[143].mxu1  ;;  %v5546_v54 = vcombine.high %v5544_v2, %v5544_v2  ;;  %v5560_v57 = vrot.slane %v5544_v2, %v14003_v36  ;;  %v5567_v5 = vrot.slane %v5545_v26, %v14003_v36  ;;  %v5575_v27 = vcombine.high %v15738_v11, %v15738_v11 }
 0x5d6   :  { %v5593_v56 = vrot.slane %v5579_v60, %v14003_v36  ;;  %v5594_v34 = vcombine.high %v5586_v45, %v5586_v45  ;;  %v5602_v0 = vrot.slane %v5586_v45, %v14003_v36  ;;  %v5943_v33 = vcombine.low %v5935_v21, %v5942_v52 }
 0x5d7   :  { %v5574_v63 = vrot.slane %v5546_v54, %v14003_v36  ;;  %v5576_v55 = vcombine.high %v5560_v57, %v5560_v57  ;;  %v5577_v15 = vcombine.high %v5567_v5, %v5567_v5  ;;  %v6154_v4 = vcombine.low %v5567_v5, %v5575_v27 }
 0x5d8   :  { %v5595_v30 = vcombine.high %v5593_v56, %v5593_v56  ;;  %v5609_v53 = vrot.slane %v5593_v56, %v14003_v36  ;;  %v5616_v2 = vrot.slane %v5594_v34, %v14003_v36  ;;  %v5624_v26 = vcombine.high %v5602_v0, %v5602_v0 }
 0x5d9   :  { %v5578_v22 = vcombine.high %v5574_v63, %v5574_v63  ;;  %v6155_v28 = vcombine.low %v5577_v15, %v5560_v57  ;;  %v6156_v11 = vcombine.low %v5574_v63, %v5576_v55  ;;  %v6164_v60 = vrot.slane %v6154_v4, %v14003_v36  ;;  %v15761_v46 = vpop.f32.mrb[144].mxu0 }
 0x5da   :  { %v15763_v45 = vpop.f32.mrb[144].mxu1  ;;  %v15766_v21 = vrot.slane %v5595_v30, %v14003_v36  ;;  %v5625_v52 = vcombine.high %v5609_v53, %v5609_v53  ;;  %v5626_v54 = vcombine.high %v5616_v2, %v5616_v2  ;;  %v15768_v5 = vcombine.low %v5616_v2, %v5624_v26  ;;  %v15770_v27 = vpop.f32.mrb[145].mxu0 }
 0x5db   :  { %v15772_v56 = vpop.f32.mrb[145].mxu1  ;;  %v6171_v57 = vrot.slane %v6155_v28, %v14003_v36  ;;  %v6178_v34 = vrot.slane %v6156_v11, %v14003_v36  ;;  %v6157_v63 = vcombine.low %v5578_v22, %v5602_v0  ;;  %v6476_v55 = vpack.c.bf16 %v5943_v33, %v5894_v7  ;;  %v15776_v15 = vpop.f32.mrb[146].mxu0 }
 0x5dc   :  { %v15778_v4 = vpop.f32.mrb[146].mxu1  ;;  %v5627_v30 = vcombine.high %v15766_v21, %v15766_v21  ;;  %v15782_v51 = vcombine.low %v5626_v54, %v5609_v53  ;;  %v15785_v2 = vcombine.low %v15766_v21, %v5625_v52  ;;  %v15789_v28 = vpop.f32.mrb[147].mxu0  ;;  %v12502_v7 = vadd.f32 %v15587_v18, %v15577_v14 }
 0x5dd   :  { %v15791_v11 = vpop.f32.mrb[147].mxu1  ;;  %v6185_v22 = vrot.slane %v6157_v63, %v14003_v36  ;;  %12746 = vmatprep.mubr.bf16.mxu0 %v6476_v55  ;;  %v12447_v53 = vadd.f32 %v15600_v43, %v15589_v19  ;;  %v12505_v0 = vadd.f32 %v15602_v29, %v15591_v48  ;;  %v12450_v52 = vadd.f32 %v15634_v8, %v15627_v24 }
 0x5de   :  { %v12508_v54 = vadd.f32 %v15636_v41, %v15629_v47  ;;  %v5202_v63 = vadd.f32 %v12502_v7, %v5114_v37  ;;  %v12453_v43 = vadd.f32 %v15647_v1, %v15641_v17  ;;  %v12511_v29 = vadd.f32 %v15649_v61, %v15643_v32 }
 0x5df   :  { %v5117_v14 = vadd.f32 %v12447_v53, %v15213_v38  ;;  %v5122_v19 = vadd.f32 %v12450_v52, %v15213_v38  ;;  %v5042_v48 = vrot.slane %v15192_v31, %v14003_v36  ;;  %v12456_v18 = vadd.f32 %v15676_v39, %v15664_v9 }
 0x5e0   :  { %v15820_v24 = vadd.f32 %v15678_v62, %v15666_v49  ;;  %v5628_v47 = vcombine.high %v5202_v63, %v5202_v63  ;;  %v5635_v8 = vrot.slane %v5202_v63, %v14003_v36  ;;  %v5125_v17 = vadd.f32 %v12453_v43, %v15213_v38 }
 0x5e1   :  { %v5205_v41 = vadd.f32 %v12505_v0, %v5117_v14  ;;  %v15824_v1 = vpop.f32.mrb[148].mxu0  ;;  %v5210_v61 = vadd.f32 %v12508_v54, %v5122_v19  ;;  %v15828_v37 = vadd.f32 %v12456_v18, %v5042_v48  ;;  %v15830_v31 = vcombine.low %v6164_v60, %v6171_v57 }
 0x5e2   :  { %v15826_v32 = vpop.f32.mrb[148].mxu1  ;;  %v15832_v9 = vcombine.low %v6178_v34, %v6185_v22  ;;  %v15834_v39 = vpop.f32.mrb[149].mxu0  ;;  %v5642_v62 = vrot.slane %v5628_v47, %v14003_v36  ;;  %v5643_v55 = vcombine.high %v5635_v8, %v5635_v8  ;;  %v5651_v38 = vrot.slane %v5635_v8, %v14003_v36 }
 0x5e3   :  { %v15836_v49 = vpop.f32.mrb[149].mxu1  ;;  %v5677_v7 = vcombine.high %v5205_v41, %v5205_v41  ;;  %v15840_v53 = vpop.f32.mrb[150].mxu0  ;;  %v5684_v52 = vrot.slane %v5205_v41, %v14003_v36  ;;  %v5726_v60 = vcombine.high %v5210_v61, %v5210_v61  ;;  %v5733_v57 = vrot.slane %v5210_v61, %v14003_v36 }
 0x5e4   :  { %v15842_v0 = vpop.f32.mrb[150].mxu1  ;;  %v15846_v34 = vadd.f32 %v12511_v29, %v5125_v17  ;;  %v15848_v22 = vpop.f32.mrb[151].mxu0  ;;  %v5644_v63 = vcombine.high %v5642_v62, %v5642_v62  ;;  %v5658_v14 = vrot.slane %v5642_v62, %v14003_v36  ;;  %v5665_v43 = vrot.slane %v5643_v55, %v14003_v36 }
 0x5e5   :  { %v15850_v54 = vpop.f32.mrb[151].mxu1  ;;  %v5673_v19 = vcombine.high %v5651_v38, %v5651_v38  ;;  %v15854_v48 = vcombine.low %v5627_v30, %v5651_v38  ;;  %v5691_v18 = vrot.slane %v5677_v7, %v14003_v36  ;;  %v5692_v47 = vcombine.high %v5684_v52, %v5684_v52 }
 0x5e6   :  { %v5700_v8 = vrot.slane %v5684_v52, %v14003_v36  ;;  %v5672_v29 = vrot.slane %v5644_v63, %v14003_v36  ;;  %v5674_v41 = vcombine.high %v5658_v14, %v5658_v14  ;;  %v5675_v17 = vcombine.high %v5665_v43, %v5665_v43 }
 0x5e7   :  { %v6252_v61 = vcombine.low %v5665_v43, %v5673_v19  ;;  %v5693_v26 = vcombine.high %v5691_v18, %v5691_v18  ;;  %v5707_v62 = vrot.slane %v5691_v18, %v14003_v36  ;;  %v5714_v55 = vrot.slane %v5692_v47, %v14003_v36 }
 0x5e8   :  { %v5676_v30 = vcombine.high %v5672_v29, %v5672_v29  ;;  %v6253_v38 = vcombine.low %v5675_v17, %v5658_v14  ;;  %v6254_v33 = vcombine.low %v5672_v29, %v5674_v41  ;;  %v5722_v43 = vcombine.high %v5700_v8, %v5700_v8 }
 0x5e9   :  { %v6262_v7 = vrot.slane %v6252_v61, %v14003_v36  ;;  %v15864_v10 = vpop.f32.mrb[152].mxu0  ;;  %v5721_v63 = vrot.slane %v5693_v26, %v14003_v36  ;;  %v5723_v19 = vcombine.high %v5707_v62, %v5707_v62  ;;  %v5724_v44 = vcombine.high %v5714_v55, %v5714_v55 }
 0x5ea   :  { %v15866_v52 = vpop.f32.mrb[152].mxu1  ;;  %v15869_v21 = vpop.f32.mrb[153].mxu0  ;;  %v6269_v18 = vrot.slane %v6253_v38, %v14003_v36  ;;  %v6276_v14 = vrot.slane %v6254_v33, %v14003_v36  ;;  %v6255_v47 = vcombine.low %v5676_v30, %v5700_v8  ;;  %v5740_v29 = vrot.slane %v5726_v60, %v14003_v36 }
 0x5eb   :  { %v15871_v35 = vpop.f32.mrb[153].mxu1  ;;  %v15876_v41 = vpop.f32.mrb[154].mxu0  ;;  %v5725_v61 = vcombine.high %v5721_v63, %v5721_v63  ;;  %v6301_v26 = vcombine.low %v5714_v55, %v5722_v43  ;;  %v6302_v16 = vcombine.low %v5724_v44, %v5707_v62  ;;  %v6303_v59 = vcombine.low %v5721_v63, %v5723_v19 }
 0x5ec   :  { %18684 = vst [vmem:[#allocation193_spill] sm:$0xff] %v15871_v35  ;;  %v15878_v17 = vpop.f32.mrb[154].mxu1  ;;  %v15880_v20 = vpop.f32.mrb[155].mxu0  ;;  %v6284_v58 = vcombine.low %v6262_v7, %v6269_v18  ;;  %v6283_v38 = vrot.slane %v6255_v47, %v14003_v36  ;;  %v5741_v35 = vcombine.high %v5733_v57, %v5733_v57  ;;  %v5742_v33 = vcombine.high %v5740_v29, %v5740_v29 }
 0x5ed   :  { %18685 = vst [vmem:[#allocation209_spill] sm:$0xff] %v15878_v17  ;;  %v15882_v13 = vpop.f32.mrb[155].mxu1  ;;  %v6311_v8 = vrot.slane %v6301_v26, %v14003_v36  ;;  %v6318_v60 = vrot.slane %v6302_v16, %v14003_v36  ;;  %v6325_v30 = vrot.slane %v6303_v59, %v14003_v36  ;;  %v5749_v17 = vrot.slane %v5733_v57, %v14003_v36 }
 0x5ee   :  { %v6292_v44 = vrot.slane %v6284_v58, %v14003_v36  ;;  %v6285_v62 = vcombine.low %v6276_v14, %v6283_v38  ;;  %v5756_v55 = vrot.slane %v5740_v29, %v14003_v36  ;;  %v5763_v63 = vrot.slane %v5741_v35, %v14003_v36 }
 0x5ef   :  { %v6333_v7 = vcombine.low %v6311_v8, %v6318_v60  ;;  %v5770_v43 = vrot.slane %v5742_v33, %v14003_v36  ;;  %v5771_v19 = vcombine.high %v5749_v17, %v5749_v17  ;;  %v6304_v18 = vcombine.low %v5725_v61, %v5749_v17 }
 0x5f0   :  { %v6299_v47 = vrot.slane %v6285_v62, %v14003_v36  ;;  %v5772_v26 = vcombine.high %v5756_v55, %v5756_v55  ;;  %v5773_v16 = vcombine.high %v5763_v63, %v5763_v63  ;;  %v5775_v59 = vcombine.high %v15846_v34, %v15846_v34 }
 0x5f1   :  { %v15896_v57 = vpop.f32.mrb[156].mxu0  ;;  %v6341_v14 = vrot.slane %v6333_v7, %v14003_v36  ;;  %v5774_v29 = vcombine.high %v5770_v43, %v5770_v43  ;;  %v6332_v35 = vrot.slane %v6304_v18, %v14003_v36  ;;  %v15902_v38 = vcombine.low %v5763_v63, %v5771_v19 }
 0x5f2   :  { %v15898_v58 = vpop.f32.mrb[156].mxu1  ;;  %v15904_v33 = vpop.f32.mrb[157].mxu0  ;;  %v15908_v61 = vcombine.low %v6292_v44, %v6299_v47  ;;  %v15910_v8 = vcombine.low %v5773_v16, %v5756_v55  ;;  %v15912_v60 = vcombine.low %v5770_v43, %v5772_v26  ;;  %v5782_v62 = vrot.slane %v15846_v34, %v14003_v36 }
 0x5f3   :  { %18686 = vst [vmem:[#allocation369_spill] sm:$0xff] %v15898_v58  ;;  %18687 = vst [vmem:[#allocation370_spill] sm:$0xff] %v15902_v38  ;;  %v15906_v17 = vpop.f32.mrb[157].mxu1  ;;  %v15916_v58 = vpop.f32.mrb[158].mxu0  ;;  %v6334_v18 = vcombine.low %v6325_v30, %v6332_v35  ;;  %v5789_v19 = vrot.slane %v5775_v59, %v14003_v36  ;;  %v5218_v44 = vadd.f32 %v15820_v24, %v15828_v37 }
 0x5f4   :  { %18688 = vst [vmem:[#allocation371_spill] sm:$0xff] %v15908_v61  ;;  %18689 = vst [vmem:[#allocation372_spill] sm:$0xff] %v15910_v8  ;;  %v15918_v7 = vpop.f32.mrb[158].mxu1  ;;  %v15925_v55 = vpop.f32.mrb[159].mxu0  ;;  %v5790_v26 = vcombine.high %v5782_v62, %v5782_v62  ;;  %v5798_v30 = vrot.slane %v5782_v62, %v14003_v36  ;;  %v6194_v34 = vrot.slane %v15830_v31, %v14003_v36 }
 0x5f5   :  { %18690 = vst [vmem:[#allocation373_spill] sm:$0xff] %v15912_v60  ;;  %v15927_v43 = vpop.f32.mrb[159].mxu1  ;;  %v6348_v16 = vrot.slane %v6334_v18, %v14003_v36  ;;  %v5791_v35 = vcombine.high %v5789_v19, %v5789_v19  ;;  %v5805_v59 = vrot.slane %v5789_v19, %v14003_v36  ;;  %v15937_v24 = vrot.slane %v5218_v44, %v14003_v36  ;;  %v11863_v19 = vld [vmem:[%s17875_s2] ss:$0 sm:$0xff] }
 0x5f6   :  { %v5812_v37 = vrot.slane %v5790_v26, %v14003_v36  ;;  %v5820_v63 = vcombine.high %v5798_v30, %v5798_v30  ;;  %v15940_v38 = vcombine.low %v5774_v29, %v5798_v30  ;;  %v6201_v18 = vrot.slane %v15832_v9, %v14003_v36 }
 0x5f7   :  { %18691 = vst [vmem:[#allocation374_spill] sm:$0xff] %v15937_v24  ;;  %v15944_v47 = vcombine.low %v6341_v14, %v6348_v16  ;;  %v5819_v62 = vrot.slane %v5791_v35, %v14003_v36  ;;  %v5821_v60 = vcombine.high %v5805_v59, %v5805_v59  ;;  %v5838_v31 = vrot.slane %v15937_v24, %v14003_v36 }
 0x5f8   :  { %18692 = vst [vmem:[#allocation375_spill] sm:$0xff] %v15940_v38  ;;  %v5822_v44 = vcombine.high %v5812_v37, %v5812_v37  ;;  %v15954_v26 = vcombine.low %v5812_v37, %v5820_v63  ;;  %v18696_v8 = vrot.slane %v15782_v51, %v14003_v36  ;;  %v18697_v63 = vrot.slane %v15768_v5, %v14003_v36 }
 0x5f9   :  { %18693 = vst [vmem:[#allocation376_spill] sm:$0xff] %v15944_v47  ;;  %v15958_v14 = vpop.f32.mrb[160].mxu0  ;;  %v15962_v16 = vcombine.low %v5819_v62, %v5821_v60  ;;  %v5823_v35 = vcombine.high %v5819_v62, %v5819_v62  ;;  %v18698_v62 = vrot.slane %v15854_v48, %v14003_v36  ;;  %v18699_v9 = vrot.slane %v15785_v2, %v14003_v36 }
 0x5fa   :  { %18694 = vst [vmem:[#allocation377_spill] sm:$0xff] %v15954_v26  ;;  %v15960_v30 = vpop.f32.mrb[160].mxu1  ;;  %v6235_v37 = vcombine.low %v18697_v63, %v18696_v8  ;;  %v15972_v29 = vpop.f32.mrb[161].mxu0  ;;  %v15976_v38 = vcombine.low %v5822_v44, %v5805_v59  ;;  %v6490_v47 = vcombine.high %v11863_v19, %v11863_v19  ;;  %v6202_v44 = vcombine.low %v6194_v34, %v6201_v18 }
 0x5fb   :  { %18695 = vst [vmem:[#allocation378_spill] sm:$0xff] %v15962_v16  ;;  %v15974_v24 = vpop.f32.mrb[161].mxu1  ;;  %v6236_v51 = vcombine.low %v18699_v9, %v18698_v62  ;;  %v15986_v61 = vpop.f32.mrb[162].mxu0  ;;  %v15992_v59 = vcombine.low %v5823_v35, %v5838_v31  ;;  %v6497_v9 = vrot.slane %v11863_v19, %v14003_v36  ;;  %v16008_v34 = vadd.f32 %v15732_v40, %v15722_v50 }
 0x5fc   :  { %v15988_v5 = vpop.f32.mrb[162].mxu1  ;;  %v6243_v63 = vrot.slane %v6235_v37, %v14003_v36  ;;  %v15995_v60 = vpop.f32.mrb[163].mxu0  ;;  %v6504_v26 = vrot.slane %v6490_v47, %v14003_v36  ;;  %v16012_v18 = vadd.f32 %v15734_v12, %v15724_v25  ;;  %v16016_v35 = vadd.f32 %v15747_v3, %v15740_v42 }
 0x5fd   :  { %18700 = vst [vmem:[#allocation379_spill] sm:$0xff] %v15992_v59  ;;  %v15997_v48 = vpop.f32.mrb[163].mxu1  ;;  %v6250_v62 = vrot.slane %v6236_v51, %v14003_v36  ;;  %v6505_v51 = vcombine.high %v6497_v9, %v6497_v9  ;;  %v6513_v47 = vrot.slane %v6497_v9, %v14003_v36  ;;  %v16022_v31 = vadd.f32 %v15749_v6, %v15742_v23 }
 0x5fe   :  { %v6506_v19 = vcombine.high %v6504_v26, %v6504_v26  ;;  %v6520_v8 = vrot.slane %v6504_v26, %v14003_v36  ;;  %v12542_v50 = vadd.f32 %v15770_v27, %v15761_v46  ;;  %v16028_v25 = vadd.f32 %v15772_v56, %v15763_v45 }
 0x5ff   :  { %v6251_v37 = vcombine.low %v6243_v63, %v6250_v62  ;;  %v6527_v12 = vrot.slane %v6505_v51, %v14003_v36  ;;  %v12545_v3 = vadd.f32 %v15789_v28, %v15776_v15  ;;  %v12603_v23 = vadd.f32 %v15791_v11, %v15778_v4 }
 0x600   :  { %v6534_v42 = vrot.slane %v6506_v19, %v14003_v36  ;;  %v12548_v46 = vadd.f32 %v15834_v39, %v15824_v1  ;;  %v12606_v6 = vadd.f32 %v15836_v49, %v15826_v32  ;;  %v12551_v45 = vadd.f32 %v15848_v22, %v15840_v53 }
 0x601   :  { %v6480_v40 = vpack.c.bf16 %v6251_v37, %v6202_v44  ;;  %v16034_v26 = vpop.f32.mrb[164].mxu0  ;;  %v6539_v15 = vcombine.low %v6513_v47, %v6527_v12  ;;  %v11864_v28 = vcombine.high %v6513_v47, %v6527_v12  ;;  %v12609_v11 = vadd.f32 %v15850_v54, %v15842_v0 }
 0x602   :  { %v16036_v63 = vpop.f32.mrb[164].mxu1  ;;  %v16046_v27 = vpop.f32.mrb[165].mxu0  ;;  %v6541_v44 = vcombine.low %v6520_v8, %v6534_v42  ;;  %v11865_v62 = vcombine.high %v6520_v8, %v6534_v42  ;;  %v6535_v1 = vcombine.high %v6513_v47, %v6513_v47  ;;  %v6536_v39 = vcombine.high %v6520_v8, %v6520_v8 }
 0x603   :  { %v16048_v56 = vpop.f32.mrb[165].mxu1  ;;  %12762 = vmatprep.mubr.bf16.mxu1 %v6480_v40  ;;  %v12573_v9 = vpop.f32.mrb[166].mxu0  ;;  %v6537_v32 = vcombine.high %v6527_v12, %v6527_v12  ;;  %v6549_v53 = vrot.slane %v6539_v15, %v14003_v36  ;;  %v6556_v22 = vrot.slane %v11864_v28, %v14003_v36  ;;  %v6538_v40 = vcombine.high %v6534_v42, %v6534_v42 }
 0x604   :  { %v12631_v4 = vpop.f32.mrb[166].mxu1  ;;  %v12574_v49 = vpop.f32.mrb[167].mxu0  ;;  %v6563_v51 = vrot.slane %v6541_v44, %v14003_v36  ;;  %v6570_v19 = vrot.slane %v11865_v62, %v14003_v36  ;;  %v6588_v2 = vcombine.low %v6513_v47, %v6513_v47  ;;  %v6589_v9 = vcombine.low %v6527_v12, %v6535_v1  ;;  %v18701_v12 = vld [vmem:[#allocation193_spill] sm:$0xff] }
 0x605   :  { %v12632_v37 = vpop.f32.mrb[167].mxu1  ;;  %v6590_v4 = vcombine.low %v6537_v32, %v6520_v8  ;;  %v6571_v16 = vcombine.low %v6549_v53, %v6556_v22  ;;  %v6591_v0 = vcombine.low %v6534_v42, %v6536_v39  ;;  %v16058_v54 = vadd.f32 %v15869_v21, %v15864_v10 }
 0x606   :  { %v6572_v59 = vcombine.low %v6563_v51, %v6570_v19  ;;  %v6598_v49 = vrot.slane %v6588_v2, %v14003_v36  ;;  %v6605_v15 = vrot.slane %v6589_v9, %v14003_v36  ;;  %v6637_v44 = vcombine.low %v6538_v40, %v6513_v47  ;;  %v18702_v2 = vld [vmem:[#allocation209_spill] sm:$0xff] }
 0x607   :  { %v6612_v28 = vrot.slane %v6590_v4, %v14003_v36  ;;  %v6579_v62 = vrot.slane %v6571_v16, %v14003_v36  ;;  %v6619_v8 = vrot.slane %v6591_v0, %v14003_v36  ;;  %v16068_v42 = vadd.f32 %v18701_v12, %v15866_v52  ;;  %v18703_v52 = vld [vmem:[#allocation369_spill] sm:$0xff] }
 0x608   :  { %v6586_v37 = vrot.slane %v6572_v59, %v14003_v36  ;;  %v6620_v1 = vcombine.low %v6598_v49, %v6605_v15  ;;  %v16071_v10 = vrot.slane %v6637_v44, %v14003_v36  ;;  %v16075_v21 = vadd.f32 %v15880_v20, %v15876_v41 }
 0x609   :  { %v16079_v47 = vadd.f32 %v15882_v13, %v18702_v2  ;;  %v6621_v59 = vcombine.low %v6612_v28, %v6619_v8  ;;  %v16083_v39 = vadd.f32 %v15904_v33, %v15896_v57  ;;  %v16087_v32 = vadd.f32 %v15906_v17, %v18703_v52 }
 0x60a   :  { %v6587_v16 = vcombine.low %v6579_v62, %v6586_v37  ;;  %v16090_v53 = vrot.slane %v6620_v1, %v14003_v36  ;;  %v6645_v20 = vcombine.low %v16071_v10, %v6605_v15  ;;  %v16095_v41 = vadd.f32 %v15925_v55, %v15916_v58 }
 0x60b   :  { %v16099_v13 = vadd.f32 %v15927_v43, %v15918_v7  ;;  %v16104_v40 = vrot.slane %v6621_v59, %v14003_v36 }
 0x60c   :  { %v6700_v57 = vadd.f32 %v16008_v34, %v6587_v16  ;;  %v6703_v33 = vadd.f32 %v16016_v35, %v6587_v16  ;;  %v6708_v22 = vadd.f32 %v12542_v50, %v6587_v16  ;;  %v6711_v17 = vadd.f32 %v12545_v3, %v6587_v16 }
 0x60d   :  { %v6716_v51 = vadd.f32 %v12548_v46, %v6587_v16  ;;  %v6719_v19 = vadd.f32 %v12551_v45, %v6587_v16  ;;  %v6652_v9 = vrot.slane %v6645_v20, %v14003_v36  ;;  %v6636_v35 = vcombine.low %v16090_v53, %v16104_v40 }
 0x60e   :  { %v6788_v58 = vadd.f32 %v16012_v18, %v6700_v57  ;;  %v6791_v55 = vadd.f32 %v16022_v31, %v6703_v33  ;;  %v6796_v7 = vadd.f32 %v16028_v25, %v6708_v22  ;;  %v6799_v43 = vadd.f32 %v12603_v23, %v6711_v17 }
 0x60f   :  { %v16110_v4 = vadd.f32 %v12606_v6, %v6716_v51  ;;  %v16112_v34 = vadd.f32 %v12609_v11, %v6719_v19  ;;  %v16117_v50 = vcombine.low %v6652_v9, %v16104_v40 }
 0x610   :  { %v6854_v3 = vcombine.high %v6788_v58, %v6788_v58  ;;  %v6861_v46 = vrot.slane %v6788_v58, %v14003_v36  ;;  %v6903_v45 = vcombine.high %v6791_v55, %v6791_v55  ;;  %v6910_v18 = vrot.slane %v6791_v55, %v14003_v36 }
 0x611   :  { %v6952_v31 = vcombine.high %v6796_v7, %v6796_v7  ;;  %v6959_v25 = vrot.slane %v6796_v7, %v14003_v36  ;;  %v7001_v23 = vcombine.high %v6799_v43, %v6799_v43  ;;  %v7008_v6 = vrot.slane %v6799_v43, %v14003_v36 }
 0x612   :  { %v6868_v11 = vrot.slane %v6854_v3, %v14003_v36  ;;  %v6869_v0 = vcombine.high %v6861_v46, %v6861_v46  ;;  %v6877_v49 = vrot.slane %v6861_v46, %v14003_v36  ;;  %v6917_v15 = vrot.slane %v6903_v45, %v14003_v36 }
 0x613   :  { %v6918_v28 = vcombine.high %v6910_v18, %v6910_v18  ;;  %v6926_v44 = vrot.slane %v6910_v18, %v14003_v36  ;;  %v6966_v62 = vrot.slane %v6952_v31, %v14003_v36  ;;  %v6967_v37 = vcombine.high %v6959_v25, %v6959_v25 }
 0x614   :  { %v6870_v8 = vcombine.high %v6868_v11, %v6868_v11  ;;  %v6884_v12 = vrot.slane %v6868_v11, %v14003_v36  ;;  %v6891_v1 = vrot.slane %v6869_v0, %v14003_v36  ;;  %v6919_v2 = vcombine.high %v6917_v15, %v6917_v15 }
 0x615   :  { %v6933_v16 = vrot.slane %v6917_v15, %v14003_v36  ;;  %v6940_v59 = vrot.slane %v6918_v28, %v14003_v36  ;;  %v6968_v52 = vcombine.high %v6966_v62, %v6966_v62  ;;  %v6975_v20 = vrot.slane %v6959_v25, %v14003_v36 }
 0x616   :  { %v6898_v57 = vrot.slane %v6870_v8, %v14003_v36  ;;  %v7464_v33 = vcombine.low %v6877_v49, %v6891_v1  ;;  %v11866_v22 = vcombine.high %v6877_v49, %v6891_v1  ;;  %v6947_v17 = vrot.slane %v6919_v2, %v14003_v36 }
 0x617   :  { %v7513_v51 = vcombine.low %v6926_v44, %v6940_v59  ;;  %v11868_v19 = vcombine.high %v6926_v44, %v6940_v59  ;;  %v6982_v9 = vrot.slane %v6966_v62, %v14003_v36  ;;  %v6989_v58 = vrot.slane %v6967_v37, %v14003_v36 }
 0x618   :  { %v7466_v55 = vcombine.low %v6884_v12, %v6898_v57  ;;  %v11867_v7 = vcombine.high %v6884_v12, %v6898_v57  ;;  %v16138_v43 = vrot.slane %v7464_v33, %v14003_v36  ;;  %v16141_v3 = vrot.slane %v11866_v22, %v14003_v36 }
 0x619   :  { %v7515_v46 = vcombine.low %v6933_v16, %v6947_v17  ;;  %v11869_v45 = vcombine.high %v6933_v16, %v6947_v17  ;;  %v16144_v18 = vrot.slane %v7513_v51, %v14003_v36  ;;  %v16147_v31 = vrot.slane %v11868_v19, %v14003_v36 }
 0x61a   :  { %v16150_v25 = vrot.slane %v7466_v55, %v14003_v36  ;;  %v16153_v11 = vrot.slane %v11867_v7, %v14003_v36  ;;  %v6996_v0 = vrot.slane %v6968_v52, %v14003_v36  ;;  %v7562_v49 = vcombine.low %v6975_v20, %v6989_v58 }
 0x61b   :  { %v16157_v15 = vrot.slane %v7515_v46, %v14003_v36  ;;  %v16160_v28 = vrot.slane %v11869_v45, %v14003_v36  ;;  %v11870_v44 = vcombine.high %v6975_v20, %v6989_v58  ;;  %v7015_v62 = vrot.slane %v7001_v23, %v14003_v36 }
 0x61c   :  { %v7564_v37 = vcombine.low %v6982_v9, %v6996_v0  ;;  %v11871_v8 = vcombine.high %v6982_v9, %v6996_v0  ;;  %v16164_v12 = vrot.slane %v7562_v49, %v14003_v36  ;;  %v7016_v1 = vcombine.high %v7008_v6, %v7008_v6 }
 0x61d   :  { %v16167_v2 = vrot.slane %v11870_v44, %v14003_v36  ;;  %v7017_v16 = vcombine.high %v7015_v62, %v7015_v62  ;;  %v7024_v59 = vrot.slane %v7008_v6, %v14003_v36  ;;  %v7031_v52 = vrot.slane %v7015_v62, %v14003_v36 }
 0x61e   :  { %v16172_v57 = vrot.slane %v7564_v37, %v14003_v36  ;;  %v16175_v20 = vrot.slane %v11871_v8, %v14003_v36  ;;  %v7038_v23 = vrot.slane %v7016_v1, %v14003_v36  ;;  %v7050_v33 = vcombine.high %v16110_v4, %v16110_v4 }
 0x61f   :  { %v7045_v22 = vrot.slane %v7017_v16, %v14003_v36  ;;  %v7057_v17 = vrot.slane %v16110_v4, %v14003_v36  ;;  %v7099_v6 = vcombine.high %v16112_v34, %v16112_v34  ;;  %v7106_v51 = vrot.slane %v16112_v34, %v14003_v36 }
 0x620   :  { %v7611_v19 = vcombine.low %v7024_v59, %v7038_v23  ;;  %v11872_v9 = vcombine.high %v7024_v59, %v7038_v23  ;;  %v7064_v58 = vrot.slane %v7050_v33, %v14003_v36  ;;  %v6724_v55 = vadd.f32 %v16058_v54, %v6636_v35 }
 0x621   :  { %v7613_v7 = vcombine.low %v7031_v52, %v7045_v22  ;;  %v11873_v46 = vcombine.high %v7031_v52, %v7045_v22  ;;  %v7065_v45 = vcombine.high %v7057_v17, %v7057_v17  ;;  %v7073_v4 = vrot.slane %v7057_v17, %v14003_v36 }
 0x622   :  { %v16194_v0 = vrot.slane %v7611_v19, %v14003_v36  ;;  %v16197_v49 = vrot.slane %v11872_v9, %v14003_v36  ;;  %v7066_v34 = vcombine.high %v7064_v58, %v7064_v58  ;;  %v7080_v44 = vrot.slane %v7064_v58, %v14003_v36 }
 0x623   :  { %v16201_v62 = vrot.slane %v7613_v7, %v14003_v36  ;;  %v16204_v53 = vrot.slane %v11873_v46, %v14003_v36  ;;  %v7087_v54 = vrot.slane %v7065_v45, %v14003_v36  ;;  %v7113_v40 = vrot.slane %v7099_v6, %v14003_v36 }
 0x624   :  { %v7094_v35 = vrot.slane %v7066_v34, %v14003_v36  ;;  %v7114_v37 = vcombine.high %v7106_v51, %v7106_v51  ;;  %v7122_v8 = vrot.slane %v7106_v51, %v14003_v36  ;;  %v6812_v1 = vadd.f32 %v16068_v42, %v6724_v55 }
 0x625   :  { %v7660_v16 = vcombine.low %v7073_v4, %v7087_v54  ;;  %v11874_v59 = vcombine.high %v7073_v4, %v7087_v54  ;;  %v7115_v52 = vcombine.high %v7113_v40, %v7113_v40  ;;  %v7129_v23 = vrot.slane %v7113_v40, %v14003_v36 }
 0x626   :  { %v7662_v33 = vcombine.low %v7080_v44, %v7094_v35  ;;  %v11875_v22 = vcombine.high %v7080_v44, %v7094_v35  ;;  %v7136_v17 = vrot.slane %v7114_v37, %v14003_v36  ;;  %v7148_v19 = vcombine.high %v6812_v1, %v6812_v1 }
 0x627   :  { %v16214_v9 = vrot.slane %v7660_v16, %v14003_v36  ;;  %v16217_v6 = vrot.slane %v11874_v59, %v14003_v36  ;;  %v7143_v51 = vrot.slane %v7115_v52, %v14003_v36  ;;  %v7155_v42 = vrot.slane %v6812_v1, %v14003_v36 }
 0x628   :  { %v16222_v58 = vrot.slane %v7662_v33, %v14003_v36  ;;  %v16225_v55 = vrot.slane %v11875_v22, %v14003_v36  ;;  %v7709_v7 = vcombine.low %v7122_v8, %v7136_v17  ;;  %v11876_v46 = vcombine.high %v7122_v8, %v7136_v17 }
 0x629   :  { %v7711_v45 = vcombine.low %v7129_v23, %v7143_v51  ;;  %v11877_v4 = vcombine.high %v7129_v23, %v7143_v51  ;;  %v7162_v34 = vrot.slane %v7148_v19, %v14003_v36  ;;  %v7163_v44 = vcombine.high %v7155_v42, %v7155_v42 }
 0x62a   :  { %v16229_v54 = vrot.slane %v7709_v7, %v14003_v36  ;;  %v16232_v40 = vrot.slane %v11876_v46, %v14003_v36  ;;  %v16235_v35 = vrot.slane %v7155_v42, %v14003_v36  ;;  %v6727_v37 = vadd.f32 %v16075_v21, %v16117_v50 }
 0x62b   :  { %v16240_v1 = vrot.slane %v7711_v45, %v14003_v36  ;;  %v16243_v8 = vrot.slane %v11877_v4, %v14003_v36  ;;  %v7164_v16 = vcombine.high %v7162_v34, %v7162_v34  ;;  %v7178_v59 = vrot.slane %v7162_v34, %v14003_v36 }
 0x62c   :  { %v7185_v52 = vrot.slane %v7163_v44, %v14003_v36  ;;  %v7193_v23 = vcombine.high %v16235_v35, %v16235_v35  ;;  %v6815_v33 = vadd.f32 %v16079_v47, %v6727_v37  ;;  %v7496_v22 = vcombine.low %v16138_v43, %v16141_v3 }
 0x62d   :  { %v7192_v21 = vrot.slane %v7164_v16, %v14003_v36  ;;  %v7194_v17 = vcombine.high %v7178_v59, %v7178_v59  ;;  %v7497_v19 = vcombine.low %v16150_v25, %v16153_v11  ;;  %v7545_v51 = vcombine.low %v16144_v18, %v16147_v31 }
 0x62e   :  { %v7195_v42 = vcombine.high %v7185_v52, %v7185_v52  ;;  %v16257_v7 = vcombine.low %v7185_v52, %v7193_v23  ;;  %v7197_v46 = vcombine.high %v6815_v33, %v6815_v33  ;;  %v7204_v45 = vrot.slane %v6815_v33, %v14003_v36 }
 0x62f   :  { %v7196_v4 = vcombine.high %v7192_v21, %v7192_v21  ;;  %v16260_v47 = vcombine.low %v7192_v21, %v7194_v17  ;;  %v7504_v43 = vrot.slane %v7496_v22, %v14003_v36  ;;  %v7511_v3 = vrot.slane %v7497_v19, %v14003_v36 }
 0x630   :  { %v16264_v34 = vcombine.low %v7195_v42, %v7178_v59  ;;  %v7782_v25 = vrot.slane %v16257_v7, %v14003_v36  ;;  %v7211_v18 = vrot.slane %v7197_v46, %v14003_v36  ;;  %v7212_v31 = vcombine.high %v7204_v45, %v7204_v45 }
 0x631   :  { %v7796_v11 = vrot.slane %v16260_v47, %v14003_v36  ;;  %v7220_v44 = vrot.slane %v7204_v45, %v14003_v36  ;;  %v7512_v37 = vcombine.low %v7504_v43, %v7511_v3  ;;  %v7546_v16 = vcombine.low %v16157_v15, %v16160_v28 }
 0x632   :  { %v7789_v52 = vrot.slane %v16264_v34, %v14003_v36  ;;  %v7213_v59 = vcombine.high %v7211_v18, %v7211_v18  ;;  %v7227_v23 = vrot.slane %v7211_v18, %v14003_v36  ;;  %v7234_v33 = vrot.slane %v7212_v31, %v14003_v36 }
 0x633   :  { %v7242_v22 = vcombine.high %v7220_v44, %v7220_v44  ;;  %v16278_v21 = vcombine.low %v7196_v4, %v7220_v44  ;;  %v7553_v17 = vrot.slane %v7545_v51, %v14003_v36  ;;  %v7560_v19 = vrot.slane %v7546_v16, %v14003_v36 }
 0x634   :  { %v7241_v42 = vrot.slane %v7213_v59, %v14003_v36  ;;  %v7243_v46 = vcombine.high %v7227_v23, %v7227_v23  ;;  %v7244_v45 = vcombine.high %v7234_v33, %v7234_v33  ;;  %v6732_v15 = vadd.f32 %v16083_v39, %v16117_v50 }
 0x635   :  { %v7803_v28 = vrot.slane %v16278_v21, %v14003_v36  ;;  %v16287_v43 = vcombine.low %v7234_v33, %v7242_v22  ;;  %v7561_v3 = vcombine.low %v7553_v17, %v7560_v19  ;;  %v6735_v4 = vadd.f32 %v16095_v41, %v16117_v50  ;;  %v18706_v21 = vld [vmem:[#allocation214_spill] sm:$0xff] }
 0x636   :  { %v7245_v18 = vcombine.high %v7241_v42, %v7241_v42  ;;  %v16291_v51 = vcombine.low %v7244_v45, %v7227_v23  ;;  %v16293_v31 = vcombine.low %v7241_v42, %v7243_v46  ;;  %v6820_v44 = vadd.f32 %v16087_v32, %v6732_v15 }
 0x637   :  { %v7831_v16 = vrot.slane %v16287_v43, %v14003_v36  ;;  %v8094_v39 = vpack.c.bf16 %v7561_v3, %v7512_v37  ;;  %v6823_v59 = vadd.f32 %v16099_v13, %v6735_v4  ;;  %v7594_v33 = vcombine.low %v16164_v12, %v16167_v2 }
 0x638   :  { %v7838_v22 = vrot.slane %v16291_v51, %v14003_v36  ;;  %v7246_v23 = vcombine.high %v6820_v44, %v6820_v44  ;;  %v7253_v17 = vrot.slane %v6820_v44, %v14003_v36  ;;  %v7595_v37 = vcombine.low %v16172_v57, %v16175_v20 }
 0x639   :  { %12738 = vmatprep.subr.bf16.mxu0 %v8094_v39  ;;  %v7295_v32 = vcombine.high %v6823_v59, %v6823_v59  ;;  %v7302_v19 = vrot.slane %v6823_v59, %v14003_v36  ;;  %v16310_v13 = vrot.slane %v7594_v33, %v14003_v36  ;;  %v7643_v46 = vcombine.low %v16194_v0, %v16197_v49 }
 0x63a   :  { %12739 = vmatpush3.bf16.xpose.msra.mxu0 %v8094_v39  ;;  %v7260_v12 = vrot.slane %v7246_v23, %v14003_v36  ;;  %v7261_v2 = vcombine.high %v7253_v17, %v7253_v17  ;;  %v7269_v42 = vrot.slane %v7253_v17, %v14003_v36  ;;  %v7609_v4 = vrot.slane %v7595_v37, %v14003_v36 }
 0x63b   :  { %v7309_v45 = vrot.slane %v7295_v32, %v14003_v36  ;;  %v7310_v15 = vcombine.high %v7302_v19, %v7302_v19  ;;  %v7318_v3 = vrot.slane %v7302_v19, %v14003_v36  ;;  %v7853_v34 = vcombine.low %v7831_v16, %v7838_v22  ;;  %v18712_v16 = vld [vmem:[#allocation191_spill] sm:$0xff] }
 0x63c   :  { %v7262_v57 = vcombine.high %v7260_v12, %v7260_v12  ;;  %v7276_v20 = vrot.slane %v7260_v12, %v14003_v36  ;;  %v7283_v44 = vrot.slane %v7261_v2, %v14003_v36  ;;  %v7291_v39 = vcombine.high %v7269_v42, %v7269_v42  ;;  %v18713_v22 = vld [vmem:[#allocation215_spill] sm:$0xff] }
 0x63d   :  { %v16321_v59 = vcombine.low %v7245_v18, %v7269_v42  ;;  %v7311_v33 = vcombine.high %v7309_v45, %v7309_v45  ;;  %v7325_v23 = vrot.slane %v7309_v45, %v14003_v36  ;;  %v7332_v0 = vrot.slane %v7310_v15, %v14003_v36 }
 0x63e   :  { %v7290_v49 = vrot.slane %v7262_v57, %v14003_v36  ;;  %v7292_v17 = vcombine.high %v7276_v20, %v7276_v20  ;;  %v7293_v32 = vcombine.high %v7283_v44, %v7283_v44  ;;  %v16326_v19 = vcombine.low %v7283_v44, %v7291_v39 }
 0x63f   :  { %v16331_v12 = vrot.slane %v7311_v33, %v14003_v36  ;;  %v7340_v2 = vcombine.high %v7318_v3, %v7318_v3  ;;  %v7341_v18 = vcombine.high %v7325_v23, %v7325_v23  ;;  %v7342_v57 = vcombine.high %v7332_v0, %v7332_v0 }
 0x640   :  { %v7294_v42 = vcombine.high %v7290_v49, %v7290_v49  ;;  %v16333_v41 = vcombine.low %v7293_v32, %v7276_v20  ;;  %v16335_v45 = vcombine.low %v7290_v49, %v7292_v17  ;;  %v7610_v17 = vcombine.low %v16310_v13, %v7609_v4 }
 0x641   :  { %v7343_v44 = vcombine.high %v16331_v12, %v16331_v12  ;;  %v16341_v39 = vcombine.low %v7332_v0, %v7340_v2  ;;  %v16344_v37 = vcombine.low %v16331_v12, %v7341_v18  ;;  %v16353_v32 = vcombine.low %v7342_v57, %v7325_v23 }
 0x642   :  { %v7887_v33 = vrot.slane %v16333_v41, %v14003_v36  ;;  %v7894_v20 = vrot.slane %v16335_v45, %v14003_v36  ;;  %v16350_v49 = vcombine.low %v7294_v42, %v7318_v3  ;;  %v7644_v12 = vcombine.low %v16201_v62, %v16204_v53 }
 0x643   :  { %v7929_v15 = vrot.slane %v16341_v39, %v14003_v36  ;;  %v7943_v0 = vrot.slane %v16344_v37, %v14003_v36  ;;  %v7651_v18 = vrot.slane %v7643_v46, %v14003_v36  ;;  %v12566_v3 = vadd.f32 %v15972_v29, %v15958_v14  ;;  %v18721_v39 = vld [vmem:[#allocation217_spill] sm:$0xff] }
 0x644   :  { %v7901_v2 = vrot.slane %v16350_v49, %v14003_v36  ;;  %v12569_v13 = vadd.f32 %v15995_v60, %v15986_v61  ;;  %v7936_v4 = vrot.slane %v16353_v32, %v14003_v36  ;;  %v7658_v23 = vrot.slane %v7644_v12, %v14003_v36 }
 0x645   :  { %v12624_v42 = vadd.f32 %v15974_v24, %v15960_v30  ;;  %v12627_v62 = vadd.f32 %v15997_v48, %v15988_v5  ;;  %v6740_v53 = vadd.f32 %v12566_v3, %v16117_v50  ;;  %v7692_v29 = vcombine.low %v16214_v9, %v16217_v6 }
 0x646   :  { %v6743_v46 = vadd.f32 %v12569_v13, %v16117_v50  ;;  %v7693_v61 = vcombine.low %v16222_v58, %v16225_v55  ;;  %v7659_v14 = vcombine.low %v7651_v18, %v7658_v23  ;;  %v7741_v60 = vcombine.low %v16229_v54, %v16232_v40 }
 0x647   :  { %v7742_v24 = vcombine.low %v16240_v1, %v16243_v8  ;;  %v7764_v30 = vrot.slane %v16235_v35, %v14003_v36  ;;  %v6828_v5 = vadd.f32 %v12624_v42, %v6740_v53  ;;  %v7700_v50 = vrot.slane %v7692_v29, %v14003_v36 }
 0x648   :  { %v6831_v48 = vadd.f32 %v12627_v62, %v6743_v46  ;;  %v7707_v57 = vrot.slane %v7693_v61, %v14003_v36  ;;  %v8095_v9 = vpack.c.bf16 %v7659_v14, %v7610_v17  ;;  %v7749_v6 = vrot.slane %v7741_v60, %v14003_v36 }
 0x649   :  { %v7756_v58 = vrot.slane %v7742_v24, %v14003_v36  ;;  %v7771_v55 = vrot.slane %v7764_v30, %v14003_v36  ;;  %v7344_v54 = vcombine.high %v6828_v5, %v6828_v5  ;;  %v7351_v40 = vrot.slane %v6828_v5, %v14003_v36 }
 0x64a   :  { %v7393_v1 = vcombine.high %v6831_v48, %v6831_v48  ;;  %v7400_v8 = vrot.slane %v6831_v48, %v14003_v36  ;;  %12740 = vmatprep.subr.bf16.mxu0 %v8095_v9  ;;  %v7708_v35 = vcombine.low %v7700_v50, %v7707_v57  ;;  %v6660_v17 = vrot.slane %v16071_v10, %v14003_v36 }
 0x64b   :  { %v7757_v12 = vcombine.low %v7749_v6, %v7756_v58  ;;  %v16394_v18 = vpack.c.bf16 %v7771_v55, %v7771_v55  ;;  %12741 = vmatpush3.bf16.xpose.msra.mxu0 %v8095_v9  ;;  %v7358_v3 = vrot.slane %v7344_v54, %v14003_v36  ;;  %v7359_v13 = vcombine.high %v7351_v40, %v7351_v40 }
 0x64c   :  { %v7367_v23 = vrot.slane %v7351_v40, %v14003_v36  ;;  %v7407_v42 = vrot.slane %v7393_v1, %v14003_v36  ;;  %v7408_v62 = vcombine.high %v7400_v8, %v7400_v8  ;;  %v7416_v53 = vrot.slane %v7400_v8, %v14003_v36 }
 0x64d   :  { %v8096_v46 = vpack.c.bf16 %v7757_v12, %v7708_v35  ;;  %v12572_v29 = vadd.f32 %v16046_v27, %v16034_v26  ;;  %v7360_v61 = vcombine.high %v7358_v3, %v7358_v3  ;;  %v7374_v14 = vrot.slane %v7358_v3, %v14003_v36 }
 0x64e   :  { %v7381_v10 = vrot.slane %v7359_v13, %v14003_v36  ;;  %v7389_v60 = vcombine.high %v7367_v23, %v7367_v23  ;;  %v16406_v24 = vcombine.low %v7343_v44, %v7367_v23  ;;  %v7409_v30 = vcombine.high %v7407_v42, %v7407_v42 }
 0x64f   :  { %v7423_v5 = vrot.slane %v7407_v42, %v14003_v36  ;;  %v7430_v48 = vrot.slane %v7408_v62, %v14003_v36  ;;  %12742 = vmatprep.subr.bf16.mxu0 %v8096_v46  ;;  %v7388_v50 = vrot.slane %v7360_v61, %v14003_v36  ;;  %v7390_v57 = vcombine.high %v7374_v14, %v7374_v14 }
 0x650   :  { %v7391_v9 = vcombine.high %v7381_v10, %v7381_v10  ;;  %v16411_v6 = vcombine.low %v7381_v10, %v7389_v60  ;;  %v7950_v26 = vrot.slane %v16406_v24, %v14003_v36  ;;  %v7437_v27 = vrot.slane %v7409_v30, %v14003_v36 }
 0x651   :  { %v7438_v58 = vcombine.high %v7416_v53, %v7416_v53  ;;  %v7439_v44 = vcombine.high %v7423_v5, %v7423_v5  ;;  %v7392_v55 = vcombine.high %v7388_v50, %v7388_v50  ;;  %v7970_v40 = vcombine.low %v7388_v50, %v7390_v57  ;;  %v18714_v50 = vld [vmem:[#allocation200_spill] sm:$0xff]  ;;  %v18715_v57 = vld [vmem:[#allocation207_spill] sm:$0xff] }
 0x652   :  { %v7969_v54 = vcombine.low %v7391_v9, %v7374_v14  ;;  %v7978_v1 = vrot.slane %v16411_v6, %v14003_v36  ;;  %v7440_v8 = vcombine.high %v7430_v48, %v7430_v48  ;;  %v6748_v3 = vadd.f32 %v12572_v29, %v6660_v17  ;;  %v18716_v6 = vld [vmem:[#allocation192_spill] sm:$0xff] }
 0x653   :  { %v8017_v35 = vcombine.low %v7430_v48, %v7438_v58  ;;  %v8019_v12 = vcombine.low %v7437_v27, %v7439_v44  ;;  %v7992_v23 = vrot.slane %v7970_v40, %v14003_v36  ;;  %v7971_v42 = vcombine.low %v7392_v55, %v7416_v53  ;;  %12743 = vmatpush3.bf16.xpose.msra.mxu0 %v8096_v46  ;;  %v18707_v46 = vld [vmem:[#allocation190_spill] sm:$0xff] }
 0x654   :  { %v7985_v13 = vrot.slane %v7969_v54, %v14003_v36  ;;  %v12630_v62 = vadd.f32 %v16048_v56, %v16036_v63  ;;  %v8018_v61 = vcombine.low %v7440_v8, %v7423_v5  ;;  %12744 = vmatprep.subr.bf16.mxu0 %v16394_v18  ;;  %v7441_v60 = vcombine.high %v7437_v27, %v7437_v27  ;;  %v18717_v27 = vld [vmem:[#allocation216_spill] sm:$0xff] }
 0x655   :  { %v8027_v14 = vrot.slane %v8017_v35, %v14003_v36  ;;  %v8041_v10 = vrot.slane %v8019_v12, %v14003_v36  ;;  %v7999_v24 = vrot.slane %v7971_v42, %v14003_v36  ;;  %v7804_v53 = vcombine.low %v7782_v25, %v7789_v52  ;;  %v18718_v12 = vld [vmem:[#allocation201_spill] sm:$0xff] }
 0x656   :  { %v6836_v17 = vadd.f32 %v12630_v62, %v6748_v3  ;;  %v7805_v63 = vcombine.low %v7796_v11, %v7803_v28  ;;  %v8034_v56 = vrot.slane %v8018_v61, %v14003_v36  ;;  %v18704_v7 = vrot.slane %v16321_v59, %v14003_v36  ;;  %v18709_v11 = vld [vmem:[#allocation206_spill] sm:$0xff]  ;;  %v18710_v28 = vld [vmem:[#allocation199_spill] sm:$0xff]  ;;  %v18719_v3 = vld [vmem:[#allocation208_spill] sm:$0xff] }
 0x657   :  { %v18705_v25 = vrot.slane %v16293_v31, %v14003_v36  ;;  %v18708_v47 = vcombine.low %v18706_v21, %v18707_v46  ;;  %v18711_v29 = vcombine.low %v18709_v11, %v18710_v28  ;;  %v7812_v5 = vrot.slane %v7804_v53, %v14003_v36 }
 0x658   :  { %v7448_v51 = vrot.slane %v6836_v17, %v14003_v36  ;;  %v7819_v43 = vrot.slane %v7805_v63, %v14003_v36  ;;  %v6074_v59 = vcombine.low %v18713_v22, %v18712_v16  ;;  %v7861_v48 = vrot.slane %v7853_v34, %v14003_v36  ;;  %v18726_v22 = vld [vmem:[#allocation179_spill] sm:$0xff] }
 0x659   :  { %v7854_v52 = vcombine.low %v18705_v25, %v18704_v7  ;;  %v6477_v30 = vpack.c.bf16 %v18711_v29, %v18708_v47  ;;  %v6075_v9 = vcombine.low %v18715_v57, %v18714_v50  ;;  %v6123_v58 = vcombine.low %v18717_v27, %v18716_v6  ;;  %v18728_v57 = vld [vmem:[#allocation171_spill] sm:$0xff]  ;;  %v18730_v27 = vld [vmem:[#allocation218_spill] sm:$0xff] }
 0x65a   :  { %v7449_v44 = vcombine.high %v7448_v51, %v7448_v51  ;;  %v7456_v55 = vrot.slane %v7448_v51, %v14003_v36  ;;  %v7820_v54 = vcombine.low %v7812_v5, %v7819_v43  ;;  %v6082_v40 = vrot.slane %v6074_v59, %v14003_v36  ;;  %v18727_v59 = vld [vmem:[#allocation163_spill] sm:$0xff] }
 0x65b   :  { %v7868_v31 = vrot.slane %v7854_v52, %v14003_v36  ;;  %v6089_v35 = vrot.slane %v6075_v9, %v14003_v36  ;;  %v6124_v42 = vcombine.low %v18719_v3, %v18718_v12  ;;  %v6131_v62 = vrot.slane %v6123_v58, %v14003_v36  ;;  %12745 = vmatpush3.bf16.xpose.msra.mxu0 %v16394_v18  ;;  %v18729_v9 = vld [vmem:[#allocation155_spill] sm:$0xff] }
 0x65c   :  { %v8020_v61 = vcombine.low %v7441_v60, %v7456_v55  ;;  %v18720_v17 = vrot.slane %v16326_v19, %v14003_v36  ;;  %v7903_v63 = vcombine.low %v7894_v20, %v7901_v2  ;;  %v7951_v18 = vcombine.low %v7929_v15, %v7936_v4 }
 0x65d   :  { %v7869_v8 = vcombine.low %v7861_v48, %v7868_v31  ;;  %v6090_v41 = vcombine.low %v6082_v40, %v6089_v35  ;;  %v6138_v34 = vrot.slane %v6124_v42, %v14003_v36  ;;  %v7952_v19 = vcombine.low %v7943_v0, %v7950_v26  ;;  %v18731_v40 = vld [vmem:[#allocation371_spill] sm:$0xff] }
 0x65e   :  { %v7902_v53 = vcombine.low %v18720_v17, %v7887_v33  ;;  %v8048_v33 = vrot.slane %v8020_v61, %v14003_v36  ;;  %v7917_v20 = vrot.slane %v7903_v63, %v14003_v36  ;;  %v7959_v49 = vrot.slane %v7951_v18, %v14003_v36  ;;  %v18735_v17 = vld [vmem:[#allocation370_spill] sm:$0xff] }
 0x65f   :  { %v8098_v60 = vpack.c.bf16 %v7869_v8, %v7820_v54  ;;  %v6139_v32 = vcombine.low %v6131_v62, %v6138_v34  ;;  %v7966_v15 = vrot.slane %v7952_v19, %v14003_v36  ;;  %v6146_v2 = vrot.slane %v18721_v39, %v14003_v36  ;;  %v18732_v8 = vld [vmem:[#allocation376_spill] sm:$0xff]  ;;  %v18739_v34 = vld [vmem:[#allocation373_spill] sm:$0xff] }
 0x660   :  { %v7910_v45 = vrot.slane %v7902_v53, %v14003_v36  ;;  %v8000_v4 = vcombine.low %v7978_v1, %v7985_v13  ;;  %v8001_v37 = vcombine.low %v7992_v23, %v7999_v24  ;;  %v8049_v0 = vcombine.low %v8027_v14, %v8034_v56  ;;  %v18722_v23 = vld [vmem:[#allocation178_spill] sm:$0xff]  ;;  %v18733_v62 = vld [vmem:[#allocation372_spill] sm:$0xff] }
 0x661   :  { %12754 = vmatprep.subr.bf16.mxu1 %v8098_v60  ;;  %v8050_v26 = vcombine.low %v8041_v10, %v8048_v33  ;;  %v6478_v25 = vpack.c.bf16 %v6139_v32, %v6090_v41  ;;  %v7967_v52 = vcombine.low %v7959_v49, %v7966_v15  ;;  %v6153_v21 = vrot.slane %v6146_v2, %v14003_v36  ;;  %v18723_v14 = vld [vmem:[#allocation162_spill] sm:$0xff]  ;;  %v18744_v15 = vld [vmem:[#allocation379_spill] sm:$0xff] }
 0x662   :  { %12755 = vmatpush3.bf16.xpose.msra.mxu1 %v8098_v60  ;;  %v7918_v7 = vcombine.low %v7910_v45, %v7917_v20  ;;  %v8008_v46 = vrot.slane %v8000_v4, %v14003_v36  ;;  %v8015_v47 = vrot.slane %v8001_v37, %v14003_v36  ;;  %v8057_v11 = vrot.slane %v8049_v0, %v14003_v36  ;;  %v18724_v24 = vld [vmem:[#allocation170_spill] sm:$0xff]  ;;  %v18737_v60 = vld [vmem:[#allocation375_spill] sm:$0xff]  ;;  %v18742_v20 = vld [vmem:[#allocation377_spill] sm:$0xff] }
 0x663   :  { %v8064_v28 = vrot.slane %v8050_v26, %v14003_v36  ;;  %v7463_v29 = vrot.slane %v7449_v44, %v14003_v36  ;;  %12747 = vmatmul.mubr.bf16.vlgmr.msra.gmra.mrb[168].mxu0 %v6477_v30  ;;  %v6479_v13 = vpack.c.bf16 %v6153_v21, %v6153_v21  ;;  %v10024_v10 = vcombine.low %v18723_v14, %v18722_v23  ;;  %v18725_v56 = vld [vmem:[#allocation154_spill] sm:$0xff]  ;;  %v16520_v30 = vld [vmem:[%s17876_s3] sm:$0xf] }
 0x664   :  { %v8099_v1 = vpack.c.bf16 %v7967_v52, %v7918_v7  ;;  %v10025_v51 = vcombine.low %v18725_v56, %v18724_v24  ;;  %12750 = vmatprep.mubr.bf16.mxu0 %v6478_v25  ;;  %v8016_v5 = vcombine.low %v8008_v46, %v8015_v47  ;;  %v10073_v48 = vcombine.low %v18727_v59, %v18726_v22  ;;  %v18746_v2 = vld [vmem:[#allocation378_spill] sm:$0xff]  ;;  %v18748_v25 = vld [vmem:[#allocation321_spill] sm:$0xff] }
 0x665   :  { %v8065_v43 = vcombine.low %v8057_v11, %v8064_v28  ;;  %v8072_v16 = vrot.slane %v7463_v29, %v14003_v36  ;;  %v10032_v31 = vrot.slane %v10024_v10, %v14003_v36  ;;  %v10074_v6 = vcombine.low %v18729_v9, %v18728_v57  ;;  %v18750_v29 = vld [vmem:[#allocation323_spill] sm:$0xff]  ;;  %v18754_v57 = vld [vmem:[#allocation326_spill] sm:$0xff]  ;;  %v18755_v9 = vld [vmem:[#allocation324_spill] sm:$0xff] }
 0x666   :  { %12756 = vmatprep.subr.bf16.mxu1 %v8099_v1  ;;  %v10039_v50 = vrot.slane %v10025_v51, %v14003_v36  ;;  %v10638_v58 = vsub.s32 3, %v18730_v27  ;;  %v10081_v54 = vrot.slane %v10073_v48, %v14003_v36  ;;  %v6481_v35 = vpack.c.bf16 %v18732_v8, %v18731_v40 }
 0x667   :  { %v8100_v44 = vpack.c.bf16 %v8065_v43, %v8016_v5  ;;  %v8079_v55 = vrot.slane %v8072_v16, %v14003_v36  ;;  %v10088_v3 = vrot.slane %v10074_v6, %v14003_v36  ;;  %v18734_v61 = vrot.slane %v18733_v62, %v14003_v36  ;;  %v18752_v5 = vld [vmem:[#allocation325_spill] sm:$0xff]  ;;  %v18753_v43 = vld [vmem:[#allocation322_spill] sm:$0xff] }
 0x668   :  { %v10040_v12 = vcombine.low %v10032_v31, %v10039_v50  ;;  %v16533_v42 = vrot.slane %v16520_v30, %v10638_v58  ;;  %v18736_v53 = vrot.slane %v18735_v17, %v14003_v36  ;;  %v18738_v41 = vrot.slane %v18737_v60, %v14003_v36 }
 0x669   :  { %v16541_v18 = vpack.c.bf16 %v8079_v55, %v8079_v55  ;;  %v18740_v19 = vrot.slane %v18739_v34, %v14003_v36  ;;  %v18741_v45 = vrot.slane %v15976_v38, %v14003_v36  ;;  %v18743_v49 = vrot.slane %v18742_v20, %v14003_v36  ;;  %v18749_v38 = vld [vmem:[#allocation319_spill] sm:$0xff] }
 0x66a   :  { %v6382_v63 = vcombine.low %v18736_v53, %v18734_v61  ;;  %12757 = vmatpush3.bf16.xpose.msra.mxu1 %v8099_v1  ;;  %v18745_v39 = vrot.slane %v18744_v15, %v14003_v36  ;;  %v18747_v4 = vrot.slane %v18746_v2, %v14003_v36  ;;  %v10089_v37 = vcombine.low %v10081_v54, %v10088_v3  ;;  %v18751_v1 = vld [vmem:[#allocation320_spill] sm:$0xff]  ;;  %v18761_v15 = vld [vmem:[#allocation165_spill] sm:$0xff] }
 0x66b   :  { %v6383_v33 = vcombine.low %v18740_v19, %v18738_v41  ;;  %v6431_v32 = vcombine.low %v18743_v49, %v18741_v45  ;;  %12758 = vmatprep.subr.bf16.mxu1 %v8100_v44  ;;  %v16562_v0 = vadd.f32 %v16533_v42, %v10040_v12  ;;  %v9362_v52 = vcombine.low %v18749_v38, %v18748_v25  ;;  %v18756_v53 = vld [vmem:[#allocation180_spill] sm:$0xff]  ;;  %v18762_v2 = vld [vmem:[#allocation173_spill] sm:$0xff] }
 0x66c   :  { %v6432_v7 = vcombine.low %v18747_v4, %v18745_v39  ;;  %v6390_v26 = vrot.slane %v6382_v63, %v14003_v36  ;;  %v11902_v11 = vcombine.high %v18749_v38, %v18748_v25  ;;  %12751 = vmatmul.mubr.bf16.gmra.mrb[172].mxu0 %v6479_v13  ;;  %v10651_v28 = vadd.f32 %v16533_v42, %v10089_v37  ;;  %v18757_v63 = vld [vmem:[#allocation164_spill] sm:$0xff]  ;;  %v18763_v4 = vld [vmem:[#allocation157_spill] sm:$0xff]  ;;  %v18765_v38 = vld [vmem:[#allocation327_spill] sm:$0xff] }
 0x66d   :  { %v6397_v21 = vrot.slane %v6383_v33, %v14003_v36  ;;  %v6439_v46 = vrot.slane %v6431_v32, %v14003_v36  ;;  %v9364_v23 = vcombine.low %v18751_v1, %v18750_v29  ;;  %v11903_v14 = vcombine.high %v18751_v1, %v18750_v29  ;;  %v18758_v33 = vld [vmem:[#allocation172_spill] sm:$0xff]  ;;  %v18760_v32 = vld [vmem:[#allocation181_spill] sm:$0xff]  ;;  %v18766_v1 = vld [vmem:[#allocation331_spill] sm:$0xff] }
 0x66e   :  { %v6446_v47 = vrot.slane %v6432_v7, %v14003_v36  ;;  %v9372_v10 = vrot.slane %v9362_v52, %v14003_v36  ;;  %v9379_v51 = vrot.slane %v11902_v11, %v14003_v36  ;;  %v9411_v16 = vcombine.low %v18753_v43, %v18752_v5  ;;  %v18759_v45 = vld [vmem:[#allocation156_spill] sm:$0xff]  ;;  %v18764_v25 = vld [vmem:[#allocation329_spill] sm:$0xff] }
 0x66f   :  { %v16578_v24 = vcombine.low %v6390_v26, %v6397_v21  ;;  %v11030_v13 = vpack.c.bf16 %v10651_v28, %v16562_v0  ;;  %v9386_v22 = vrot.slane %v9364_v23, %v14003_v36  ;;  %v9393_v59 = vrot.slane %v11903_v14, %v14003_v36  ;;  %v18767_v23 = vld [vmem:[#allocation328_spill] sm:$0xff] }
 0x670   :  { %v16580_v56 = vcombine.low %v6439_v46, %v6446_v47  ;;  %v11904_v48 = vcombine.high %v18753_v43, %v18752_v5  ;;  %v9394_v50 = vcombine.low %v9372_v10, %v9379_v51  ;;  %v9413_v6 = vcombine.low %v18755_v9, %v18754_v57 }
 0x671   :  { %v11905_v58 = vcombine.high %v18755_v9, %v18754_v57  ;;  %v9395_v55 = vcombine.low %v9386_v22, %v9393_v59  ;;  %v9421_v54 = vrot.slane %v9411_v16, %v14003_v36  ;;  %v10634_v3 = vsub.s32 2, %v18730_v27  ;;  %v18769_v57 = vld [vmem:[#allocation330_spill] sm:$0xff] }
 0x672   :  { %v6482_v31 = vpack.c.bf16 %v16580_v56, %v16578_v24  ;;  %v9428_v12 = vrot.slane %v11904_v48, %v14003_v36  ;;  %12759 = vmatpush3.bf16.xpose.msra.mxu1 %v8100_v44  ;;  %v9402_v62 = vrot.slane %v9394_v50, %v14003_v36  ;;  %v9435_v61 = vrot.slane %v9413_v6, %v14003_v36  ;;  %v18768_v50 = vld [vmem:[#allocation333_spill] sm:$0xff] }
 0x673   :  { %v9442_v17 = vrot.slane %v11905_v58, %v14003_v36  ;;  %v10122_v60 = vcombine.low %v18757_v63, %v18756_v53  ;;  %12760 = vmatprep.subr.bf16.mxu1 %v16541_v18  ;;  %v9409_v41 = vrot.slane %v9395_v55, %v14003_v36  ;;  %v16607_v19 = vrot.slane %v16520_v30, %v10634_v3  ;;  %v18770_v3 = vld [vmem:[#allocation334_spill] sm:$0xff] }
 0x674   :  { %v9443_v34 = vcombine.low %v9421_v54, %v9428_v12  ;;  %v10123_v44 = vcombine.low %v18759_v45, %v18758_v33  ;;  %v10171_v39 = vcombine.low %v18761_v15, %v18760_v32  ;;  %v10172_v7 = vcombine.low %v18763_v4, %v18762_v2  ;;  %v18772_v45 = vld [vmem:[#allocation182_spill] sm:$0xff]  ;;  %v18776_v2 = vld [vmem:[#allocation159_spill] sm:$0xff] }
 0x675   :  { %v9444_v20 = vcombine.low %v9435_v61, %v9442_v17  ;;  %v10130_v49 = vrot.slane %v10122_v60, %v14003_v36  ;;  %v9410_v37 = vcombine.low %v9402_v62, %v9409_v41  ;;  %v9460_v52 = vcombine.low %v18765_v38, %v18764_v25  ;;  %v18771_v62 = vld [vmem:[#allocation332_spill] sm:$0xff]  ;;  %v18774_v32 = vld [vmem:[#allocation174_spill] sm:$0xff]  ;;  %v18777_v4 = vld [vmem:[#allocation183_spill] sm:$0xff] }
 0x676   :  { %v9451_v0 = vrot.slane %v9443_v34, %v14003_v36  ;;  %v10137_v26 = vrot.slane %v10123_v44, %v14003_v36  ;;  %v10179_v46 = vrot.slane %v10171_v39, %v14003_v36  ;;  %v10186_v47 = vrot.slane %v10172_v7, %v14003_v36  ;;  %v18773_v44 = vld [vmem:[#allocation166_spill] sm:$0xff] }
 0x677   :  { %v9458_v21 = vrot.slane %v9444_v20, %v14003_v36  ;;  %v11906_v11 = vcombine.high %v18765_v38, %v18764_v25  ;;  %v10646_v28 = vadd.f32 %v16607_v19, %v9410_v37  ;;  %v9462_v14 = vcombine.low %v18767_v23, %v18766_v1  ;;  %v18775_v15 = vld [vmem:[#allocation158_spill] sm:$0xff]  ;;  %v18778_v37 = vld [vmem:[#allocation168_spill] sm:$0xff] }
 0x678   :  { %v10138_v29 = vcombine.low %v10130_v49, %v10137_v26  ;;  %v11907_v10 = vcombine.high %v18767_v23, %v18766_v1  ;;  %v10187_v5 = vcombine.low %v10179_v46, %v10186_v47  ;;  %v9470_v43 = vrot.slane %v9460_v52, %v14003_v36 }
 0x679   :  { %v9459_v51 = vcombine.low %v9451_v0, %v9458_v21  ;;  %v9477_v16 = vrot.slane %v11906_v11, %v14003_v36  ;;  %v9484_v59 = vrot.slane %v9462_v14, %v14003_v36  ;;  %v9509_v9 = vcombine.low %v18769_v57, %v18768_v50  ;;  %v18779_v0 = vld [vmem:[#allocation175_spill] sm:$0xff]  ;;  %v18780_v21 = vld [vmem:[#allocation374_spill] sm:$0xff] }
 0x67a   :  { %v10655_v22 = vadd.f32 %v16533_v42, %v10138_v29  ;;  %v9491_v48 = vrot.slane %v11907_v10, %v14003_v36  ;;  %12761 = vmatpush3.bf16.xpose.msra.mxu1 %v16541_v18  ;;  %v10659_v58 = vadd.f32 %v16533_v42, %v10187_v5  ;;  %v11908_v54 = vcombine.high %v18769_v57, %v18768_v50  ;;  %v18783_v5 = vld [vmem:[#allocation335_spill] sm:$0xff] }
 0x67b   :  { %v10650_v6 = vadd.f32 %v16607_v19, %v9459_v51  ;;  %v9492_v55 = vcombine.low %v9470_v43, %v9477_v16  ;;  %11118 = vmatprep.subr.bf16.mxu1 %v11030_v13  ;;  %v9511_v61 = vcombine.low %v18771_v62, %v18770_v3  ;;  %v11909_v17 = vcombine.high %v18771_v62, %v18770_v3  ;;  %v18782_v51 = vld [vmem:[#allocation337_spill] sm:$0xff] }
 0x67c   :  { %v9493_v12 = vcombine.low %v9484_v59, %v9491_v48  ;;  %v9519_v53 = vrot.slane %v9509_v9, %v14003_v36  ;;  %v11034_v18 = vpack.c.bf16 %v10659_v58, %v10655_v22  ;;  %v9526_v41 = vrot.slane %v11908_v54, %v14003_v36  ;;  %v18784_v59 = vld [vmem:[#allocation339_spill] sm:$0xff]  ;;  %v18785_v48 = vld [vmem:[#allocation336_spill] sm:$0xff]  ;;  %v18786_v62 = vld [vmem:[#allocation341_spill] sm:$0xff] }
 0x67d   :  { %v11029_v63 = vpack.c.bf16 %v10650_v6, %v10646_v28  ;;  %v9500_v60 = vrot.slane %v9492_v55, %v14003_v36  ;;  %v9533_v33 = vrot.slane %v9511_v61, %v14003_v36  ;;  %v9540_v13 = vrot.slane %v11909_v17, %v14003_v36  ;;  %v18787_v61 = vld [vmem:[#allocation338_spill] sm:$0xff] }
 0x67e   :  { %v9507_v34 = vrot.slane %v9493_v12, %v14003_v36  ;;  %v10220_v20 = vcombine.low %v18773_v44, %v18772_v45  ;;  %v9541_v49 = vcombine.low %v9519_v53, %v9526_v41  ;;  %v10221_v39 = vcombine.low %v18775_v15, %v18774_v32  ;;  %v18789_v41 = vld [vmem:[#allocation340_spill] sm:$0xff] }
 0x67f   :  { %v10269_v7 = vcombine.low %v18777_v4, %v18776_v2  ;;  %v10270_v26 = vcombine.low %v18779_v0, %v18778_v37  ;;  %v9542_v38 = vcombine.low %v9533_v33, %v9540_v13  ;;  %v18781_v46 = vcombine.high %v18780_v21, %v18780_v21  ;;  %v18793_v21 = vld [vmem:[#allocation160_spill] sm:$0xff] }
 0x680   :  { %v9508_v25 = vcombine.low %v9500_v60, %v9507_v34  ;;  %v10228_v52 = vrot.slane %v10220_v20, %v14003_v36  ;;  %v9549_v11 = vrot.slane %v9541_v49, %v14003_v36  ;;  %v10235_v28 = vrot.slane %v10221_v39, %v14003_v36  ;;  %v18788_v60 = vld [vmem:[#allocation342_spill] sm:$0xff]  ;;  %v18790_v20 = vld [vmem:[#allocation167_spill] sm:$0xff] }
 0x681   :  { %v5845_v47 = vrot.slane %v18781_v46, %v14003_v36  ;;  %v10277_v29 = vrot.slane %v10269_v7, %v14003_v36  ;;  %v10284_v1 = vrot.slane %v10270_v26, %v14003_v36  ;;  %12763 = vmatmul.mubr.bf16.vlgmr.msra.gmra.mrb[168].mxu1 %v6481_v35  ;;  %v9556_v23 = vrot.slane %v9542_v38, %v14003_v36  ;;  %v18792_v26 = vld [vmem:[#allocation343_spill] sm:$0xff] }
 0x682   :  { %v10654_v14 = vadd.f32 %v16607_v19, %v9508_v25  ;;  %v9558_v43 = vcombine.low %v18783_v5, %v18782_v51  ;;  %12766 = vmatprep.mubr.bf16.mxu1 %v6482_v31  ;;  %11119 = vmatpush1.bf16.msra.mxu1 %v11029_v63  ;;  %v10236_v16 = vcombine.low %v10228_v52, %v10235_v28  ;;  %v18199_v37 = vmov 0  }
 0x683   :  { %v6454_v10 = vrot.slane %v5845_v47, %v14003_v36  ;;  %v10285_v22 = vcombine.low %v10277_v29, %v10284_v1  ;;  %v11910_v40 = vcombine.high %v18783_v5, %v18782_v51  ;;  %11120 = vmatprep.subr.bf16.mxu1 %v11034_v18  ;;  %v9557_v8 = vcombine.low %v9549_v11, %v9556_v23  ;;  %v18795_v47 = vld [vmem:[#allocation184_spill] sm:$0xff]  ;;  %v18797_v29 = vld [vmem:[#allocation169_spill] sm:$0xff] }
 0x684   :  { %v9560_v50 = vcombine.low %v18785_v48, %v18784_v59  ;;  %v11911_v57 = vcombine.high %v18785_v48, %v18784_v59  ;;  %v10663_v24 = vadd.f32 %v16533_v42, %v10236_v16  ;;  %v9568_v31 = vrot.slane %v9558_v43, %v14003_v36  ;;  %v18799_v23 = vld [vmem:[#allocation176_spill] sm:$0xff]  ;;  %11109 = vmatprep.mubr.bf16.mxu0 %v18199_v37  ;;  %v18801_v16 = vld [vmem:[#allocation177_spill] sm:$0xff] }
 0x685   :  { %v6461_v35 = vrot.slane %v6454_v10, %v14003_v36  ;;  %v10667_v56 = vadd.f32 %v16533_v42, %v10285_v22  ;;  %v9575_v9 = vrot.slane %v11910_v40, %v14003_v36  ;;  %v10658_v6 = vadd.f32 %v16607_v19, %v9557_v8  ;;  %v18803_v40 = vld [vmem:[#allocation185_spill] sm:$0xff] }
 0x686   :  { %v9582_v55 = vrot.slane %v9560_v50, %v14003_v36  ;;  %v9589_v54 = vrot.slane %v11911_v57, %v14003_v36  ;;  %v9607_v17 = vcombine.low %v18787_v61, %v18786_v62  ;;  %v11912_v53 = vcombine.high %v18787_v61, %v18786_v62  ;;  %v18809_v62 = vld [vmem:[#allocation186_spill] sm:$0xff] }
 0x687   :  { %v6483_v58 = vpack.c.bf16 %v6461_v35, %v6461_v35  ;;  %v11038_v12 = vpack.c.bf16 %v10667_v56, %v10663_v24  ;;  %v9590_v3 = vcombine.low %v9568_v31, %v9575_v9  ;;  %v11033_v63 = vpack.c.bf16 %v10658_v6, %v10654_v14  ;;  %v18805_v31 = vld [vmem:[#allocation194_spill] sm:$0xff]  ;;  %v18807_v6 = vld [vmem:[#allocation161_spill] sm:$0xff] }
 0x688   :  { %v9591_v18 = vcombine.low %v9582_v55, %v9589_v54  ;;  %v9609_v34 = vcombine.low %v18789_v41, %v18788_v60  ;;  %v11913_v33 = vcombine.high %v18789_v41, %v18788_v60  ;;  %v9617_v45 = vrot.slane %v9607_v17, %v14003_v36  ;;  %v18811_v17 = vld [vmem:[#allocation210_spill] sm:$0xff] }
 0x689   :  { %v9598_v13 = vrot.slane %v9590_v3, %v14003_v36  ;;  %v9624_v44 = vrot.slane %v11912_v53, %v14003_v36  ;;  %v18791_v49 = vrot.slane %v18790_v20, %v14003_v36  ;;  %11121 = vmatpush1.bf16.msra.mxu1 %v11033_v63  ;;  %v16715_v0 = vsel %vm11062_vm0, 65535, %v18199_v37  ;;  %v18815_v41 = vld [vmem:[#allocation202_spill] sm:$0xff] }
 0x68a   :  { %v9605_v15 = vrot.slane %v9591_v18, %v14003_v36  ;;  %v9631_v39 = vrot.slane %v9609_v34, %v14003_v36  ;;  %v9638_v2 = vrot.slane %v11913_v33, %v14003_v36  ;;  %11122 = vmatprep.subr.bf16.mxu1 %v11038_v12  ;;  %12767 = vmatmul.mubr.bf16.gmra.mrb[172].mxu1 %v6483_v58  ;;  %v18813_v18 = vld [vmem:[#allocation195_spill] sm:$0xff] }
 0x68b   :  { %v10299_v32 = vrot.slane %v18791_v49, %v14003_v36  ;;  %v9639_v4 = vcombine.low %v9617_v45, %v9624_v44  ;;  %v9662_v25 = vrot.slane %v18792_v26, %v14003_v36  ;;  %v18794_v46 = vrot.slane %v18793_v21, %v14003_v36  ;;  %11150 = vmatprep.mubr.bf16.mxu1 %v18199_v37  ;;  %v18817_v44 = vld [vmem:[#allocation187_spill] sm:$0xff] }
 0x68c   :  { %v9606_v38 = vcombine.low %v9598_v13, %v9605_v15  ;;  %v9640_v52 = vcombine.low %v9631_v39, %v9638_v2  ;;  %v18796_v11 = vrot.slane %v18795_v47, %v14003_v36  ;;  %v18798_v1 = vrot.slane %v18797_v29, %v14003_v36  ;;  %v18819_v49 = vld [vmem:[#allocation211_spill] sm:$0xff]  ;;  %v18821_v39 = vld [vmem:[#allocation196_spill] sm:$0xff] }
 0x68d   :  { %v10671_v7 = vadd.f32 %v16533_v42, %v10299_v32  ;;  %v18800_v14 = vrot.slane %v18799_v23, %v14003_v36  ;;  %v9647_v51 = vrot.slane %v9639_v4, %v14003_v36  ;;  %v9669_v43 = vrot.slane %v9662_v25, %v14003_v36  ;;  %v18823_v4 = vld [vmem:[#allocation203_spill] sm:$0xff] }
 0x68e   :  { %v10332_v28 = vcombine.low %v18796_v11, %v18794_v46  ;;  %v18802_v22 = vrot.slane %v18801_v16, %v14003_v36  ;;  %v18804_v8 = vrot.slane %v18803_v40, %v14003_v36  ;;  %v9654_v59 = vrot.slane %v9640_v52, %v14003_v36  ;;  %v18829_v16 = vld [vmem:[#allocation197_spill] sm:$0xff]  ;;  %v18831_v40 = vld [vmem:[#allocation188_spill] sm:$0xff]  ;;  %v18979_v37 = vld [vmem:[#allocation307_spill] sm:$0xff] }
 0x68f   :  { %v10333_v10 = vcombine.low %v18800_v14, %v18798_v1  ;;  %v11042_v5 = vpack.c.bf16 %v10671_v7, %v10671_v7  ;;  %v10662_v48 = vadd.f32 %v16607_v19, %v9606_v38  ;;  %v10670_v56 = vadd.f32 %v16607_v19, %v9669_v43  ;;  %v18825_v14 = vld [vmem:[#allocation204_spill] sm:$0xff] }
 0x690   :  { %v10381_v35 = vcombine.low %v18804_v8, %v18802_v22  ;;  %v10340_v50 = vrot.slane %v10332_v28, %v14003_v36  ;;  %v18806_v9 = vrot.slane %v18805_v31, %v14003_v36  ;;  %v18808_v58 = vrot.slane %v18807_v6, %v14003_v36  ;;  %v18837_v6 = vld [vmem:[#allocation198_spill] sm:$0xff] }
 0x691   :  { %v10347_v57 = vrot.slane %v10333_v10, %v14003_v36  ;;  %v11075_v24 = vand.u32 %v16715_v0, %v11042_v5  ;;  %v9655_v12 = vcombine.low %v9647_v51, %v9654_v59  ;;  %v18810_v61 = vrot.slane %v18809_v62, %v14003_v36  ;;  %v18827_v51 = vld [vmem:[#allocation212_spill] sm:$0xff] }
 0x692   :  { %v10382_v55 = vcombine.low %v18808_v58, %v18806_v9  ;;  %v10389_v54 = vrot.slane %v10381_v35, %v14003_v36  ;;  %v18812_v53 = vrot.slane %v18811_v17, %v14003_v36  ;;  %v18814_v60 = vrot.slane %v18813_v18, %v14003_v36 }
 0x693   :  { %v10348_v3 = vcombine.low %v10340_v50, %v10347_v57  ;;  %v18816_v34 = vrot.slane %v18815_v41, %v14003_v36  ;;  %v11041_v13 = vpack.c.bf16 %v10670_v56, %v10670_v56  ;;  %v18818_v20 = vrot.slane %v18817_v44, %v14003_v36  ;;  %v18833_v57 = vld [vmem:[#allocation189_spill] sm:$0xff] }
 0x694   :  { %v10430_v63 = vcombine.low %v18812_v53, %v18810_v61  ;;  %v10396_v45 = vrot.slane %v10382_v55, %v14003_v36  ;;  %v18820_v32 = vrot.slane %v18819_v49, %v14003_v36  ;;  %v18822_v2 = vrot.slane %v18821_v39, %v14003_v36  ;;  %v18835_v56 = vld [vmem:[#allocation213_spill] sm:$0xff] }
 0x695   :  { %v10431_v33 = vcombine.low %v18816_v34, %v18814_v60  ;;  %v18824_v7 = vrot.slane %v18823_v4, %v14003_v36  ;;  %v10666_v38 = vadd.f32 %v16607_v19, %v9655_v12  ;;  %v10675_v52 = vadd.f32 %v16533_v42, %v10348_v3  ;;  %v18838_v3 = vld [vmem:[#allocation205_spill] sm:$0xff] }
 0x696   :  { %v10479_v15 = vcombine.low %v18820_v32, %v18818_v20  ;;  %v10438_v21 = vrot.slane %v10430_v63, %v14003_v36  ;;  %v11072_v47 = vand.u32 %v16715_v0, %v11041_v13  ;;  %v10397_v11 = vcombine.low %v10389_v54, %v10396_v45 }
 0x697   :  { %v10480_v25 = vcombine.low %v18824_v7, %v18822_v2  ;;  %v10445_v46 = vrot.slane %v10431_v33, %v14003_v36  ;;  %v11037_v1 = vpack.c.bf16 %v10666_v38, %v10662_v48  ;;  %v18826_v10 = vrot.slane %v18825_v14, %v14003_v36 }
 0x698   :  { %v10487_v28 = vrot.slane %v10479_v15, %v14003_v36  ;;  %v18828_v5 = vrot.slane %v18827_v51, %v14003_v36  ;;  %v18830_v22 = vrot.slane %v18829_v16, %v14003_v36  ;;  %v18832_v8 = vrot.slane %v18831_v40, %v14003_v36 }
 0x699   :  { %v10494_v29 = vrot.slane %v10480_v25, %v14003_v36  ;;  %v10446_v23 = vcombine.low %v10438_v21, %v10445_v46  ;;  %v10679_v59 = vadd.f32 %v16533_v42, %v10397_v11  ;;  %v18834_v48 = vrot.slane %v18833_v57, %v14003_v36  ;;  %11123 = vmatpush1.bf16.msra.mxu1 %v11037_v1 }
 0x69a   :  { %v10528_v43 = vcombine.low %v18828_v5, %v18826_v10  ;;  %v10529_v35 = vcombine.low %v18832_v8, %v18830_v22  ;;  %v18836_v31 = vrot.slane %v18835_v56, %v14003_v36  ;;  %v10592_v58 = vrot.slane %v18837_v6, %v14003_v36  ;;  %11124 = vmatprep.subr.bf16.mxu1 %v11075_v24 }
 0x69b   :  { %v10495_v50 = vcombine.low %v10487_v28, %v10494_v29  ;;  %v16808_v55 = vadd.f32 %v16533_v42, %v10446_v23  ;;  %v16814_v62 = vadd.f32 %v16533_v42, %v18838_v3  ;;  %v11046_v61 = vpack.c.bf16 %v10679_v59, %v10675_v52 }
 0x69c   :  { %v10577_v9 = vcombine.low %v18836_v31, %v18834_v48  ;;  %v10536_v54 = vrot.slane %v10528_v43, %v14003_v36  ;;  %v10543_v12 = vrot.slane %v10529_v35, %v14003_v36 }
 0x69d   :  { %v16817_v17 = vadd.f32 %v16533_v42, %v10495_v50  ;;  %11125 = vmatpush1.bf16.msra.mxu1 %v11072_v47 }
 0x69e   :  { %v10585_v53 = vrot.slane %v10577_v9, %v14003_v36  ;;  %v10544_v63 = vcombine.low %v10536_v54, %v10543_v12  ;;  %11215 = vmatprep.subr.bf16.mxu1 %v11046_v61 }
 0x6a0   :  { %v10593_v60 = vcombine.low %v10585_v53, %v10592_v58  ;;  %v16823_v41 = vadd.f32 %v16533_v42, %v10544_v63 }
 0x6a2   :  { %v16826_v34 = vadd.f32 %v16533_v42, %v10593_v60 }
 0x736   :  { %v12748_v33 = vpop.f32.mrb[168].mxu0 }
 0x737   :  { %v10734_v13 = vpop.f32.mrb[169].mxu0  ;;  %v10835_v45 = vsel %vm10828_vm1, %v12748_v33, -inf }
 0x738   :  { %10836 = vmax.xlane.f32.xlu1 %v10835_v45  ;;  %v12749_v44 = vpop.f32.mrb[170].mxu0  ;;  %v10829_v20 = vsel %vm10828_vm1, %v10734_v13, -inf }
 0x739   :  { %10830 = vmax.xlane.f32.xlu0 %v10829_v20  ;;  %v10737_v49 = vpop.f32.mrb[171].mxu0  ;;  %v10838_v32 = vsel %vm10828_vm1, %v12749_v44, -inf }
 0x73a   :  { %v10832_v42 = vsel %vm10828_vm1, %v10737_v49, -inf }
 0x73c   :  { %10839 = vmax.xlane.f32.xlu1 %v10838_v32 }
 0x73d   :  { %10833 = vmax.xlane.f32.xlu0 %v10832_v42 }
 0x73f   :  { %v12752_v15 = vpop.f32.mrb[172].mxu0 }
 0x740   :  { %v10750_v39 = vpop.f32.mrb[173].mxu0  ;;  %v10848_v38 = vsel %vm10847_vm2, %v12752_v15, -inf }
 0x741   :  { %v12753_v2 = vpop.f32.mrb[174].mxu0  ;;  %v10841_v4 = vsel %vm10828_vm1, %v10750_v39, -inf }
 0x742   :  { %10842 = vmax.xlane.f32.xlu0 %v10841_v4  ;;  %v10753_v7 = vpop.f32.mrb[175].mxu0 }
 0x743   :  { %v10844_v25 = vsel %vm10828_vm1, %v10753_v7, -inf }
 0x744   :  { %10845 = vmax.xlane.f32.xlu1 %v10844_v25 }
 0x746   :  { %10849 = vmax.xlane.f32.xlu0 %v10848_v38 }
 0x754   :  { %v16837_v52 = vpop.f32.mrb[168].mxu1 }
 0x755   :  { %v16839_v21 = vpop.f32.mrb[169].mxu1  ;;  %v10857_v29 = vsel %vm10828_vm1, %v16837_v52, -inf }
 0x756   :  { %v16841_v46 = vpop.f32.mrb[170].mxu1  ;;  %v10851_v47 = vsel %vm10828_vm1, %v16839_v21, -inf }
 0x757   :  { %v16845_v11 = vpop.f32.mrb[171].mxu1  ;;  %10852 = vmax.xlane.f32.xlu1 %v10851_v47  ;;  %v10860_v1 = vsel %vm10828_vm1, %v16841_v46, -inf }
 0x758   :  { %v10854_v28 = vsel %vm10828_vm1, %v16845_v11, -inf }
 0x759   :  { %10855 = vmax.xlane.f32.xlu0 %v10854_v28 }
 0x75b   :  { %10858 = vmax.xlane.f32.xlu1 %v10857_v29 }
 0x75d   :  { %v16853_v23 = vpop.f32.mrb[172].mxu1  ;;  %10861 = vmax.xlane.f32.xlu0 %v10860_v1 }
 0x75e   :  { %v16855_v14 = vpop.f32.mrb[173].mxu1  ;;  %v10869_v16 = vsel %vm10847_vm2, %v16853_v23, -inf }
 0x75f   :  { %v12769_v10 = vpop.f32.mrb[174].mxu1  ;;  %v10863_v51 = vsel %vm10828_vm1, %v16855_v14, -inf }
 0x760   :  { %v16859_v5 = vpop.f32.mrb[175].mxu1  ;;  %10864 = vmax.xlane.f32.xlu1 %v10863_v51 }
 0x761   :  { %v10866_v43 = vsel %vm10828_vm1, %v16859_v5, -inf }
 0x762   :  { %10867 = vmax.xlane.f32.xlu0 %v10866_v43 }
 0x764   :  { %10870 = vmax.xlane.f32.xlu1 %v10869_v16 }
 0x7c5   :  { %v10837_v22 = vpop.xlane.xlu1 %10836 }
 0x7c6   :  { %v10874_v40 = vsub.f32 %v12748_v33, %v10837_v22  ;;  %v10831_v8 = vpop.xlane.xlu0 %10830 }
 0x7c7   :  { %v10872_v35 = vsub.f32 %v10734_v13, %v10831_v8 }
 0x7c8   :  { %v10890_v59 = vmul.f32 1.442695, %v10874_v40 }
 0x7c9   :  { %v10886_v50 = vmul.f32 1.442695, %v10872_v35  ;;  %v10840_v57 = vpop.xlane.xlu1 %10839 }
 0x7ca   :  { %v10875_v48 = vsub.f32 %v12749_v44, %v10840_v57  ;;  %v10834_v56 = vpop.xlane.xlu0 %10833 }
 0x7cb   :  { %12781 = vpow2.f32 %v10886_v50  ;;  %v10873_v31 = vsub.f32 %v10737_v49, %v10834_v56 }
 0x7cc   :  { %12783 = vpow2.f32 %v10890_v59  ;;  %v10892_v9 = vmul.f32 1.442695, %v10875_v48 }
 0x7cd   :  { %v10888_v6 = vmul.f32 1.442695, %v10873_v31 }
 0x7cf   :  { %v10843_v58 = vpop.xlane.xlu0 %10842  ;;  %12785 = vpow2.f32 %v10888_v6 }
 0x7d0   :  { %v10876_v54 = vsub.f32 %v10750_v39, %v10843_v58  ;;  %12787 = vpow2.f32 %v10892_v9 }
 0x7d1   :  { %v10846_v12 = vpop.xlane.xlu1 %10845 }
 0x7d2   :  { %v10894_v3 = vmul.f32 1.442695, %v10876_v54  ;;  %v10877_v61 = vsub.f32 %v10753_v7, %v10846_v12 }
 0x7d3   :  { %v10850_v53 = vpop.xlane.xlu0 %10849 }
 0x7d4   :  { %12789 = vpow2.f32 %v10894_v3  ;;  %v10896_v63 = vmul.f32 1.442695, %v10877_v61  ;;  %v10878_v60 = vsub.f32 %v12752_v15, %v10850_v53 }
 0x7d5   :  { %v16865_v33 = vpop.eup %12781 }
 0x7d6   :  { %12791 = vpow2.f32 %v10896_v63  ;;  %v10898_v13 = vmul.f32 1.442695, %v10878_v60  ;;  %v10914_v45 = vsel %vm10828_vm1, %v16865_v33, 0.0  ;;  %v16869_v44 = vpop.eup %12783 }
 0x7d7   :  { %10915 = vadd.xlane.f32.xlu0 %v10914_v45  ;;  %v10920_v49 = vsel %vm10828_vm1, %v16869_v44, 0.0  ;;  %v18840_v45 = vld [vmem:[#allocation269_spill] sm:$0xff] }
 0x7d8   :  { %12793 = vpow2.f32 %v10898_v13  ;;  %v18839_v13 = vld [vmem:[#allocation271_spill] sm:$0xff] }
 0x7d9   :  { %v16871_v20 = vpop.eup %12785 }
 0x7da   :  { %v10917_v32 = vsel %vm10828_vm1, %v16871_v20, 0.0  ;;  %v16877_v42 = vpop.eup %12787 }
 0x7db   :  { %10921 = vadd.xlane.f32.xlu0 %v10920_v49  ;;  %10918 = vadd.xlane.f32.xlu1 %v10917_v32  ;;  %v10923_v2 = vsel %vm10828_vm1, %v16877_v42, 0.0  ;;  %v8732_v49 = vcombine.low %v18840_v45, %v18839_v13  ;;  %v11890_v32 = vcombine.high %v18840_v45, %v18839_v13 }
 0x7de   :  { %v16879_v15 = vpop.eup %12789 }
 0x7df   :  { %v10926_v39 = vsel %vm10828_vm1, %v16879_v15, 0.0  ;;  %10924 = vadd.xlane.f32.xlu1 %v10923_v2  ;;  %v18842_v2 = vld [vmem:[#allocation270_spill] sm:$0xff] }
 0x7e0   :  { %v16885_v4 = vpop.eup %12791  ;;  %10927 = vadd.xlane.f32.xlu0 %v10926_v39  ;;  %v18841_v39 = vld [vmem:[#allocation273_spill] sm:$0xff] }
 0x7e1   :  { %v10929_v47 = vsel %vm10828_vm1, %v16885_v4, 0.0 }
 0x7e2   :  { %v16887_v7 = vpop.eup %12793 }
 0x7e3   :  { %v10932_v38 = vsel %vm10847_vm2, %v16887_v7, 0.0  ;;  %10930 = vadd.xlane.f32.xlu1 %v10929_v47  ;;  %v18843_v47 = vld [vmem:[#allocation275_spill] sm:$0xff] }
 0x7e4   :  { %v10853_v25 = vpop.xlane.xlu1 %10852  ;;  %10933 = vadd.xlane.f32.xlu0 %v10932_v38  ;;  %v11891_v38 = vcombine.high %v18842_v2, %v18841_v39 }
 0x7e5   :  { %v10879_v28 = vsub.f32 %v16839_v21, %v10853_v25  ;;  %v8734_v25 = vcombine.low %v18842_v2, %v18841_v39 }
 0x7e6   :  { %v10856_v29 = vpop.xlane.xlu0 %10855 }
 0x7e7   :  { %v10900_v1 = vmul.f32 1.442695, %v10879_v28  ;;  %v10880_v10 = vsub.f32 %v16845_v11, %v10856_v29  ;;  %v18844_v28 = vld [vmem:[#allocation272_spill] sm:$0xff] }
 0x7e8   :  { %v10859_v51 = vpop.xlane.xlu1 %10858  ;;  %v8781_v29 = vcombine.low %v18844_v28, %v18843_v47 }
 0x7e9   :  { %12795 = vpow2.f32 %v10900_v1  ;;  %v10902_v43 = vmul.f32 1.442695, %v10880_v10  ;;  %v10881_v16 = vsub.f32 %v16837_v52, %v10859_v51  ;;  %v11892_v1 = vcombine.high %v18844_v28, %v18843_v47  ;;  %v18845_v10 = vld [vmem:[#allocation276_spill] sm:$0xff]  ;;  %v18846_v51 = vld [vmem:[#allocation274_spill] sm:$0xff] }
 0x7ea   :  { %v10862_v22 = vpop.xlane.xlu0 %10861 }
 0x7eb   :  { %12797 = vpow2.f32 %v10902_v43  ;;  %v10904_v40 = vmul.f32 1.442695, %v10881_v16  ;;  %v10882_v8 = vsub.f32 %v16841_v46, %v10862_v22  ;;  %v8783_v43 = vcombine.low %v18846_v51, %v18845_v10 }
 0x7ec   :  { %v11893_v16 = vcombine.high %v18846_v51, %v18845_v10  ;;  %v8742_v22 = vrot.slane %v8732_v49, %v14003_v36  ;;  %v18852_v10 = vld [vmem:[#allocation222_spill] sm:$0xff] }
 0x7ed   :  { %12799 = vpow2.f32 %v10904_v40  ;;  %v10906_v35 = vmul.f32 1.442695, %v10882_v8  ;;  %v10865_v59 = vpop.xlane.xlu1 %10864  ;;  %v8749_v40 = vrot.slane %v11890_v32, %v14003_v36  ;;  %v8756_v8 = vrot.slane %v8734_v25, %v14003_v36 }
 0x7ee   :  { %v10883_v21 = vsub.f32 %v16855_v14, %v10865_v59  ;;  %v8791_v59 = vrot.slane %v8781_v29, %v14003_v36 }
 0x7ef   :  { %12801 = vpow2.f32 %v10906_v35  ;;  %v10868_v50 = vpop.xlane.xlu0 %10867  ;;  %v8763_v35 = vrot.slane %v11891_v38, %v14003_v36 }
 0x7f0   :  { %v10908_v57 = vmul.f32 1.442695, %v10883_v21  ;;  %v10884_v11 = vsub.f32 %v16859_v5, %v10868_v50  ;;  %v8798_v21 = vrot.slane %v11892_v1, %v14003_v36  ;;  %v8805_v50 = vrot.slane %v8783_v43, %v14003_v36  ;;  %v18851_v1 = vld [vmem:[#allocation225_spill] sm:$0xff] }
 0x7f1   :  { %v10871_v48 = vpop.xlane.xlu1 %10870  ;;  %v8151_v51 = vcombine.low %v18852_v10, %v18851_v1 }
 0x7f2   :  { %12803 = vpow2.f32 %v10908_v57  ;;  %v10910_v56 = vmul.f32 1.442695, %v10884_v11  ;;  %v10885_v52 = vsub.f32 %v16853_v23, %v10871_v48  ;;  %v8812_v57 = vrot.slane %v11893_v16, %v14003_v36 }
 0x7f3   :  { %v16900_v31 = vpop.eup %12795  ;;  %v8764_v11 = vcombine.low %v8742_v22, %v8749_v40  ;;  %v8765_v48 = vcombine.low %v8756_v8, %v8763_v35  ;;  %v11880_v22 = vcombine.high %v18852_v10, %v18851_v1  ;;  %v18853_v40 = vld [vmem:[#allocation226_spill] sm:$0xff]  ;;  %v18854_v8 = vld [vmem:[#allocation224_spill] sm:$0xff] }
 0x7f4   :  { %12805 = vpow2.f32 %v10910_v56  ;;  %v10912_v9 = vmul.f32 1.442695, %v10885_v52  ;;  %v10935_v46 = vsel %vm10828_vm1, %v16900_v31, 0.0  ;;  %v10630_v56 = vsub.s32 1, %v18730_v27  ;;  %v18847_v52 = vld [vmem:[#allocation221_spill] sm:$0xff] }
 0x7f5   :  { %v16904_v6 = vpop.eup %12797  ;;  %10936 = vadd.xlane.f32.xlu1 %v10935_v46  ;;  %v8772_v13 = vrot.slane %v8764_v11, %v14003_v36  ;;  %v8779_v45 = vrot.slane %v8765_v48, %v14003_v36  ;;  %v8153_v35 = vcombine.low %v18854_v8, %v18853_v40 }
 0x7f6   :  { %12807 = vpow2.f32 %v10912_v9  ;;  %v10938_v14 = vsel %vm10828_vm1, %v16904_v6, 0.0  ;;  %v18848_v9 = vld [vmem:[#allocation219_spill] sm:$0xff]  ;;  %v16962_v49 = vrot.slane %v16520_v30, %v10630_v56  ;;  %v8168_v56 = vrot.slane %v11880_v22, %v14003_v36  ;;  %v18860_v22 = vld [vmem:[#allocation280_spill] sm:$0xff] }
 0x7f7   :  { %v16908_v5 = vpop.eup %12799  ;;  %10939 = vadd.xlane.f32.xlu0 %v10938_v14  ;;  %v8102_v46 = vcombine.low %v18848_v9, %v18847_v52  ;;  %v8813_v14 = vcombine.low %v8791_v59, %v8798_v21  ;;  %v8780_v47 = vcombine.low %v8772_v13, %v8779_v45  ;;  %v18857_v45 = vld [vmem:[#allocation281_spill] sm:$0xff] }
 0x7f8   :  { %v10941_v23 = vsel %vm10828_vm1, %v16908_v5, 0.0 }
 0x7f9   :  { %v16912_v58 = vpop.eup %12801  ;;  %10942 = vadd.xlane.f32.xlu1 %v10941_v23  ;;  %v8814_v23 = vcombine.low %v8805_v50, %v8812_v57  ;;  %v8821_v39 = vrot.slane %v8813_v14, %v14003_v36  ;;  %v8112_v25 = vrot.slane %v8102_v46, %v14003_v36  ;;  %v10645_v59 = vadd.f32 %v16962_v49, %v8780_v47 }
 0x7fa   :  { %v10944_v54 = vsel %vm10828_vm1, %v16912_v58, 0.0  ;;  %v11881_v50 = vcombine.high %v18854_v8, %v18853_v40  ;;  %v8161_v57 = vrot.slane %v8151_v51, %v14003_v36  ;;  %v10626_v14 = vsub.s32 0, %v18730_v27 }
 0x7fb   :  { %10945 = vadd.xlane.f32.xlu0 %v10944_v54  ;;  %v11878_v54 = vcombine.high %v18848_v9, %v18847_v52  ;;  %v8828_v2 = vrot.slane %v8814_v23, %v14003_v36  ;;  %v8175_v52 = vrot.slane %v8153_v35, %v14003_v36  ;;  %v18855_v23 = vld [vmem:[#allocation279_spill] sm:$0xff] }
 0x7fc   :  { %v16916_v12 = vpop.eup %12803  ;;  %v8182_v46 = vrot.slane %v11881_v50, %v14003_v36 }
 0x7fd   :  { %v10947_v3 = vsel %vm10828_vm1, %v16916_v12, 0.0  ;;  %v8119_v38 = vrot.slane %v11878_v54, %v14003_v36  ;;  %v8829_v43 = vcombine.low %v8821_v39, %v8828_v2  ;;  %v18856_v54 = vld [vmem:[#allocation277_spill] sm:$0xff] }
 0x7fe   :  { %v16920_v61 = vpop.eup %12805  ;;  %10948 = vadd.xlane.f32.xlu1 %v10947_v3  ;;  %v18849_v3 = vld [vmem:[#allocation223_spill] sm:$0xff]  ;;  %v11894_v13 = vcombine.high %v18856_v54, %v18855_v23 }
 0x7ff   :  { %v10950_v53 = vsel %vm10828_vm1, %v16920_v61, 0.0  ;;  %v8134_v16 = vcombine.low %v8112_v25, %v8119_v38  ;;  %v10649_v11 = vadd.f32 %v16962_v49, %v8829_v43  ;;  %v8184_v25 = vcombine.low %v8175_v52, %v8182_v46  ;;  %v18863_v52 = vld [vmem:[#allocation229_spill] sm:$0xff] }
 0x800   :  { %v16924_v63 = vpop.eup %12807  ;;  %10951 = vadd.xlane.f32.xlu0 %v10950_v53  ;;  %v18850_v53 = vld [vmem:[#allocation220_spill] sm:$0xff]  ;;  %v16996_v38 = vrot.slane %v16520_v30, %v10626_v14  ;;  %v8847_v1 = vrot.slane %v11894_v13, %v14003_v36  ;;  %v18859_v30 = vld [vmem:[#allocation283_spill] sm:$0xff] }
 0x801   :  { %v10953_v60 = vsel %vm10847_vm2, %v16924_v63, 0.0  ;;  %v11879_v32 = vcombine.high %v18850_v53, %v18849_v3  ;;  %v8142_v48 = vrot.slane %v8134_v16, %v14003_v36  ;;  %v8198_v51 = vrot.slane %v8184_v25, %v14003_v36 }
 0x802   :  { %10954 = vadd.xlane.f32.xlu1 %v10953_v60  ;;  %v8104_v60 = vcombine.low %v18850_v53, %v18849_v3  ;;  %v8830_v3 = vcombine.low %v18856_v54, %v18855_v23  ;;  %v11028_v53 = vpack.c.bf16 %v10649_v11, %v10645_v59  ;;  %v8879_v40 = vcombine.low %v18860_v22, %v18859_v30  ;;  %v18861_v59 = vld [vmem:[#allocation284_spill] sm:$0xff] }
 0x803   :  { %v8133_v29 = vrot.slane %v11879_v32, %v14003_v36  ;;  %v18858_v32 = vld [vmem:[#allocation278_spill] sm:$0xff]  ;;  %v11896_v35 = vcombine.high %v18860_v22, %v18859_v30 }
 0x804   :  { %v8126_v28 = vrot.slane %v8104_v60, %v14003_v36  ;;  %v8183_v60 = vcombine.low %v8161_v57, %v8168_v56  ;;  %v8832_v39 = vcombine.low %v18858_v32, %v18857_v45  ;;  %v11895_v47 = vcombine.high %v18858_v32, %v18857_v45  ;;  %11077 = vmatprep.subr.bf16.mxu0 %v11028_v53  ;;  %v18865_v45 = vld [vmem:[#allocation231_spill] sm:$0xff]  ;;  %v18866_v32 = vld [vmem:[#allocation228_spill] sm:$0xff] }
 0x805   :  { %v8889_v56 = vrot.slane %v8879_v40, %v14003_v36  ;;  %v8896_v23 = vrot.slane %v11896_v35, %v14003_v36  ;;  %v18867_v40 = vld [vmem:[#allocation233_spill] sm:$0xff] }
 0x806   :  { %v8135_v21 = vcombine.low %v8126_v28, %v8133_v29  ;;  %v8191_v28 = vrot.slane %v8183_v60, %v14003_v36  ;;  %v8840_v29 = vrot.slane %v8830_v3, %v14003_v36  ;;  %v8854_v10 = vrot.slane %v8832_v39, %v14003_v36 }
 0x807   :  { %v8861_v16 = vrot.slane %v11895_v47, %v14003_v36  ;;  %v8202_v39 = vcombine.low %v18866_v32, %v18865_v45  ;;  %v11883_v47 = vcombine.high %v18866_v32, %v18865_v45 }
 0x808   :  { %v8149_v9 = vrot.slane %v8135_v21, %v14003_v36  ;;  %v8862_v8 = vcombine.low %v8840_v29, %v8847_v1  ;;  %v18862_v21 = vld [vmem:[#allocation282_spill] sm:$0xff]  ;;  %v8199_v11 = vcombine.low %v8191_v28, %v8198_v51 }
 0x809   :  { %v8881_v50 = vcombine.low %v18862_v21, %v18861_v59  ;;  %v11897_v57 = vcombine.high %v18862_v21, %v18861_v59  ;;  %v8224_v51 = vrot.slane %v8202_v39, %v14003_v36  ;;  %v8231_v22 = vrot.slane %v11883_v47, %v14003_v36 }
 0x80a   :  { %v8150_v2 = vcombine.low %v8142_v48, %v8149_v9  ;;  %v8863_v48 = vcombine.low %v8854_v10, %v8861_v16  ;;  %v18864_v9 = vld [vmem:[#allocation227_spill] sm:$0xff]  ;;  %v8870_v14 = vrot.slane %v8862_v8, %v14003_v36  ;;  %v10648_v53 = vadd.f32 %v16996_v38, %v8199_v11  ;;  %v18868_v8 = vld [vmem:[#allocation230_spill] sm:$0xff] }
 0x80b   :  { %v8200_v46 = vcombine.low %v18864_v9, %v18863_v52  ;;  %v8903_v54 = vrot.slane %v8881_v50, %v14003_v36  ;;  %v8910_v3 = vrot.slane %v11897_v57, %v14003_v36  ;;  %v11882_v13 = vcombine.high %v18864_v9, %v18863_v52  ;;  %v18869_v50 = vld [vmem:[#allocation234_spill] sm:$0xff]  ;;  %v18870_v57 = vld [vmem:[#allocation232_spill] sm:$0xff] }
 0x80c   :  { %v10644_v43 = vadd.f32 %v16996_v38, %v8150_v2  ;;  %v8877_v60 = vrot.slane %v8863_v48, %v14003_v36  ;;  %v8911_v2 = vcombine.low %v8889_v56, %v8896_v23  ;;  %v8249_v35 = vcombine.low %v18868_v8, %v18867_v40 }
 0x80d   :  { %v8912_v25 = vcombine.low %v8903_v54, %v8910_v3  ;;  %v8210_v28 = vrot.slane %v8200_v46, %v14003_v36  ;;  %v8217_v10 = vrot.slane %v11882_v13, %v14003_v36  ;;  %v8251_v11 = vcombine.low %v18870_v57, %v18869_v50  ;;  %v18871_v54 = vld [vmem:[#allocation287_spill] sm:$0xff]  ;;  %v18872_v3 = vld [vmem:[#allocation285_spill] sm:$0xff] }
 0x80e   :  { %v11027_v29 = vpack.c.bf16 %v10648_v53, %v10644_v43  ;;  %v8878_v1 = vcombine.low %v8870_v14, %v8877_v60  ;;  %v8919_v16 = vrot.slane %v8911_v2, %v14003_v36  ;;  %v11884_v43 = vcombine.high %v18868_v8, %v18867_v40  ;;  %v18873_v2 = vld [vmem:[#allocation289_spill] sm:$0xff]  ;;  %v18875_v8 = vld [vmem:[#allocation291_spill] sm:$0xff] }
 0x80f   :  { %v8926_v30 = vrot.slane %v8912_v25, %v14003_v36  ;;  %v8232_v21 = vcombine.low %v8210_v28, %v8217_v10  ;;  %v8233_v56 = vcombine.low %v8224_v51, %v8231_v22  ;;  %v11885_v52 = vcombine.high %v18870_v57, %v18869_v50  ;;  %v18874_v25 = vld [vmem:[#allocation286_spill] sm:$0xff] }
 0x810   :  { %11078 = vmatpush1.bf16.msra.mxu0 %v11027_v29  ;;  %v10653_v59 = vadd.f32 %v16962_v49, %v8878_v1  ;;  %v8259_v9 = vrot.slane %v8249_v35, %v14003_v36  ;;  %v8266_v14 = vrot.slane %v11884_v43, %v14003_v36  ;;  %v8273_v23 = vrot.slane %v8251_v11, %v14003_v36  ;;  %v18876_v35 = vld [vmem:[#allocation288_spill] sm:$0xff] }
 0x811   :  { %v8927_v48 = vcombine.low %v8919_v16, %v8926_v30  ;;  %v8240_v46 = vrot.slane %v8232_v21, %v14003_v36  ;;  %v8928_v53 = vcombine.low %v18872_v3, %v18871_v54  ;;  %v8247_v13 = vrot.slane %v8233_v56, %v14003_v36  ;;  %v18878_v56 = vld [vmem:[#allocation290_spill] sm:$0xff] }
 0x812   :  { %v8280_v45 = vrot.slane %v11885_v52, %v14003_v36  ;;  %v11898_v32 = vcombine.high %v18872_v3, %v18871_v54  ;;  %v8281_v39 = vcombine.low %v8259_v9, %v8266_v14  ;;  %v8930_v47 = vcombine.low %v18874_v25, %v18873_v2  ;;  %v18879_v3 = vld [vmem:[#allocation237_spill] sm:$0xff] }
 0x813   :  { %v10657_v60 = vadd.f32 %v16962_v49, %v8927_v48  ;;  %v11899_v28 = vcombine.high %v18874_v25, %v18873_v2  ;;  %v8938_v29 = vrot.slane %v8928_v53, %v14003_v36  ;;  %v8248_v10 = vcombine.low %v8240_v46, %v8247_v13  ;;  %v18877_v48 = vld [vmem:[#allocation292_spill] sm:$0xff]  ;;  %v18880_v53 = vld [vmem:[#allocation235_spill] sm:$0xff] }
 0x814   :  { %v8282_v51 = vcombine.low %v8273_v23, %v8280_v45  ;;  %v8945_v16 = vrot.slane %v11898_v32, %v14003_v36  ;;  %v8289_v30 = vrot.slane %v8281_v39, %v14003_v36  ;;  %v8952_v22 = vrot.slane %v8930_v47, %v14003_v36  ;;  %v18881_v47 = vld [vmem:[#allocation239_spill] sm:$0xff] }
 0x815   :  { %v11032_v1 = vpack.c.bf16 %v10657_v60, %v10653_v59  ;;  %v8959_v40 = vrot.slane %v11899_v28, %v14003_v36  ;;  %v8977_v21 = vcombine.low %v18876_v35, %v18875_v8  ;;  %v10652_v50 = vadd.f32 %v16996_v38, %v8248_v10  ;;  %v18882_v28 = vld [vmem:[#allocation236_spill] sm:$0xff] }
 0x816   :  { %v8296_v43 = vrot.slane %v8282_v51, %v14003_v36  ;;  %v8960_v57 = vcombine.low %v8938_v29, %v8945_v16  ;;  %v11900_v59 = vcombine.high %v18876_v35, %v18875_v8  ;;  %v8979_v52 = vcombine.low %v18878_v56, %v18877_v48 }
 0x817   :  { %11079 = vmatprep.subr.bf16.mxu0 %v11032_v1  ;;  %v8961_v11 = vcombine.low %v8952_v22, %v8959_v40  ;;  %v11901_v9 = vcombine.high %v18878_v56, %v18877_v48  ;;  %v8987_v46 = vrot.slane %v8977_v21, %v14003_v36  ;;  %v8298_v60 = vcombine.low %v18880_v53, %v18879_v3 }
 0x818   :  { %v8297_v14 = vcombine.low %v8289_v30, %v8296_v43  ;;  %v8968_v23 = vrot.slane %v8960_v57, %v14003_v36  ;;  %v8994_v54 = vrot.slane %v11900_v59, %v14003_v36  ;;  %v9001_v45 = vrot.slane %v8979_v52, %v14003_v36  ;;  %v18883_v59 = vld [vmem:[#allocation241_spill] sm:$0xff] }
 0x819   :  { %v8975_v13 = vrot.slane %v8961_v11, %v14003_v36  ;;  %v9008_v32 = vrot.slane %v11901_v9, %v14003_v36  ;;  %v11886_v39 = vcombine.high %v18880_v53, %v18879_v3  ;;  %v8300_v29 = vcombine.low %v18882_v28, %v18881_v47  ;;  %v18884_v11 = vld [vmem:[#allocation238_spill] sm:$0xff]  ;;  %v18886_v9 = vld [vmem:[#allocation240_spill] sm:$0xff]  ;;  %v18887_v53 = vld [vmem:[#allocation293_spill] sm:$0xff] }
 0x81a   :  { %v10656_v2 = vadd.f32 %v16996_v38, %v8297_v14  ;;  %v9009_v25 = vcombine.low %v8987_v46, %v8994_v54  ;;  %v11887_v1 = vcombine.high %v18882_v28, %v18881_v47  ;;  %v8308_v16 = vrot.slane %v8298_v60, %v14003_v36  ;;  %v18888_v47 = vld [vmem:[#allocation243_spill] sm:$0xff] }
 0x81b   :  { %v8976_v10 = vcombine.low %v8968_v23, %v8975_v13  ;;  %v9010_v51 = vcombine.low %v9001_v45, %v9008_v32  ;;  %v8315_v30 = vrot.slane %v11886_v39, %v14003_v36  ;;  %v8322_v8 = vrot.slane %v8300_v29, %v14003_v36 }
 0x81c   :  { %v11031_v22 = vpack.c.bf16 %v10656_v2, %v10652_v50  ;;  %v9017_v40 = vrot.slane %v9009_v25, %v14003_v36  ;;  %v8329_v35 = vrot.slane %v11887_v1, %v14003_v36  ;;  %v8347_v48 = vcombine.low %v18884_v11, %v18883_v59  ;;  %v18885_v50 = vld [vmem:[#allocation242_spill] sm:$0xff] }
 0x81d   :  { %v9024_v21 = vrot.slane %v9010_v51, %v14003_v36  ;;  %v10661_v43 = vadd.f32 %v16962_v49, %v8976_v10  ;;  %v8330_v57 = vcombine.low %v8308_v16, %v8315_v30  ;;  %v11888_v52 = vcombine.high %v18884_v11, %v18883_v59  ;;  %v18891_v11 = vld [vmem:[#allocation345_spill] sm:$0xff] }
 0x81e   :  { %11080 = vmatpush1.bf16.msra.mxu0 %v11031_v22  ;;  %v8331_v56 = vcombine.low %v8322_v8, %v8329_v35  ;;  %v8349_v46 = vcombine.low %v18886_v9, %v18885_v50  ;;  %v11889_v14 = vcombine.high %v18886_v9, %v18885_v50  ;;  %v8357_v3 = vrot.slane %v8347_v48, %v14003_v36  ;;  %v18890_v35 = vld [vmem:[#allocation346_spill] sm:$0xff] }
 0x81f   :  { %v9025_v23 = vcombine.low %v9017_v40, %v9024_v21  ;;  %v8338_v54 = vrot.slane %v8330_v57, %v14003_v36  ;;  %v9032_v60 = vrot.slane %v18887_v53, %v14003_v36  ;;  %v8364_v45 = vrot.slane %v11888_v52, %v14003_v36  ;;  %v18894_v52 = vld [vmem:[#allocation349_spill] sm:$0xff] }
 0x820   :  { %v8345_v13 = vrot.slane %v8331_v56, %v14003_v36  ;;  %v8371_v32 = vrot.slane %v8349_v46, %v14003_v36  ;;  %v8378_v39 = vrot.slane %v11889_v14, %v14003_v36  ;;  %v8402_v28 = vrot.slane %v18888_v47, %v14003_v36 }
 0x821   :  { %v10665_v2 = vadd.f32 %v16962_v49, %v9025_v23  ;;  %v9039_v25 = vrot.slane %v9032_v60, %v14003_v36  ;;  %v8379_v1 = vcombine.low %v8357_v3, %v8364_v45  ;;  %v18889_v8 = vcombine.high %v18792_v26, %v18792_v26  ;;  %v18895_v26 = vld [vmem:[#allocation344_spill] sm:$0xff] }
 0x822   :  { %v8346_v29 = vcombine.low %v8338_v54, %v8345_v13  ;;  %v8380_v10 = vcombine.low %v8371_v32, %v8378_v39  ;;  %v8409_v30 = vrot.slane %v8402_v28, %v14003_v36  ;;  %v18893_v56 = vcombine.high %v18891_v11, %v18891_v11  ;;  %v18898_v3 = vld [vmem:[#allocation348_spill] sm:$0xff]  ;;  %v18899_v13 = vld [vmem:[#allocation347_spill] sm:$0xff]  ;;  %v18902_v28 = vld [vmem:[#allocation350_spill] sm:$0xff] }
 0x823   :  { %v11036_v51 = vpack.c.bf16 %v10665_v2, %v10661_v43  ;;  %v10669_v16 = vadd.f32 %v16962_v49, %v9039_v25  ;;  %v8387_v22 = vrot.slane %v8379_v1, %v14003_v36  ;;  %v9670_v21 = vcombine.low %v18890_v35, %v18889_v8  ;;  %v18903_v1 = vld [vmem:[#allocation351_spill] sm:$0xff] }
 0x824   :  { %v8394_v40 = vrot.slane %v8380_v10, %v14003_v36  ;;  %v10668_v59 = vadd.f32 %v16996_v38, %v8409_v30  ;;  %v18892_v43 = vcombine.high %v18890_v35, %v18890_v35  ;;  %v9672_v50 = vcombine.low %v18894_v52, %v18893_v56 }
 0x825   :  { %11081 = vmatprep.subr.bf16.mxu0 %v11036_v51  ;;  %v11040_v57 = vpack.c.bf16 %v10669_v16, %v10669_v16  ;;  %v10660_v46 = vadd.f32 %v16996_v38, %v8346_v29  ;;  %v18896_v14 = vcombine.high %v18894_v52, %v18894_v52  ;;  %v18897_v54 = vcombine.high %v18895_v26, %v18895_v26  ;;  %v18906_v52 = vld [vmem:[#allocation353_spill] sm:$0xff] }
 0x826   :  { %v9671_v48 = vcombine.low %v18892_v43, %v18891_v11  ;;  %v8395_v9 = vcombine.low %v8387_v22, %v8394_v40  ;;  %v18900_v45 = vcombine.high %v18898_v3, %v18898_v3  ;;  %v11039_v2 = vpack.c.bf16 %v10668_v59, %v10668_v59 }
 0x827   :  { %v9673_v23 = vcombine.low %v18896_v14, %v18895_v26  ;;  %v9719_v60 = vcombine.low %v18898_v3, %v18897_v54  ;;  %v18901_v25 = vcombine.high %v18899_v13, %v18899_v13  ;;  %v18904_v10 = vcombine.high %v18902_v28, %v18902_v28  ;;  %v18910_v14 = vld [vmem:[#allocation355_spill] sm:$0xff]  ;;  %v18911_v54 = vld [vmem:[#allocation354_spill] sm:$0xff] }
 0x828   :  { %v9720_v32 = vcombine.low %v18900_v45, %v18899_v13  ;;  %v10664_v39 = vadd.f32 %v16996_v38, %v8395_v9  ;;  %v11069_v16 = vand.u32 %v16715_v0, %v11040_v57  ;;  %v9680_v30 = vrot.slane %v9670_v21, %v14003_v36 }
 0x829   :  { %v9721_v29 = vcombine.low %v18902_v28, %v18901_v25  ;;  %v9722_v51 = vcombine.low %v18904_v10, %v18903_v1  ;;  %v9687_v22 = vrot.slane %v9671_v48, %v14003_v36  ;;  %v9694_v40 = vrot.slane %v9672_v50, %v14003_v36  ;;  %v18907_v50 = vld [vmem:[#allocation352_spill] sm:$0xff] }
 0x82a   :  { %v11035_v8 = vpack.c.bf16 %v10664_v39, %v10660_v46  ;;  %v9701_v35 = vrot.slane %v9673_v23, %v14003_v36  ;;  %v9729_v59 = vrot.slane %v9719_v60, %v14003_v36  ;;  %v9736_v11 = vrot.slane %v9720_v32, %v14003_v36  ;;  %v18914_v32 = vld [vmem:[#allocation357_spill] sm:$0xff]  ;;  %v18915_v28 = vld [vmem:[#allocation356_spill] sm:$0xff] }
 0x82b   :  { %v9743_v43 = vrot.slane %v9721_v29, %v14003_v36  ;;  %v9750_v56 = vrot.slane %v9722_v51, %v14003_v36  ;;  %v18905_v57 = vcombine.high %v18903_v1, %v18903_v1  ;;  %v11066_v48 = vand.u32 %v16715_v0, %v11039_v2 }
 0x82c   :  { %11082 = vmatpush1.bf16.msra.mxu0 %v11035_v8  ;;  %v18908_v9 = vcombine.high %v18906_v52, %v18906_v52  ;;  %v18909_v26 = vcombine.high %v18907_v50, %v18907_v50  ;;  %v18912_v3 = vcombine.high %v18910_v14, %v18910_v14  ;;  %v9702_v13 = vcombine.low %v9680_v30, %v9687_v22  ;;  %v18919_v22 = vld [vmem:[#allocation358_spill] sm:$0xff] }
 0x82d   :  { %v9768_v21 = vcombine.low %v18906_v52, %v18905_v57  ;;  %11083 = vmatprep.subr.bf16.mxu0 %v11069_v16  ;;  %v18913_v45 = vcombine.high %v18911_v54, %v18911_v54  ;;  %v9703_v2 = vcombine.low %v9694_v40, %v9701_v35  ;;  %v9751_v25 = vcombine.low %v9729_v59, %v9736_v11  ;;  %v18918_v16 = vld [vmem:[#allocation359_spill] sm:$0xff] }
 0x82e   :  { %v9769_v46 = vcombine.low %v18908_v9, %v18907_v50  ;;  %v9770_v23 = vcombine.low %v18910_v14, %v18909_v26  ;;  %v9771_v60 = vcombine.low %v18912_v3, %v18911_v54  ;;  %v18916_v29 = vcombine.high %v18914_v32, %v18914_v32  ;;  %v18923_v26 = vld [vmem:[#allocation295_spill] sm:$0xff] }
 0x82f   :  { %v9817_v39 = vcombine.low %v18914_v32, %v18913_v45  ;;  %v9752_v10 = vcombine.low %v9743_v43, %v9750_v56  ;;  %v9778_v51 = vrot.slane %v9768_v21, %v14003_v36  ;;  %v18917_v8 = vcombine.high %v18915_v28, %v18915_v28  ;;  %v18922_v43 = vld [vmem:[#allocation296_spill] sm:$0xff]  ;;  %v18926_v3 = vld [vmem:[#allocation299_spill] sm:$0xff]  ;;  %v18927_v45 = vld [vmem:[#allocation294_spill] sm:$0xff] }
 0x830   :  { %v9818_v1 = vcombine.low %v18916_v29, %v18915_v28  ;;  %v18920_v57 = vcombine.high %v18918_v16, %v18918_v16  ;;  %11084 = vmatpush1.bf16.msra.mxu0 %v11066_v48  ;;  %v9785_v40 = vrot.slane %v9769_v46, %v14003_v36  ;;  %v9792_v35 = vrot.slane %v9770_v23, %v14003_v36 }
 0x831   :  { %v9819_v30 = vcombine.low %v18918_v16, %v18917_v8  ;;  %v9799_v59 = vrot.slane %v9771_v60, %v14003_v36  ;;  %v18921_v11 = vcombine.high %v18887_v53, %v18887_v53  ;;  %v9710_v21 = vrot.slane %v9702_v13, %v14003_v36 }
 0x832   :  { %v9820_v52 = vcombine.low %v18920_v57, %v18919_v22  ;;  %v9827_v50 = vrot.slane %v9817_v39, %v14003_v36  ;;  %v9834_v9 = vrot.slane %v9818_v1, %v14003_v36  ;;  %v18924_v48 = vcombine.high %v18922_v43, %v18922_v43 }
 0x833   :  { %v9040_v56 = vcombine.low %v18922_v43, %v18921_v11  ;;  %v9717_v14 = vrot.slane %v9703_v2, %v14003_v36  ;;  %v9841_v23 = vrot.slane %v9819_v30, %v14003_v36  ;;  %v18925_v53 = vcombine.high %v18923_v26, %v18923_v26  ;;  %v18930_v11 = vld [vmem:[#allocation298_spill] sm:$0xff] }
 0x834   :  { %v9041_v46 = vcombine.low %v18924_v48, %v18923_v26  ;;  %v9848_v54 = vrot.slane %v9820_v52, %v14003_v36  ;;  %v9759_v13 = vrot.slane %v9751_v25, %v14003_v36  ;;  %v18928_v32 = vcombine.high %v18926_v3, %v18926_v3  ;;  %v18931_v48 = vld [vmem:[#allocation297_spill] sm:$0xff] }
 0x835   :  { %v9042_v60 = vcombine.low %v18926_v3, %v18925_v53  ;;  %v9050_v28 = vrot.slane %v9040_v56, %v14003_v36  ;;  %v9766_v29 = vrot.slane %v9752_v10, %v14003_v36  ;;  %v9800_v1 = vcombine.low %v9778_v51, %v9785_v40  ;;  %v18934_v51 = vld [vmem:[#allocation300_spill] sm:$0xff] }
 0x836   :  { %v9043_v39 = vcombine.low %v18928_v32, %v18927_v45  ;;  %v9057_v2 = vrot.slane %v9041_v46, %v14003_v36  ;;  %v9801_v8 = vcombine.low %v9792_v35, %v9799_v59  ;;  %v9849_v30 = vcombine.low %v9827_v50, %v9834_v9  ;;  %v18935_v35 = vld [vmem:[#allocation301_spill] sm:$0xff] }
 0x837   :  { %v9064_v16 = vrot.slane %v9042_v60, %v14003_v36  ;;  %v18929_v25 = vcombine.high %v18927_v45, %v18927_v45  ;;  %v9850_v26 = vcombine.low %v9841_v23, %v9848_v54  ;;  %v18932_v56 = vcombine.high %v18930_v11, %v18930_v11 }
 0x838   :  { %v9071_v57 = vrot.slane %v9043_v39, %v14003_v36  ;;  %v9072_v52 = vcombine.low %v9050_v28, %v9057_v2  ;;  %v18933_v10 = vcombine.high %v18931_v48, %v18931_v48  ;;  %v18936_v59 = vcombine.high %v18934_v51, %v18934_v51 }
 0x839   :  { %v9089_v43 = vcombine.low %v18930_v11, %v18929_v25  ;;  %v9090_v46 = vcombine.low %v18932_v56, %v18931_v48  ;;  %v9718_v9 = vcombine.low %v9710_v21, %v9717_v14  ;;  %v9767_v54 = vcombine.low %v9759_v13, %v9766_v29  ;;  %v18938_v29 = vld [vmem:[#allocation361_spill] sm:$0xff]  ;;  %v18939_v11 = vld [vmem:[#allocation360_spill] sm:$0xff]  ;;  %v18943_v56 = vld [vmem:[#allocation363_spill] sm:$0xff] }
 0x83a   :  { %v9091_v40 = vcombine.low %v18934_v51, %v18933_v10  ;;  %v9092_v50 = vcombine.low %v18936_v59, %v18935_v35  ;;  %v9073_v53 = vcombine.low %v9064_v16, %v9071_v57  ;;  %v9080_v3 = vrot.slane %v9072_v52, %v14003_v36 }
 0x83b   :  { %v9099_v23 = vrot.slane %v9089_v43, %v14003_v36  ;;  %v9106_v60 = vrot.slane %v9090_v46, %v14003_v36  ;;  %v9808_v39 = vrot.slane %v9800_v1, %v14003_v36  ;;  %v9815_v28 = vrot.slane %v9801_v8, %v14003_v36 }
 0x83c   :  { %v9113_v45 = vrot.slane %v9091_v40, %v14003_v36  ;;  %v9120_v32 = vrot.slane %v9092_v50, %v14003_v36  ;;  %v9857_v2 = vrot.slane %v9849_v30, %v14003_v36  ;;  %v9087_v21 = vrot.slane %v9073_v53, %v14003_v36  ;;  %v18942_v30 = vld [vmem:[#allocation362_spill] sm:$0xff] }
 0x83d   :  { %v9864_v14 = vrot.slane %v9850_v26, %v14003_v36  ;;  %v9121_v16 = vcombine.low %v9099_v23, %v9106_v60  ;;  %v18937_v13 = vcombine.high %v18919_v22, %v18919_v22  ;;  %v18940_v1 = vcombine.high %v18938_v29, %v18938_v29 }
 0x83e   :  { %v9122_v57 = vcombine.low %v9113_v45, %v9120_v32  ;;  %v9088_v25 = vcombine.low %v9080_v3, %v9087_v21  ;;  %v18941_v8 = vcombine.high %v18939_v11, %v18939_v11  ;;  %v18944_v26 = vcombine.high %v18942_v30, %v18942_v30  ;;  %v18946_v21 = vld [vmem:[#allocation365_spill] sm:$0xff] }
 0x83f   :  { %v9866_v52 = vcombine.low %v18938_v29, %v18937_v13  ;;  %v9867_v43 = vcombine.low %v18940_v1, %v18939_v11  ;;  %v9129_v22 = vrot.slane %v9121_v16, %v14003_v36  ;;  %v17275_v51 = vadd.f32 %v16607_v19, %v9718_v9  ;;  %v18951_v29 = vld [vmem:[#allocation245_spill] sm:$0xff] }
 0x840   :  { %v9868_v48 = vcombine.low %v18942_v30, %v18941_v8  ;;  %v9869_v46 = vcombine.low %v18944_v26, %v18943_v56  ;;  %v9136_v10 = vrot.slane %v9122_v57, %v14003_v36  ;;  %v17278_v40 = vadd.f32 %v16607_v19, %v9767_v54  ;;  %v18950_v57 = vld [vmem:[#allocation246_spill] sm:$0xff]  ;;  %v18954_v8 = vld [vmem:[#allocation367_spill] sm:$0xff] }
 0x841   :  { %v9816_v59 = vcombine.low %v9808_v39, %v9815_v28  ;;  %v9865_v50 = vcombine.low %v9857_v2, %v9864_v14  ;;  %v10673_v3 = vadd.f32 %v16962_v49, %v9088_v25  ;;  %v9876_v23 = vrot.slane %v9866_v52, %v14003_v36  ;;  %v18947_v39 = vld [vmem:[#allocation364_spill] sm:$0xff] }
 0x842   :  { %v9137_v53 = vcombine.low %v9129_v22, %v9136_v10  ;;  %v9883_v60 = vrot.slane %v9867_v43, %v14003_v36  ;;  %v9890_v45 = vrot.slane %v9868_v48, %v14003_v36  ;;  %v9897_v32 = vrot.slane %v9869_v46, %v14003_v36  ;;  %v18955_v48 = vld [vmem:[#allocation366_spill] sm:$0xff] }
 0x843   :  { %v18945_v9 = vcombine.high %v18943_v56, %v18943_v56  ;;  %v18948_v28 = vcombine.high %v18946_v21, %v18946_v21  ;;  %v18949_v14 = vcombine.high %v18888_v47, %v18888_v47  ;;  %v18952_v52 = vcombine.high %v18950_v57, %v18950_v57 }
 0x844   :  { %v10677_v54 = vadd.f32 %v16962_v49, %v9137_v53  ;;  %v17305_v1 = vadd.f32 %v16607_v19, %v9816_v59  ;;  %v18953_v43 = vcombine.high %v18947_v39, %v18947_v39  ;;  %v18956_v47 = vrot.slane %v18955_v48, %v14003_v36  ;;  %v18959_v59 = vld [vmem:[#allocation249_spill] sm:$0xff]  ;;  %v18967_v48 = vld [vmem:[#allocation250_spill] sm:$0xff] }
 0x845   :  { %v9915_v16 = vcombine.low %v18946_v21, %v18945_v9  ;;  %v9916_v2 = vcombine.low %v18948_v28, %v18947_v39  ;;  %v8410_v13 = vcombine.low %v18950_v57, %v18949_v14  ;;  %v8411_v25 = vcombine.low %v18952_v52, %v18951_v29  ;;  %v18960_v9 = vld [vmem:[#allocation244_spill] sm:$0xff] }
 0x846   :  { %v9917_v30 = vcombine.low %v18954_v8, %v18953_v43  ;;  %v18957_v56 = vcombine.high %v18954_v8, %v18954_v8  ;;  %v17318_v46 = vadd.f32 %v16607_v19, %v9865_v50  ;;  %v11044_v22 = vpack.c.bf16 %v10677_v54, %v10673_v3  ;;  %v18963_v3 = vld [vmem:[#allocation248_spill] sm:$0xff]  ;;  %v18964_v8 = vld [vmem:[#allocation247_spill] sm:$0xff] }
 0x847   :  { %v18958_v10 = vcombine.high %v18951_v29, %v18951_v29  ;;  %v18961_v21 = vcombine.high %v18959_v59, %v18959_v59  ;;  %v17328_v28 = vcombine.low %v9876_v23, %v9883_v60  ;;  %v17330_v14 = vcombine.low %v9890_v45, %v9897_v32 }
 0x848   :  { %v9918_v26 = vcombine.low %v18957_v56, %v18956_v47  ;;  %v9925_v57 = vrot.slane %v9915_v16, %v14003_v36  ;;  %v18962_v50 = vcombine.high %v18960_v9, %v18960_v9  ;;  %11174 = vmatprep.subr.bf16.mxu0 %v11044_v22  ;;  %v9932_v29 = vrot.slane %v9916_v2, %v14003_v36  ;;  %v18968_v56 = vld [vmem:[#allocation251_spill] sm:$0xff] }
 0x849   :  { %v8412_v53 = vcombine.low %v18959_v59, %v18958_v10  ;;  %v8413_v39 = vcombine.low %v18961_v21, %v18960_v9  ;;  %v8420_v52 = vrot.slane %v8410_v13, %v14003_v36  ;;  %v8427_v43 = vrot.slane %v8411_v25, %v14003_v36 }
 0x84a   :  { %v8459_v54 = vcombine.low %v18963_v3, %v18962_v50  ;;  %v18965_v23 = vcombine.high %v18963_v3, %v18963_v3  ;;  %v9939_v45 = vrot.slane %v9917_v30, %v14003_v36  ;;  %v9946_v32 = vrot.slane %v9918_v26, %v14003_v36  ;;  %v18971_v26 = vld [vmem:[#allocation303_spill] sm:$0xff]  ;;  %v18972_v3 = vld [vmem:[#allocation302_spill] sm:$0xff] }
 0x84b   :  { %v18966_v16 = vcombine.high %v18964_v8, %v18964_v8  ;;  %v18969_v2 = vcombine.high %v18967_v48, %v18967_v48  ;;  %v8434_v25 = vrot.slane %v8412_v53, %v14003_v36  ;;  %v8441_v22 = vrot.slane %v8413_v39, %v14003_v36 }
 0x84c   :  { %v8460_v60 = vcombine.low %v18965_v23, %v18964_v8  ;;  %v8469_v10 = vrot.slane %v8459_v54, %v14003_v36  ;;  %v18970_v30 = vcombine.high %v18935_v35, %v18935_v35  ;;  %v18973_v8 = vcombine.high %v18971_v26, %v18971_v26 }
 0x84d   :  { %v8461_v47 = vcombine.low %v18967_v48, %v18966_v16  ;;  %v8462_v13 = vcombine.low %v18969_v2, %v18968_v56  ;;  %v9906_v39 = vrot.slane %v17328_v28, %v14003_v36  ;;  %v8442_v54 = vcombine.low %v8420_v52, %v8427_v43  ;;  %v18975_v16 = vld [vmem:[#allocation305_spill] sm:$0xff] }
 0x84e   :  { %v9138_v59 = vcombine.low %v18971_v26, %v18970_v30  ;;  %v8476_v9 = vrot.slane %v8460_v60, %v14003_v36  ;;  %v9139_v53 = vcombine.low %v18973_v8, %v18972_v3  ;;  %v18974_v35 = vcombine.high %v18972_v3, %v18972_v3  ;;  %v18976_v60 = vld [vmem:[#allocation304_spill] sm:$0xff] }
 0x84f   :  { %v8483_v21 = vrot.slane %v8461_v47, %v14003_v36  ;;  %v8490_v50 = vrot.slane %v8462_v13, %v14003_v36  ;;  %v18977_v47 = vcombine.high %v18975_v16, %v18975_v16  ;;  %v9913_v13 = vrot.slane %v17330_v14, %v14003_v36 }
 0x850   :  { %v9140_v48 = vcombine.low %v18975_v16, %v18974_v35  ;;  %v17380_v30 = vcombine.low %v9925_v57, %v9932_v29  ;;  %v17382_v26 = vcombine.low %v9939_v45, %v9946_v32  ;;  %v9148_v8 = vrot.slane %v9138_v59, %v14003_v36  ;;  %v18980_v59 = vld [vmem:[#allocation306_spill] sm:$0xff] }
 0x851   :  { %v9141_v2 = vcombine.low %v18977_v47, %v18976_v60  ;;  %v8443_v52 = vcombine.low %v8434_v25, %v8441_v22  ;;  %v9155_v43 = vrot.slane %v9139_v53, %v14003_v36  ;;  %v8491_v35 = vcombine.low %v8469_v10, %v8476_v9  ;;  %v18983_v9 = vld [vmem:[#allocation309_spill] sm:$0xff] }
 0x852   :  { %v9162_v3 = vrot.slane %v9140_v48, %v14003_v36  ;;  %v8492_v24 = vcombine.low %v8483_v21, %v8490_v50  ;;  %v18978_v47 = vcombine.high %v18976_v60, %v18976_v60  ;;  %v8450_v32 = vrot.slane %v8442_v54, %v14003_v36  ;;  %v18984_v50 = vld [vmem:[#allocation308_spill] sm:$0xff] }
 0x853   :  { %v9169_v16 = vrot.slane %v9141_v2, %v14003_v36  ;;  %v18981_v25 = vcombine.high %v18979_v37, %v18979_v37  ;;  %v18982_v10 = vcombine.high %v18980_v59, %v18980_v59  ;;  %v18985_v53 = vcombine.high %v18983_v9, %v18983_v9 }
 0x854   :  { %v9187_v57 = vcombine.low %v18979_v37, %v18978_v47  ;;  %v9170_v48 = vcombine.low %v9148_v8, %v9155_v43  ;;  %v8457_v2 = vrot.slane %v8443_v52, %v14003_v36  ;;  %v18987_v8 = vld [vmem:[#allocation253_spill] sm:$0xff] }
 0x855   :  { %v9188_v22 = vcombine.low %v18981_v25, %v18980_v59  ;;  %v9189_v21 = vcombine.low %v18983_v9, %v18982_v10  ;;  %v9171_v60 = vcombine.low %v9162_v3, %v9169_v16  ;;  %v8499_v59 = vrot.slane %v8491_v35, %v14003_v36  ;;  %v18991_v9 = vld [vmem:[#allocation255_spill] sm:$0xff] }
 0x856   :  { %v9197_v54 = vrot.slane %v9187_v57, %v14003_v36  ;;  %v8506_v25 = vrot.slane %v8492_v24, %v14003_v36  ;;  %v18989_v52 = vcombine.high %v18987_v8, %v18987_v8 }
 0x857   :  { %v9204_v37 = vrot.slane %v9188_v22, %v14003_v36  ;;  %v9211_v47 = vrot.slane %v9189_v21, %v14003_v36  ;;  %v18992_v21 = vld [vmem:[#allocation254_spill] sm:$0xff] }
 0x858   :  { %v8507_v11 = vcombine.low %v8499_v59, %v8506_v25  ;;  %v18999_v25 = vld [vmem:[#allocation258_spill] sm:$0xff] }
 0x859   :  { %v9219_v57 = vcombine.low %v9197_v54, %v9204_v37  ;;  %v9185_v54 = vrot.slane %v9171_v60, %v14003_v36 }
 0x864   :  { %v10916_v23 = vpop.xlane.xlu0 %10915 }
 0x865   :  { %12809 = vrcp.f32 %v10916_v23  ;;  %v9190_v23 = vcombine.low %v18985_v53, %v18984_v50  ;;  %v18993_v53 = vcombine.high %v18991_v9, %v18991_v9 }
 0x867   :  { %v9218_v10 = vrot.slane %v9190_v23, %v14003_v36  ;;  %v9178_v23 = vrot.slane %v9170_v48, %v14003_v36 }
 0x868   :  { %v10922_v29 = vpop.xlane.xlu0 %10921  ;;  %v10919_v45 = vpop.xlane.xlu1 %10918 }
 0x869   :  { %12811 = vrcp.f32 %v10922_v29  ;;  %v18986_v29 = vcombine.high %v18968_v56, %v18968_v56  ;;  %v8511_v56 = vcombine.low %v18993_v53, %v18992_v21  ;;  %v9220_v37 = vcombine.low %v9211_v47, %v9218_v10  ;;  %v18995_v10 = vld [vmem:[#allocation257_spill] sm:$0xff] }
 0x86a   :  { %12813 = vrcp.f32 %v10919_v45  ;;  %v18988_v45 = vld [vmem:[#allocation252_spill] sm:$0xff]  ;;  %v18994_v47 = vcombine.high %v18992_v21, %v18992_v21 }
 0x86b   :  { %v8508_v43 = vcombine.low %v18987_v8, %v18986_v29  ;;  %v8509_v22 = vcombine.low %v18989_v52, %v18988_v45  ;;  %v18990_v35 = vcombine.high %v18988_v45, %v18988_v45  ;;  %v9227_v29 = vrot.slane %v9219_v57, %v14003_v36 }
 0x86c   :  { %v10925_v16 = vpop.xlane.xlu1 %10924  ;;  %v8458_v52 = vcombine.low %v8450_v32, %v8457_v2  ;;  %v18997_v32 = vcombine.high %v18995_v10, %v18995_v10  ;;  %v9186_v57 = vcombine.low %v9178_v23, %v9185_v54 }
 0x86d   :  { %v10928_v3 = vpop.xlane.xlu0 %10927  ;;  %v8510_v24 = vcombine.low %v18991_v9, %v18990_v35  ;;  %v8518_v8 = vrot.slane %v8508_v43, %v14003_v36  ;;  %v8525_v45 = vrot.slane %v8509_v22, %v14003_v36  ;;  %v9234_v35 = vrot.slane %v9220_v37, %v14003_v36  ;;  %v18996_v43 = vld [vmem:[#allocation256_spill] sm:$0xff]  ;;  %v19000_v37 = vld [vmem:[#allocation259_spill] sm:$0xff] }
 0x86e   :  { %12815 = vrcp.f32 %v10928_v3  ;;  %v8539_v9 = vrot.slane %v8511_v56, %v14003_v36  ;;  %v8558_v2 = vcombine.low %v18997_v32, %v18996_v43  ;;  %v9955_v56 = vrot.slane %v17380_v30, %v14003_v36 }
 0x86f   :  { %12817 = vrcp.f32 %v10925_v16  ;;  %v8532_v18 = vrot.slane %v8510_v24, %v14003_v36  ;;  %v12810_v3 = vpop.eup %12809  ;;  %v8540_v60 = vcombine.low %v8518_v8, %v8525_v45  ;;  %v8557_v16 = vcombine.low %v18995_v10, %v18994_v47 }
 0x870   :  { %v10931_v48 = vpop.xlane.xlu1 %10930  ;;  %v9235_v22 = vcombine.low %v9227_v29, %v9234_v35  ;;  %v18998_v59 = vcombine.high %v18996_v43, %v18996_v43  ;;  %v19001_v8 = vcombine.high %v18999_v25, %v18999_v25  ;;  %v8574_v30 = vrot.slane %v8558_v2, %v14003_v36 }
 0x871   :  { %v10934_v53 = vpop.xlane.xlu0 %10933  ;;  %v8541_v24 = vcombine.low %v8532_v18, %v8539_v9  ;;  %v9962_v18 = vrot.slane %v17382_v26, %v14003_v36  ;;  %v8567_v23 = vrot.slane %v8557_v16, %v14003_v36  ;;  %v17460_v29 = vadd.f32 %v16996_v38, %v8458_v52 }
 0x872   :  { %12819 = vrcp.f32 %v10934_v53  ;;  %v8559_v21 = vcombine.low %v18999_v25, %v18998_v59  ;;  %v8560_v45 = vcombine.low %v19001_v8, %v19000_v37  ;;  %v10970_v53 = vmul.f32 %v12810_v3, %v16865_v33 }
 0x873   :  { %12821 = vrcp.f32 %v10931_v48  ;;  %v12812_v47 = vpop.eup %12811  ;;  %v17463_v35 = vadd.f32 %v16996_v38, %v8507_v11  ;;  %v8548_v9 = vrot.slane %v8540_v60, %v14003_v36  ;;  %v8555_v48 = vrot.slane %v8541_v24, %v14003_v36 }
 0x874   :  { %v12814_v54 = vpop.eup %12813  ;;  %v10972_v33 = vmul.f32 %v12812_v47, %v16869_v44  ;;  %v17470_v26 = vadd.f32 %v16962_v49, %v9186_v57  ;;  %v17473_v10 = vadd.f32 %v16962_v49, %v9235_v22  ;;  %v11049_v52 = vpack.c.bf16 %v17318_v46, %v17305_v1  ;;  %v19003_v22 = vld [vmem:[#allocation311_spill] sm:$0xff]  ;;  %v19004_v47 = vld [vmem:[#allocation310_spill] sm:$0xff] }
 0x875   :  { %v10971_v3 = vmul.f32 %v12814_v54, %v16871_v20  ;;  %v17483_v11 = vcombine.low %v9906_v39, %v9913_v13  ;;  %v8581_v44 = vrot.slane %v8559_v21, %v14003_v36  ;;  %v8588_v20 = vrot.slane %v8560_v45, %v14003_v36 }
 0x876   :  { %v10984_v16 = vsel %vm10828_vm1, %v10970_v53, 0.0  ;;  %v17489_v32 = vcombine.low %v9955_v56, %v9962_v18  ;;  %v17491_v2 = vcombine.low %v8567_v23, %v8574_v30  ;;  %v11043_v28 = vpack.c.bf16 %v17463_v35, %v17460_v29  ;;  %v19007_v23 = vld [vmem:[#allocation312_spill] sm:$0xff] }
 0x877   :  { %v10985_v43 = vsel %vm10828_vm1, %v10971_v3, 0.0  ;;  %v8556_v39 = vcombine.low %v8548_v9, %v8555_v48  ;;  %v19002_v13 = vcombine.high %v18984_v50, %v18984_v50  ;;  %v10987_v59 = vsel %vm10828_vm1, %v10972_v33, 0.0  ;;  %v19008_v9 = vld [vmem:[#allocation313_spill] sm:$0xff] }
 0x878   :  { %v12816_v60 = vpop.eup %12815  ;;  %v10986_v14 = vadd.f32 %v10985_v43, %v10984_v16  ;;  %v11048_v21 = vpack.c.bf16 %v17473_v10, %v17470_v26  ;;  %v17504_v45 = vcombine.low %v8581_v44, %v8588_v20  ;;  %v19005_v53 = vcombine.high %v19003_v22, %v19003_v22  ;;  %v19011_v44 = vld [vmem:[#allocation315_spill] sm:$0xff] }
 0x879   :  { %v12818_v57 = vpop.eup %12817  ;;  %v9236_v24 = vcombine.low %v19003_v22, %v19002_v13  ;;  %v10974_v25 = vmul.f32 %v12816_v60, %v16879_v15  ;;  %v19006_v50 = vcombine.high %v19004_v47, %v19004_v47  ;;  %v19009_v48 = vcombine.high %v19007_v23, %v19007_v23 }
 0x87a   :  { %v10973_v56 = vmul.f32 %v12818_v57, %v16877_v42  ;;  %v10988_v8 = vadd.f32 %v10987_v59, %v10986_v14  ;;  %v9237_v18 = vcombine.low %v19005_v53, %v19004_v47  ;;  %v8597_v42 = vrot.slane %v17491_v2, %v14003_v36  ;;  %v19012_v14 = vld [vmem:[#allocation314_spill] sm:$0xff]  ;;  %v19015_v53 = vld [vmem:[#allocation317_spill] sm:$0xff] }
 0x87b   :  { %v9238_v30 = vcombine.low %v19007_v23, %v19006_v50  ;;  %v9239_v33 = vcombine.low %v19009_v48, %v19008_v9  ;;  %v19010_v3 = vcombine.high %v19008_v9, %v19008_v9  ;;  %v17527_v57 = vadd.f32 %v16996_v38, %v8556_v39 }
 0x87c   :  { %v12820_v54 = vpop.eup %12819  ;;  %v10989_v15 = vsel %vm10828_vm1, %v10973_v56, 0.0  ;;  %v19013_v13 = vcombine.high %v19011_v44, %v19011_v44  ;;  %v10991_v59 = vsel %vm10828_vm1, %v10974_v25, 0.0  ;;  %v19014_v47 = vcombine.high %v19012_v14, %v19012_v14 }
 0x87d   :  { %v9285_v20 = vcombine.low %v19011_v44, %v19010_v3  ;;  %v12822_v60 = vpop.eup %12821  ;;  %v10990_v16 = vadd.f32 %v10989_v15, %v10988_v8  ;;  %v10976_v43 = vmul.f32 %v12820_v54, %v16887_v7  ;;  %v19016_v8 = vld [vmem:[#allocation316_spill] sm:$0xff]  ;;  %v19018_v39 = vcombine.high %v19015_v53, %v19015_v53 }
 0x87e   :  { %v9286_v22 = vcombine.low %v19013_v13, %v19012_v14  ;;  %v10975_v56 = vmul.f32 %v12822_v60, %v16885_v4  ;;  %v9287_v50 = vcombine.low %v19015_v53, %v19014_v47  ;;  %v19017_v7 = vrot.slane %v19016_v8, %v14003_v36  ;;  %v19024_v47 = vld [vmem:[#allocation265_spill] sm:$0xff] }
 0x87f   :  { %v10992_v54 = vadd.f32 %v10991_v59, %v10990_v16  ;;  %v9246_v15 = vrot.slane %v9236_v24, %v14003_v36  ;;  %v9253_v9 = vrot.slane %v9237_v18, %v14003_v36  ;;  %v9260_v25 = vrot.slane %v9238_v30, %v14003_v36  ;;  %v19020_v24 = vld [vmem:[#allocation262_spill] sm:$0xff]  ;;  %v19021_v18 = vld [vmem:[#allocation261_spill] sm:$0xff] }
 0x880   :  { %v9288_v23 = vcombine.low %v19018_v39, %v19017_v7  ;;  %v10995_v4 = vsel %vm10847_vm2, %v10976_v43, 0.0  ;;  %v10993_v48 = vsel %vm10828_vm1, %v10975_v56, 0.0  ;;  %v9267_v3 = vrot.slane %v9239_v33, %v14003_v36  ;;  %v19025_v7 = vld [vmem:[#allocation260_spill] sm:$0xff] }
 0x881   :  { %v9295_v44 = vrot.slane %v9285_v20, %v14003_v36  ;;  %v10994_v60 = vadd.f32 %v10993_v48, %v10992_v54  ;;  %v9302_v13 = vrot.slane %v9286_v22, %v14003_v36  ;;  %v19019_v16 = vcombine.high %v19000_v37, %v19000_v37 }
 0x882   :  { %v10937_v14 = vpop.xlane.xlu1 %10936  ;;  %v19022_v30 = vcombine.high %v19020_v24, %v19020_v24  ;;  %v9309_v56 = vrot.slane %v9287_v50, %v14003_v36  ;;  %v9316_v33 = vrot.slane %v9288_v23, %v14003_v36  ;;  %v19023_v20 = vcombine.high %v19021_v18, %v19021_v18 }
 0x883   :  { %v8606_v59 = vcombine.low %v19020_v24, %v19019_v16  ;;  %12823 = vrcp.f32 %v10937_v14  ;;  %v10996_v53 = vadd.f32 %v10995_v4, %v10994_v60  ;;  %v9268_v37 = vcombine.low %v9246_v15, %v9253_v9  ;;  %v19028_v9 = vld [vmem:[#allocation264_spill] sm:$0xff] }
 0x884   :  { %v8607_v43 = vcombine.low %v19022_v30, %v19021_v18  ;;  %v8608_v22 = vcombine.low %v19024_v47, %v19023_v20  ;;  %v10940_v8 = vpop.xlane.xlu0 %10939  ;;  %v19026_v39 = vcombine.high %v19024_v47, %v19024_v47  ;;  %v9269_v14 = vcombine.low %v9260_v25, %v9267_v3  ;;  %v19029_v20 = vld [vmem:[#allocation263_spill] sm:$0xff] }
 0x885   :  { %v8616_v48 = vrot.slane %v8606_v59, %v14003_v36  ;;  %12825 = vrcp.f32 %v10940_v8  ;;  %v10997_v16 = vrot.slane %v10996_v53, 4  ;;  %v9317_v18 = vcombine.low %v9295_v44, %v9302_v13 }
 0x886   :  { %v8609_v54 = vcombine.low %v19026_v39, %v19025_v7  ;;  %v8623_v50 = vrot.slane %v8607_v43, %v14003_v36  ;;  %v8630_v23 = vrot.slane %v8608_v22, %v14003_v36  ;;  %v10943_v24 = vpop.xlane.xlu1 %10942  ;;  %v19027_v15 = vcombine.high %v19025_v7, %v19025_v7  ;;  %v19032_v43 = vld [vmem:[#allocation266_spill] sm:$0xff]  ;;  %v19033_v7 = vld [vmem:[#allocation267_spill] sm:$0xff] }
 0x887   :  { %12827 = vrcp.f32 %v10943_v24  ;;  %v9318_v30 = vcombine.low %v9309_v56, %v9316_v33  ;;  %v19030_v25 = vcombine.high %v19028_v9, %v19028_v9  ;;  %v19031_v59 = vcombine.high %v19029_v20, %v19029_v20 }
 0x888   :  { %v8637_v4 = vrot.slane %v8609_v54, %v14003_v36  ;;  %v8655_v60 = vcombine.low %v19028_v9, %v19027_v15  ;;  %v10998_v44 = vadd.f32 %v10997_v16, %v10996_v53  ;;  %v10946_v13 = vpop.xlane.xlu0 %10945  ;;  %v8604_v22 = vrot.slane %v17504_v45, %v14003_v36 }
 0x889   :  { %v8656_v3 = vcombine.low %v19030_v25, %v19029_v20  ;;  %v8657_v47 = vcombine.low %v19032_v43, %v19031_v59  ;;  %v8638_v8 = vcombine.low %v8616_v48, %v8623_v50  ;;  %v19034_v39 = vrot.slane %v19033_v7, %v14003_v36 }
 0x88a   :  { %v19035_v56 = vcombine.high %v19032_v43, %v19032_v43  ;;  %12829 = vrcp.f32 %v10946_v13  ;;  %v8639_v54 = vcombine.low %v8630_v23, %v8637_v4  ;;  %v8665_v24 = vrot.slane %v8655_v60, %v14003_v36 }
 0x88b   :  { %v8672_v15 = vrot.slane %v8656_v3, %v14003_v36  ;;  %v10999_v9 = vrot.slane %v10998_v44, 2  ;;  %v9276_v53 = vrot.slane %v9268_v37, %v14003_v36  ;;  %v9283_v16 = vrot.slane %v9269_v14, %v14003_v36  ;;  %v10949_v48 = vpop.xlane.xlu1 %10948  ;;  %v19036_v37 = vld [vmem:[#allocation318_spill] sm:$0xff] }
 0x88c   :  { %v8658_v33 = vcombine.low %v19035_v56, %v19034_v39  ;;  %v8679_v45 = vrot.slane %v8657_v47, %v14003_v36  ;;  %v9325_v50 = vrot.slane %v9317_v18, %v14003_v36  ;;  %v9332_v20 = vrot.slane %v9318_v30, %v14003_v36  ;;  %v19037_v30 = vld [vmem:[#allocation268_spill] sm:$0xff] }
 0x88d   :  { %v8687_v59 = vcombine.low %v8665_v24, %v8672_v15  ;;  %12831 = vrcp.f32 %v10949_v48  ;;  %v11000_v23 = vadd.f32 %v10999_v9, %v10998_v44  ;;  %v8605_v4 = vcombine.low %v8597_v42, %v8604_v22  ;;  %v12824_v14 = vpop.eup %12823  ;;  %v10952_v3 = vpop.xlane.xlu0 %10951 }
 0x88e   :  { %v8686_v25 = vrot.slane %v8658_v33, %v14003_v36  ;;  %v9340_v60 = vrot.slane %v19036_v37, %v14003_v36  ;;  %v8646_v43 = vrot.slane %v8638_v8, %v14003_v36  ;;  %v8653_v18 = vrot.slane %v8639_v54, %v14003_v36  ;;  %v19038_v8 = vld [vmem:[#allocation368_spill] sm:$0xff] }
 0x88f   :  { %v8710_v13 = vrot.slane %v19037_v30, %v14003_v36  ;;  %v10977_v7 = vmul.f32 %v12824_v14, %v16900_v31  ;;  %12833 = vrcp.f32 %v10952_v3  ;;  %v11001_v44 = vrot.slane %v11000_v23, 1  ;;  %v12826_v42 = vpop.eup %12825  ;;  %v10955_v22 = vpop.xlane.xlu1 %10954 }
 0x890   :  { %v8688_v47 = vcombine.low %v8679_v45, %v8686_v25  ;;  %v8695_v2 = vrot.slane %v8687_v59, %v14003_v36  ;;  %v9284_v39 = vcombine.low %v9276_v53, %v9283_v16  ;;  %v9333_v56 = vcombine.low %v9325_v50, %v9332_v20 }
 0x891   :  { %v9970_v24 = vrot.slane %v19038_v8, %v14003_v36  ;;  %v10978_v54 = vmul.f32 %v12826_v42, %v16904_v6  ;;  %12835 = vrcp.f32 %v10955_v22  ;;  %v11002_v15 = vadd.f32 %v11001_v44, %v11000_v23  ;;  %v12828_v31 = vpop.eup %12827 }
 0x892   :  { %v8702_v33 = vrot.slane %v8688_v47, %v14003_v36  ;;  %v9347_v9 = vrot.slane %v9340_v60, %v14003_v36  ;;  %v11003_v45 = vsel %vm10828_vm1, %v10977_v7, 0.0  ;;  %v10684_v48 = vadd.f32 %v16996_v38, %v8605_v4 }
 0x893   :  { %v8654_v25 = vcombine.low %v8646_v43, %v8653_v18  ;;  %v8717_v53 = vrot.slane %v8710_v13, %v14003_v36  ;;  %v11004_v16 = vsel %vm10828_vm1, %v10978_v54, 0.0  ;;  %v10979_v50 = vmul.f32 %v12828_v31, %v16908_v5 }
 0x894   :  { %v11023_v20 = vmul.f32 0.020408163, %v11002_v15  ;;  %v8703_v59 = vcombine.low %v8695_v2, %v8702_v33  ;;  %v12830_v37 = vpop.eup %12829  ;;  %v11005_v6 = vadd.f32 %v11004_v16, %v11003_v45  ;;  %v10689_v23 = vadd.f32 %v16962_v49, %v9284_v39  ;;  %v19043_v45 = vld [vmem:[#allocation98_spill] sm:$0xff] }
 0x895   :  { %v10693_v60 = vadd.f32 %v16962_v49, %v9333_v56  ;;  %v9977_v14 = vrot.slane %v9970_v24, %v14003_v36  ;;  %v11006_v3 = vsel %vm10828_vm1, %v10979_v50, 0.0  ;;  %v10980_v4 = vmul.f32 %v12830_v37, %v16912_v58  ;;  %v19047_v50 = vld [vmem:[#allocation106_spill] sm:$0xff]  ;;  %v19049_v37 = vld [vmem:[#allocation104_spill] sm:$0xff] }
 0x896   :  { %v11025_v43 = vpack.c.bf16 %v11023_v20, %v11023_v20  ;;  %v10697_v18 = vadd.f32 %v16962_v49, %v9347_v9  ;;  %v11007_v47 = vadd.f32 %v11006_v3, %v11005_v6  ;;  %v10690_v5 = vadd.f32 %v16607_v19, %v17483_v11  ;;  %v19052_v3 = vld [vmem:[#allocation107_spill] sm:$0xff] }
 0x897   :  { %v10694_v30 = vadd.f32 %v16607_v19, %v17489_v32  ;;  %v11047_v13 = vpack.c.bf16 %v10684_v48, %v17527_v57  ;;  %v12832_v7 = vpop.eup %12831  ;;  %v11008_v44 = vsel %vm10828_vm1, %v10980_v4, 0.0  ;;  %v10688_v36 = vadd.f32 %v16996_v38, %v8654_v25  ;;  %v19044_v48 = vld [vmem:[#allocation102_spill] sm:$0xff] }
 0x898   :  { %11926 = vmatmul.mubr.msk.bf16.vlgmr.msra.gmra.mrb[176].mxu0 %vm10828_vm1, %v11025_v43  ;;  %11927 = vmatmul.mubr.msk.bf16.vlgmr.msra.gmra.mrb[176].mxu1 %vm10828_vm1, %v11025_v43  ;;  %v10692_v58 = vadd.f32 %v16996_v38, %v8703_v59  ;;  %v10696_v49 = vadd.f32 %v16996_v38, %v8717_v53  ;;  %v11009_v2 = vadd.f32 %v11008_v44, %v11007_v47  ;;  %v19041_v39 = vmov 0   ;;  %v19046_v53 = vld [vmem:[#allocation103_spill] sm:$0xff]  ;;  %v19048_v59 = vld [vmem:[#allocation100_spill] sm:$0xff]  ;;  %v19053_v43 = vld [vmem:[#allocation110_spill] sm:$0xff] }
 0x899   :  { %v10981_v11 = vmul.f32 %v12832_v7, %v16916_v12  ;;  %v19039_v32 = vpack.c.bf16 %v17278_v40, %v17275_v51  ;;  %11175 = vmatpush1.bf16.msra.mxu0 %v11043_v28  ;;  %v10698_v57 = vadd.f32 %v16607_v19, %v9977_v14  ;;  %v12834_v42 = vpop.eup %12833  ;;  %v19040_v22 = vpack.c.bf16 %v16817_v17, %v16808_v55  ;;  %v19054_v47 = vld [vmem:[#allocation108_spill] sm:$0xff]  ;;  %v19056_v7 = vld [vmem:[#allocation111_spill] sm:$0xff] }
 0x89a   :  { %11176 = vmatprep.subr.bf16.mxu0 %v11048_v21  ;;  %v11052_v12 = vpack.c.bf16 %v10693_v60, %v10689_v23  ;;  %v11056_v38 = vpack.c.bf16 %v10697_v18, %v10697_v18  ;;  %v10982_v40 = vmul.f32 %v12834_v42, %v16920_v61  ;;  %11206 = vmatprep.mubr.bf16.mxu0 %v19041_v39  ;;  %v19050_v23 = vld [vmem:[#allocation101_spill] sm:$0xff] }
 0x89b   :  { %11216 = vmatpush1.bf16.msra.mxu1 %v19039_v32  ;;  %v11010_v51 = vsel %vm10828_vm1, %v10981_v11, 0.0  ;;  %11247 = vmatprep.mubr.bf16.mxu1 %v19041_v39  ;;  %v12836_v19 = vpop.eup %12835  ;;  %v11053_v35 = vpack.c.bf16 %v10694_v30, %v10690_v5  ;;  %v11058_v55 = vpack.c.bf16 %v16814_v62, %v16814_v62  ;;  %v11055_v17 = vpack.c.bf16 %v10696_v49, %v10696_v49  ;;  %v19051_v60 = vld [vmem:[#allocation105_spill] sm:$0xff]  ;;  %v19058_v49 = vld [vmem:[#allocation112_spill] sm:$0xff] }
 0x89c   :  { %11217 = vmatprep.subr.bf16.mxu1 %v19040_v22  ;;  %v11011_v29 = vadd.f32 %v11010_v51, %v11009_v2  ;;  %v11012_v26 = vsel %vm10828_vm1, %v10982_v40, 0.0  ;;  %v10983_v10 = vmul.f32 %v12836_v19, %v16924_v63  ;;  %v11051_v61 = vpack.c.bf16 %v10692_v58, %v10688_v36  ;;  %v19055_v30 = vld [vmem:[#allocation109_spill] sm:$0xff]  ;;  %v19057_v36 = vld [vmem:[#allocation114_spill] sm:$0xff] }
 0x89d   :  { %11177 = vmatpush1.bf16.msra.mxu0 %v11047_v13  ;;  %v11057_v28 = vpack.c.bf16 %v10698_v57, %v10698_v57  ;;  %v19042_v56 = vpack.c.bf16 %v16826_v34, %v16823_v41  ;;  %v11166_v62 = vand.u32 %v16715_v0, %v11056_v38  ;;  %v11172_v63 = vand.u32 %v16715_v0, %v11058_v55  ;;  %v19059_v11 = vld [vmem:[#allocation113_spill] sm:$0xff]  ;;  %v19060_v57 = vld [vmem:[#allocation115_spill] sm:$0xff]  ;;  %v19061_v22 = vld [vmem:[#allocation118_spill] sm:$0xff] }
 0x89e   :  { %v11013_v21 = vadd.f32 %v11012_v26, %v11011_v29  ;;  %11178 = vmatprep.subr.bf16.mxu0 %v11052_v12  ;;  %v11014_v33 = vsel %vm10847_vm2, %v10983_v10, 0.0  ;;  %v11163_v1 = vand.u32 %v16715_v0, %v11055_v17  ;;  %v11256_v25 = vadd.f32 %v19044_v48, %v19043_v45  ;;  %v19062_v38 = vld [vmem:[#allocation116_spill] sm:$0xff]  ;;  %v19063_v40 = vld [vmem:[#allocation122_spill] sm:$0xff]  ;;  %v19064_v19 = vld [vmem:[#allocation117_spill] sm:$0xff] }
 0x89f   :  { %11218 = vmatpush1.bf16.msra.mxu1 %v11049_v52  ;;  %v11169_v46 = vand.u32 %v16715_v0, %v11057_v28  ;;  %v19045_v0 = vld [vmem:[#allocation99_spill] sm:$0xff]  ;;  %v11282_v6 = vadd.f32 %v19049_v37, %v19048_v59  ;;  %v11295_v14 = vadd.f32 %v19051_v60, %v19050_v23  ;;  %v11261_v39 = vsel %vm11062_vm0, %v19063_v40, 0.0 }
 0x8a0   :  { %11219 = vmatprep.subr.bf16.mxu1 %v19042_v56  ;;  %v11015_v8 = vadd.f32 %v11014_v33, %v11013_v21  ;;  %v11269_v16 = vadd.f32 %v19046_v53, %v19045_v0  ;;  %v11257_v20 = vadd.f32 %v11256_v25, %v19047_v50  ;;  %v19066_v17 = vld [vmem:[#allocation123_spill] sm:$0xff]  ;;  %v19068_v21 = vld [vmem:[#allocation126_spill] sm:$0xff]  ;;  %v19070_v33 = vld [vmem:[#allocation124_spill] sm:$0xff] }
 0x8a1   :  { %11179 = vmatpush1.bf16.msra.mxu0 %v11051_v61  ;;  %v11283_v5 = vadd.f32 %v11282_v6, %v19054_v47  ;;  %v11296_v13 = vadd.f32 %v11295_v14, %v19055_v30  ;;  %v11274_v26 = vsel %vm11062_vm0, %v19066_v17, 0.0  ;;  %v19067_v61 = vld [vmem:[#allocation120_spill] sm:$0xff]  ;;  %v19069_v56 = vld [vmem:[#allocation130_spill] sm:$0xff]  ;;  %v19079_v37 = vld [vmem:[#allocation127_spill] sm:$0xff] }
 0x8a2   :  { %v11016_v52 = vrot.slane %v11015_v8, 4  ;;  %11180 = vmatprep.subr.bf16.mxu0 %v11166_v62  ;;  %v11270_v4 = vadd.f32 %v11269_v16, %v19052_v3  ;;  %v11258_v18 = vadd.f32 %v11257_v20, %v19053_v43  ;;  %v11308_v62 = vadd.f32 %v19069_v56, %v19068_v21  ;;  %v19075_v25 = vld [vmem:[#allocation142_spill] sm:$0xff]  ;;  %v19077_v50 = vld [vmem:[#allocation128_spill] sm:$0xff]  ;;  %v19080_v6 = vld [vmem:[#allocation131_spill] sm:$0xff] }
 0x8a3   :  { %11220 = vmatpush1.bf16.msra.mxu1 %v11053_v35  ;;  %v11284_v2 = vadd.f32 %v11283_v5, %v19058_v49  ;;  %v11297_v32 = vadd.f32 %v11296_v13, %v19059_v11  ;;  %v19065_v35 = vld [vmem:[#allocation119_spill] sm:$0xff]  ;;  %v19076_v53 = vld [vmem:[#allocation150_spill] sm:$0xff]  ;;  %v19078_v20 = vld [vmem:[#allocation132_spill] sm:$0xff]  ;;  %v11321_v23 = vadd.f32 %v19080_v6, %v19079_v37 }
 0x8a4   :  { %11221 = vmatprep.subr.bf16.mxu1 %v11172_v63  ;;  %v11017_v24 = vadd.f32 %v11016_v52, %v11015_v8  ;;  %v11271_v44 = vadd.f32 %v11270_v4, %v19056_v7  ;;  %v11259_v58 = vadd.f32 %v11258_v18, %v19057_v36  ;;  %v11287_v8 = vsel %vm11062_vm0, %v19070_v33, 0.0  ;;  %v19071_v63 = vld [vmem:[#allocation121_spill] sm:$0xff]  ;;  %v19081_v3 = vld [vmem:[#allocation146_spill] sm:$0xff]  ;;  %v19082_v18 = vld [vmem:[#allocation136_spill] sm:$0xff] }
 0x8a5   :  { %11181 = vmatpush1.bf16.msra.mxu0 %v11163_v1  ;;  %v11285_v51 = vadd.f32 %v11284_v2, %v19062_v38  ;;  %v11298_v29 = vadd.f32 %v11297_v32, %v19064_v19  ;;  %v19072_v52 = vld [vmem:[#allocation125_spill] sm:$0xff]  ;;  %v11313_v16 = vsel %vm11062_vm0, %v19076_v53, 0.0  ;;  %v11334_v59 = vadd.f32 %v19078_v20, %v19077_v50  ;;  %v19083_v5 = vld [vmem:[#allocation135_spill] sm:$0xff]  ;;  %v19088_v38 = vld [vmem:[#allocation144_spill] sm:$0xff] }
 0x8a6   :  { %v11018_v41 = vrot.slane %v11017_v24, 2  ;;  %v11272_v42 = vadd.f32 %v11271_v44, %v19060_v57  ;;  %v11260_v12 = vadd.f32 %v11259_v58, %v19061_v22  ;;  %v11322_v30 = vadd.f32 %v11321_v23, %v19083_v5  ;;  %v19084_v44 = vld [vmem:[#allocation140_spill] sm:$0xff]  ;;  %v19085_v58 = vld [vmem:[#allocation139_spill] sm:$0xff]  ;;  %v19086_v2 = vld [vmem:[#allocation129_spill] sm:$0xff] }
 0x8a7   :  { %11222 = vmatpush1.bf16.msra.mxu1 %v11169_v46  ;;  %v11286_v28 = vadd.f32 %v11285_v51, %v19067_v61  ;;  %v11299_v1 = vadd.f32 %v11298_v29, %v19071_v63  ;;  %v11335_v47 = vadd.f32 %v11334_v59, %v19082_v18  ;;  %v19087_v11 = vld [vmem:[#allocation133_spill] sm:$0xff]  ;;  %v19089_v40 = vld [vmem:[#allocation143_spill] sm:$0xff]  ;;  %v19091_v17 = vld [vmem:[#allocation152_spill] sm:$0xff] }
 0x8a8   :  { %v11019_v34 = vadd.f32 %v11018_v41, %v11017_v24  ;;  %v11273_v55 = vadd.f32 %v11272_v42, %v19065_v35  ;;  %v11262_v10 = vadd.f32 %v11261_v39, %v11260_v12  ;;  %v11300_v24 = vsel %vm11062_vm0, %v19072_v52, 0.0  ;;  %v19073_v41 = vld [vmem:[#allocation134_spill] sm:$0xff]  ;;  %v19090_v19 = vld [vmem:[#allocation137_spill] sm:$0xff]  ;;  %v19094_v56 = vld [vmem:[#allocation147_spill] sm:$0xff] }
 0x8a9   :  { %v11301_v45 = vadd.f32 %v11300_v24, %v11299_v1  ;;  %v11336_v36 = vadd.f32 %v11335_v47, %v19084_v44  ;;  %v11323_v49 = vadd.f32 %v11322_v30, %v19085_v58  ;;  %v11347_v32 = vadd.f32 %v19087_v11, %v19086_v2  ;;  %v19095_v33 = vld [vmem:[#allocation141_spill] sm:$0xff] }
 0x8aa   :  { %v11020_v54 = vrot.slane %v11019_v34, 1  ;;  %v11275_v46 = vadd.f32 %v11274_v26, %v11273_v55  ;;  %v11339_v26 = vsel %vm11062_vm0, %v19091_v17, 0.0  ;;  %v13054_v44 = vmov 1983009808  }
 0x8ab   :  { %v11302_v43 = vrot.slane %v11301_v45, 4  ;;  %v11337_v51 = vadd.f32 %v11336_v36, %v19088_v38  ;;  %v11324_v39 = vadd.f32 %v11323_v49, %v19089_v40  ;;  %v11348_v29 = vadd.f32 %v11347_v32, %v19090_v19 }
 0x8ac   :  { %v11021_v15 = vadd.f32 %v11020_v54, %v11019_v34  ;;  %v11309_v34 = vadd.f32 %v11308_v62, %v19073_v41  ;;  %v11263_v54 = vrot.slane %v11262_v10, 4  ;;  %v11276_v48 = vrot.slane %v11275_v46, 4  ;;  %v19096_v41 = vld [vmem:[#allocation145_spill] sm:$0xff] }
 0x8ad   :  { %v11303_v12 = vadd.f32 %v11302_v43, %v11301_v45  ;;  %v11325_v62 = vadd.f32 %v11324_v39, %v19094_v56  ;;  %v11426_v36 = vunpack.c.l.s4 %v13054_v44 }
 0x8ae   :  { %v11024_v9 = vmul.f32 0.020408163, %v11021_v15  ;;  %v11288_v15 = vadd.f32 %v11287_v8, %v11286_v28  ;;  %v11264_v60 = vadd.f32 %v11263_v54, %v11262_v10  ;;  %v11277_v13 = vadd.f32 %v11276_v48, %v11275_v46  ;;  %v19092_v10 = vld [vmem:[#allocation151_spill] sm:$0xff]  ;;  %v19093_v28 = vld [vmem:[#allocation148_spill] sm:$0xff] }
 0x8af   :  { %v11326_v61 = vsel %vm11062_vm0, %v19092_v10, 0.0  ;;  %v11338_v21 = vadd.f32 %v11337_v51, %v19093_v28  ;;  %v11349_v8 = vadd.f32 %v11348_v29, %v19095_v33  ;;  %v11427_v40 = vunpack.c.0.s8 %v11426_v36 }
 0x8b0   :  { %v11026_v31 = vpack.c.bf16 %v11024_v9, %v11024_v9  ;;  %v19074_v9 = vld [vmem:[#allocation138_spill] sm:$0xff]  ;;  %v11289_v14 = vrot.slane %v11288_v15, 4  ;;  %v11265_v57 = vrot.slane %v11264_v60, 2  ;;  %v11278_v35 = vrot.slane %v11277_v13, 2 }
 0x8b1   :  { %v11340_v52 = vadd.f32 %v11339_v26, %v11338_v21  ;;  %v11327_v24 = vadd.f32 %v11326_v61, %v11325_v62  ;;  %v11430_v28 = vsub.s32 %v11427_v40, %v18730_v27 }
 0x8b2   :  { %11928 = vmatmul.mubr.msk.bf16.vlgmr.msra.gmra.mrb[180].mxu0 %vm10828_vm1, %v11026_v31  ;;  %11929 = vmatmul.mubr.msk.bf16.vlgmr.msra.gmra.mrb[180].mxu1 %vm10828_vm1, %v11026_v31  ;;  %v11310_v31 = vadd.f32 %v11309_v34, %v19074_v9  ;;  %v11290_v42 = vadd.f32 %v11289_v14, %v11288_v15  ;;  %v11266_v63 = vadd.f32 %v11265_v57, %v11264_v60  ;;  %v11304_v15 = vrot.slane %v11303_v12, 2 }
 0x8b3   :  { %v11350_v34 = vadd.f32 %v11349_v8, %v19096_v41  ;;  %v11279_v54 = vadd.f32 %v11278_v35, %v11277_v13  ;;  %v11341_v48 = vrot.slane %v11340_v52, 4 }
 0x8b4   :  { %v11311_v0 = vadd.f32 %v11310_v31, %v19075_v25  ;;  %v11291_v1 = vrot.slane %v11290_v42, 2  ;;  %v19097_v31 = vld [vmem:[#allocation153_spill] sm:$0xff]  ;;  %v11328_v25 = vrot.slane %v11327_v24, 4  ;;  %v11305_v60 = vadd.f32 %v11304_v15, %v11303_v12 }
 0x8b5   :  { %v11352_v45 = vsel %vm11062_vm0, %v19097_v31, 0.0  ;;  %v11342_v59 = vadd.f32 %v11341_v48, %v11340_v52  ;;  %v11280_v23 = vrot.slane %v11279_v54, 1  ;;  %v11369_v31 = vstv %s17877_s4 }
 0x8b6   :  { %v11312_v4 = vadd.f32 %v11311_v0, %v19081_v3  ;;  %v19098_v0 = vld [vmem:[#allocation149_spill] sm:$0xff]  ;;  %v11292_v50 = vadd.f32 %v11291_v1, %v11290_v42  ;;  %v11329_v37 = vadd.f32 %v11328_v25, %v11327_v24 }
 0x8b7   :  { %v11351_v53 = vadd.f32 %v11350_v34, %v19098_v0  ;;  %v11343_v14 = vrot.slane %v11342_v59, 2  ;;  %v11281_v58 = vadd.f32 %v11280_v23, %v11279_v54 }
 0x8b8   :  { %v11314_v7 = vadd.f32 %v11313_v16, %v11312_v4  ;;  %v11267_v16 = vrot.slane %v11266_v63, 1  ;;  %v11330_v3 = vrot.slane %v11329_v37, 2  ;;  %v11293_v18 = vrot.slane %v11292_v50, 1 }
 0x8b9   :  { %v11353_v6 = vadd.f32 %v11352_v45, %v11351_v53  ;;  %v11344_v5 = vadd.f32 %v11343_v14, %v11342_v59  ;;  %v11361_v39 = vmul.f32 0.020408163, %v11281_v58 }
 0x8ba   :  { %v11315_v22 = vrot.slane %v11314_v7, 4  ;;  %v11268_v43 = vadd.f32 %v11267_v16, %v11266_v63  ;;  %v11331_v30 = vadd.f32 %v11330_v3, %v11329_v37  ;;  %v11294_v57 = vadd.f32 %v11293_v18, %v11292_v50 }
 0x8bb   :  { %v11354_v4 = vrot.slane %v11353_v6, 4  ;;  %v11345_v49 = vrot.slane %v11344_v5, 1 }
 0x8bc   :  { %v11316_v55 = vadd.f32 %v11315_v22, %v11314_v7  ;;  %v11306_v7 = vrot.slane %v11305_v60, 1  ;;  %v11332_v2 = vrot.slane %v11331_v30, 1  ;;  %v11360_v32 = vmul.f32 0.020408163, %v11268_v43 }
 0x8bd   :  { %v11355_v13 = vadd.f32 %v11354_v4, %v11353_v6  ;;  %v11346_v22 = vadd.f32 %v11345_v49, %v11344_v5 }
 0x8be   :  { %v11317_v46 = vrot.slane %v11316_v55, 2  ;;  %v11333_v12 = vadd.f32 %v11332_v2, %v11331_v30  ;;  %v11307_v51 = vadd.f32 %v11306_v7, %v11305_v60 }
 0x8bf   :  { %v11356_v11 = vrot.slane %v11355_v13, 2  ;;  %v11366_v17 = vmul.f32 0.020408163, %v11346_v22 }
 0x8c0   :  { %v11318_v9 = vadd.f32 %v11317_v46, %v11316_v55  ;;  %v11365_v29 = vmul.f32 0.020408163, %v11333_v12  ;;  %v11362_v55 = vmul.f32 0.020408163, %v11294_v57  ;;  %v11363_v21 = vmul.f32 0.020408163, %v11307_v51 }
 0x8c1   :  { %v11357_v38 = vadd.f32 %v11356_v11, %v11355_v13 }
 0x8c2   :  { %v11319_v20 = vrot.slane %v11318_v9, 1  ;;  %v17744_v26 = vsel %vm11394_vm3, %v11365_v29, %v11361_v39  ;;  %v17750_v56 = vsel %vm11394_vm3, %v11366_v17, %v11362_v55 }
 0x8c3   :  { %v11358_v35 = vrot.slane %v11357_v38, 1 }
 0x8c4   :  { %v11320_v47 = vadd.f32 %v11319_v20, %v11318_v9 }
 0x8c5   :  { %v11359_v10 = vadd.f32 %v11358_v35, %v11357_v38  ;;  %v11466_v35 = vpack.c.bf16 %v17744_v26, %v17744_v26 }
 0x8c6   :  { %v11364_v42 = vmul.f32 0.020408163, %v11320_v47 }
 0x8c7   :  { %v11367_v62 = vmul.f32 0.020408163, %v11359_v10 }
 0x8c8   :  { %v17741_v19 = vsel %vm11394_vm3, %v11364_v42, %v11360_v32 }
 0x8c9   :  { %v11423_v61 = vcombine.low %v17741_v19, %v17744_v26  ;;  %v17753_v33 = vsel %vm11394_vm3, %v11367_v62, %v11363_v21 }
 0x8ca   :  { %v11424_v63 = vcombine.low %v17750_v56, %v17753_v33 }
 0x8cb   :  { %v11431_v8 = vrot.slane %v11423_v61, %v11430_v28 }
 0x8cc   :  { %v11438_v1 = vrot.slane %v11424_v63, %v11430_v28 }
 0x8ce   :  { %v11439_v46 = vcombine.low %v11431_v8, %v11438_v1 }
 0x8d0   :  { %11459 = vst [vmem:[#allocation8] sm:$0xff] %v11439_v46 }
 0x96b   :  { %v11111_v52 = vpop.f32.mrb[176].mxu0  ;;  %v11152_v24 = vpop.f32.mrb[176].mxu1 }
 0x96c   :  { %v11113_v41 = vpop.f32.mrb[177].mxu0  ;;  %v11154_v34 = vpop.f32.mrb[177].mxu1  ;;  %v11370_v25 = vmul.f32 %v11369_v31, %v11111_v52  ;;  %v11372_v0 = vmul.f32 %v11369_v31, %v11152_v24 }
 0x96d   :  { %v11115_v27 = vpop.f32.mrb[178].mxu0  ;;  %v11156_v54 = vpop.f32.mrb[178].mxu1  ;;  %v11371_v59 = vmul.f32 %v11369_v31, %v11113_v41  ;;  %v11373_v37 = vmul.f32 %v11369_v31, %v11154_v34 }
 0x96e   :  { %v11116_v15 = vpop.f32.mrb[179].mxu0  ;;  %v11157_v9 = vpop.f32.mrb[179].mxu1  ;;  %v11378_v30 = vadd.f32 %v11370_v25, %v11360_v32  ;;  %v11380_v13 = vadd.f32 %v11372_v0, %v11362_v55  ;;  %v11468_v55 = vpack.c.bf16 %v17753_v33, %v17753_v33 }
 0x96f   :  { %v11379_v36 = vadd.f32 %v11371_v59, %v11361_v39  ;;  %v11381_v58 = vadd.f32 %v11373_v37, %v11363_v21  ;;  %v19099_v39 = vld [vmem:[#allocation42_spill] sm:$0xff] }
 0x970   :  { %12650 = vmatprep.subr.bf16.mxu0 %v19099_v39 }
 0x985   :  { %v11208_v45 = vpop.f32.mrb[180].mxu0  ;;  %v11249_v48 = vpop.f32.mrb[180].mxu1 }
 0x986   :  { %v11374_v53 = vmul.f32 %v11369_v31, %v11208_v45  ;;  %v11376_v16 = vmul.f32 %v11369_v31, %v11249_v48  ;;  %v11210_v50 = vpop.f32.mrb[181].mxu0  ;;  %v11251_v20 = vpop.f32.mrb[181].mxu1 }
 0x987   :  { %v11375_v6 = vmul.f32 %v11369_v31, %v11210_v50  ;;  %v11377_v23 = vmul.f32 %v11369_v31, %v11251_v20  ;;  %v11212_v60 = vpop.f32.mrb[182].mxu0  ;;  %v11253_v14 = vpop.f32.mrb[182].mxu1 }
 0x988   :  { %v11382_v3 = vadd.f32 %v11374_v53, %v11364_v42  ;;  %v11384_v4 = vadd.f32 %v11376_v16, %v11366_v17  ;;  %v11213_v43 = vpop.f32.mrb[183].mxu0  ;;  %v11254_v18 = vpop.f32.mrb[183].mxu1 }
 0x989   :  { %v11383_v47 = vadd.f32 %v11375_v6, %v11365_v29  ;;  %v11385_v5 = vadd.f32 %v11377_v23, %v11367_v62  ;;  %v19100_v29 = vld [vmem:[#allocation58_spill] sm:$0xff] }
 0x98a   :  { %v11411_v7 = vrot.slane %v11382_v3, 7  ;;  %v11415_v44 = vrot.slane %v11384_v4, 7  ;;  %12672 = vmatprep.subr.bf16.mxu1 %v19100_v29 }
 0x98b   :  { %v11413_v49 = vrot.slane %v11383_v47, 7  ;;  %v11417_v2 = vrot.slane %v11385_v5, 7 }
 0x98c   :  { %v17761_v11 = vsel %vm11394_vm3, %v11411_v7, %v11378_v30  ;;  %v17764_v57 = vsel %vm11394_vm3, %v11415_v44, %v11380_v13 }
 0x98d   :  { %v11414_v42 = vsel %vm11394_vm3, %v11413_v49, %v11379_v36  ;;  %v11418_v22 = vsel %vm11394_vm3, %v11417_v2, %v11381_v58 }
 0x98e   :  { %v11440_v12 = vcombine.low %v17761_v11, %v11414_v42  ;;  %v11441_v32 = vcombine.low %v17764_v57, %v11418_v22 }
 0x990   :  { %v11448_v38 = vrot.slane %v11440_v12, %v11430_v28  ;;  %v11455_v51 = vrot.slane %v11441_v32, %v11430_v28 }
 0x992   :  { %v11456_v40 = vcombine.low %v11448_v38, %v11455_v51 }
 0x994   :  { %11460 = vst [vmem:[#allocation8 + $0x8] sm:$0xff] %v11456_v40 }
 0x995   :  { %13040 = dma.done.wait [#allocation4 + $0x6], 8192 }
 0x996   :  { %13041 = vsyncadd [#allocation4 + $0x6], 4294959104  ;;  %v19101_v17 = vld [vmem:[#allocation34_spill] sm:$0xff]  ;;  %v19103_v61 = vld [vmem:[#allocation43_spill] sm:$0xff]  ;;  %11576 = vmatprep.mubr.bf16.mxu0 %v11466_v35  ;;  %11616 = vmatprep.mubr.bf16.mxu1 %v11468_v55  ;;  %v11465_v20 = vpack.c.bf16 %v17741_v19, %v17741_v19  ;;  %v11467_v59 = vpack.c.bf16 %v17750_v56, %v17750_v56  ;;  %v11470_v14 = vpack.c.bf16 %v11414_v42, %v11414_v42  ;;  %s13055_s4 = smov [#allocation8]  }
 0x997   :  { %12651 = vmatpush3.bf16.msra.mxu0 %v19101_v17  ;;  %v19102_v10 = vld [vmem:[#allocation50_spill] sm:$0xff]  ;;  %v19104_v28 = vld [vmem:[#allocation59_spill] sm:$0xff]  ;;  %v19107_v26 = vld [vmem:[#allocation44_spill] sm:$0xff]  ;;  %v11472_v3 = vpack.c.bf16 %v11418_v22, %v11418_v22  ;;  %s11721_s23 = sshll.u32 %s13055_s4, 4  ;;  %s11722_s23 = int_to_ptr.vmem [resolvable:$true] %s11721_s23 }
 0x998   :  { %12673 = vmatpush3.bf16.msra.mxu1 %v19102_v10  ;;  %12652 = vmatprep.subr.bf16.mxu0 %v19103_v61  ;;  %v19105_v21 = vld [vmem:[#allocation35_spill] sm:$0xff]  ;;  %v19108_v8 = vld [vmem:[#allocation60_spill] sm:$0xff]  ;;  %v19111_v1 = vld [vmem:[#allocation45_spill] sm:$0xff]  ;;  %v11469_v61 = vpack.c.bf16 %v17761_v11, %v17761_v11  ;;  %s12984_s11 = scalar_lea.vmem %s11722_s23, 256  ;;  %p12989_p13 = scmp.lt.s32.totalorder %s11722_s23, %s11722_s23 }
 0x999   :  { %12674 = vmatprep.subr.bf16.mxu1 %v19104_v28  ;;  %v19106_v62 = vld [vmem:[#allocation51_spill] sm:$0xff]  ;;  %v19109_v33 = vld [vmem:[#allocation36_spill] sm:$0xff]  ;;  %v19112_v46 = vld [vmem:[#allocation61_spill] sm:$0xff]  ;;  %v11471_v28 = vpack.c.bf16 %v17764_v57, %v17764_v57  ;;  %p12985_p6 = scmp.ne.s32.totalorder %s11722_s23, %s12984_s11  ;;  %p12990_p0 = scmp.lt.s32.totalorder %s12984_s11, %s12984_s11 }
 0x99a   :  { %v19110_v63 = vld [vmem:[#allocation52_spill] sm:$0xff]  ;;  %v19113_v52 = vld [vmem:[#allocation37_spill] sm:$0xff]  ;;  %v19115_v41 = vld [vmem:[#allocation46_spill] sm:$0xff] }
 0x99b   :  { %12653 = vmatpush3.bf16.msra.mxu0 %v19105_v21  ;;  %v19114_v24 = vld [vmem:[#allocation53_spill] sm:$0xff]  ;;  %v19116_v34 = vld [vmem:[#allocation62_spill] sm:$0xff]  ;;  %v19119_v15 = vld [vmem:[#allocation47_spill] sm:$0xff]  ;;  %p12991_p1 = por %p12990_p0, %p12989_p13 }
 0x99c   :  { %12675 = vmatpush3.bf16.msra.mxu1 %v19106_v62  ;;  %12654 = vmatprep.subr.bf16.mxu0 %v19107_v26  ;;  %v19117_v27 = vld [vmem:[#allocation38_spill] sm:$0xff]  ;;  %v19120_v9 = vld [vmem:[#allocation63_spill] sm:$0xff]  ;;  %v19123_v48 = vld [vmem:[#allocation48_spill] sm:$0xff] }
 0x99d   :  { %12676 = vmatprep.subr.bf16.mxu1 %v19108_v8  ;;  %v19118_v54 = vld [vmem:[#allocation54_spill] sm:$0xff]  ;;  %v19121_v31 = vld [vmem:[#allocation39_spill] sm:$0xff]  ;;  %v19124_v25 = vld [vmem:[#allocation64_spill] sm:$0xff]  ;;  %p12992_p3 = pnand %p12991_p1, %p12985_p6 }
 0x99e   :  { %v19122_v45 = vld [vmem:[#allocation55_spill] sm:$0xff]  ;;  %v19125_v0 = vld [vmem:[#allocation40_spill] sm:$0xff]  ;;  %v19127_v16 = vld [vmem:[#allocation49_spill] sm:$0xff] }
 0x99f   :  { %12655 = vmatpush3.bf16.msra.mxu0 %v19109_v33  ;;  %v19126_v53 = vld [vmem:[#allocation56_spill] sm:$0xff]  ;;  %v19128_v50 = vld [vmem:[#allocation65_spill] sm:$0xff]  ;;  %v19131_v23 = vld [vmem:[#allocation74_spill] sm:$0xff] }
 0x9a0   :  { %12677 = vmatpush3.bf16.msra.mxu1 %v19110_v63  ;;  %12656 = vmatprep.subr.bf16.mxu0 %v19111_v1  ;;  %v19129_v37 = vld [vmem:[#allocation41_spill] sm:$0xff]  ;;  %v19132_v60 = vld [vmem:[#allocation90_spill] sm:$0xff]  ;;  %v19135_v19 = vld [vmem:[#allocation75_spill] sm:$0xff] }
 0x9a1   :  { %12678 = vmatprep.subr.bf16.mxu1 %v19112_v46  ;;  %v19130_v6 = vld [vmem:[#allocation57_spill] sm:$0xff]  ;;  %v19133_v4 = vld [vmem:[#allocation66_spill] sm:$0xff]  ;;  %v19136_v18 = vld [vmem:[#allocation91_spill] sm:$0xff] }
 0x9a2   :  { %v19134_v43 = vld [vmem:[#allocation82_spill] sm:$0xff]  ;;  %v19137_v56 = vld [vmem:[#allocation67_spill] sm:$0xff]  ;;  %v19139_v5 = vld [vmem:[#allocation76_spill] sm:$0xff] }
 0x9a3   :  { %12657 = vmatpush3.bf16.msra.mxu0 %v19113_v52  ;;  %v19138_v47 = vld [vmem:[#allocation83_spill] sm:$0xff]  ;;  %v19140_v30 = vld [vmem:[#allocation92_spill] sm:$0xff]  ;;  %v19143_v44 = vld [vmem:[#allocation77_spill] sm:$0xff] }
 0x9a4   :  { %12679 = vmatpush3.bf16.msra.mxu1 %v19114_v24  ;;  %12658 = vmatprep.subr.bf16.mxu0 %v19115_v41  ;;  %v19141_v13 = vld [vmem:[#allocation68_spill] sm:$0xff]  ;;  %v19144_v36 = vld [vmem:[#allocation93_spill] sm:$0xff]  ;;  %v19147_v2 = vld [vmem:[#allocation78_spill] sm:$0xff] }
 0x9a5   :  { %12680 = vmatprep.subr.bf16.mxu1 %v19116_v34  ;;  %v19142_v7 = vld [vmem:[#allocation84_spill] sm:$0xff]  ;;  %v19145_v58 = vld [vmem:[#allocation69_spill] sm:$0xff]  ;;  %v19148_v42 = vld [vmem:[#allocation94_spill] sm:$0xff] }
 0x9a6   :  { %v19146_v49 = vld [vmem:[#allocation85_spill] sm:$0xff]  ;;  %v19149_v22 = vld [vmem:[#allocation70_spill] sm:$0xff]  ;;  %v19151_v32 = vld [vmem:[#allocation79_spill] sm:$0xff] }
 0x9a7   :  { %12659 = vmatpush3.bf16.msra.mxu0 %v19117_v27  ;;  %v19150_v12 = vld [vmem:[#allocation86_spill] sm:$0xff]  ;;  %v19152_v38 = vld [vmem:[#allocation95_spill] sm:$0xff]  ;;  %v19155_v39 = vld [vmem:[#allocation80_spill] sm:$0xff] }
 0x9a8   :  { %12681 = vmatpush3.bf16.msra.mxu1 %v19118_v54  ;;  %12660 = vmatprep.subr.bf16.mxu0 %v19119_v15  ;;  %v19153_v51 = vld [vmem:[#allocation71_spill] sm:$0xff]  ;;  %v19156_v29 = vld [vmem:[#allocation96_spill] sm:$0xff]  ;;  %v19159_v17 = vld [vmem:[#allocation81_spill] sm:$0xff] }
 0x9a9   :  { %12682 = vmatprep.subr.bf16.mxu1 %v19120_v9  ;;  %v19154_v40 = vld [vmem:[#allocation87_spill] sm:$0xff]  ;;  %v19157_v35 = vld [vmem:[#allocation72_spill] sm:$0xff]  ;;  %v19160_v10 = vld [vmem:[#allocation97_spill] sm:$0xff] }
 0x9aa   :  { %v19158_v55 = vld [vmem:[#allocation88_spill] sm:$0xff]  ;;  %v19161_v21 = vld [vmem:[#allocation73_spill] sm:$0xff] }
 0x9ab   :  { %12661 = vmatpush3.bf16.msra.mxu0 %v19121_v31  ;;  %v19162_v62 = vld [vmem:[#allocation89_spill] sm:$0xff] }
 0x9ac   :  { %12683 = vmatpush3.bf16.msra.mxu1 %v19122_v45  ;;  %12662 = vmatprep.subr.bf16.mxu0 %v19123_v48 }
 0x9ad   :  { %12684 = vmatprep.subr.bf16.mxu1 %v19124_v25 }
 0x9af   :  { %12663 = vmatpush3.bf16.msra.mxu0 %v19125_v0 }
 0x9b0   :  { %12685 = vmatpush3.bf16.msra.mxu1 %v19126_v53  ;;  %12664 = vmatprep.subr.bf16.mxu0 %v19127_v16 }
 0x9b1   :  { %12686 = vmatprep.subr.bf16.mxu1 %v19128_v50 }
 0x9b3   :  { %12665 = vmatpush3.bf16.msra.mxu0 %v19129_v37 }
 0x9b4   :  { %12687 = vmatpush3.bf16.msra.mxu1 %v19130_v6  ;;  %12694 = vmatprep.subr.bf16.mxu0 %v19131_v23 }
 0x9b5   :  { %12716 = vmatprep.subr.bf16.mxu1 %v19132_v60 }
 0x9b6   :  { %11577 = vmatmul.mubr.bf16.vlgmr.msra.gmra.mrb[184].mxu0 %v11465_v20 }
 0x9b7   :  { %11617 = vmatmul.mubr.bf16.vlgmr.msra.gmra.mrb[184].mxu1 %v11467_v59  ;;  %12695 = vmatpush3.bf16.msra.mxu0 %v19133_v4 }
 0x9b8   :  { %12717 = vmatpush3.bf16.msra.mxu1 %v19134_v43  ;;  %12696 = vmatprep.subr.bf16.mxu0 %v19135_v19 }
 0x9b9   :  { %12718 = vmatprep.subr.bf16.mxu1 %v19136_v18  ;;  %11656 = vmatprep.mubr.bf16.mxu0 %v11470_v14 }
 0x9ba   :  { %11696 = vmatprep.mubr.bf16.mxu1 %v11472_v3 }
 0x9bb   :  { %12697 = vmatpush3.bf16.msra.mxu0 %v19137_v56 }
 0x9bc   :  { %12719 = vmatpush3.bf16.msra.mxu1 %v19138_v47  ;;  %12698 = vmatprep.subr.bf16.mxu0 %v19139_v5 }
 0x9bd   :  { %12720 = vmatprep.subr.bf16.mxu1 %v19140_v30 }
 0x9bf   :  { %12699 = vmatpush3.bf16.msra.mxu0 %v19141_v13 }
 0x9c0   :  { %12721 = vmatpush3.bf16.msra.mxu1 %v19142_v7  ;;  %12700 = vmatprep.subr.bf16.mxu0 %v19143_v44 }
 0x9c1   :  { %12722 = vmatprep.subr.bf16.mxu1 %v19144_v36 }
 0x9c3   :  { %12701 = vmatpush3.bf16.msra.mxu0 %v19145_v58 }
 0x9c4   :  { %12723 = vmatpush3.bf16.msra.mxu1 %v19146_v49  ;;  %12702 = vmatprep.subr.bf16.mxu0 %v19147_v2 }
 0x9c5   :  { %12724 = vmatprep.subr.bf16.mxu1 %v19148_v42 }
 0x9c7   :  { %12703 = vmatpush3.bf16.msra.mxu0 %v19149_v22 }
 0x9c8   :  { %12725 = vmatpush3.bf16.msra.mxu1 %v19150_v12  ;;  %12704 = vmatprep.subr.bf16.mxu0 %v19151_v32 }
 0x9c9   :  { %12726 = vmatprep.subr.bf16.mxu1 %v19152_v38 }
 0x9cb   :  { %12705 = vmatpush3.bf16.msra.mxu0 %v19153_v51 }
 0x9cc   :  { %12727 = vmatpush3.bf16.msra.mxu1 %v19154_v40  ;;  %12706 = vmatprep.subr.bf16.mxu0 %v19155_v39 }
 0x9cd   :  { %12728 = vmatprep.subr.bf16.mxu1 %v19156_v29 }
 0x9cf   :  { %12707 = vmatpush3.bf16.msra.mxu0 %v19157_v35 }
 0x9d0   :  { %12729 = vmatpush3.bf16.msra.mxu1 %v19158_v55  ;;  %12708 = vmatprep.subr.bf16.mxu0 %v19159_v17 }
 0x9d1   :  { %12730 = vmatprep.subr.bf16.mxu1 %v19160_v10 }
 0x9d3   :  { %12709 = vmatpush3.bf16.msra.mxu0 %v19161_v21 }
 0x9d4   :  { %12731 = vmatpush3.bf16.msra.mxu1 %v19162_v62 }
 0x9d6   :  { %11657 = vmatmul.mubr.bf16.vlgmr.msra.gmra.mrb[188].mxu0 %v11469_v61 }
 0x9d7   :  { %11697 = vmatmul.mubr.bf16.vlgmr.msra.gmra.mrb[188].mxu1 %v11471_v28 }
 0x9d8   :  { %12995 = shalt.err (!%p12992_p3)
}
 0x9d9   :  { %s12996_s28 = scalar_lea.hbm %s17882_s9, 256 }
 0x9da   :  { %p12997_p4 = scmp.ne.s32.totalorder %s17882_s9, %s12996_s28  ;;  %p13000_p5 = scmp.lt.u32.totalorder %s12996_s28, %s17882_s9 }
 0x9dc   :  { %p13002_p7 = pnand %p13000_p5, %p12997_p4 }
 0x9de   :  { %13005 = shalt.err (!%p13002_p7)
}
 0x9df   :  { %11724 = dma.vmem_to_hbm [thread:$0]  %s11722_s23, 256, %s17882_s9, [#allocation9]   ;;  %v11930_v26 = vld [vmem:[%s17878_s5] ss:$0 sm:$0xff] }
 0x9e0   :  { %s13056_s5 = smov [#allocation6]  }
 0x9e1   :  { %s11711_s9 = sshll.u32 %s13056_s5, 4  ;;  %s11712_s9 = int_to_ptr.vmem [resolvable:$true] %s11711_s9 }
 0x9e2   :  { %s13006_s30 = scalar_lea.vmem %s11712_s9, 32  ;;  %p13011_p8 = scmp.lt.s32.totalorder %s11712_s9, %s11712_s9 }
 0x9e3   :  { %p13007_p2 = scmp.ne.s32.totalorder %s11712_s9, %s13006_s30  ;;  %p13012_p9 = scmp.lt.s32.totalorder %s13006_s30, %s13006_s30 }
 0x9e5   :  { %p13013_p10 = por %p13012_p9, %p13011_p8 }
 0x9e7   :  { %p13014_p11 = pnand %p13013_p10, %p13007_p2 }
 0xa89   :  { %v12666_v11 = vpop.f32.mrb[184].mxu0 }
 0xa8a   :  { %v12688_v57 = vpop.f32.mrb[184].mxu1  ;;  %v12667_v8 = vpop.f32.mrb[185].mxu0 }
 0xa8b   :  { %v12689_v33 = vpop.f32.mrb[185].mxu1  ;;  %v12668_v63 = vadd.f32 %v12667_v8, %v12666_v11  ;;  %v12669_v46 = vpop.f32.mrb[186].mxu0 }
 0xa8c   :  { %v12690_v1 = vadd.f32 %v12689_v33, %v12688_v57  ;;  %v12691_v52 = vpop.f32.mrb[186].mxu1  ;;  %v12670_v24 = vpop.f32.mrb[187].mxu0 }
 0xa8d   :  { %v12692_v41 = vpop.f32.mrb[187].mxu1  ;;  %v11579_v34 = vadd.f32 %v12668_v63, %v11930_v26 }
 0xa8f   :  { %v11619_v27 = vadd.f32 %v12690_v1, %v11579_v34 }
 0xaa9   :  { %v12710_v54 = vpop.f32.mrb[188].mxu0 }
 0xaaa   :  { %v12732_v15 = vpop.f32.mrb[188].mxu1  ;;  %v12711_v9 = vpop.f32.mrb[189].mxu0 }
 0xaab   :  { %v12733_v31 = vpop.f32.mrb[189].mxu1  ;;  %v12712_v45 = vadd.f32 %v12711_v9, %v12710_v54  ;;  %v12713_v25 = vpop.f32.mrb[190].mxu0 }
 0xaac   :  { %v12734_v48 = vadd.f32 %v12733_v31, %v12732_v15  ;;  %v12735_v0 = vpop.f32.mrb[190].mxu1  ;;  %v12714_v53 = vpop.f32.mrb[191].mxu0 }
 0xaad   :  { %v12736_v16 = vpop.f32.mrb[191].mxu1  ;;  %v11659_v50 = vadd.f32 %v12712_v45, %v11619_v27 }
 0xaaf   :  { %v11699_v20 = vadd.f32 %v12734_v48, %v11659_v50 }
 0xab1   :  { %11704 = vst [vmem:[#allocation6] sm:$0x3] %v11699_v20 }
 0xab2   :  { %13017 = shalt.err (!%p13014_p11)
}
 0xab3   :  { %s13018_s14 = scalar_lea.hbm %s17881_s8, 32 }
 0xab4   :  { %p13019_p12 = scmp.ne.s32.totalorder %s17881_s8, %s13018_s14  ;;  %p13022_p6 = scmp.lt.u32.totalorder %s13018_s14, %s17881_s8 }
 0xab6   :  { %p13024_p13 = pnand %p13022_p6, %p13019_p12 }
 0xab8   :  { %13027 = shalt.err (!%p13024_p13)
}
 0xab9   :  { %11714 = dma.vmem_to_hbm [thread:$0]  %s11712_s9, 32, %s17881_s8, [#allocation7]  }
 0xaba   :  { %13042 = dma.done.wait [#allocation7], 32  }
 0xabb   :  { %13043 = vsyncadd [#allocation7], 4294967264 }
 0xabc   :  { %13044 = dma.done.wait [#allocation9], 256  }
 0xabd   :  { %13045 = vsyncadd [#allocation9], 4294967040 }
 0xabe   :  { %11731 = vsyncpa [#allocation7], 1 }
 0xabf   :  { %11732 = vsyncpa [#allocation9], 1 }
 0xac0   :  { %11733 = vsyncmov [#allocation4] }
 0xac3   :  { %s11734_s2 = vpop.sfrf %11733 }
 0xac4   :  { %p11931_p0 = scmp.ne.s32.totalorder %s11734_s2, 0 }
 0xac6   :  { %11738 = shalt.err (%p11931_p0)  }
 0xac7   :  { %11740 = vsyncmov [#allocation4 + $0x1] }
 0xaca   :  { %s11741_s20 = vpop.sfrf %11740 }
 0xacb   :  { %p11932_p1 = scmp.ne.s32.totalorder %s11741_s20, 0 }
 0xacd   :  { %11745 = shalt.err (%p11932_p1)  }
 0xace   :  { %11747 = vsyncmov [#allocation4 + $0x2] }
 0xad1   :  { %s11748_s3 = vpop.sfrf %11747 }
 0xad2   :  { %p11933_p3 = scmp.ne.s32.totalorder %s11748_s3, 0 }
 0xad4   :  { %11752 = shalt.err (%p11933_p3)  }
 0xad5   :  { %11754 = vsyncmov [#allocation4 + $0x3] }
 0xad8   :  { %s11755_s8 = vpop.sfrf %11754 }
 0xad9   :  { %p11934_p4 = scmp.ne.s32.totalorder %s11755_s8, 0 }
 0xadb   :  { %11759 = shalt.err (%p11934_p4)  }
 0xadc   :  { %11761 = vsyncmov [#allocation4 + $0x4] }
 0xadf   :  { %s11762_s17 = vpop.sfrf %11761 }
 0xae0   :  { %p11935_p5 = scmp.ne.s32.totalorder %s11762_s17, 0 }
 0xae2   :  { %11766 = shalt.err (%p11935_p5)  }
 0xae3   :  { %11768 = vsyncmov [#allocation4 + $0x5] }
 0xae6   :  { %s11769_s4 = vpop.sfrf %11768 }
 0xae7   :  { %p11936_p7 = scmp.ne.s32.totalorder %s11769_s4, 0 }
 0xae9   :  { %11773 = shalt.err (%p11936_p7)  }
 0xaea   :  { %11775 = vsyncmov [#allocation4 + $0x6] }
 0xaed   :  { %s11776_s23 = vpop.sfrf %11775 }
 0xaee   :  { %p11937_p2 = scmp.ne.s32.totalorder %s11776_s23, 0 }
 0xaf0   :  { %11780 = shalt.err (%p11937_p2)  }

</bundles_post_ra>
